<compile_context>
chip_gen: v6e
topology: v6e:2x2x1
jax: 0.10.0
libtpu: 0.0.40
codegen_flags: <defaults>
</compile_context>

<pallas_src>
import numpy as np
import jax
import jax.numpy as jnp
from jax import lax
from jax.experimental import pallas as pl
from jax.experimental.pallas import tpu as pltpu

# ---------------- configuration ----------------
B = 2
H_IN, W_IN = 64, 64
C1, C2, C3, C4 = 32, 64, 128, 256
S1, S2, S3 = 16, 8, 4
NUM_CLASS = 16
FEATURE_DIM = C4 + C4 + C3 + C2 + C1       # 736
BN_EPS = 1e-5
HW1, HW2, HW3 = S1 * S1, S2 * S2, S3 * S3  # 256, 64, 16


# ---------------- precomputed spatial operators (host-side, exact) ----------------
def _up1d_bilinear(n):
    # nn.Upsample(scale_factor=2, mode='bilinear', align_corners=False), exact
    m = np.zeros((2 * n, n), np.float32)
    for i in range(n):
        m[2 * i, max(i - 1, 0)] += 0.25
        m[2 * i, i] += 0.75
        m[2 * i + 1, i] += 0.75
        m[2 * i + 1, min(i + 1, n - 1)] += 0.25
    return m


def _up1d_nearest(n):
    # F.upsample(scale_factor=2) default mode='nearest'
    m = np.zeros((2 * n, n), np.float32)
    for j in range(2 * n):
        m[j, j // 2] = 1.0
    return m


def _shift_mats(hh, ww):
    # 9 per-tap 0/1 shift matrices for a 3x3 conv with padding=1 on a row-major
    # flattened (hh, ww) grid: (x @ S_tap)[c, p] = x[c, neighbor_tap(p)] or 0.
    hw = hh * ww
    mats = np.zeros((9, hw, hw), np.float32)
    for ky in range(3):
        for kx in range(3):
            t = ky * 3 + kx
            dy, dx = ky - 1, kx - 1
            for h in range(hh):
                hs = h + dy
                if not (0 <= hs < hh):
                    continue
                for w in range(ww):
                    ws = w + dx
                    if 0 <= ws < ww:
                        mats[t, hs * ww + ws, h * ww + w] = 1.0
    return mats


# ---------------- fused head kernel ----------------
def _head_kernel(*refs):
    (f1_ref, f2_ref, f3_ref, f4_ref,
     h1w, h1b, h2w, h2b, h3w, h3b,
     up4w, up4b, up3w, up3b, up2w, up2b,
     u43, u32,
     cu1w, cu1b, cu2w, cu2b, cu3w, cu3b,
     s1m, s2m, s3m,
     attw, attb, n43, n32,
     bng, bnb, bnm, bnv, clsw,
     pool_ref, bn_ref, cls_ref) = refs

    def mm(a, b):  # bf16 MXU operands, f32 accumulation
        return jnp.dot(a.astype(jnp.bfloat16), b.astype(jnp.bfloat16),
                       preferred_element_type=jnp.float32)

    f1 = f1_ref[0]            # (C1, 256) bf16
    f2 = f2_ref[0]            # (C2,  64)
    f3 = f3_ref[0]            # (C3,  16)
    f4 = f4_ref[0]            # (C4,  16)

    # lateral 1x1 convs
    f1h = mm(h1w[...], f1) + h1b[...]
    f2h = mm(h2w[...], f2) + h2b[...]
    f3h = mm(h3w[...], f3) + h3b[...]

    # top-down FPN path (bilinear x2 upsample = right-matmul with operator)
    up4 = mm(up4w[...], f4) + up4b[...] + f3h            # (C3, 16)
    up4x2 = mm(up4, u43[...])                            # (C3, 64)
    up3 = mm(up3w[...], up4x2) + up3b[...] + f2h         # (C2, 64)
    up3x2 = mm(up3, u32[...])                            # (C2, 256)
    up2 = mm(up2w[...], up3x2) + up2b[...] + f1h         # (C1, 256)

    # 3x3 convs (padding=1): sum over the 9 taps of W_tap @ x @ ShiftMat_tap
    def conv3x3(x, w_ref, b_ref, s_ref):
        acc = mm(mm(w_ref[0], x), s_ref[0])
        for t in range(1, 9):
            acc = acc + mm(mm(w_ref[t], x), s_ref[t])
        return acc + b_ref[...]

    ff1 = conv3x3(up2, cu1w, cu1b, s1m)                  # (C1, 256)
    ff2 = conv3x3(up3, cu2w, cu2b, s2m)                  # (C2, 64)
    ff3 = conv3x3(up4, cu3w, cu3b, s3m)                  # (C3, 16)

    # spatial attention mask (1x1 conv + sigmoid), row-replicated x8 so all
    # matmuls keep M >= 8; nearest x2 upsamples are 0/1 operator matmuls.
    m4 = jax.nn.sigmoid(mm(attw[...], f4) + attb[...])   # (8, 16)
    m2 = mm(m4, n43[...])                                # (8, 64)
    m1 = mm(m2, n32[...])                                # (8, 256)
    mask4 = m4[0:1, :]
    mask2 = m2[0:1, :]
    mask1 = m1[0:1, :]

    # attention-masked adaptive average pooling (lane reductions, f32)
    f4f = f4.astype(jnp.float32)
    feat4_avg = jnp.sum(f4f, axis=1, keepdims=True) * (1.0 / HW3)          # (C4,1)
    feat4_att = jnp.sum(f4f * mask4, axis=1, keepdims=True) * (1.0 / HW3)  # (C4,1)
    feat3_att = jnp.sum(ff3 * mask4, axis=1, keepdims=True) * (1.0 / HW3)  # (C3,1)
    feat2_att = jnp.sum(ff2 * mask2, axis=1, keepdims=True) * (1.0 / HW2)  # (C2,1)
    feat1_att = jnp.sum(ff1 * mask1, axis=1, keepdims=True) * (1.0 / HW1)  # (C1,1)

    pool = jnp.concatenate(
        [feat4_avg, feat4_att, feat3_att, feat2_att, feat1_att], axis=0)   # (736,1)

    # eval-mode BatchNorm1d (running stats) + bias-free classifier
    inv = lax.rsqrt(bnv[...] + BN_EPS)
    bn = (pool - bnm[...]) * inv * bng[...] + bnb[...]                     # (736,1)
    cls8 = mm(clsw[...], jnp.broadcast_to(bn, (FEATURE_DIM, 8)))           # (16, 8)

    pool_ref[0] = pool
    bn_ref[0] = bn
    cls_ref[0] = cls8[:, 0:1]


# ---------------- spec helpers ----------------
def _shared_spec(a):
    nd = a.ndim
    return pl.BlockSpec(a.shape, lambda i, _n=nd: (0,) * _n)


def _batched_spec(a):
    nd = a.ndim
    return pl.BlockSpec((1,) + a.shape[1:], lambda i, _n=nd: (i,) + (0,) * (_n - 1))


# ---------------- backbone stand-in ----------------
# TODO(synk): resnet50_ibn_a backbone is an external pretrained module with no clean
# in-script Pallas equivalent; replaced by a deterministic pooled random-projection
# stand-in producing the same-shaped feature pyramid (feat1..feat4, last_stride=1).
def _backbone_standin(x, params):
    def pool_to(t, s):
        bsz, h, w, c = t.shape
        f = h // s
        return t.reshape(bsz, s, f, s, f, c).mean(axis=(2, 4))
    feat1 = jnp.tanh(pool_to(x, S1) @ params["proj1"])   # (B, 16, 16, C1)
    feat2 = jnp.tanh(pool_to(x, S2) @ params["proj2"])   # (B,  8,  8, C2)
    feat3 = jnp.tanh(pool_to(x, S3) @ params["proj3"])   # (B,  4,  4, C3)
    feat4 = jnp.tanh(pool_to(x, S3) @ params["proj4"])   # (B,  4,  4, C4)
    return feat1, feat2, feat3, feat4


# ---------------- forward (eval mode) ----------------
def rgb_to_infrared_forward(params, x, ids, cam_ids):
    del ids  # only consumed by the (training-only) loss branch
    head = params["head"]

    # sub = (cam_ids == 3) + (cam_ids == 6); x[sub == 0] *= w_RGB   (plain XLA)
    sub = (cam_ids == 3) | (cam_ids == 6)
    scale = jnp.where(sub[:, None], 1.0, params["w_rgb"][None, :]).astype(jnp.float32)
    x = x * scale[:, None, None, :]

    feat1, feat2, feat3, feat4 = _backbone_standin(x, params)   # NHWC

    def to_cs(f):   # NHWC -> (B, C, H*W) bf16 (channels on sublanes, space on lanes)
        b, h, w, c = f.shape
        return jnp.transpose(f, (0, 3, 1, 2)).reshape(b, c, h * w).astype(jnp.bfloat16)

    f1, f2, f3, f4 = to_cs(feat1), to_cs(feat2), to_cs(feat3), to_cs(feat4)

    args = [
        f1, f2, f3, f4,
        head["h1_wt"], head["h1_b"], head["h2_wt"], head["h2_b"],
        head["h3_wt"], head["h3_b"],
        head["up4_wt"], head["up4_b"], head["up3_wt"], head["up3_b"],
        head["up2_wt"], head["up2_b"],
        head["u43"], head["u32"],
        head["cu1_wt"], head["cu1_b"], head["cu2_wt"], head["cu2_b"],
        head["cu3_wt"], head["cu3_b"],
        head["s1"], head["s2"], head["s3"],
        head["att_wt"], head["att_b"], head["n43"], head["n32"],
        head["bn_gamma"], head["bn_beta"], head["bn_mean"], head["bn_var"],
        head["cls_wt"],
    ]
    in_specs = [_batched_spec(a) for a in args[:4]] + [_shared_spec(a) for a in args[4:]]

    out_shape = (
        jax.ShapeDtypeStruct((B, FEATURE_DIM, 1), jnp.float32),   # feat_pool
        jax.ShapeDtypeStruct((B, FEATURE_DIM, 1), jnp.float32),   # bn_feat
        jax.ShapeDtypeStruct((B, NUM_CLASS, 1), jnp.float32),     # cls
    )
    out_specs = (
        pl.BlockSpec((1, FEATURE_DIM, 1), lambda i: (i, 0, 0)),
        pl.BlockSpec((1, FEATURE_DIM, 1), lambda i: (i, 0, 0)),
        pl.BlockSpec((1, NUM_CLASS, 1), lambda i: (i, 0, 0)),
    )

    # advisory cost hint for XLA scheduling
    in_bytes = sum(int(np.prod(a.shape)) * a.dtype.itemsize for a in args)
    out_bytes = sum(int(np.prod(o.shape)) * 4 for o in out_shape)
    macs = (C1 * C1 * HW1 + C2 * C2 * HW2 + C3 * C3 * HW3
            + C3 * C4 * HW3 + C3 * HW3 * HW2 + C2 * C3 * HW2
            + C2 * HW2 * HW1 + C1 * C2 * HW1
            + 9 * (C1 * C1 * HW1 + C1 * HW1 * HW1)
            + 9 * (C2 * C2 * HW2 + C2 * HW2 * HW2)
            + 9 * (C3 * C3 * HW3 + C3 * HW3 * HW3)
            + 8 * C4 * HW3 + 8 * HW3 * HW2 + 8 * HW2 * HW1
            + NUM_CLASS * FEATURE_DIM * 8)
    cost = pl.CostEstimate(flops=2 * macs * B, transcendentals=8 * HW3 * B,
                           bytes_accessed=in_bytes + out_bytes)

    pool_out, bn_out, cls_out = pl.pallas_call(
        _head_kernel,
        out_shape=out_shape,
        grid=(B,),
        in_specs=in_specs,
        out_specs=out_specs,
        compiler_params=pltpu.CompilerParams(dimension_semantics=("parallel",)),
        cost_estimate=cost,
    )(*args)

    feat_pool = pool_out.reshape(B, FEATURE_DIM)
    bn_feat = bn_out.reshape(B, FEATURE_DIM)
    cls = cls_out.reshape(B, NUM_CLASS)
    # (torch forward debug-prints bn_feat[0, 4096:]; FEATURE_DIM < 4096 here)
    return bn_feat, cls, feat_pool


# ---------------- kernel-ready parameter preparation ----------------
def _prepare_head(p):
    bf16, f32 = jnp.bfloat16, jnp.float32
    col = lambda v: jnp.asarray(v, f32).reshape(-1, 1)

    up4x = _up1d_bilinear(S3)   # 4 -> 8
    up8x = _up1d_bilinear(S2)   # 8 -> 16
    nn4x = _up1d_nearest(S3)
    nn8x = _up1d_nearest(S2)

    return {
        "h1_wt": jnp.asarray(p["h1_w"].T, bf16), "h1_b": col(p["h1_b"]),
        "h2_wt": jnp.asarray(p["h2_w"].T, bf16), "h2_b": col(p["h2_b"]),
        "h3_wt": jnp.asarray(p["h3_w"].T, bf16), "h3_b": col(p["h3_b"]),
        "up4_wt": jnp.asarray(p["up4_w"].T, bf16), "up4_b": col(p["up4_b"]),
        "up3_wt": jnp.asarray(p["up3_w"].T, bf16), "up3_b": col(p["up3_b"]),
        "up2_wt": jnp.asarray(p["up2_w"].T, bf16), "up2_b": col(p["up2_b"]),
        # bilinear / nearest upsample operators, transposed for x @ U
        "u43": jnp.asarray(np.kron(up4x, up4x).T, bf16),   # (16, 64)
        "u32": jnp.asarray(np.kron(up8x, up8x).T, bf16),   # (64, 256)
        "n43": jnp.asarray(np.kron(nn4x, nn4x).T, bf16),   # (16, 64)
        "n32": jnp.asarray(np.kron(nn8x, nn8x).T, bf16),   # (64, 256)
        # 3x3 conv taps (9, Cout, Cin) + per-tap spatial shift matrices
        "cu1_wt": jnp.asarray(
            jnp.transpose(p["cu1_w"].reshape(9, C1, C1), (0, 2, 1)), bf16),
        "cu1_b": col(p["cu1_b"]),
        "cu2_wt": jnp.asarray(
            jnp.transpose(p["cu2_w"].reshape(9, C2, C2), (0, 2, 1)), bf16),
        "cu2_b": col(p["cu2_b"]),
        "cu3_wt": jnp.asarray(
            jnp.transpose(p["cu3_w"].reshape(9, C3, C3), (0, 2, 1)), bf16),
        "cu3_b": col(p["cu3_b"]),
        "s1": jnp.asarray(_shift_mats(S1, S1), bf16),
        "s2": jnp.asarray(_shift_mats(S2, S2), bf16),
        "s3": jnp.asarray(_shift_mats(S3, S3), bf16),
        # spatial attention 1x1 conv, row-replicated to 8 rows (keeps M >= 8)
        "att_wt": jnp.asarray(jnp.tile(p["att_w"].T, (8, 1)), bf16),   # (8, C4)
        "att_b": jnp.asarray(p["att_b"], f32).reshape(1, 1),
        "bn_gamma": col(p["bn_gamma"]), "bn_beta": col(p["bn_beta"]),
        "bn_mean": col(p["bn_mean"]), "bn_var": col(p["bn_var"]),
        "cls_wt": jnp.asarray(p["cls_w"].T, bf16),                     # (16, 736)
    }


# ---------------- deterministic parameter init ----------------
def init_params(key):
    ks = jax.random.split(key, 40)
    nrm = lambda k, shape, s=0.05: jax.random.normal(k, shape, jnp.float32) * s
    p = {}
    p["w_rgb"] = jax.random.normal(ks[0], (3,), jnp.float32)   # (1,3,1,1) in torch
    p["proj1"] = nrm(ks[1], (3, C1), 0.5)
    p["proj2"] = nrm(ks[2], (3, C2), 0.5)
    p["proj3"] = nrm(ks[3], (3, C3), 0.5)
    p["proj4"] = nrm(ks[4], (3, C4), 0.5)
    p["h1_w"], p["h1_b"] = nrm(ks[5], (C1, C1)), nrm(ks[6], (C1,))
    p["h2_w"], p["h2_b"] = nrm(ks[7], (C2, C2)), nrm(ks[8], (C2,))
    p["h3_w"], p["h3_b"] = nrm(ks[9], (C3, C3)), nrm(ks[10], (C3,))
    p["up4_w"], p["up4_b"] = nrm(ks[11], (C4, C3)), nrm(ks[12], (C3,))
    p["up3_w"], p["up3_b"] = nrm(ks[13], (C3, C2)), nrm(ks[14], (C2,))
    p["up2_w"], p["up2_b"] = nrm(ks[15], (C2, C1)), nrm(ks[16], (C1,))
    p["cu1_w"], p["cu1_b"] = nrm(ks[17], (3, 3, C1, C1)), nrm(ks[18], (C1,))
    p["cu2_w"], p["cu2_b"] = nrm(ks[19], (3, 3, C2, C2)), nrm(ks[20], (C2,))
    p["cu3_w"], p["cu3_b"] = nrm(ks[21], (3, 3, C3, C3)), nrm(ks[22], (C3,))
    p["att_w"], p["att_b"] = nrm(ks[23], (C4, 1)), nrm(ks[24], (1,))
    p["bn_gamma"] = 1.0 + nrm(ks[25], (FEATURE_DIM,), 0.1)
    p["bn_beta"] = nrm(ks[26], (FEATURE_DIM,), 0.1)
    p["bn_mean"] = nrm(ks[27], (FEATURE_DIM,), 0.1)
    p["bn_var"] = 1.0 + jax.random.uniform(ks[28], (FEATURE_DIM,), jnp.float32,
                                           minval=-0.3, maxval=0.3)
    p["cls_w"] = nrm(ks[29], (FEATURE_DIM, NUM_CLASS))
    p["head"] = _prepare_head(p)
    return p


if __name__ == "__main__":
    key = jax.random.PRNGKey(0)
    kp, kx = jax.random.split(key)
    params = init_params(kp)

    # x corresponds to torch NCHW (2, 3, 64, 64) -> NHWC here
    x = jax.random.normal(kx, (B, H_IN, W_IN, 3), jnp.float32)
    ids = jnp.arange(B, dtype=jnp.int32)
    cam_ids = jnp.array([3, 1], dtype=jnp.int32)   # sample 0 IR cam, sample 1 gets w_RGB

    fwd = jax.jit(rgb_to_infrared_forward)
    bn_feat, cls, feat_pool = fwd(params, x, ids, cam_ids)
    jax.block_until_ready((bn_feat, cls, feat_pool))

    assert bn_feat.shape == (B, FEATURE_DIM)
    assert cls.shape == (B, NUM_CLASS)
    assert feat_pool.shape == (B, FEATURE_DIM)
    assert bool(jnp.all(jnp.isfinite(bn_feat)))
    assert bool(jnp.all(jnp.isfinite(cls)))
    print("KERNEL_OK")
</pallas_src>

<mosaic_0001>
module attributes {stable_mosaic.version = 11 : i64} {
  func.func @_head_kernel(%arg0: i32, %arg1: memref<1x32x256xbf16, #tpu.memory_space<vmem>>, %arg2: memref<1x64x64xbf16, #tpu.memory_space<vmem>>, %arg3: memref<1x128x16xbf16, #tpu.memory_space<vmem>>, %arg4: memref<1x256x16xbf16, #tpu.memory_space<vmem>>, %arg5: memref<32x32xbf16, #tpu.memory_space<vmem>>, %arg6: memref<32x1xf32, #tpu.memory_space<vmem>>, %arg7: memref<64x64xbf16, #tpu.memory_space<vmem>>, %arg8: memref<64x1xf32, #tpu.memory_space<vmem>>, %arg9: memref<128x128xbf16, #tpu.memory_space<vmem>>, %arg10: memref<128x1xf32, #tpu.memory_space<vmem>>, %arg11: memref<128x256xbf16, #tpu.memory_space<vmem>>, %arg12: memref<128x1xf32, #tpu.memory_space<vmem>>, %arg13: memref<64x128xbf16, #tpu.memory_space<vmem>>, %arg14: memref<64x1xf32, #tpu.memory_space<vmem>>, %arg15: memref<32x64xbf16, #tpu.memory_space<vmem>>, %arg16: memref<32x1xf32, #tpu.memory_space<vmem>>, %arg17: memref<16x64xbf16, #tpu.memory_space<vmem>>, %arg18: memref<64x256xbf16, #tpu.memory_space<vmem>>, %arg19: memref<9x32x32xbf16, #tpu.memory_space<vmem>>, %arg20: memref<32x1xf32, #tpu.memory_space<vmem>>, %arg21: memref<9x64x64xbf16, #tpu.memory_space<vmem>>, %arg22: memref<64x1xf32, #tpu.memory_space<vmem>>, %arg23: memref<9x128x128xbf16, #tpu.memory_space<vmem>>, %arg24: memref<128x1xf32, #tpu.memory_space<vmem>>, %arg25: memref<9x256x256xbf16, #tpu.memory_space<vmem>>, %arg26: memref<9x64x64xbf16, #tpu.memory_space<vmem>>, %arg27: memref<9x16x16xbf16, #tpu.memory_space<vmem>>, %arg28: memref<8x256xbf16, #tpu.memory_space<vmem>>, %arg29: memref<1x1xf32, #tpu.memory_space<vmem>>, %arg30: memref<16x64xbf16, #tpu.memory_space<vmem>>, %arg31: memref<64x256xbf16, #tpu.memory_space<vmem>>, %arg32: memref<736x1xf32, #tpu.memory_space<vmem>>, %arg33: memref<736x1xf32, #tpu.memory_space<vmem>>, %arg34: memref<736x1xf32, #tpu.memory_space<vmem>>, %arg35: memref<736x1xf32, #tpu.memory_space<vmem>>, %arg36: memref<16x736xbf16, #tpu.memory_space<vmem>>, %arg37: memref<1x736x1xf32, #tpu.memory_space<vmem>>, %arg38: memref<1x736x1xf32, #tpu.memory_space<vmem>>, %arg39: memref<1x16x1xf32, #tpu.memory_space<vmem>>) attributes {dimension_semantics = [#tpu.dimension_semantics<parallel>], iteration_bounds = array<i64: 2>, scalar_prefetch = 0 : i64, scratch_operands = 0 : i64, tpu.core_type = #tpu.core_type<tc>, window_params = [{transform_indices = @transform_0, window_bounds = array<i64: 1, 32, 256>}, {transform_indices = @transform_1, window_bounds = array<i64: 1, 64, 64>}, {transform_indices = @transform_2, window_bounds = array<i64: 1, 128, 16>}, {transform_indices = @transform_3, window_bounds = array<i64: 1, 256, 16>}, {pipeline_mode = #tpu.pipeline_mode<synchronous>, transform_indices = @transform_4, window_bounds = array<i64: 32, 32>}, {pipeline_mode = #tpu.pipeline_mode<synchronous>, transform_indices = @transform_5, window_bounds = array<i64: 32, 1>}, {pipeline_mode = #tpu.pipeline_mode<synchronous>, transform_indices = @transform_6, window_bounds = array<i64: 64, 64>}, {pipeline_mode = #tpu.pipeline_mode<synchronous>, transform_indices = @transform_7, window_bounds = array<i64: 64, 1>}, {pipeline_mode = #tpu.pipeline_mode<synchronous>, transform_indices = @transform_8, window_bounds = array<i64: 128, 128>}, {pipeline_mode = #tpu.pipeline_mode<synchronous>, transform_indices = @transform_9, window_bounds = array<i64: 128, 1>}, {pipeline_mode = #tpu.pipeline_mode<synchronous>, transform_indices = @transform_10, window_bounds = array<i64: 128, 256>}, {pipeline_mode = #tpu.pipeline_mode<synchronous>, transform_indices = @transform_11, window_bounds = array<i64: 128, 1>}, {pipeline_mode = #tpu.pipeline_mode<synchronous>, transform_indices = @transform_12, window_bounds = array<i64: 64, 128>}, {pipeline_mode = #tpu.pipeline_mode<synchronous>, transform_indices = @transform_13, window_bounds = array<i64: 64, 1>}, {pipeline_mode = #tpu.pipeline_mode<synchronous>, transform_indices = @transform_14, window_bounds = array<i64: 32, 64>}, {pipeline_mode = #tpu.pipeline_mode<synchronous>, transform_indices = @transform_15, window_bounds = array<i64: 32, 1>}, {pipeline_mode = #tpu.pipeline_mode<synchronous>, transform_indices = @transform_16, window_bounds = array<i64: 16, 64>}, {pipeline_mode = #tpu.pipeline_mode<synchronous>, transform_indices = @transform_17, window_bounds = array<i64: 64, 256>}, {pipeline_mode = #tpu.pipeline_mode<synchronous>, transform_indices = @transform_18, window_bounds = array<i64: 9, 32, 32>}, {pipeline_mode = #tpu.pipeline_mode<synchronous>, transform_indices = @transform_19, window_bounds = array<i64: 32, 1>}, {pipeline_mode = #tpu.pipeline_mode<synchronous>, transform_indices = @transform_20, window_bounds = array<i64: 9, 64, 64>}, {pipeline_mode = #tpu.pipeline_mode<synchronous>, transform_indices = @transform_21, window_bounds = array<i64: 64, 1>}, {pipeline_mode = #tpu.pipeline_mode<synchronous>, transform_indices = @transform_22, window_bounds = array<i64: 9, 128, 128>}, {pipeline_mode = #tpu.pipeline_mode<synchronous>, transform_indices = @transform_23, window_bounds = array<i64: 128, 1>}, {pipeline_mode = #tpu.pipeline_mode<synchronous>, transform_indices = @transform_24, window_bounds = array<i64: 9, 256, 256>}, {pipeline_mode = #tpu.pipeline_mode<synchronous>, transform_indices = @transform_25, window_bounds = array<i64: 9, 64, 64>}, {pipeline_mode = #tpu.pipeline_mode<synchronous>, transform_indices = @transform_26, window_bounds = array<i64: 9, 16, 16>}, {pipeline_mode = #tpu.pipeline_mode<synchronous>, transform_indices = @transform_27, window_bounds = array<i64: 8, 256>}, {pipeline_mode = #tpu.pipeline_mode<synchronous>, transform_indices = @transform_28, window_bounds = array<i64: 1, 1>}, {pipeline_mode = #tpu.pipeline_mode<synchronous>, transform_indices = @transform_29, window_bounds = array<i64: 16, 64>}, {pipeline_mode = #tpu.pipeline_mode<synchronous>, transform_indices = @transform_30, window_bounds = array<i64: 64, 256>}, {pipeline_mode = #tpu.pipeline_mode<synchronous>, transform_indices = @transform_31, window_bounds = array<i64: 736, 1>}, {pipeline_mode = #tpu.pipeline_mode<synchronous>, transform_indices = @transform_32, window_bounds = array<i64: 736, 1>}, {pipeline_mode = #tpu.pipeline_mode<synchronous>, transform_indices = @transform_33, window_bounds = array<i64: 736, 1>}, {pipeline_mode = #tpu.pipeline_mode<synchronous>, transform_indices = @transform_34, window_bounds = array<i64: 736, 1>}, {pipeline_mode = #tpu.pipeline_mode<synchronous>, transform_indices = @transform_35, window_bounds = array<i64: 16, 736>}, {transform_indices = @transform_36, window_bounds = array<i64: 1, 736, 1>}, {transform_indices = @transform_37, window_bounds = array<i64: 1, 736, 1>}, {transform_indices = @transform_38, window_bounds = array<i64: 1, 16, 1>}]} {
    %c0 = arith.constant 0 : index
    %c0_0 = arith.constant 0 : index
    %c0_1 = arith.constant 0 : index
    %0 = vector.load %arg1[%c0, %c0_0, %c0_1] : memref<1x32x256xbf16, #tpu.memory_space<vmem>>, vector<1x32x256xbf16>
    %1 = vector.shape_cast %0 : vector<1x32x256xbf16> to vector<32x256xbf16>
    %c0_2 = arith.constant 0 : index
    %c0_3 = arith.constant 0 : index
    %c0_4 = arith.constant 0 : index
    %2 = vector.load %arg2[%c0_2, %c0_3, %c0_4] : memref<1x64x64xbf16, #tpu.memory_space<vmem>>, vector<1x64x64xbf16>
    %3 = vector.shape_cast %2 : vector<1x64x64xbf16> to vector<64x64xbf16>
    %c0_5 = arith.constant 0 : index
    %c0_6 = arith.constant 0 : index
    %c0_7 = arith.constant 0 : index
    %4 = vector.load %arg3[%c0_5, %c0_6, %c0_7] : memref<1x128x16xbf16, #tpu.memory_space<vmem>>, vector<1x128x16xbf16>
    %5 = vector.shape_cast %4 : vector<1x128x16xbf16> to vector<128x16xbf16>
    %c0_8 = arith.constant 0 : index
    %c0_9 = arith.constant 0 : index
    %c0_10 = arith.constant 0 : index
    %6 = vector.load %arg4[%c0_8, %c0_9, %c0_10] : memref<1x256x16xbf16, #tpu.memory_space<vmem>>, vector<1x256x16xbf16>
    %7 = vector.shape_cast %6 : vector<1x256x16xbf16> to vector<256x16xbf16>
    %c0_11 = arith.constant 0 : index
    %c0_12 = arith.constant 0 : index
    %8 = vector.load %arg5[%c0_11, %c0_12] : memref<32x32xbf16, #tpu.memory_space<vmem>>, vector<32x32xbf16>
    %cst = arith.constant dense<0.000000e+00> : vector<32x256xf32>
    %9 = tpu.matmul %8, %1, %cst {dimension_numbers = #tpu.dot_dimension_numbers<[1], [0], [0], [1], [0, 0, 1, 1], [], []>} : vector<32x32xbf16>, vector<32x256xbf16>, vector<32x256xf32> -> vector<32x256xf32>
    %c0_13 = arith.constant 0 : index
    %c0_14 = arith.constant 0 : index
    %10 = vector.load %arg6[%c0_13, %c0_14] : memref<32x1xf32, #tpu.memory_space<vmem>>, vector<32x1xf32>
    %11 = vector.broadcast %10 : vector<32x1xf32> to vector<32x256xf32>
    %12 = arith.addf %9, %11 : vector<32x256xf32>
    %c0_15 = arith.constant 0 : index
    %c0_16 = arith.constant 0 : index
    %13 = vector.load %arg7[%c0_15, %c0_16] : memref<64x64xbf16, #tpu.memory_space<vmem>>, vector<64x64xbf16>
    %cst_17 = arith.constant dense<0.000000e+00> : vector<64x64xf32>
    %14 = tpu.matmul %13, %3, %cst_17 {dimension_numbers = #tpu.dot_dimension_numbers<[1], [0], [0], [1], [0, 0, 1, 1], [], []>} : vector<64x64xbf16>, vector<64x64xbf16>, vector<64x64xf32> -> vector<64x64xf32>
    %c0_18 = arith.constant 0 : index
    %c0_19 = arith.constant 0 : index
    %15 = vector.load %arg8[%c0_18, %c0_19] : memref<64x1xf32, #tpu.memory_space<vmem>>, vector<64x1xf32>
    %16 = vector.broadcast %15 : vector<64x1xf32> to vector<64x64xf32>
    %17 = arith.addf %14, %16 : vector<64x64xf32>
    %c0_20 = arith.constant 0 : index
    %c0_21 = arith.constant 0 : index
    %18 = vector.load %arg9[%c0_20, %c0_21] : memref<128x128xbf16, #tpu.memory_space<vmem>>, vector<128x128xbf16>
    %cst_22 = arith.constant dense<0.000000e+00> : vector<128x16xf32>
    %19 = tpu.matmul %18, %5, %cst_22 {dimension_numbers = #tpu.dot_dimension_numbers<[1], [0], [0], [1], [0, 0, 1, 1], [], []>} : vector<128x128xbf16>, vector<128x16xbf16>, vector<128x16xf32> -> vector<128x16xf32>
    %c0_23 = arith.constant 0 : index
    %c0_24 = arith.constant 0 : index
    %20 = vector.load %arg10[%c0_23, %c0_24] : memref<128x1xf32, #tpu.memory_space<vmem>>, vector<128x1xf32>
    %21 = vector.broadcast %20 : vector<128x1xf32> to vector<128x16xf32>
    %22 = arith.addf %19, %21 : vector<128x16xf32>
    %c0_25 = arith.constant 0 : index
    %c0_26 = arith.constant 0 : index
    %23 = vector.load %arg11[%c0_25, %c0_26] : memref<128x256xbf16, #tpu.memory_space<vmem>>, vector<128x256xbf16>
    %cst_27 = arith.constant dense<0.000000e+00> : vector<128x16xf32>
    %24 = tpu.matmul %23, %7, %cst_27 {dimension_numbers = #tpu.dot_dimension_numbers<[1], [0], [0], [1], [0, 0, 1, 1], [], []>} : vector<128x256xbf16>, vector<256x16xbf16>, vector<128x16xf32> -> vector<128x16xf32>
    %c0_28 = arith.constant 0 : index
    %c0_29 = arith.constant 0 : index
    %25 = vector.load %arg12[%c0_28, %c0_29] : memref<128x1xf32, #tpu.memory_space<vmem>>, vector<128x1xf32>
    %26 = vector.broadcast %25 : vector<128x1xf32> to vector<128x16xf32>
    %27 = arith.addf %24, %26 : vector<128x16xf32>
    %28 = arith.addf %27, %22 : vector<128x16xf32>
    %c0_30 = arith.constant 0 : index
    %c0_31 = arith.constant 0 : index
    %29 = vector.load %arg17[%c0_30, %c0_31] : memref<16x64xbf16, #tpu.memory_space<vmem>>, vector<16x64xbf16>
    %30 = arith.truncf %28 : vector<128x16xf32> to vector<128x16xbf16>
    %cst_32 = arith.constant dense<0.000000e+00> : vector<128x64xf32>
    %31 = tpu.matmul %30, %29, %cst_32 {dimension_numbers = #tpu.dot_dimension_numbers<[1], [0], [0], [1], [0, 0, 1, 1], [], []>} : vector<128x16xbf16>, vector<16x64xbf16>, vector<128x64xf32> -> vector<128x64xf32>
    %c0_33 = arith.constant 0 : index
    %c0_34 = arith.constant 0 : index
    %32 = vector.load %arg13[%c0_33, %c0_34] : memref<64x128xbf16, #tpu.memory_space<vmem>>, vector<64x128xbf16>
    %33 = arith.truncf %31 : vector<128x64xf32> to vector<128x64xbf16>
    %cst_35 = arith.constant dense<0.000000e+00> : vector<64x64xf32>
    %34 = tpu.matmul %32, %33, %cst_35 {dimension_numbers = #tpu.dot_dimension_numbers<[1], [0], [0], [1], [0, 0, 1, 1], [], []>} : vector<64x128xbf16>, vector<128x64xbf16>, vector<64x64xf32> -> vector<64x64xf32>
    %c0_36 = arith.constant 0 : index
    %c0_37 = arith.constant 0 : index
    %35 = vector.load %arg14[%c0_36, %c0_37] : memref<64x1xf32, #tpu.memory_space<vmem>>, vector<64x1xf32>
    %36 = vector.broadcast %35 : vector<64x1xf32> to vector<64x64xf32>
    %37 = arith.addf %34, %36 : vector<64x64xf32>
    %38 = arith.addf %37, %17 : vector<64x64xf32>
    %c0_38 = arith.constant 0 : index
    %c0_39 = arith.constant 0 : index
    %39 = vector.load %arg18[%c0_38, %c0_39] : memref<64x256xbf16, #tpu.memory_space<vmem>>, vector<64x256xbf16>
    %40 = arith.truncf %38 : vector<64x64xf32> to vector<64x64xbf16>
    %cst_40 = arith.constant dense<0.000000e+00> : vector<64x256xf32>
    %41 = tpu.matmul %40, %39, %cst_40 {dimension_numbers = #tpu.dot_dimension_numbers<[1], [0], [0], [1], [0, 0, 1, 1], [], []>} : vector<64x64xbf16>, vector<64x256xbf16>, vector<64x256xf32> -> vector<64x256xf32>
    %c0_41 = arith.constant 0 : index
    %c0_42 = arith.constant 0 : index
    %42 = vector.load %arg15[%c0_41, %c0_42] : memref<32x64xbf16, #tpu.memory_space<vmem>>, vector<32x64xbf16>
    %43 = arith.truncf %41 : vector<64x256xf32> to vector<64x256xbf16>
    %cst_43 = arith.constant dense<0.000000e+00> : vector<32x256xf32>
    %44 = tpu.matmul %42, %43, %cst_43 {dimension_numbers = #tpu.dot_dimension_numbers<[1], [0], [0], [1], [0, 0, 1, 1], [], []>} : vector<32x64xbf16>, vector<64x256xbf16>, vector<32x256xf32> -> vector<32x256xf32>
    %c0_44 = arith.constant 0 : index
    %c0_45 = arith.constant 0 : index
    %45 = vector.load %arg16[%c0_44, %c0_45] : memref<32x1xf32, #tpu.memory_space<vmem>>, vector<32x1xf32>
    %46 = vector.broadcast %45 : vector<32x1xf32> to vector<32x256xf32>
    %47 = arith.addf %44, %46 : vector<32x256xf32>
    %48 = arith.addf %47, %12 : vector<32x256xf32>
    %c0_46 = arith.constant 0 : index
    %c0_47 = arith.constant 0 : index
    %c0_48 = arith.constant 0 : index
    %49 = vector.load %arg19[%c0_46, %c0_47, %c0_48] : memref<9x32x32xbf16, #tpu.memory_space<vmem>>, vector<1x32x32xbf16>
    %50 = vector.shape_cast %49 : vector<1x32x32xbf16> to vector<32x32xbf16>
    %51 = arith.truncf %48 : vector<32x256xf32> to vector<32x256xbf16>
    %cst_49 = arith.constant dense<0.000000e+00> : vector<32x256xf32>
    %52 = tpu.matmul %50, %51, %cst_49 {dimension_numbers = #tpu.dot_dimension_numbers<[1], [0], [0], [1], [0, 0, 1, 1], [], []>} : vector<32x32xbf16>, vector<32x256xbf16>, vector<32x256xf32> -> vector<32x256xf32>
    %c0_50 = arith.constant 0 : index
    %c0_51 = arith.constant 0 : index
    %c0_52 = arith.constant 0 : index
    %53 = vector.load %arg25[%c0_50, %c0_51, %c0_52] : memref<9x256x256xbf16, #tpu.memory_space<vmem>>, vector<1x256x256xbf16>
    %54 = vector.shape_cast %53 : vector<1x256x256xbf16> to vector<256x256xbf16>
    %55 = arith.truncf %52 : vector<32x256xf32> to vector<32x256xbf16>
    %cst_53 = arith.constant dense<0.000000e+00> : vector<32x256xf32>
    %56 = tpu.matmul %55, %54, %cst_53 {dimension_numbers = #tpu.dot_dimension_numbers<[1], [0], [0], [1], [0, 0, 1, 1], [], []>} : vector<32x256xbf16>, vector<256x256xbf16>, vector<32x256xf32> -> vector<32x256xf32>
    %c1 = arith.constant 1 : index
    %c0_54 = arith.constant 0 : index
    %c0_55 = arith.constant 0 : index
    %57 = vector.load %arg19[%c1, %c0_54, %c0_55] : memref<9x32x32xbf16, #tpu.memory_space<vmem>>, vector<1x32x32xbf16>
    %58 = vector.shape_cast %57 : vector<1x32x32xbf16> to vector<32x32xbf16>
    %59 = arith.truncf %48 : vector<32x256xf32> to vector<32x256xbf16>
    %cst_56 = arith.constant dense<0.000000e+00> : vector<32x256xf32>
    %60 = tpu.matmul %58, %59, %cst_56 {dimension_numbers = #tpu.dot_dimension_numbers<[1], [0], [0], [1], [0, 0, 1, 1], [], []>} : vector<32x32xbf16>, vector<32x256xbf16>, vector<32x256xf32> -> vector<32x256xf32>
    %c1_57 = arith.constant 1 : index
    %c0_58 = arith.constant 0 : index
    %c0_59 = arith.constant 0 : index
    %61 = vector.load %arg25[%c1_57, %c0_58, %c0_59] : memref<9x256x256xbf16, #tpu.memory_space<vmem>>, vector<1x256x256xbf16>
    %62 = vector.shape_cast %61 : vector<1x256x256xbf16> to vector<256x256xbf16>
    %63 = arith.truncf %60 : vector<32x256xf32> to vector<32x256xbf16>
    %cst_60 = arith.constant dense<0.000000e+00> : vector<32x256xf32>
    %64 = tpu.matmul %63, %62, %cst_60 {dimension_numbers = #tpu.dot_dimension_numbers<[1], [0], [0], [1], [0, 0, 1, 1], [], []>} : vector<32x256xbf16>, vector<256x256xbf16>, vector<32x256xf32> -> vector<32x256xf32>
    %65 = arith.addf %56, %64 : vector<32x256xf32>
    %c2 = arith.constant 2 : index
    %c0_61 = arith.constant 0 : index
    %c0_62 = arith.constant 0 : index
    %66 = vector.load %arg19[%c2, %c0_61, %c0_62] : memref<9x32x32xbf16, #tpu.memory_space<vmem>>, vector<1x32x32xbf16>
    %67 = vector.shape_cast %66 : vector<1x32x32xbf16> to vector<32x32xbf16>
    %68 = arith.truncf %48 : vector<32x256xf32> to vector<32x256xbf16>
    %cst_63 = arith.constant dense<0.000000e+00> : vector<32x256xf32>
    %69 = tpu.matmul %67, %68, %cst_63 {dimension_numbers = #tpu.dot_dimension_numbers<[1], [0], [0], [1], [0, 0, 1, 1], [], []>} : vector<32x32xbf16>, vector<32x256xbf16>, vector<32x256xf32> -> vector<32x256xf32>
    %c2_64 = arith.constant 2 : index
    %c0_65 = arith.constant 0 : index
    %c0_66 = arith.constant 0 : index
    %70 = vector.load %arg25[%c2_64, %c0_65, %c0_66] : memref<9x256x256xbf16, #tpu.memory_space<vmem>>, vector<1x256x256xbf16>
    %71 = vector.shape_cast %70 : vector<1x256x256xbf16> to vector<256x256xbf16>
    %72 = arith.truncf %69 : vector<32x256xf32> to vector<32x256xbf16>
    %cst_67 = arith.constant dense<0.000000e+00> : vector<32x256xf32>
    %73 = tpu.matmul %72, %71, %cst_67 {dimension_numbers = #tpu.dot_dimension_numbers<[1], [0], [0], [1], [0, 0, 1, 1], [], []>} : vector<32x256xbf16>, vector<256x256xbf16>, vector<32x256xf32> -> vector<32x256xf32>
    %74 = arith.addf %65, %73 : vector<32x256xf32>
    %c3 = arith.constant 3 : index
    %c0_68 = arith.constant 0 : index
    %c0_69 = arith.constant 0 : index
    %75 = vector.load %arg19[%c3, %c0_68, %c0_69] : memref<9x32x32xbf16, #tpu.memory_space<vmem>>, vector<1x32x32xbf16>
    %76 = vector.shape_cast %75 : vector<1x32x32xbf16> to vector<32x32xbf16>
    %77 = arith.truncf %48 : vector<32x256xf32> to vector<32x256xbf16>
    %cst_70 = arith.constant dense<0.000000e+00> : vector<32x256xf32>
    %78 = tpu.matmul %76, %77, %cst_70 {dimension_numbers = #tpu.dot_dimension_numbers<[1], [0], [0], [1], [0, 0, 1, 1], [], []>} : vector<32x32xbf16>, vector<32x256xbf16>, vector<32x256xf32> -> vector<32x256xf32>
    %c3_71 = arith.constant 3 : index
    %c0_72 = arith.constant 0 : index
    %c0_73 = arith.constant 0 : index
    %79 = vector.load %arg25[%c3_71, %c0_72, %c0_73] : memref<9x256x256xbf16, #tpu.memory_space<vmem>>, vector<1x256x256xbf16>
    %80 = vector.shape_cast %79 : vector<1x256x256xbf16> to vector<256x256xbf16>
    %81 = arith.truncf %78 : vector<32x256xf32> to vector<32x256xbf16>
    %cst_74 = arith.constant dense<0.000000e+00> : vector<32x256xf32>
    %82 = tpu.matmul %81, %80, %cst_74 {dimension_numbers = #tpu.dot_dimension_numbers<[1], [0], [0], [1], [0, 0, 1, 1], [], []>} : vector<32x256xbf16>, vector<256x256xbf16>, vector<32x256xf32> -> vector<32x256xf32>
    %83 = arith.addf %74, %82 : vector<32x256xf32>
    %c4 = arith.constant 4 : index
    %c0_75 = arith.constant 0 : index
    %c0_76 = arith.constant 0 : index
    %84 = vector.load %arg19[%c4, %c0_75, %c0_76] : memref<9x32x32xbf16, #tpu.memory_space<vmem>>, vector<1x32x32xbf16>
    %85 = vector.shape_cast %84 : vector<1x32x32xbf16> to vector<32x32xbf16>
    %86 = arith.truncf %48 : vector<32x256xf32> to vector<32x256xbf16>
    %cst_77 = arith.constant dense<0.000000e+00> : vector<32x256xf32>
    %87 = tpu.matmul %85, %86, %cst_77 {dimension_numbers = #tpu.dot_dimension_numbers<[1], [0], [0], [1], [0, 0, 1, 1], [], []>} : vector<32x32xbf16>, vector<32x256xbf16>, vector<32x256xf32> -> vector<32x256xf32>
    %c4_78 = arith.constant 4 : index
    %c0_79 = arith.constant 0 : index
    %c0_80 = arith.constant 0 : index
    %88 = vector.load %arg25[%c4_78, %c0_79, %c0_80] : memref<9x256x256xbf16, #tpu.memory_space<vmem>>, vector<1x256x256xbf16>
    %89 = vector.shape_cast %88 : vector<1x256x256xbf16> to vector<256x256xbf16>
    %90 = arith.truncf %87 : vector<32x256xf32> to vector<32x256xbf16>
    %cst_81 = arith.constant dense<0.000000e+00> : vector<32x256xf32>
    %91 = tpu.matmul %90, %89, %cst_81 {dimension_numbers = #tpu.dot_dimension_numbers<[1], [0], [0], [1], [0, 0, 1, 1], [], []>} : vector<32x256xbf16>, vector<256x256xbf16>, vector<32x256xf32> -> vector<32x256xf32>
    %92 = arith.addf %83, %91 : vector<32x256xf32>
    %c5 = arith.constant 5 : index
    %c0_82 = arith.constant 0 : index
    %c0_83 = arith.constant 0 : index
    %93 = vector.load %arg19[%c5, %c0_82, %c0_83] : memref<9x32x32xbf16, #tpu.memory_space<vmem>>, vector<1x32x32xbf16>
    %94 = vector.shape_cast %93 : vector<1x32x32xbf16> to vector<32x32xbf16>
    %95 = arith.truncf %48 : vector<32x256xf32> to vector<32x256xbf16>
    %cst_84 = arith.constant dense<0.000000e+00> : vector<32x256xf32>
    %96 = tpu.matmul %94, %95, %cst_84 {dimension_numbers = #tpu.dot_dimension_numbers<[1], [0], [0], [1], [0, 0, 1, 1], [], []>} : vector<32x32xbf16>, vector<32x256xbf16>, vector<32x256xf32> -> vector<32x256xf32>
    %c5_85 = arith.constant 5 : index
    %c0_86 = arith.constant 0 : index
    %c0_87 = arith.constant 0 : index
    %97 = vector.load %arg25[%c5_85, %c0_86, %c0_87] : memref<9x256x256xbf16, #tpu.memory_space<vmem>>, vector<1x256x256xbf16>
    %98 = vector.shape_cast %97 : vector<1x256x256xbf16> to vector<256x256xbf16>
    %99 = arith.truncf %96 : vector<32x256xf32> to vector<32x256xbf16>
    %cst_88 = arith.constant dense<0.000000e+00> : vector<32x256xf32>
    %100 = tpu.matmul %99, %98, %cst_88 {dimension_numbers = #tpu.dot_dimension_numbers<[1], [0], [0], [1], [0, 0, 1, 1], [], []>} : vector<32x256xbf16>, vector<256x256xbf16>, vector<32x256xf32> -> vector<32x256xf32>
    %101 = arith.addf %92, %100 : vector<32x256xf32>
    %c6 = arith.constant 6 : index
    %c0_89 = arith.constant 0 : index
    %c0_90 = arith.constant 0 : index
    %102 = vector.load %arg19[%c6, %c0_89, %c0_90] : memref<9x32x32xbf16, #tpu.memory_space<vmem>>, vector<1x32x32xbf16>
    %103 = vector.shape_cast %102 : vector<1x32x32xbf16> to vector<32x32xbf16>
    %104 = arith.truncf %48 : vector<32x256xf32> to vector<32x256xbf16>
    %cst_91 = arith.constant dense<0.000000e+00> : vector<32x256xf32>
    %105 = tpu.matmul %103, %104, %cst_91 {dimension_numbers = #tpu.dot_dimension_numbers<[1], [0], [0], [1], [0, 0, 1, 1], [], []>} : vector<32x32xbf16>, vector<32x256xbf16>, vector<32x256xf32> -> vector<32x256xf32>
    %c6_92 = arith.constant 6 : index
    %c0_93 = arith.constant 0 : index
    %c0_94 = arith.constant 0 : index
    %106 = vector.load %arg25[%c6_92, %c0_93, %c0_94] : memref<9x256x256xbf16, #tpu.memory_space<vmem>>, vector<1x256x256xbf16>
    %107 = vector.shape_cast %106 : vector<1x256x256xbf16> to vector<256x256xbf16>
    %108 = arith.truncf %105 : vector<32x256xf32> to vector<32x256xbf16>
    %cst_95 = arith.constant dense<0.000000e+00> : vector<32x256xf32>
    %109 = tpu.matmul %108, %107, %cst_95 {dimension_numbers = #tpu.dot_dimension_numbers<[1], [0], [0], [1], [0, 0, 1, 1], [], []>} : vector<32x256xbf16>, vector<256x256xbf16>, vector<32x256xf32> -> vector<32x256xf32>
    %110 = arith.addf %101, %109 : vector<32x256xf32>
    %c7 = arith.constant 7 : index
    %c0_96 = arith.constant 0 : index
    %c0_97 = arith.constant 0 : index
    %111 = vector.load %arg19[%c7, %c0_96, %c0_97] : memref<9x32x32xbf16, #tpu.memory_space<vmem>>, vector<1x32x32xbf16>
    %112 = vector.shape_cast %111 : vector<1x32x32xbf16> to vector<32x32xbf16>
    %113 = arith.truncf %48 : vector<32x256xf32> to vector<32x256xbf16>
    %cst_98 = arith.constant dense<0.000000e+00> : vector<32x256xf32>
    %114 = tpu.matmul %112, %113, %cst_98 {dimension_numbers = #tpu.dot_dimension_numbers<[1], [0], [0], [1], [0, 0, 1, 1], [], []>} : vector<32x32xbf16>, vector<32x256xbf16>, vector<32x256xf32> -> vector<32x256xf32>
    %c7_99 = arith.constant 7 : index
    %c0_100 = arith.constant 0 : index
    %c0_101 = arith.constant 0 : index
    %115 = vector.load %arg25[%c7_99, %c0_100, %c0_101] : memref<9x256x256xbf16, #tpu.memory_space<vmem>>, vector<1x256x256xbf16>
    %116 = vector.shape_cast %115 : vector<1x256x256xbf16> to vector<256x256xbf16>
    %117 = arith.truncf %114 : vector<32x256xf32> to vector<32x256xbf16>
    %cst_102 = arith.constant dense<0.000000e+00> : vector<32x256xf32>
    %118 = tpu.matmul %117, %116, %cst_102 {dimension_numbers = #tpu.dot_dimension_numbers<[1], [0], [0], [1], [0, 0, 1, 1], [], []>} : vector<32x256xbf16>, vector<256x256xbf16>, vector<32x256xf32> -> vector<32x256xf32>
    %119 = arith.addf %110, %118 : vector<32x256xf32>
    %c8 = arith.constant 8 : index
    %c0_103 = arith.constant 0 : index
    %c0_104 = arith.constant 0 : index
    %120 = vector.load %arg19[%c8, %c0_103, %c0_104] : memref<9x32x32xbf16, #tpu.memory_space<vmem>>, vector<1x32x32xbf16>
    %121 = vector.shape_cast %120 : vector<1x32x32xbf16> to vector<32x32xbf16>
    %122 = arith.truncf %48 : vector<32x256xf32> to vector<32x256xbf16>
    %cst_105 = arith.constant dense<0.000000e+00> : vector<32x256xf32>
    %123 = tpu.matmul %121, %122, %cst_105 {dimension_numbers = #tpu.dot_dimension_numbers<[1], [0], [0], [1], [0, 0, 1, 1], [], []>} : vector<32x32xbf16>, vector<32x256xbf16>, vector<32x256xf32> -> vector<32x256xf32>
    %c8_106 = arith.constant 8 : index
    %c0_107 = arith.constant 0 : index
    %c0_108 = arith.constant 0 : index
    %124 = vector.load %arg25[%c8_106, %c0_107, %c0_108] : memref<9x256x256xbf16, #tpu.memory_space<vmem>>, vector<1x256x256xbf16>
    %125 = vector.shape_cast %124 : vector<1x256x256xbf16> to vector<256x256xbf16>
    %126 = arith.truncf %123 : vector<32x256xf32> to vector<32x256xbf16>
    %cst_109 = arith.constant dense<0.000000e+00> : vector<32x256xf32>
    %127 = tpu.matmul %126, %125, %cst_109 {dimension_numbers = #tpu.dot_dimension_numbers<[1], [0], [0], [1], [0, 0, 1, 1], [], []>} : vector<32x256xbf16>, vector<256x256xbf16>, vector<32x256xf32> -> vector<32x256xf32>
    %128 = arith.addf %119, %127 : vector<32x256xf32>
    %c0_110 = arith.constant 0 : index
    %c0_111 = arith.constant 0 : index
    %129 = vector.load %arg20[%c0_110, %c0_111] : memref<32x1xf32, #tpu.memory_space<vmem>>, vector<32x1xf32>
    %130 = vector.broadcast %129 : vector<32x1xf32> to vector<32x256xf32>
    %131 = arith.addf %128, %130 : vector<32x256xf32>
    %c0_112 = arith.constant 0 : index
    %c0_113 = arith.constant 0 : index
    %c0_114 = arith.constant 0 : index
    %132 = vector.load %arg21[%c0_112, %c0_113, %c0_114] : memref<9x64x64xbf16, #tpu.memory_space<vmem>>, vector<1x64x64xbf16>
    %133 = vector.shape_cast %132 : vector<1x64x64xbf16> to vector<64x64xbf16>
    %134 = arith.truncf %38 : vector<64x64xf32> to vector<64x64xbf16>
    %cst_115 = arith.constant dense<0.000000e+00> : vector<64x64xf32>
    %135 = tpu.matmul %133, %134, %cst_115 {dimension_numbers = #tpu.dot_dimension_numbers<[1], [0], [0], [1], [0, 0, 1, 1], [], []>} : vector<64x64xbf16>, vector<64x64xbf16>, vector<64x64xf32> -> vector<64x64xf32>
    %c0_116 = arith.constant 0 : index
    %c0_117 = arith.constant 0 : index
    %c0_118 = arith.constant 0 : index
    %136 = vector.load %arg26[%c0_116, %c0_117, %c0_118] : memref<9x64x64xbf16, #tpu.memory_space<vmem>>, vector<1x64x64xbf16>
    %137 = vector.shape_cast %136 : vector<1x64x64xbf16> to vector<64x64xbf16>
    %138 = arith.truncf %135 : vector<64x64xf32> to vector<64x64xbf16>
    %cst_119 = arith.constant dense<0.000000e+00> : vector<64x64xf32>
    %139 = tpu.matmul %138, %137, %cst_119 {dimension_numbers = #tpu.dot_dimension_numbers<[1], [0], [0], [1], [0, 0, 1, 1], [], []>} : vector<64x64xbf16>, vector<64x64xbf16>, vector<64x64xf32> -> vector<64x64xf32>
    %c1_120 = arith.constant 1 : index
    %c0_121 = arith.constant 0 : index
    %c0_122 = arith.constant 0 : index
    %140 = vector.load %arg21[%c1_120, %c0_121, %c0_122] : memref<9x64x64xbf16, #tpu.memory_space<vmem>>, vector<1x64x64xbf16>
    %141 = vector.shape_cast %140 : vector<1x64x64xbf16> to vector<64x64xbf16>
    %142 = arith.truncf %38 : vector<64x64xf32> to vector<64x64xbf16>
    %cst_123 = arith.constant dense<0.000000e+00> : vector<64x64xf32>
    %143 = tpu.matmul %141, %142, %cst_123 {dimension_numbers = #tpu.dot_dimension_numbers<[1], [0], [0], [1], [0, 0, 1, 1], [], []>} : vector<64x64xbf16>, vector<64x64xbf16>, vector<64x64xf32> -> vector<64x64xf32>
    %c1_124 = arith.constant 1 : index
    %c0_125 = arith.constant 0 : index
    %c0_126 = arith.constant 0 : index
    %144 = vector.load %arg26[%c1_124, %c0_125, %c0_126] : memref<9x64x64xbf16, #tpu.memory_space<vmem>>, vector<1x64x64xbf16>
    %145 = vector.shape_cast %144 : vector<1x64x64xbf16> to vector<64x64xbf16>
    %146 = arith.truncf %143 : vector<64x64xf32> to vector<64x64xbf16>
    %cst_127 = arith.constant dense<0.000000e+00> : vector<64x64xf32>
    %147 = tpu.matmul %146, %145, %cst_127 {dimension_numbers = #tpu.dot_dimension_numbers<[1], [0], [0], [1], [0, 0, 1, 1], [], []>} : vector<64x64xbf16>, vector<64x64xbf16>, vector<64x64xf32> -> vector<64x64xf32>
    %148 = arith.addf %139, %147 : vector<64x64xf32>
    %c2_128 = arith.constant 2 : index
    %c0_129 = arith.constant 0 : index
    %c0_130 = arith.constant 0 : index
    %149 = vector.load %arg21[%c2_128, %c0_129, %c0_130] : memref<9x64x64xbf16, #tpu.memory_space<vmem>>, vector<1x64x64xbf16>
    %150 = vector.shape_cast %149 : vector<1x64x64xbf16> to vector<64x64xbf16>
    %151 = arith.truncf %38 : vector<64x64xf32> to vector<64x64xbf16>
    %cst_131 = arith.constant dense<0.000000e+00> : vector<64x64xf32>
    %152 = tpu.matmul %150, %151, %cst_131 {dimension_numbers = #tpu.dot_dimension_numbers<[1], [0], [0], [1], [0, 0, 1, 1], [], []>} : vector<64x64xbf16>, vector<64x64xbf16>, vector<64x64xf32> -> vector<64x64xf32>
    %c2_132 = arith.constant 2 : index
    %c0_133 = arith.constant 0 : index
    %c0_134 = arith.constant 0 : index
    %153 = vector.load %arg26[%c2_132, %c0_133, %c0_134] : memref<9x64x64xbf16, #tpu.memory_space<vmem>>, vector<1x64x64xbf16>
    %154 = vector.shape_cast %153 : vector<1x64x64xbf16> to vector<64x64xbf16>
    %155 = arith.truncf %152 : vector<64x64xf32> to vector<64x64xbf16>
    %cst_135 = arith.constant dense<0.000000e+00> : vector<64x64xf32>
    %156 = tpu.matmul %155, %154, %cst_135 {dimension_numbers = #tpu.dot_dimension_numbers<[1], [0], [0], [1], [0, 0, 1, 1], [], []>} : vector<64x64xbf16>, vector<64x64xbf16>, vector<64x64xf32> -> vector<64x64xf32>
    %157 = arith.addf %148, %156 : vector<64x64xf32>
    %c3_136 = arith.constant 3 : index
    %c0_137 = arith.constant 0 : index
    %c0_138 = arith.constant 0 : index
    %158 = vector.load %arg21[%c3_136, %c0_137, %c0_138] : memref<9x64x64xbf16, #tpu.memory_space<vmem>>, vector<1x64x64xbf16>
    %159 = vector.shape_cast %158 : vector<1x64x64xbf16> to vector<64x64xbf16>
    %160 = arith.truncf %38 : vector<64x64xf32> to vector<64x64xbf16>
    %cst_139 = arith.constant dense<0.000000e+00> : vector<64x64xf32>
    %161 = tpu.matmul %159, %160, %cst_139 {dimension_numbers = #tpu.dot_dimension_numbers<[1], [0], [0], [1], [0, 0, 1, 1], [], []>} : vector<64x64xbf16>, vector<64x64xbf16>, vector<64x64xf32> -> vector<64x64xf32>
    %c3_140 = arith.constant 3 : index
    %c0_141 = arith.constant 0 : index
    %c0_142 = arith.constant 0 : index
    %162 = vector.load %arg26[%c3_140, %c0_141, %c0_142] : memref<9x64x64xbf16, #tpu.memory_space<vmem>>, vector<1x64x64xbf16>
    %163 = vector.shape_cast %162 : vector<1x64x64xbf16> to vector<64x64xbf16>
    %164 = arith.truncf %161 : vector<64x64xf32> to vector<64x64xbf16>
    %cst_143 = arith.constant dense<0.000000e+00> : vector<64x64xf32>
    %165 = tpu.matmul %164, %163, %cst_143 {dimension_numbers = #tpu.dot_dimension_numbers<[1], [0], [0], [1], [0, 0, 1, 1], [], []>} : vector<64x64xbf16>, vector<64x64xbf16>, vector<64x64xf32> -> vector<64x64xf32>
    %166 = arith.addf %157, %165 : vector<64x64xf32>
    %c4_144 = arith.constant 4 : index
    %c0_145 = arith.constant 0 : index
    %c0_146 = arith.constant 0 : index
    %167 = vector.load %arg21[%c4_144, %c0_145, %c0_146] : memref<9x64x64xbf16, #tpu.memory_space<vmem>>, vector<1x64x64xbf16>
    %168 = vector.shape_cast %167 : vector<1x64x64xbf16> to vector<64x64xbf16>
    %169 = arith.truncf %38 : vector<64x64xf32> to vector<64x64xbf16>
    %cst_147 = arith.constant dense<0.000000e+00> : vector<64x64xf32>
    %170 = tpu.matmul %168, %169, %cst_147 {dimension_numbers = #tpu.dot_dimension_numbers<[1], [0], [0], [1], [0, 0, 1, 1], [], []>} : vector<64x64xbf16>, vector<64x64xbf16>, vector<64x64xf32> -> vector<64x64xf32>
    %c4_148 = arith.constant 4 : index
    %c0_149 = arith.constant 0 : index
    %c0_150 = arith.constant 0 : index
    %171 = vector.load %arg26[%c4_148, %c0_149, %c0_150] : memref<9x64x64xbf16, #tpu.memory_space<vmem>>, vector<1x64x64xbf16>
    %172 = vector.shape_cast %171 : vector<1x64x64xbf16> to vector<64x64xbf16>
    %173 = arith.truncf %170 : vector<64x64xf32> to vector<64x64xbf16>
    %cst_151 = arith.constant dense<0.000000e+00> : vector<64x64xf32>
    %174 = tpu.matmul %173, %172, %cst_151 {dimension_numbers = #tpu.dot_dimension_numbers<[1], [0], [0], [1], [0, 0, 1, 1], [], []>} : vector<64x64xbf16>, vector<64x64xbf16>, vector<64x64xf32> -> vector<64x64xf32>
    %175 = arith.addf %166, %174 : vector<64x64xf32>
    %c5_152 = arith.constant 5 : index
    %c0_153 = arith.constant 0 : index
    %c0_154 = arith.constant 0 : index
    %176 = vector.load %arg21[%c5_152, %c0_153, %c0_154] : memref<9x64x64xbf16, #tpu.memory_space<vmem>>, vector<1x64x64xbf16>
    %177 = vector.shape_cast %176 : vector<1x64x64xbf16> to vector<64x64xbf16>
    %178 = arith.truncf %38 : vector<64x64xf32> to vector<64x64xbf16>
    %cst_155 = arith.constant dense<0.000000e+00> : vector<64x64xf32>
    %179 = tpu.matmul %177, %178, %cst_155 {dimension_numbers = #tpu.dot_dimension_numbers<[1], [0], [0], [1], [0, 0, 1, 1], [], []>} : vector<64x64xbf16>, vector<64x64xbf16>, vector<64x64xf32> -> vector<64x64xf32>
    %c5_156 = arith.constant 5 : index
    %c0_157 = arith.constant 0 : index
    %c0_158 = arith.constant 0 : index
    %180 = vector.load %arg26[%c5_156, %c0_157, %c0_158] : memref<9x64x64xbf16, #tpu.memory_space<vmem>>, vector<1x64x64xbf16>
    %181 = vector.shape_cast %180 : vector<1x64x64xbf16> to vector<64x64xbf16>
    %182 = arith.truncf %179 : vector<64x64xf32> to vector<64x64xbf16>
    %cst_159 = arith.constant dense<0.000000e+00> : vector<64x64xf32>
    %183 = tpu.matmul %182, %181, %cst_159 {dimension_numbers = #tpu.dot_dimension_numbers<[1], [0], [0], [1], [0, 0, 1, 1], [], []>} : vector<64x64xbf16>, vector<64x64xbf16>, vector<64x64xf32> -> vector<64x64xf32>
    %184 = arith.addf %175, %183 : vector<64x64xf32>
    %c6_160 = arith.constant 6 : index
    %c0_161 = arith.constant 0 : index
    %c0_162 = arith.constant 0 : index
    %185 = vector.load %arg21[%c6_160, %c0_161, %c0_162] : memref<9x64x64xbf16, #tpu.memory_space<vmem>>, vector<1x64x64xbf16>
    %186 = vector.shape_cast %185 : vector<1x64x64xbf16> to vector<64x64xbf16>
    %187 = arith.truncf %38 : vector<64x64xf32> to vector<64x64xbf16>
    %cst_163 = arith.constant dense<0.000000e+00> : vector<64x64xf32>
    %188 = tpu.matmul %186, %187, %cst_163 {dimension_numbers = #tpu.dot_dimension_numbers<[1], [0], [0], [1], [0, 0, 1, 1], [], []>} : vector<64x64xbf16>, vector<64x64xbf16>, vector<64x64xf32> -> vector<64x64xf32>
    %c6_164 = arith.constant 6 : index
    %c0_165 = arith.constant 0 : index
    %c0_166 = arith.constant 0 : index
    %189 = vector.load %arg26[%c6_164, %c0_165, %c0_166] : memref<9x64x64xbf16, #tpu.memory_space<vmem>>, vector<1x64x64xbf16>
    %190 = vector.shape_cast %189 : vector<1x64x64xbf16> to vector<64x64xbf16>
    %191 = arith.truncf %188 : vector<64x64xf32> to vector<64x64xbf16>
    %cst_167 = arith.constant dense<0.000000e+00> : vector<64x64xf32>
    %192 = tpu.matmul %191, %190, %cst_167 {dimension_numbers = #tpu.dot_dimension_numbers<[1], [0], [0], [1], [0, 0, 1, 1], [], []>} : vector<64x64xbf16>, vector<64x64xbf16>, vector<64x64xf32> -> vector<64x64xf32>
    %193 = arith.addf %184, %192 : vector<64x64xf32>
    %c7_168 = arith.constant 7 : index
    %c0_169 = arith.constant 0 : index
    %c0_170 = arith.constant 0 : index
    %194 = vector.load %arg21[%c7_168, %c0_169, %c0_170] : memref<9x64x64xbf16, #tpu.memory_space<vmem>>, vector<1x64x64xbf16>
    %195 = vector.shape_cast %194 : vector<1x64x64xbf16> to vector<64x64xbf16>
    %196 = arith.truncf %38 : vector<64x64xf32> to vector<64x64xbf16>
    %cst_171 = arith.constant dense<0.000000e+00> : vector<64x64xf32>
    %197 = tpu.matmul %195, %196, %cst_171 {dimension_numbers = #tpu.dot_dimension_numbers<[1], [0], [0], [1], [0, 0, 1, 1], [], []>} : vector<64x64xbf16>, vector<64x64xbf16>, vector<64x64xf32> -> vector<64x64xf32>
    %c7_172 = arith.constant 7 : index
    %c0_173 = arith.constant 0 : index
    %c0_174 = arith.constant 0 : index
    %198 = vector.load %arg26[%c7_172, %c0_173, %c0_174] : memref<9x64x64xbf16, #tpu.memory_space<vmem>>, vector<1x64x64xbf16>
    %199 = vector.shape_cast %198 : vector<1x64x64xbf16> to vector<64x64xbf16>
    %200 = arith.truncf %197 : vector<64x64xf32> to vector<64x64xbf16>
    %cst_175 = arith.constant dense<0.000000e+00> : vector<64x64xf32>
    %201 = tpu.matmul %200, %199, %cst_175 {dimension_numbers = #tpu.dot_dimension_numbers<[1], [0], [0], [1], [0, 0, 1, 1], [], []>} : vector<64x64xbf16>, vector<64x64xbf16>, vector<64x64xf32> -> vector<64x64xf32>
    %202 = arith.addf %193, %201 : vector<64x64xf32>
    %c8_176 = arith.constant 8 : index
    %c0_177 = arith.constant 0 : index
    %c0_178 = arith.constant 0 : index
    %203 = vector.load %arg21[%c8_176, %c0_177, %c0_178] : memref<9x64x64xbf16, #tpu.memory_space<vmem>>, vector<1x64x64xbf16>
    %204 = vector.shape_cast %203 : vector<1x64x64xbf16> to vector<64x64xbf16>
    %205 = arith.truncf %38 : vector<64x64xf32> to vector<64x64xbf16>
    %cst_179 = arith.constant dense<0.000000e+00> : vector<64x64xf32>
    %206 = tpu.matmul %204, %205, %cst_179 {dimension_numbers = #tpu.dot_dimension_numbers<[1], [0], [0], [1], [0, 0, 1, 1], [], []>} : vector<64x64xbf16>, vector<64x64xbf16>, vector<64x64xf32> -> vector<64x64xf32>
    %c8_180 = arith.constant 8 : index
    %c0_181 = arith.constant 0 : index
    %c0_182 = arith.constant 0 : index
    %207 = vector.load %arg26[%c8_180, %c0_181, %c0_182] : memref<9x64x64xbf16, #tpu.memory_space<vmem>>, vector<1x64x64xbf16>
    %208 = vector.shape_cast %207 : vector<1x64x64xbf16> to vector<64x64xbf16>
    %209 = arith.truncf %206 : vector<64x64xf32> to vector<64x64xbf16>
    %cst_183 = arith.constant dense<0.000000e+00> : vector<64x64xf32>
    %210 = tpu.matmul %209, %208, %cst_183 {dimension_numbers = #tpu.dot_dimension_numbers<[1], [0], [0], [1], [0, 0, 1, 1], [], []>} : vector<64x64xbf16>, vector<64x64xbf16>, vector<64x64xf32> -> vector<64x64xf32>
    %211 = arith.addf %202, %210 : vector<64x64xf32>
    %c0_184 = arith.constant 0 : index
    %c0_185 = arith.constant 0 : index
    %212 = vector.load %arg22[%c0_184, %c0_185] : memref<64x1xf32, #tpu.memory_space<vmem>>, vector<64x1xf32>
    %213 = vector.broadcast %212 : vector<64x1xf32> to vector<64x64xf32>
    %214 = arith.addf %211, %213 : vector<64x64xf32>
    %c0_186 = arith.constant 0 : index
    %c0_187 = arith.constant 0 : index
    %c0_188 = arith.constant 0 : index
    %215 = vector.load %arg23[%c0_186, %c0_187, %c0_188] : memref<9x128x128xbf16, #tpu.memory_space<vmem>>, vector<1x128x128xbf16>
    %216 = vector.shape_cast %215 : vector<1x128x128xbf16> to vector<128x128xbf16>
    %217 = arith.truncf %28 : vector<128x16xf32> to vector<128x16xbf16>
    %cst_189 = arith.constant dense<0.000000e+00> : vector<128x16xf32>
    %218 = tpu.matmul %216, %217, %cst_189 {dimension_numbers = #tpu.dot_dimension_numbers<[1], [0], [0], [1], [0, 0, 1, 1], [], []>} : vector<128x128xbf16>, vector<128x16xbf16>, vector<128x16xf32> -> vector<128x16xf32>
    %c0_190 = arith.constant 0 : index
    %c0_191 = arith.constant 0 : index
    %c0_192 = arith.constant 0 : index
    %219 = vector.load %arg27[%c0_190, %c0_191, %c0_192] : memref<9x16x16xbf16, #tpu.memory_space<vmem>>, vector<1x16x16xbf16>
    %220 = vector.shape_cast %219 : vector<1x16x16xbf16> to vector<16x16xbf16>
    %221 = arith.truncf %218 : vector<128x16xf32> to vector<128x16xbf16>
    %cst_193 = arith.constant dense<0.000000e+00> : vector<128x16xf32>
    %222 = tpu.matmul %221, %220, %cst_193 {dimension_numbers = #tpu.dot_dimension_numbers<[1], [0], [0], [1], [0, 0, 1, 1], [], []>} : vector<128x16xbf16>, vector<16x16xbf16>, vector<128x16xf32> -> vector<128x16xf32>
    %c1_194 = arith.constant 1 : index
    %c0_195 = arith.constant 0 : index
    %c0_196 = arith.constant 0 : index
    %223 = vector.load %arg23[%c1_194, %c0_195, %c0_196] : memref<9x128x128xbf16, #tpu.memory_space<vmem>>, vector<1x128x128xbf16>
    %224 = vector.shape_cast %223 : vector<1x128x128xbf16> to vector<128x128xbf16>
    %225 = arith.truncf %28 : vector<128x16xf32> to vector<128x16xbf16>
    %cst_197 = arith.constant dense<0.000000e+00> : vector<128x16xf32>
    %226 = tpu.matmul %224, %225, %cst_197 {dimension_numbers = #tpu.dot_dimension_numbers<[1], [0], [0], [1], [0, 0, 1, 1], [], []>} : vector<128x128xbf16>, vector<128x16xbf16>, vector<128x16xf32> -> vector<128x16xf32>
    %c1_198 = arith.constant 1 : index
    %c0_199 = arith.constant 0 : index
    %c0_200 = arith.constant 0 : index
    %227 = vector.load %arg27[%c1_198, %c0_199, %c0_200] : memref<9x16x16xbf16, #tpu.memory_space<vmem>>, vector<1x16x16xbf16>
    %228 = vector.shape_cast %227 : vector<1x16x16xbf16> to vector<16x16xbf16>
    %229 = arith.truncf %226 : vector<128x16xf32> to vector<128x16xbf16>
    %cst_201 = arith.constant dense<0.000000e+00> : vector<128x16xf32>
    %230 = tpu.matmul %229, %228, %cst_201 {dimension_numbers = #tpu.dot_dimension_numbers<[1], [0], [0], [1], [0, 0, 1, 1], [], []>} : vector<128x16xbf16>, vector<16x16xbf16>, vector<128x16xf32> -> vector<128x16xf32>
    %231 = arith.addf %222, %230 : vector<128x16xf32>
    %c2_202 = arith.constant 2 : index
    %c0_203 = arith.constant 0 : index
    %c0_204 = arith.constant 0 : index
    %232 = vector.load %arg23[%c2_202, %c0_203, %c0_204] : memref<9x128x128xbf16, #tpu.memory_space<vmem>>, vector<1x128x128xbf16>
    %233 = vector.shape_cast %232 : vector<1x128x128xbf16> to vector<128x128xbf16>
    %234 = arith.truncf %28 : vector<128x16xf32> to vector<128x16xbf16>
    %cst_205 = arith.constant dense<0.000000e+00> : vector<128x16xf32>
    %235 = tpu.matmul %233, %234, %cst_205 {dimension_numbers = #tpu.dot_dimension_numbers<[1], [0], [0], [1], [0, 0, 1, 1], [], []>} : vector<128x128xbf16>, vector<128x16xbf16>, vector<128x16xf32> -> vector<128x16xf32>
    %c2_206 = arith.constant 2 : index
    %c0_207 = arith.constant 0 : index
    %c0_208 = arith.constant 0 : index
    %236 = vector.load %arg27[%c2_206, %c0_207, %c0_208] : memref<9x16x16xbf16, #tpu.memory_space<vmem>>, vector<1x16x16xbf16>
    %237 = vector.shape_cast %236 : vector<1x16x16xbf16> to vector<16x16xbf16>
    %238 = arith.truncf %235 : vector<128x16xf32> to vector<128x16xbf16>
    %cst_209 = arith.constant dense<0.000000e+00> : vector<128x16xf32>
    %239 = tpu.matmul %238, %237, %cst_209 {dimension_numbers = #tpu.dot_dimension_numbers<[1], [0], [0], [1], [0, 0, 1, 1], [], []>} : vector<128x16xbf16>, vector<16x16xbf16>, vector<128x16xf32> -> vector<128x16xf32>
    %240 = arith.addf %231, %239 : vector<128x16xf32>
    %c3_210 = arith.constant 3 : index
    %c0_211 = arith.constant 0 : index
    %c0_212 = arith.constant 0 : index
    %241 = vector.load %arg23[%c3_210, %c0_211, %c0_212] : memref<9x128x128xbf16, #tpu.memory_space<vmem>>, vector<1x128x128xbf16>
    %242 = vector.shape_cast %241 : vector<1x128x128xbf16> to vector<128x128xbf16>
    %243 = arith.truncf %28 : vector<128x16xf32> to vector<128x16xbf16>
    %cst_213 = arith.constant dense<0.000000e+00> : vector<128x16xf32>
    %244 = tpu.matmul %242, %243, %cst_213 {dimension_numbers = #tpu.dot_dimension_numbers<[1], [0], [0], [1], [0, 0, 1, 1], [], []>} : vector<128x128xbf16>, vector<128x16xbf16>, vector<128x16xf32> -> vector<128x16xf32>
    %c3_214 = arith.constant 3 : index
    %c0_215 = arith.constant 0 : index
    %c0_216 = arith.constant 0 : index
    %245 = vector.load %arg27[%c3_214, %c0_215, %c0_216] : memref<9x16x16xbf16, #tpu.memory_space<vmem>>, vector<1x16x16xbf16>
    %246 = vector.shape_cast %245 : vector<1x16x16xbf16> to vector<16x16xbf16>
    %247 = arith.truncf %244 : vector<128x16xf32> to vector<128x16xbf16>
    %cst_217 = arith.constant dense<0.000000e+00> : vector<128x16xf32>
    %248 = tpu.matmul %247, %246, %cst_217 {dimension_numbers = #tpu.dot_dimension_numbers<[1], [0], [0], [1], [0, 0, 1, 1], [], []>} : vector<128x16xbf16>, vector<16x16xbf16>, vector<128x16xf32> -> vector<128x16xf32>
    %249 = arith.addf %240, %248 : vector<128x16xf32>
    %c4_218 = arith.constant 4 : index
    %c0_219 = arith.constant 0 : index
    %c0_220 = arith.constant 0 : index
    %250 = vector.load %arg23[%c4_218, %c0_219, %c0_220] : memref<9x128x128xbf16, #tpu.memory_space<vmem>>, vector<1x128x128xbf16>
    %251 = vector.shape_cast %250 : vector<1x128x128xbf16> to vector<128x128xbf16>
    %252 = arith.truncf %28 : vector<128x16xf32> to vector<128x16xbf16>
    %cst_221 = arith.constant dense<0.000000e+00> : vector<128x16xf32>
    %253 = tpu.matmul %251, %252, %cst_221 {dimension_numbers = #tpu.dot_dimension_numbers<[1], [0], [0], [1], [0, 0, 1, 1], [], []>} : vector<128x128xbf16>, vector<128x16xbf16>, vector<128x16xf32> -> vector<128x16xf32>
    %c4_222 = arith.constant 4 : index
    %c0_223 = arith.constant 0 : index
    %c0_224 = arith.constant 0 : index
    %254 = vector.load %arg27[%c4_222, %c0_223, %c0_224] : memref<9x16x16xbf16, #tpu.memory_space<vmem>>, vector<1x16x16xbf16>
    %255 = vector.shape_cast %254 : vector<1x16x16xbf16> to vector<16x16xbf16>
    %256 = arith.truncf %253 : vector<128x16xf32> to vector<128x16xbf16>
    %cst_225 = arith.constant dense<0.000000e+00> : vector<128x16xf32>
    %257 = tpu.matmul %256, %255, %cst_225 {dimension_numbers = #tpu.dot_dimension_numbers<[1], [0], [0], [1], [0, 0, 1, 1], [], []>} : vector<128x16xbf16>, vector<16x16xbf16>, vector<128x16xf32> -> vector<128x16xf32>
    %258 = arith.addf %249, %257 : vector<128x16xf32>
    %c5_226 = arith.constant 5 : index
    %c0_227 = arith.constant 0 : index
    %c0_228 = arith.constant 0 : index
    %259 = vector.load %arg23[%c5_226, %c0_227, %c0_228] : memref<9x128x128xbf16, #tpu.memory_space<vmem>>, vector<1x128x128xbf16>
    %260 = vector.shape_cast %259 : vector<1x128x128xbf16> to vector<128x128xbf16>
    %261 = arith.truncf %28 : vector<128x16xf32> to vector<128x16xbf16>
    %cst_229 = arith.constant dense<0.000000e+00> : vector<128x16xf32>
    %262 = tpu.matmul %260, %261, %cst_229 {dimension_numbers = #tpu.dot_dimension_numbers<[1], [0], [0], [1], [0, 0, 1, 1], [], []>} : vector<128x128xbf16>, vector<128x16xbf16>, vector<128x16xf32> -> vector<128x16xf32>
    %c5_230 = arith.constant 5 : index
    %c0_231 = arith.constant 0 : index
    %c0_232 = arith.constant 0 : index
    %263 = vector.load %arg27[%c5_230, %c0_231, %c0_232] : memref<9x16x16xbf16, #tpu.memory_space<vmem>>, vector<1x16x16xbf16>
    %264 = vector.shape_cast %263 : vector<1x16x16xbf16> to vector<16x16xbf16>
    %265 = arith.truncf %262 : vector<128x16xf32> to vector<128x16xbf16>
    %cst_233 = arith.constant dense<0.000000e+00> : vector<128x16xf32>
    %266 = tpu.matmul %265, %264, %cst_233 {dimension_numbers = #tpu.dot_dimension_numbers<[1], [0], [0], [1], [0, 0, 1, 1], [], []>} : vector<128x16xbf16>, vector<16x16xbf16>, vector<128x16xf32> -> vector<128x16xf32>
    %267 = arith.addf %258, %266 : vector<128x16xf32>
    %c6_234 = arith.constant 6 : index
    %c0_235 = arith.constant 0 : index
    %c0_236 = arith.constant 0 : index
    %268 = vector.load %arg23[%c6_234, %c0_235, %c0_236] : memref<9x128x128xbf16, #tpu.memory_space<vmem>>, vector<1x128x128xbf16>
    %269 = vector.shape_cast %268 : vector<1x128x128xbf16> to vector<128x128xbf16>
    %270 = arith.truncf %28 : vector<128x16xf32> to vector<128x16xbf16>
    %cst_237 = arith.constant dense<0.000000e+00> : vector<128x16xf32>
    %271 = tpu.matmul %269, %270, %cst_237 {dimension_numbers = #tpu.dot_dimension_numbers<[1], [0], [0], [1], [0, 0, 1, 1], [], []>} : vector<128x128xbf16>, vector<128x16xbf16>, vector<128x16xf32> -> vector<128x16xf32>
    %c6_238 = arith.constant 6 : index
    %c0_239 = arith.constant 0 : index
    %c0_240 = arith.constant 0 : index
    %272 = vector.load %arg27[%c6_238, %c0_239, %c0_240] : memref<9x16x16xbf16, #tpu.memory_space<vmem>>, vector<1x16x16xbf16>
    %273 = vector.shape_cast %272 : vector<1x16x16xbf16> to vector<16x16xbf16>
    %274 = arith.truncf %271 : vector<128x16xf32> to vector<128x16xbf16>
    %cst_241 = arith.constant dense<0.000000e+00> : vector<128x16xf32>
    %275 = tpu.matmul %274, %273, %cst_241 {dimension_numbers = #tpu.dot_dimension_numbers<[1], [0], [0], [1], [0, 0, 1, 1], [], []>} : vector<128x16xbf16>, vector<16x16xbf16>, vector<128x16xf32> -> vector<128x16xf32>
    %276 = arith.addf %267, %275 : vector<128x16xf32>
    %c7_242 = arith.constant 7 : index
    %c0_243 = arith.constant 0 : index
    %c0_244 = arith.constant 0 : index
    %277 = vector.load %arg23[%c7_242, %c0_243, %c0_244] : memref<9x128x128xbf16, #tpu.memory_space<vmem>>, vector<1x128x128xbf16>
    %278 = vector.shape_cast %277 : vector<1x128x128xbf16> to vector<128x128xbf16>
    %279 = arith.truncf %28 : vector<128x16xf32> to vector<128x16xbf16>
    %cst_245 = arith.constant dense<0.000000e+00> : vector<128x16xf32>
    %280 = tpu.matmul %278, %279, %cst_245 {dimension_numbers = #tpu.dot_dimension_numbers<[1], [0], [0], [1], [0, 0, 1, 1], [], []>} : vector<128x128xbf16>, vector<128x16xbf16>, vector<128x16xf32> -> vector<128x16xf32>
    %c7_246 = arith.constant 7 : index
    %c0_247 = arith.constant 0 : index
    %c0_248 = arith.constant 0 : index
    %281 = vector.load %arg27[%c7_246, %c0_247, %c0_248] : memref<9x16x16xbf16, #tpu.memory_space<vmem>>, vector<1x16x16xbf16>
    %282 = vector.shape_cast %281 : vector<1x16x16xbf16> to vector<16x16xbf16>
    %283 = arith.truncf %280 : vector<128x16xf32> to vector<128x16xbf16>
    %cst_249 = arith.constant dense<0.000000e+00> : vector<128x16xf32>
    %284 = tpu.matmul %283, %282, %cst_249 {dimension_numbers = #tpu.dot_dimension_numbers<[1], [0], [0], [1], [0, 0, 1, 1], [], []>} : vector<128x16xbf16>, vector<16x16xbf16>, vector<128x16xf32> -> vector<128x16xf32>
    %285 = arith.addf %276, %284 : vector<128x16xf32>
    %c8_250 = arith.constant 8 : index
    %c0_251 = arith.constant 0 : index
    %c0_252 = arith.constant 0 : index
    %286 = vector.load %arg23[%c8_250, %c0_251, %c0_252] : memref<9x128x128xbf16, #tpu.memory_space<vmem>>, vector<1x128x128xbf16>
    %287 = vector.shape_cast %286 : vector<1x128x128xbf16> to vector<128x128xbf16>
    %288 = arith.truncf %28 : vector<128x16xf32> to vector<128x16xbf16>
    %cst_253 = arith.constant dense<0.000000e+00> : vector<128x16xf32>
    %289 = tpu.matmul %287, %288, %cst_253 {dimension_numbers = #tpu.dot_dimension_numbers<[1], [0], [0], [1], [0, 0, 1, 1], [], []>} : vector<128x128xbf16>, vector<128x16xbf16>, vector<128x16xf32> -> vector<128x16xf32>
    %c8_254 = arith.constant 8 : index
    %c0_255 = arith.constant 0 : index
    %c0_256 = arith.constant 0 : index
    %290 = vector.load %arg27[%c8_254, %c0_255, %c0_256] : memref<9x16x16xbf16, #tpu.memory_space<vmem>>, vector<1x16x16xbf16>
    %291 = vector.shape_cast %290 : vector<1x16x16xbf16> to vector<16x16xbf16>
    %292 = arith.truncf %289 : vector<128x16xf32> to vector<128x16xbf16>
    %cst_257 = arith.constant dense<0.000000e+00> : vector<128x16xf32>
    %293 = tpu.matmul %292, %291, %cst_257 {dimension_numbers = #tpu.dot_dimension_numbers<[1], [0], [0], [1], [0, 0, 1, 1], [], []>} : vector<128x16xbf16>, vector<16x16xbf16>, vector<128x16xf32> -> vector<128x16xf32>
    %294 = arith.addf %285, %293 : vector<128x16xf32>
    %c0_258 = arith.constant 0 : index
    %c0_259 = arith.constant 0 : index
    %295 = vector.load %arg24[%c0_258, %c0_259] : memref<128x1xf32, #tpu.memory_space<vmem>>, vector<128x1xf32>
    %296 = vector.broadcast %295 : vector<128x1xf32> to vector<128x16xf32>
    %297 = arith.addf %294, %296 : vector<128x16xf32>
    %c0_260 = arith.constant 0 : index
    %c0_261 = arith.constant 0 : index
    %298 = vector.load %arg28[%c0_260, %c0_261] : memref<8x256xbf16, #tpu.memory_space<vmem>>, vector<8x256xbf16>
    %cst_262 = arith.constant dense<0.000000e+00> : vector<8x16xf32>
    %299 = tpu.matmul %298, %7, %cst_262 {dimension_numbers = #tpu.dot_dimension_numbers<[1], [0], [0], [1], [0, 0, 1, 1], [], []>} : vector<8x256xbf16>, vector<256x16xbf16>, vector<8x16xf32> -> vector<8x16xf32>
    %c0_263 = arith.constant 0 : index
    %c0_264 = arith.constant 0 : index
    %300 = vector.load %arg29[%c0_263, %c0_264] : memref<1x1xf32, #tpu.memory_space<vmem>>, vector<1x1xf32>
    %301 = vector.broadcast %300 : vector<1x1xf32> to vector<8x16xf32>
    %302 = arith.addf %299, %301 : vector<8x16xf32>
    %303 = arith.negf %302 : vector<8x16xf32>
    %304 = math.exp %303 : vector<8x16xf32>
    %cst_265 = arith.constant 1.000000e+00 : f32
    %305 = vector.broadcast %cst_265 : f32 to vector<8x16xf32>
    %306 = arith.addf %305, %304 : vector<8x16xf32>
    %307 = arith.divf %305, %306 : vector<8x16xf32>
    %c0_266 = arith.constant 0 : index
    %c0_267 = arith.constant 0 : index
    %308 = vector.load %arg30[%c0_266, %c0_267] : memref<16x64xbf16, #tpu.memory_space<vmem>>, vector<16x64xbf16>
    %309 = arith.truncf %307 : vector<8x16xf32> to vector<8x16xbf16>
    %cst_268 = arith.constant dense<0.000000e+00> : vector<8x64xf32>
    %310 = tpu.matmul %309, %308, %cst_268 {dimension_numbers = #tpu.dot_dimension_numbers<[1], [0], [0], [1], [0, 0, 1, 1], [], []>} : vector<8x16xbf16>, vector<16x64xbf16>, vector<8x64xf32> -> vector<8x64xf32>
    %c0_269 = arith.constant 0 : index
    %c0_270 = arith.constant 0 : index
    %311 = vector.load %arg31[%c0_269, %c0_270] : memref<64x256xbf16, #tpu.memory_space<vmem>>, vector<64x256xbf16>
    %312 = arith.truncf %310 : vector<8x64xf32> to vector<8x64xbf16>
    %cst_271 = arith.constant dense<0.000000e+00> : vector<8x256xf32>
    %313 = tpu.matmul %312, %311, %cst_271 {dimension_numbers = #tpu.dot_dimension_numbers<[1], [0], [0], [1], [0, 0, 1, 1], [], []>} : vector<8x64xbf16>, vector<64x256xbf16>, vector<8x256xf32> -> vector<8x256xf32>
    %314 = vector.extract_strided_slice %307 {offsets = [0, 0], sizes = [1, 16], strides = [1, 1]} : vector<8x16xf32> to vector<1x16xf32>
    %315 = vector.extract_strided_slice %310 {offsets = [0, 0], sizes = [1, 64], strides = [1, 1]} : vector<8x64xf32> to vector<1x64xf32>
    %316 = vector.extract_strided_slice %313 {offsets = [0, 0], sizes = [1, 256], strides = [1, 1]} : vector<8x256xf32> to vector<1x256xf32>
    %317 = arith.extf %7 : vector<256x16xbf16> to vector<256x16xf32>
    %cst_272 = arith.constant dense<0.000000e+00> : vector<256xf32>
    %318 = vector.multi_reduction <add>, %317, %cst_272 [1] : vector<256x16xf32> to vector<256xf32>
    %319 = vector.shape_cast %318 : vector<256xf32> to vector<256x1xf32>
    %cst_273 = arith.constant 6.250000e-02 : f32
    %320 = vector.broadcast %cst_273 : f32 to vector<256x1xf32>
    %321 = arith.mulf %319, %320 : vector<256x1xf32>
    %322 = vector.broadcast %314 : vector<1x16xf32> to vector<256x16xf32>
    %323 = arith.mulf %317, %322 : vector<256x16xf32>
    %cst_274 = arith.constant dense<0.000000e+00> : vector<256xf32>
    %324 = vector.multi_reduction <add>, %323, %cst_274 [1] : vector<256x16xf32> to vector<256xf32>
    %325 = vector.shape_cast %324 : vector<256xf32> to vector<256x1xf32>
    %cst_275 = arith.constant 6.250000e-02 : f32
    %326 = vector.broadcast %cst_275 : f32 to vector<256x1xf32>
    %327 = arith.mulf %325, %326 : vector<256x1xf32>
    %328 = vector.broadcast %314 : vector<1x16xf32> to vector<128x16xf32>
    %329 = arith.mulf %297, %328 : vector<128x16xf32>
    %cst_276 = arith.constant dense<0.000000e+00> : vector<128xf32>
    %330 = vector.multi_reduction <add>, %329, %cst_276 [1] : vector<128x16xf32> to vector<128xf32>
    %331 = vector.shape_cast %330 : vector<128xf32> to vector<128x1xf32>
    %cst_277 = arith.constant 6.250000e-02 : f32
    %332 = vector.broadcast %cst_277 : f32 to vector<128x1xf32>
    %333 = arith.mulf %331, %332 : vector<128x1xf32>
    %334 = vector.broadcast %315 : vector<1x64xf32> to vector<64x64xf32>
    %335 = arith.mulf %214, %334 : vector<64x64xf32>
    %cst_278 = arith.constant dense<0.000000e+00> : vector<64xf32>
    %336 = vector.multi_reduction <add>, %335, %cst_278 [1] : vector<64x64xf32> to vector<64xf32>
    %337 = vector.shape_cast %336 : vector<64xf32> to vector<64x1xf32>
    %cst_279 = arith.constant 1.562500e-02 : f32
    %338 = vector.broadcast %cst_279 : f32 to vector<64x1xf32>
    %339 = arith.mulf %337, %338 : vector<64x1xf32>
    %340 = vector.broadcast %316 : vector<1x256xf32> to vector<32x256xf32>
    %341 = arith.mulf %131, %340 : vector<32x256xf32>
    %cst_280 = arith.constant dense<0.000000e+00> : vector<32xf32>
    %342 = vector.multi_reduction <add>, %341, %cst_280 [1] : vector<32x256xf32> to vector<32xf32>
    %343 = vector.shape_cast %342 : vector<32xf32> to vector<32x1xf32>
    %cst_281 = arith.constant 3.906250e-03 : f32
    %344 = vector.broadcast %cst_281 : f32 to vector<32x1xf32>
    %345 = arith.mulf %343, %344 : vector<32x1xf32>
    %346 = tpu.concatenate %321, %327, %333, %339, %345 in 0 : vector<256x1xf32>, vector<256x1xf32>, vector<128x1xf32>, vector<64x1xf32>, vector<32x1xf32> -> vector<736x1xf32>
    %c0_282 = arith.constant 0 : index
    %c0_283 = arith.constant 0 : index
    %347 = vector.load %arg35[%c0_282, %c0_283] : memref<736x1xf32, #tpu.memory_space<vmem>>, vector<736x1xf32>
    %cst_284 = arith.constant 9.99999974E-6 : f32
    %348 = vector.broadcast %cst_284 : f32 to vector<736x1xf32>
    %349 = arith.addf %347, %348 : vector<736x1xf32>
    %350 = math.rsqrt %349 : vector<736x1xf32>
    %c0_285 = arith.constant 0 : index
    %c0_286 = arith.constant 0 : index
    %351 = vector.load %arg34[%c0_285, %c0_286] : memref<736x1xf32, #tpu.memory_space<vmem>>, vector<736x1xf32>
    %352 = arith.subf %346, %351 : vector<736x1xf32>
    %353 = arith.mulf %352, %350 : vector<736x1xf32>
    %c0_287 = arith.constant 0 : index
    %c0_288 = arith.constant 0 : index
    %354 = vector.load %arg32[%c0_287, %c0_288] : memref<736x1xf32, #tpu.memory_space<vmem>>, vector<736x1xf32>
    %355 = arith.mulf %353, %354 : vector<736x1xf32>
    %c0_289 = arith.constant 0 : index
    %c0_290 = arith.constant 0 : index
    %356 = vector.load %arg33[%c0_289, %c0_290] : memref<736x1xf32, #tpu.memory_space<vmem>>, vector<736x1xf32>
    %357 = arith.addf %355, %356 : vector<736x1xf32>
    %c0_291 = arith.constant 0 : index
    %c0_292 = arith.constant 0 : index
    %358 = vector.load %arg36[%c0_291, %c0_292] : memref<16x736xbf16, #tpu.memory_space<vmem>>, vector<16x736xbf16>
    %359 = vector.shape_cast %357 : vector<736x1xf32> to vector<736x1xf32>
    %360 = vector.broadcast %359 : vector<736x1xf32> to vector<736x8xf32>
    %361 = arith.truncf %360 : vector<736x8xf32> to vector<736x8xbf16>
    %cst_293 = arith.constant dense<0.000000e+00> : vector<16x8xf32>
    %362 = tpu.matmul %358, %361, %cst_293 {dimension_numbers = #tpu.dot_dimension_numbers<[1], [0], [0], [1], [0, 0, 1, 1], [], []>} : vector<16x736xbf16>, vector<736x8xbf16>, vector<16x8xf32> -> vector<16x8xf32>
    %c0_294 = arith.constant 0 : index
    %c0_295 = arith.constant 0 : index
    %c0_296 = arith.constant 0 : index
    %363 = vector.load %arg37[%c0_294, %c0_295, %c0_296] : memref<1x736x1xf32, #tpu.memory_space<vmem>>, vector<1x736x1xf32>
    %364 = vector.shape_cast %363 : vector<1x736x1xf32> to vector<736x1xf32>
    %365 = vector.shape_cast %346 : vector<736x1xf32> to vector<1x736x1xf32>
    tpu.vector_store %arg37[%c0_294, %c0_295, %c0_296], %365 {strides = array<i32>} : memref<1x736x1xf32, #tpu.memory_space<vmem>>, vector<1x736x1xf32>,
    %c0_297 = arith.constant 0 : index
    %c0_298 = arith.constant 0 : index
    %c0_299 = arith.constant 0 : index
    %366 = vector.load %arg38[%c0_297, %c0_298, %c0_299] : memref<1x736x1xf32, #tpu.memory_space<vmem>>, vector<1x736x1xf32>
    %367 = vector.shape_cast %366 : vector<1x736x1xf32> to vector<736x1xf32>
    %368 = vector.shape_cast %357 : vector<736x1xf32> to vector<1x736x1xf32>
    tpu.vector_store %arg38[%c0_297, %c0_298, %c0_299], %368 {strides = array<i32>} : memref<1x736x1xf32, #tpu.memory_space<vmem>>, vector<1x736x1xf32>,
    %369 = vector.extract_strided_slice %362 {offsets = [0, 0], sizes = [16, 1], strides = [1, 1]} : vector<16x8xf32> to vector<16x1xf32>
    %c0_300 = arith.constant 0 : index
    %c0_301 = arith.constant 0 : index
    %c0_302 = arith.constant 0 : index
    %370 = vector.load %arg39[%c0_300, %c0_301, %c0_302] : memref<1x16x1xf32, #tpu.memory_space<vmem>>, vector<1x16x1xf32>
    %371 = vector.shape_cast %370 : vector<1x16x1xf32> to vector<16x1xf32>
    %372 = vector.shape_cast %369 : vector<16x1xf32> to vector<1x16x1xf32>
    tpu.vector_store %arg39[%c0_300, %c0_301, %c0_302], %372 {strides = array<i32>} : memref<1x16x1xf32, #tpu.memory_space<vmem>>, vector<1x16x1xf32>,
    return
  }
  func.func @transform_0(%arg0: i32) -> (i32, i32, i32) {
    %c0_i32 = arith.constant 0 : i32
    %c0_i32_0 = arith.constant 0 : i32
    %c0_i32_1 = arith.constant 0 : i32
    return %arg0, %c0_i32, %c0_i32_0 : i32, i32, i32
  }
  func.func @transform_1(%arg0: i32) -> (i32, i32, i32) {
    %c0_i32 = arith.constant 0 : i32
    %c0_i32_0 = arith.constant 0 : i32
    %c0_i32_1 = arith.constant 0 : i32
    return %arg0, %c0_i32, %c0_i32_0 : i32, i32, i32
  }
  func.func @transform_2(%arg0: i32) -> (i32, i32, i32) {
    %c0_i32 = arith.constant 0 : i32
    %c0_i32_0 = arith.constant 0 : i32
    %c0_i32_1 = arith.constant 0 : i32
    return %arg0, %c0_i32, %c0_i32_0 : i32, i32, i32
  }
  func.func @transform_3(%arg0: i32) -> (i32, i32, i32) {
    %c0_i32 = arith.constant 0 : i32
    %c0_i32_0 = arith.constant 0 : i32
    %c0_i32_1 = arith.constant 0 : i32
    return %arg0, %c0_i32, %c0_i32_0 : i32, i32, i32
  }
  func.func @transform_4(%arg0: i32) -> (i32, i32) {
    %c0_i32 = arith.constant 0 : i32
    %c0_i32_0 = arith.constant 0 : i32
    %c0_i32_1 = arith.constant 0 : i32
    return %c0_i32, %c0_i32_0 : i32, i32
  }
  func.func @transform_5(%arg0: i32) -> (i32, i32) {
    %c0_i32 = arith.constant 0 : i32
    %c0_i32_0 = arith.constant 0 : i32
    %c0_i32_1 = arith.constant 0 : i32
    return %c0_i32, %c0_i32_0 : i32, i32
  }
  func.func @transform_6(%arg0: i32) -> (i32, i32) {
    %c0_i32 = arith.constant 0 : i32
    %c0_i32_0 = arith.constant 0 : i32
    %c0_i32_1 = arith.constant 0 : i32
    return %c0_i32, %c0_i32_0 : i32, i32
  }
  func.func @transform_7(%arg0: i32) -> (i32, i32) {
    %c0_i32 = arith.constant 0 : i32
    %c0_i32_0 = arith.constant 0 : i32
    %c0_i32_1 = arith.constant 0 : i32
    return %c0_i32, %c0_i32_0 : i32, i32
  }
  func.func @transform_8(%arg0: i32) -> (i32, i32) {
    %c0_i32 = arith.constant 0 : i32
    %c0_i32_0 = arith.constant 0 : i32
    %c0_i32_1 = arith.constant 0 : i32
    return %c0_i32, %c0_i32_0 : i32, i32
  }
  func.func @transform_9(%arg0: i32) -> (i32, i32) {
    %c0_i32 = arith.constant 0 : i32
    %c0_i32_0 = arith.constant 0 : i32
    %c0_i32_1 = arith.constant 0 : i32
    return %c0_i32, %c0_i32_0 : i32, i32
  }
  func.func @transform_10(%arg0: i32) -> (i32, i32) {
    %c0_i32 = arith.constant 0 : i32
    %c0_i32_0 = arith.constant 0 : i32
    %c0_i32_1 = arith.constant 0 : i32
    return %c0_i32, %c0_i32_0 : i32, i32
  }
  func.func @transform_11(%arg0: i32) -> (i32, i32) {
    %c0_i32 = arith.constant 0 : i32
    %c0_i32_0 = arith.constant 0 : i32
    %c0_i32_1 = arith.constant 0 : i32
    return %c0_i32, %c0_i32_0 : i32, i32
  }
  func.func @transform_12(%arg0: i32) -> (i32, i32) {
    %c0_i32 = arith.constant 0 : i32
    %c0_i32_0 = arith.constant 0 : i32
    %c0_i32_1 = arith.constant 0 : i32
    return %c0_i32, %c0_i32_0 : i32, i32
  }
  func.func @transform_13(%arg0: i32) -> (i32, i32) {
    %c0_i32 = arith.constant 0 : i32
    %c0_i32_0 = arith.constant 0 : i32
    %c0_i32_1 = arith.constant 0 : i32
    return %c0_i32, %c0_i32_0 : i32, i32
  }
  func.func @transform_14(%arg0: i32) -> (i32, i32) {
    %c0_i32 = arith.constant 0 : i32
    %c0_i32_0 = arith.constant 0 : i32
    %c0_i32_1 = arith.constant 0 : i32
    return %c0_i32, %c0_i32_0 : i32, i32
  }
  func.func @transform_15(%arg0: i32) -> (i32, i32) {
    %c0_i32 = arith.constant 0 : i32
    %c0_i32_0 = arith.constant 0 : i32
    %c0_i32_1 = arith.constant 0 : i32
    return %c0_i32, %c0_i32_0 : i32, i32
  }
  func.func @transform_16(%arg0: i32) -> (i32, i32) {
    %c0_i32 = arith.constant 0 : i32
    %c0_i32_0 = arith.constant 0 : i32
    %c0_i32_1 = arith.constant 0 : i32
    return %c0_i32, %c0_i32_0 : i32, i32
  }
  func.func @transform_17(%arg0: i32) -> (i32, i32) {
    %c0_i32 = arith.constant 0 : i32
    %c0_i32_0 = arith.constant 0 : i32
    %c0_i32_1 = arith.constant 0 : i32
    return %c0_i32, %c0_i32_0 : i32, i32
  }
  func.func @transform_18(%arg0: i32) -> (i32, i32, i32) {
    %c0_i32 = arith.constant 0 : i32
    %c0_i32_0 = arith.constant 0 : i32
    %c0_i32_1 = arith.constant 0 : i32
    %c0_i32_2 = arith.constant 0 : i32
    return %c0_i32, %c0_i32_0, %c0_i32_1 : i32, i32, i32
  }
  func.func @transform_19(%arg0: i32) -> (i32, i32) {
    %c0_i32 = arith.constant 0 : i32
    %c0_i32_0 = arith.constant 0 : i32
    %c0_i32_1 = arith.constant 0 : i32
    return %c0_i32, %c0_i32_0 : i32, i32
  }
  func.func @transform_20(%arg0: i32) -> (i32, i32, i32) {
    %c0_i32 = arith.constant 0 : i32
    %c0_i32_0 = arith.constant 0 : i32
    %c0_i32_1 = arith.constant 0 : i32
    %c0_i32_2 = arith.constant 0 : i32
    return %c0_i32, %c0_i32_0, %c0_i32_1 : i32, i32, i32
  }
  func.func @transform_21(%arg0: i32) -> (i32, i32) {
    %c0_i32 = arith.constant 0 : i32
    %c0_i32_0 = arith.constant 0 : i32
    %c0_i32_1 = arith.constant 0 : i32
    return %c0_i32, %c0_i32_0 : i32, i32
  }
  func.func @transform_22(%arg0: i32) -> (i32, i32, i32) {
    %c0_i32 = arith.constant 0 : i32
    %c0_i32_0 = arith.constant 0 : i32
    %c0_i32_1 = arith.constant 0 : i32
    %c0_i32_2 = arith.constant 0 : i32
    return %c0_i32, %c0_i32_0, %c0_i32_1 : i32, i32, i32
  }
  func.func @transform_23(%arg0: i32) -> (i32, i32) {
    %c0_i32 = arith.constant 0 : i32
    %c0_i32_0 = arith.constant 0 : i32
    %c0_i32_1 = arith.constant 0 : i32
    return %c0_i32, %c0_i32_0 : i32, i32
  }
  func.func @transform_24(%arg0: i32) -> (i32, i32, i32) {
    %c0_i32 = arith.constant 0 : i32
    %c0_i32_0 = arith.constant 0 : i32
    %c0_i32_1 = arith.constant 0 : i32
    %c0_i32_2 = arith.constant 0 : i32
    return %c0_i32, %c0_i32_0, %c0_i32_1 : i32, i32, i32
  }
  func.func @transform_25(%arg0: i32) -> (i32, i32, i32) {
    %c0_i32 = arith.constant 0 : i32
    %c0_i32_0 = arith.constant 0 : i32
    %c0_i32_1 = arith.constant 0 : i32
    %c0_i32_2 = arith.constant 0 : i32
    return %c0_i32, %c0_i32_0, %c0_i32_1 : i32, i32, i32
  }
  func.func @transform_26(%arg0: i32) -> (i32, i32, i32) {
    %c0_i32 = arith.constant 0 : i32
    %c0_i32_0 = arith.constant 0 : i32
    %c0_i32_1 = arith.constant 0 : i32
    %c0_i32_2 = arith.constant 0 : i32
    return %c0_i32, %c0_i32_0, %c0_i32_1 : i32, i32, i32
  }
  func.func @transform_27(%arg0: i32) -> (i32, i32) {
    %c0_i32 = arith.constant 0 : i32
    %c0_i32_0 = arith.constant 0 : i32
    %c0_i32_1 = arith.constant 0 : i32
    return %c0_i32, %c0_i32_0 : i32, i32
  }
  func.func @transform_28(%arg0: i32) -> (i32, i32) {
    %c0_i32 = arith.constant 0 : i32
    %c0_i32_0 = arith.constant 0 : i32
    %c0_i32_1 = arith.constant 0 : i32
    return %c0_i32, %c0_i32_0 : i32, i32
  }
  func.func @transform_29(%arg0: i32) -> (i32, i32) {
    %c0_i32 = arith.constant 0 : i32
    %c0_i32_0 = arith.constant 0 : i32
    %c0_i32_1 = arith.constant 0 : i32
    return %c0_i32, %c0_i32_0 : i32, i32
  }
  func.func @transform_30(%arg0: i32) -> (i32, i32) {
    %c0_i32 = arith.constant 0 : i32
    %c0_i32_0 = arith.constant 0 : i32
    %c0_i32_1 = arith.constant 0 : i32
    return %c0_i32, %c0_i32_0 : i32, i32
  }
  func.func @transform_31(%arg0: i32) -> (i32, i32) {
    %c0_i32 = arith.constant 0 : i32
    %c0_i32_0 = arith.constant 0 : i32
    %c0_i32_1 = arith.constant 0 : i32
    return %c0_i32, %c0_i32_0 : i32, i32
  }
  func.func @transform_32(%arg0: i32) -> (i32, i32) {
    %c0_i32 = arith.constant 0 : i32
    %c0_i32_0 = arith.constant 0 : i32
    %c0_i32_1 = arith.constant 0 : i32
    return %c0_i32, %c0_i32_0 : i32, i32
  }
  func.func @transform_33(%arg0: i32) -> (i32, i32) {
    %c0_i32 = arith.constant 0 : i32
    %c0_i32_0 = arith.constant 0 : i32
    %c0_i32_1 = arith.constant 0 : i32
    return %c0_i32, %c0_i32_0 : i32, i32
  }
  func.func @transform_34(%arg0: i32) -> (i32, i32) {
    %c0_i32 = arith.constant 0 : i32
    %c0_i32_0 = arith.constant 0 : i32
    %c0_i32_1 = arith.constant 0 : i32
    return %c0_i32, %c0_i32_0 : i32, i32
  }
  func.func @transform_35(%arg0: i32) -> (i32, i32) {
    %c0_i32 = arith.constant 0 : i32
    %c0_i32_0 = arith.constant 0 : i32
    %c0_i32_1 = arith.constant 0 : i32
    return %c0_i32, %c0_i32_0 : i32, i32
  }
  func.func @transform_36(%arg0: i32) -> (i32, i32, i32) {
    %c0_i32 = arith.constant 0 : i32
    %c0_i32_0 = arith.constant 0 : i32
    %c0_i32_1 = arith.constant 0 : i32
    return %arg0, %c0_i32, %c0_i32_0 : i32, i32, i32
  }
  func.func @transform_37(%arg0: i32) -> (i32, i32, i32) {
    %c0_i32 = arith.constant 0 : i32
    %c0_i32_0 = arith.constant 0 : i32
    %c0_i32_1 = arith.constant 0 : i32
    return %arg0, %c0_i32, %c0_i32_0 : i32, i32, i32
  }
  func.func @transform_38(%arg0: i32) -> (i32, i32, i32) {
    %c0_i32 = arith.constant 0 : i32
    %c0_i32_0 = arith.constant 0 : i32
    %c0_i32_1 = arith.constant 0 : i32
    return %arg0, %c0_i32, %c0_i32_0 : i32, i32, i32
  }
}

</mosaic_0001>

<bundles_post_ra>
// kernel: rgb_to_infrared_forward.1
= control target key start
LH: loop header
LB: loop body
LE: loop exit
PB: predicated region body
PF: predicated region fallthrough
CT: control target
= control target key end

     0   :  { %s17457_s6 = smov 1   ;;  %s17458_s10 = smov 2   ;;  %s21566_s0 = inlined_call_operand.smem [shape: u32[39], index: -1, kind: input, shape index: {}] }
   0x1   :  { %s17506_s5 = sld [smem:[%s21566_s0]]   ;;  %s17459_s14 = smov 3  }
   0x2   :  { %s17511_s9 = sld [smem:[%s21566_s0 + %s17457_s6]]   ;;  %s17460_s18 = smov 4  }
   0x3   :  { %s17516_s13 = sld [smem:[%s21566_s0 + %s17458_s10]]   ;;  %s17461_s22 = smov 5  }
   0x4   :  { %s17521_s17 = sld [smem:[%s21566_s0 + %s17459_s14]]   ;;  %s17462_s26 = smov 6  }
   0x5   :  { %s17526_s21 = sld [smem:[%s21566_s0 + %s17460_s18]]   ;;  %s17463_s30 = smov 7  }
   0x6   :  { %s17531_s25 = sld [smem:[%s21566_s0 + %s17461_s22]]   ;;  %s17464_s4 = smov 8  }
   0x7   :  { %21716 = sst [smem:[#allocation3_spill]] %s17506_s5  ;;  %s17465_s10 = smov 9  }
   0x8   :  { %s17536_s29 = sld [smem:[%s21566_s0 + %s17462_s26]]   ;;  %s17466_s15 = smov 10  }
   0x9   :  { %s17541_s3 = sld [smem:[%s21566_s0 + %s17463_s30]]   ;;  %s17467_s20 = smov 11  }
   0xa   :  { %s17546_s8 = sld [smem:[%s21566_s0 + %s17464_s4]]   ;;  %s17468_s26 = smov 12  }
   0xb   :  { %s17551_s14 = sld [smem:[%s21566_s0 + %s17465_s10]]   ;;  %s17469_s1 = smov 13  }
   0xc   :  { %s17556_s19 = sld [smem:[%s21566_s0 + %s17466_s15]]   ;;  %s17470_s7 = smov 14  }
   0xd   :  { %s17561_s24 = sld [smem:[%s21566_s0 + %s17467_s20]]   ;;  %s17471_s15 = smov 15  }
   0xe   :  { %s17566_s30 = sld [smem:[%s21566_s0 + %s17468_s26]]   ;;  %s17472_s22 = smov 16  }
   0xf   :  { %21717 = sst [smem:[#allocation4_spill]] %s17541_s3  ;;  %s17473_s28 = smov 17  }
  0x10   :  { %s17571_s6 = sld [smem:[%s21566_s0 + %s17469_s1]]   ;;  %s17485_s1 = smov 29  }
  0x11   :  { %s17576_s12 = sld [smem:[%s21566_s0 + %s17470_s7]]   ;;  %s17474_s7 = smov 18  }
  0x12   :  { %s17581_s20 = sld [smem:[%s21566_s0 + %s17471_s15]]   ;;  %s17475_s15 = smov 19  }
  0x13   :  { %s17586_s27 = sld [smem:[%s21566_s0 + %s17472_s22]]   ;;  %s17476_s22 = smov 20  }
  0x14   :  { %21718 = sst [smem:[#allocation5_spill]] %s17566_s30  ;;  %s17486_s10 = smov 30  }
  0x15   :  { %s17591_s4 = sld [smem:[%s21566_s0 + %s17473_s28]]   ;;  %s17477_s28 = smov 21  }
  0x16   :  { %s17601_s30 = sld [smem:[%s21566_s0 + %s17475_s15]]   ;;  %s17479_s15 = smov 23  }
  0x17   :  { %21719 = sst [smem:[#allocation6_spill]] %s17576_s12  ;;  %s17487_s16 = smov 31  }
  0x18   :  { %21720 = sst [smem:[#allocation7_spill]] %s17581_s20  ;;  %s17488_s23 = smov 32  }
  0x19   :  { %21721 = sst [smem:[#allocation8_spill]] %s17586_s27 }
  0x1a   :  { %s17596_s12 = sld [smem:[%s21566_s0 + %s17474_s7]]   ;;  %s17478_s7 = smov 22  }
  0x1b   :  { %21722 = sst [smem:[#allocation9_spill]] %s17591_s4 }
  0x1c   :  { %21724 = sst [smem:[#allocation11_spill]] %s17601_s30 }
  0x1d   :  { %s17606_s27 = sld [smem:[%s21566_s0 + %s17476_s22]]   ;;  %s17480_s22 = smov 24  }
  0x1e   :  { %s17611_s4 = sld [smem:[%s21566_s0 + %s17477_s28]]   ;;  %s17481_s28 = smov 25  }
  0x1f   :  { %s17621_s30 = sld [smem:[%s21566_s0 + %s17479_s15]]   ;;  %s17483_s15 = smov 27  }
  0x20   :  { %21723 = sst [smem:[#allocation10_spill]] %s17596_s12 }
  0x21   :  { %s17616_s12 = sld [smem:[%s21566_s0 + %s17478_s7]]   ;;  %s17482_s7 = smov 26  }
  0x22   :  { %s17664_s20 = sld [smem:[%s21566_s0 + %s17488_s23]]   ;;  %s17492_s23 = smov 36  }
  0x23   :  { %21725 = sst [smem:[#allocation12_spill]] %s17606_s27 }
  0x24   :  { %21726 = sst [smem:[#allocation13_spill]] %s17611_s4 }
  0x25   :  { %21728 = sst [smem:[#allocation15_spill]] %s17621_s30 }
  0x26   :  { %s17626_s27 = sld [smem:[%s21566_s0 + %s17480_s22]]   ;;  %s17484_s22 = smov 28  }
  0x27   :  { %21727 = sst [smem:[#allocation14_spill]] %s17616_s12 }
  0x28   :  { %s17631_s4 = sld [smem:[%s21566_s0 + %s17481_s28]]   ;;  %s17493_s28 = smov 37  }
  0x29   :  { %s17636_s12 = sld [smem:[%s21566_s0 + %s17482_s7]]  }
  0x2a   :  { %s17641_s30 = sld [smem:[%s21566_s0 + %s17483_s15]]  }
  0x2b   :  { %21736 = sst [smem:[#allocation23_spill]] %s17664_s20 }
  0x2c   :  { %21729 = sst [smem:[#allocation16_spill]] %s17626_s27 }
  0x2d   :  { %s13520_s27 = sld [smem:[%s21566_s0 + %s17484_s22]]  }
  0x2e   :  { %21730 = sst [smem:[#allocation17_spill]] %s17631_s4 }
  0x2f   :  { %21731 = sst [smem:[#allocation18_spill]] %s17636_s12 }
  0x30   :  { %21732 = sst [smem:[#allocation19_spill]] %s17641_s30 }
  0x31   :  { %s17649_s4 = sld [smem:[%s21566_s0 + %s17485_s1]]   ;;  %s17489_s1 = smov 33  }
  0x32   :  { %s17654_s12 = sld [smem:[%s21566_s0 + %s17486_s10]]   ;;  %s17490_s10 = smov 34  }
  0x33   :  { %s17659_s30 = sld [smem:[%s21566_s0 + %s17487_s16]]   ;;  %v83_v0 = vstv %s13520_s27  ;;  %s17491_s16 = smov 35  }
  0x34   :  { %s17679_s22 = sld [smem:[%s21566_s0 + %s17491_s16]]   ;;  %84 = vst [vmem:[#allocation2] sm:$0x1] %v83_v0  ;;  %s17494_s27 = smov 38  }
  0x35   :  { %s17694_s15 = sld [smem:[%s21566_s0 + %s17494_s27]]   ;;  %s17696_s16 = smov 0  }
  0x37   :  { %21733 = sst [smem:[#allocation20_spill]] %s17649_s4 }
  0x38   :  { %21734 = sst [smem:[#allocation21_spill]] %s17654_s12 }
  0x39   :  { %21735 = sst [smem:[#allocation22_spill]] %s17659_s30 }
  0x3a   :  { %s17669_s4 = sld [smem:[%s21566_s0 + %s17489_s1]]  }
  0x3b   :  { %s17674_s12 = sld [smem:[%s21566_s0 + %s17490_s10]]  }
  0x3c   :  { %s17684_s1 = sld [smem:[%s21566_s0 + %s17492_s23]]  }
  0x3d   :  { %s17689_s10 = sld [smem:[%s21566_s0 + %s17493_s28]]  }
  0x42   :  { %21737 = sst [smem:[#allocation24_spill]] %s17684_s1 }
  0x43 LB: > { %s21738_s3 = sld [smem:[#allocation4_spill]]  ;;  %s13531_s20 = sadd.s32 4294967295, %s17455_s16   ;;  %s17455_s16 = sphi %s17696_s16, %s90_s16  }
  0x44   : > { %p13535_p0 = scmp.ge.s32.totalorder %s17455_s16, 1  ;;  %p1088_p1 = scmp.lt.s32.totalorder %s17455_s16, 3 }
  0x46   : > { %p1089_p2 = pnand %p13535_p0, %p1088_p1 }
  0x48   : > { %1092 = sbr.rel (%p1089_p2) target bundleno = 4358 (0x1106), region = 164 }
  0x4d   : > { %s21739_s5 = sld [smem:[#allocation3_spill]]  ;;  %v1920_v1 = vld [vmem:[%s17561_s24] sm:$0xff]  ;;  %p1207_p3 = scmp.lt.s32.totalorder %s13531_s20, 1  ;;  %v21611_v3 = vmov 0   ;;  %v1921_v4 = vld [vmem:[%s17561_s24 + $0x8] sm:$0xff]  ;;  %vm1521_vm0 = vcmask 523264  }
  0x4e   : > { %v1615_v2 = vld [vmem:[%s17551_s14] sm:$0xff]  ;;  %16286 = vset.pattern.permute.xlu1 %v21611_v3  ;;  %16285 = vset.pattern.permute.xlu0 %v21611_v3  ;;  %v1616_v5 = vld [vmem:[%s17551_s14 + $0x8] sm:$0xff]  ;;  %v1618_v6 = vld [vmem:[%s17551_s14 + $0x18] sm:$0xff]  ;;  %vm1361_vm1 = vcmask 261120   ;;  %s21756_s27 = sld [smem:[#allocation7_spill]]  ;;  %vm2321_vm2 = vcmask 130048  }
  0x4f   : > { %1938 = vperm.xlu1 %16286, %v1920_v1   ;;  %1633 = vperm.xlu0 %16285, %v1615_v2   ;;  %s22202_s20 = smov (!%p1207_p3, %s13531_s20), 1  ;;  %v1617_v7 = vld [vmem:[%s17551_s14 + $0x10] sm:$0xff]  ;;  %v16530_v8 = vld [vmem:[%s17536_s29] sm:$0xff]   ;;  %v1923_v13 = vld [vmem:[%s17561_s24 + $0x18] sm:$0xff]  ;;  %s21757_s7 = sld [smem:[#allocation8_spill]]  ;;  %vm13149_vm3 = vcmask 7168  }
  0x50   : > { %1400 = vmatprep.mubr.bf16.mxu0 %v21611_v3  ;;  %s14850_s0 = sshll.u32 %s22202_s20, 5  ;;  %s14852_s23 = sshll.u32 %s22202_s20, 6  ;;  %15409 = vmatprep.mubr.msk.bf16.mxu1 %vm1521_vm0, %v16530_v8  ;;  %v1922_v14 = vld [vmem:[%s17561_s24 + $0x10] sm:$0xff]  ;;  %v1620_v19 = vld [vmem:[%s17551_s14 + $0x28] sm:$0xff]  ;;  %v1619_v20 = vld [vmem:[%s17551_s14 + $0x20] sm:$0xff]  ;;  %vm17497_vm4 = vmmov 0  }
  0x51   : > { %s17716_s18 = scalar_lea.vmem %s17511_s9, %s14850_s0  ;;  %s17725_s26 = scalar_lea.vmem %s17516_s13, %s14852_s23  ;;  %v16527_v21 = vld [vmem:[%s17526_s21] sm:$0xff]   ;;  %v1925_v25 = vld [vmem:[%s17561_s24 + $0x28] sm:$0xff]  ;;  %v1622_v31 = vld [vmem:[%s17551_s14 + $0x38] sm:$0xff]  ;;  %vm13022_vm5 = vcmask 785408  }
  0x52   : > { %v16519_v10 = vld [vmem:[%s17716_s18 + $0x18] sm:$0xff]   ;;  %v16523_v15 = vld [vmem:[%s17716_s18 + $0x10] sm:$0xff]   ;;  %s14853_s28 = sshll.u32 %s22202_s20, 7  ;;  %v16525_v17 = vld [vmem:[%s17716_s18 + $0x8] sm:$0xff]   ;;  %s21768_s11 = sld [smem:[#allocation11_spill]] }
  0x53   : > { %s1211_s30 = scalar_lea.vmem %s21739_s5, %s14850_s0  ;;  %1943 = vperm.xlu1 %16286, %v1921_v4   ;;  %1638 = vperm.xlu0 %16285, %v1616_v5   ;;  %v16526_v18 = vld [vmem:[%s17725_s26 + $0x38] sm:$0xff]   ;;  %s17735_s2 = scalar_lea.vmem %s17521_s17, %s14853_s28  ;;  %v16528_v22 = vld [vmem:[%s17716_s18] sm:$0xff]   ;;  %v16529_v23 = vld [vmem:[%s17725_s26 + $0x30] sm:$0xff]  }
  0x54   : > { %v16517_v9 = vld [vmem:[%s1211_s30 + $0x14] ss:$8 sps:$4 sm:$0xff]   ;;  %v16520_v11 = vld [vmem:[%s1211_s30 + $0x10] ss:$8 sps:$4 sm:$0xff]   ;;  %15401 = vmatprep.subr.bf16.mxu1 %v16519_v10  ;;  %v16521_v12 = vld [vmem:[%s1211_s30 + $0x4] ss:$8 sps:$4 sm:$0xff]  }
  0x55   : > { %1380 = vmatprep.subr.bf16.mxu0 %v16517_v9  ;;  %v16524_v16 = vld [vmem:[%s1211_s30] ss:$8 sps:$4 sm:$0xff]   ;;  %15402 = vmatpush3.bf16.msra.mxu1 %v16519_v10  ;;  %v17742_v24 = vld [vmem:[%s17735_s2 + $0x78] sm:$0xff]   ;;  %v17752_v29 = vld [vmem:[%s17735_s2 + $0x70] sm:$0xff]   ;;  %s21777_s0 = sld [smem:[#allocation13_spill]]  ;;  %s16235_s30 = smul.u32 736, %s22202_s20 }
  0x56   : > { %1381 = vmatpush1.bf16.msra.mxu0 %v16520_v11  ;;  %15403 = vmatprep.subr.bf16.mxu1 %v16523_v15  ;;  %21740 = vst [vmem:[#allocation25_spill] sm:$0xff] %v17742_v24  ;;  %v1924_v26 = vld [vmem:[%s17561_s24 + $0x20] sm:$0xff]  ;;  %v17748_v27 = vld [vmem:[%s17735_s2 + $0x38] sm:$0xff]   ;;  %v16532_v28 = vld [vmem:[%s17725_s26 + $0x28] sm:$0xff]   ;;  %s21793_s18 = sld [smem:[#allocation15_spill]] }
  0x57   : > { %1648 = vperm.xlu1 %16286, %v1618_v6   ;;  %1643 = vperm.xlu0 %16285, %v1617_v7   ;;  %21741 = vst [vmem:[#allocation26_spill] sm:$0xff] %v17748_v27  ;;  %21742 = vst [vmem:[#allocation27_spill] sm:$0xff] %v17752_v29  ;;  %v16531_v30 = vld [vmem:[%s17536_s29 + $0x8] sm:$0xff]   ;;  %v1621_v32 = vld [vmem:[%s17551_s14 + $0x30] sm:$0xff]  ;;  %s21812_s1 = sld [smem:[#allocation24_spill]] }
  0x58   : > { %1382 = vmatprep.subr.bf16.mxu0 %v16521_v12  ;;  %v16535_v33 = vld [vmem:[%s17725_s26 + $0x20] sm:$0xff]   ;;  %v17761_v34 = vld [vmem:[%s17735_s2 + $0x30] sm:$0xff]   ;;  %v17764_v35 = vld [vmem:[%s17735_s2 + $0x68] sm:$0xff]   ;;  %s21813_s23 = sld [smem:[#allocation22_spill]] }
  0x59   : > { %15404 = vmatpush3.bf16.msra.mxu1 %v16523_v15  ;;  %21743 = vst [vmem:[#allocation28_spill] sm:$0xff] %v17761_v34  ;;  %21744 = vst [vmem:[#allocation29_spill] sm:$0xff] %v17764_v35  ;;  %v16544_v36 = vld [vmem:[%s17526_s21 + $0x8] sm:$0xff]   ;;  %v1927_v37 = vld [vmem:[%s17561_s24 + $0x38] sm:$0xff]  ;;  %s21814_s28 = sld [smem:[#allocation23_spill]] }
  0x5a   : > { %1383 = vmatpush1.bf16.msra.mxu0 %v16524_v16  ;;  %15405 = vmatprep.subr.bf16.mxu1 %v16525_v17  ;;  %v1926_v38 = vld [vmem:[%s17561_s24 + $0x30] sm:$0xff]  ;;  %v16538_v39 = vld [vmem:[%s17725_s26 + $0x18] sm:$0xff]   ;;  %v17773_v40 = vld [vmem:[%s17735_s2 + $0x28] sm:$0xff]   ;;  %s21892_s5 = sld [smem:[#allocation18_spill]] }
  0x5b   : > { %1953 = vperm.xlu1 %16286, %v1923_v13   ;;  %1948 = vperm.xlu0 %16285, %v1922_v14   ;;  %21745 = vst [vmem:[#allocation30_spill] sm:$0xff] %v17773_v40  ;;  %v16547_v41 = vld [vmem:[%s17536_s29 + $0x10] sm:$0xff]   ;;  %v17778_v42 = vld [vmem:[%s17735_s2 + $0x60] sm:$0xff]   ;;  %v16549_v43 = vld [vmem:[%s17536_s29 + $0x18] sm:$0xff]  }
  0x5c   : > { %15417 = vmatprep.subr.bf16.mxu0 %v16526_v18  ;;  %21746 = vst [vmem:[#allocation31_spill] sm:$0xff] %v17778_v42  ;;  %v1624_v44 = vld [vmem:[%s17551_s14 + $0x48] sm:$0xff]  ;;  %v1623_v45 = vld [vmem:[%s17551_s14 + $0x40] sm:$0xff]  ;;  %v16541_v46 = vld [vmem:[%s17725_s26 + $0x10] sm:$0xff]  }
  0x5d   : > { %13554 = vmatmul.mubr.msk.bf16.vlgmr.msra.gmra.mxu0 %vm1361_vm1, %v16527_v21  ;;  %15406 = vmatpush3.bf16.msra.mxu1 %v16525_v17  ;;  %v17789_v47 = vld [vmem:[%s17735_s2 + $0x20] sm:$0xff]   ;;  %v17792_v48 = vld [vmem:[%s17735_s2 + $0x58] sm:$0xff]   ;;  %v1929_v50 = vld [vmem:[%s17561_s24 + $0x48] sm:$0xff] }
  0x5e   : > { %15418 = vmatpush3.bf16.msra.mxu0 %v16526_v18  ;;  %15407 = vmatprep.subr.bf16.mxu1 %v16528_v22  ;;  %21747 = vst [vmem:[#allocation32_spill] sm:$0xff] %v17789_v47  ;;  %21748 = vst [vmem:[#allocation33_spill] sm:$0xff] %v17792_v48  ;;  %v16553_v49 = vld [vmem:[%s17546_s8] sm:$0xff]   ;;  %v16545_v52 = vld [vmem:[%s17725_s26 + $0x8] sm:$0xff]  }
  0x5f   : > { %1658 = vperm.xlu1 %16286, %v1620_v19   ;;  %1653 = vperm.xlu0 %16285, %v1619_v20   ;;  %v1928_v51 = vld [vmem:[%s17561_s24 + $0x40] sm:$0xff]  ;;  %v17802_v53 = vld [vmem:[%s17735_s2 + $0x18] sm:$0xff]   ;;  %v17805_v54 = vld [vmem:[%s17735_s2 + $0x50] sm:$0xff]  }
  0x60   : > { %15419 = vmatprep.subr.bf16.mxu0 %v16529_v23  ;;  %1410 = vmatprep.mubr.bf16.mxu0 %v21611_v3  ;;  %21749 = vst [vmem:[#allocation34_spill] sm:$0xff] %v17802_v53  ;;  %21750 = vst [vmem:[#allocation35_spill] sm:$0xff] %v17805_v54  ;;  %v1626_v55 = vld [vmem:[%s17551_s14 + $0x58] sm:$0xff]  ;;  %v16562_v56 = vld [vmem:[%s17556_s19 + $0x4] ss:$8 sps:$4 sm:$0xff]  }
  0x61   : > { %15408 = vmatpush3.bf16.msra.mxu1 %v16528_v22  ;;  %v1625_v57 = vld [vmem:[%s17551_s14 + $0x50] sm:$0xff]  ;;  %v16550_v59 = vld [vmem:[%s17725_s26] sm:$0xff]   ;;  %v17817_v60 = vld [vmem:[%s17735_s2 + $0x48] sm:$0xff]   ;;  %s18318_s26 = scalar_lea.vmem %s21812_s1, %s16235_s30  ;;  %s21872_s1 = sld [smem:[#allocation10_spill]] }
  0x62   : > { %15420 = vmatpush3.bf16.msra.mxu0 %v16529_v23  ;;  %14879 = vmatprep.subr.bf16.mxu1 %v17742_v24  ;;  %v17813_v58 = vld [vmem:[%s17735_s2 + $0x10] sm:$0xff]   ;;  %21752 = vst [vmem:[#allocation37_spill] sm:$0xff] %v17817_v60  ;;  %v1931_v61 = vld [vmem:[%s17561_s24 + $0x58] sm:$0xff]  ;;  %v16554_v63 = vld [vmem:[%s17546_s8 + $0x8] sm:$0xff]  }
  0x63   : > { %1963 = vperm.xlu1 %16286, %v1925_v25   ;;  %1958 = vperm.xlu0 %16285, %v1924_v26   ;;  %21751 = vst [vmem:[#allocation36_spill] sm:$0xff] %v17813_v58  ;;  %v1930_v62 = vld [vmem:[%s17561_s24 + $0x50] sm:$0xff]  ;;  %v17825_v0 = vld [vmem:[%s17735_s2 + $0x8] sm:$0xff]   ;;  %v17829_v2 = vld [vmem:[%s17735_s2 + $0x40] sm:$0xff]  }
  0x64   : > { %15421 = vmatprep.subr.bf16.mxu0 %v16532_v28  ;;  %15410 = vmatmul.mubr.msk.bf16.vlgmr.msra.gmra.mxu1 %vm1521_vm0, %v16531_v30  ;;  %21753 = vst [vmem:[#allocation38_spill] sm:$0xff] %v17825_v0  ;;  %v1628_v1 = vld [vmem:[%s17551_s14 + $0x68] sm:$0xff]  ;;  %21754 = vst [vmem:[#allocation39_spill] sm:$0xff] %v17829_v2  ;;  %v1627_v4 = vld [vmem:[%s17551_s14 + $0x60] sm:$0xff] }
  0x65   : > { %14880 = vmatpush3.bf16.msra.mxu1 %v17748_v27  ;;  %13555 = vmatmul.mubr.msk.bf16.gmra.mxu0 %vm1361_vm1, %v16544_v36  ;;  %v16559_v5 = vld [vmem:[%s17546_s8 + $0x10] sm:$0xff]   ;;  %v17836_v6 = vld [vmem:[%s17735_s2] sm:$0xff]   ;;  %v1933_v7 = vld [vmem:[%s17561_s24 + $0x68] sm:$0xff] }
  0x66   : > { %15422 = vmatpush3.bf16.msra.mxu0 %v16532_v28  ;;  %14881 = vmatprep.subr.bf16.mxu1 %v17752_v29  ;;  %21755 = vst [vmem:[#allocation40_spill] sm:$0xff] %v17836_v6  ;;  %v1932_v8 = vld [vmem:[%s17561_s24 + $0x60] sm:$0xff]  ;;  %v16563_v10 = vld [vmem:[%s17546_s8 + $0x18] sm:$0xff]   ;;  %v1629_v13 = vld [vmem:[%s17551_s14 + $0x70] sm:$0xff] }
  0x67   : > { %1668 = vperm.xlu1 %16286, %v1622_v31   ;;  %1663 = vperm.xlu0 %16285, %v1621_v32   ;;  %v16560_v9 = vld [vmem:[%s17556_s19] ss:$8 sps:$4 sm:$0xff]   ;;  %v1630_v11 = vld [vmem:[%s17551_s14 + $0x78] sm:$0xff]  ;;  %v1934_v16 = vld [vmem:[%s17561_s24 + $0x70] sm:$0xff] }
  0x68   : > { %15423 = vmatprep.subr.bf16.mxu0 %v16535_v33  ;;  %15413 = vmatprep.mubr.msk.bf16.mxu1 %vm1521_vm0, %v16547_v41  ;;  %v16564_v12 = vld [vmem:[%s17546_s8 + $0x20] sm:$0xff]   ;;  %v16565_v14 = vld [vmem:[%s17556_s19 + $0x14] ss:$8 sps:$4 sm:$0xff]   ;;  %v16567_v17 = vld [vmem:[%s17546_s8 + $0x28] sm:$0xff]  }
  0x69   : > { %14882 = vmatpush3.bf16.msra.mxu1 %v17761_v34  ;;  %15433 = vmatprep.mubr.bf16.mxu0 %v16553_v49  ;;  %v1935_v15 = vld [vmem:[%s17561_s24 + $0x78] sm:$0xff]  ;;  %v1430_v19 = vld [vmem:[%s21738_s3 + $0x8] sm:$0xff]  ;;  %v1429_v20 = vld [vmem:[%s21738_s3] sm:$0xff] }
  0x6a   : > { %15424 = vmatpush3.bf16.msra.mxu0 %v16535_v33  ;;  %14883 = vmatprep.subr.bf16.mxu1 %v17764_v35  ;;  %v16568_v18 = vld [vmem:[%s17556_s19 + $0x10] ss:$8 sps:$4 sm:$0xff]   ;;  %v16570_v22 = vld [vmem:[%s17556_s19 + $0x24] ss:$8 sps:$4 sm:$0xff]   ;;  %v16573_v28 = vld [vmem:[%s17556_s19 + $0x20] ss:$8 sps:$4 sm:$0xff]  }
  0x6b   : > { %1973 = vperm.xlu1 %16286, %v1927_v37   ;;  %1968 = vperm.xlu0 %16285, %v1926_v38   ;;  %v16569_v21 = vld [vmem:[%s17546_s8 + $0x30] sm:$0xff]   ;;  %v2460_v23 = vld [vmem:[%s17571_s6 + $0x8] sm:$0xff]  ;;  %v2459_v25 = vld [vmem:[%s17571_s6] sm:$0xff] }
  0x6c   : > { %15425 = vmatprep.subr.bf16.mxu0 %v16538_v39  ;;  %15414 = vmatmul.mubr.msk.bf16.gmra.mxu1 %vm1521_vm0, %v16549_v43  ;;  %v16572_v26 = vld [vmem:[%s17546_s8 + $0x38] sm:$0xff]   ;;  %v1431_v32 = vld [vmem:[%s21738_s3 + $0x10] sm:$0xff]  ;;  %v1434_v38 = vld [vmem:[%s21738_s3 + $0x28] sm:$0xff] }
  0x6d   : > { %14884 = vmatpush3.bf16.msra.mxu1 %v17773_v40  ;;  %2224 = vmatprep.mubr.bf16.mxu1 %v16562_v56  ;;  %v1432_v30 = vld [vmem:[%s21738_s3 + $0x18] sm:$0xff]  ;;  %v2461_v36 = vld [vmem:[%s17571_s6 + $0x10] sm:$0xff]  ;;  %v1433_v41 = vld [vmem:[%s21738_s3 + $0x20] sm:$0xff] }
  0x6e   : > { %15426 = vmatpush3.bf16.msra.mxu0 %v16538_v39  ;;  %14885 = vmatprep.subr.bf16.mxu1 %v17778_v42  ;;  %v16574_v31 = vld [vmem:[%s17556_s19 + $0x34] ss:$8 sps:$4 sm:$0xff]   ;;  %v16576_v37 = vld [vmem:[%s17556_s19 + $0x30] ss:$8 sps:$4 sm:$0xff]   ;;  %v16577_v39 = vld [vmem:[%s17556_s19 + $0x44] ss:$8 sps:$4 sm:$0xff]  }
  0x6f   : > { %1678 = vperm.xlu1 %16286, %v1624_v44   ;;  %1673 = vperm.xlu0 %16285, %v1623_v45   ;;  %v2462_v33 = vld [vmem:[%s17571_s6 + $0x18] sm:$0xff]  ;;  %v2464_v43 = vld [vmem:[%s17571_s6 + $0x28] sm:$0xff]  ;;  %v2463_v44 = vld [vmem:[%s17571_s6 + $0x20] sm:$0xff] }
  0x70   : > { %15427 = vmatprep.subr.bf16.mxu0 %v16541_v46  ;;  %v16579_v45 = vld [vmem:[%s17556_s19 + $0x40] ss:$8 sps:$4 sm:$0xff]   ;;  %v16580_v49 = vld [vmem:[%s17556_s19 + $0x54] ss:$8 sps:$4 sm:$0xff]  }
  0x71   : > { %14886 = vmatpush3.bf16.msra.mxu1 %v17789_v47  ;;  %v1310_v56 = vld [vmem:[%s17531_s25 + $0x18] sm:$0xff]  ;;  %v11589_v34 = vld [vmem:[%s17674_s12 + $0xe0] sm:$0xff] }
  0x72   : > { %15428 = vmatpush3.bf16.msra.mxu0 %v16541_v46  ;;  %14887 = vmatprep.subr.bf16.mxu1 %v17792_v48  ;;  %v1436_v46 = vld [vmem:[%s21738_s3 + $0x38] sm:$0xff]  ;;  %v11585_v48 = vld [vmem:[%s17674_s12 + $0xc0] sm:$0xff] }
  0x73   : > { %1983 = vperm.xlu1 %16286, %v1929_v50   ;;  %1978 = vperm.xlu0 %16285, %v1928_v51   ;;  %v1435_v50 = vld [vmem:[%s21738_s3 + $0x30] sm:$0xff]  ;;  %v2466_v51 = vld [vmem:[%s17571_s6 + $0x38] sm:$0xff]  ;;  %s21885_s3 = sld [smem:[#allocation12_spill]] }
  0x74   : > { %15429 = vmatprep.subr.bf16.mxu0 %v16545_v52  ;;  %v11592_v42 = vld [vmem:[%s17674_s12 + $0xf8] sm:$0xff] }
  0x75   : > { %14888 = vmatpush3.bf16.msra.mxu1 %v17802_v53 }
  0x76   : > { %15430 = vmatpush3.bf16.msra.mxu0 %v16545_v52  ;;  %14889 = vmatprep.subr.bf16.mxu1 %v17805_v54  ;;  %v2465_v52 = vld [vmem:[%s17571_s6 + $0x30] sm:$0xff] }
  0x77   : > { %1688 = vperm.xlu1 %16286, %v1626_v55   ;;  %1683 = vperm.xlu0 %16285, %v1625_v57   ;;  %v16582_v55 = vld [vmem:[%s17556_s19 + $0x50] ss:$8 sps:$4 sm:$0xff]  }
  0x78   : > { %15431 = vmatprep.subr.bf16.mxu0 %v16550_v59  ;;  %v1309_v57 = vld [vmem:[%s17531_s25 + $0x10] sm:$0xff] }
  0x79   : > { %14890 = vmatpush3.bf16.msra.mxu1 %v17813_v58 }
  0x7a   : > { %15432 = vmatpush3.bf16.msra.mxu0 %v16550_v59  ;;  %14891 = vmatprep.subr.bf16.mxu1 %v17817_v60  ;;  %v16583_v59 = vld [vmem:[%s17556_s19 + $0x64] ss:$8 sps:$4 sm:$0xff]  }
  0x7b   : > { %1993 = vperm.xlu1 %16286, %v1931_v61   ;;  %1988 = vperm.xlu0 %16285, %v1930_v62   ;;  %v2756_v61 = vld [vmem:[%s21756_s27 + $0x18] sm:$0xff]  ;;  %v2755_v62 = vld [vmem:[%s21756_s27 + $0x10] sm:$0xff] }
  0x7d   : > { %15434 = vmatmul.mubr.bf16.vlgmr.msra.gmra.mxu0 %v16554_v63  ;;  %14892 = vmatpush3.bf16.msra.mxu1 %v17825_v0  ;;  %v16585_v63 = vld [vmem:[%s17556_s19 + $0x60] ss:$8 sps:$4 sm:$0xff]  }
  0x7e   : > { %15437 = vmatprep.mubr.bf16.mxu0 %v16559_v5  ;;  %14893 = vmatprep.subr.bf16.mxu1 %v17829_v2  ;;  %v1307_v5 = vld [vmem:[%s17531_s25] sm:$0xff] }
  0x7f   : > { %1698 = vperm.xlu1 %16286, %v1628_v1   ;;  %1693 = vperm.xlu0 %16285, %v1627_v4   ;;  %v1308_v1 = vld [vmem:[%s17531_s25 + $0x8] sm:$0xff]  ;;  %v16586_v4 = vld [vmem:[%s17556_s19 + $0x74] ss:$8 sps:$4 sm:$0xff]  }
  0x81   : > { %14894 = vmatpush3.bf16.msra.mxu1 %v17836_v6 }
  0x83   : > { %2003 = vperm.xlu1 %16286, %v1933_v7   ;;  %1998 = vperm.xlu0 %16285, %v1932_v8   ;;  %v2754_v7 = vld [vmem:[%s21756_s27 + $0x8] sm:$0xff]  ;;  %v2753_v8 = vld [vmem:[%s21756_s27] sm:$0xff] }
  0x84   : > { %2225 = vmatmul.mubr.bf16.vlgmr.msra.gmra.mxu1 %v16560_v9  ;;  %v16588_v9 = vld [vmem:[%s17556_s19 + $0x70] ss:$8 sps:$4 sm:$0xff]  }
  0x85   : > { %15438 = vmatmul.mubr.bf16.gmra.mxu0 %v16563_v10  ;;  %2232 = vmatprep.mubr.bf16.mxu1 %v16565_v14  ;;  %v14826_v10 = vld [vmem:[#allocation2] ss:$0 sm:$0xff] }
  0x86   : > { %15441 = vmatprep.mubr.bf16.mxu0 %v16564_v12 }
  0x87   : > { %1708 = vperm.xlu1 %16286, %v1630_v11   ;;  %1703 = vperm.xlu0 %16285, %v1629_v13  }
  0x8b   : > { %2013 = vperm.xlu1 %16286, %v1935_v15   ;;  %2008 = vperm.xlu0 %16285, %v1934_v16  }
  0x8c   : > { %2233 = vmatmul.mubr.bf16.gmra.mxu1 %v16568_v18 }
  0x8d   : > { %15442 = vmatmul.mubr.bf16.gmra.mxu0 %v16567_v17  ;;  %2240 = vmatprep.mubr.bf16.mxu1 %v16570_v22 }
  0x8e   : > { %15445 = vmatprep.mubr.bf16.mxu0 %v16569_v21  ;;  %v16589_v21 = vld [vmem:[%s21757_s7] sm:$0xff]   ;;  %s21833_s7 = sld [smem:[#allocation5_spill]] }
  0x8f   : > { %1444 = vperm.xlu1 %16286, %v1430_v19   ;;  %1439 = vperm.xlu0 %16285, %v1429_v20   ;;  %v21607_v19 = vunpack.c.l.bf16 %v17836_v6  ;;  %v21609_v20 = vunpack.c.h.bf16 %v17836_v6  ;;  %v11573_v6 = vld [vmem:[%s17674_s12 + $0x60] sm:$0xff] }
  0x90   : > { %15449 = vmatprep.subr.bf16.mxu0 %v16589_v21 }
  0x91   : > { %15450 = vmatpush3.bf16.msra.mxu0 %v16589_v21 }
  0x93   : > { %2474 = vperm.xlu1 %16286, %v2460_v23   ;;  %2469 = vperm.xlu0 %16285, %v2459_v25   ;;  %v11113_v25 = vsel %vm2321_vm2, %v21607_v19, 0.0 }
  0x94   : > { %2241 = vmatmul.mubr.bf16.gmra.mxu1 %v16573_v28  ;;  %v11116_v28 = vsel %vm2321_vm2, %v21609_v20, 0.0 }
  0x95   : > { %15446 = vmatmul.mubr.bf16.gmra.mxu0 %v16572_v26  ;;  %2248 = vmatprep.mubr.bf16.mxu1 %v16574_v31  ;;  %v21605_v26 = vunpack.c.h.bf16 %v17825_v0 }
  0x97   : > { %1454 = vperm.xlu1 %16286, %v1432_v30   ;;  %1449 = vperm.xlu0 %16285, %v1431_v32   ;;  %v21604_v30 = vunpack.c.l.bf16 %v17825_v0  ;;  %v11122_v32 = vsel %vm2321_vm2, %v21605_v26, 0.0 }
  0x9b   : > { %2484 = vperm.xlu1 %16286, %v2462_v33   ;;  %2479 = vperm.xlu0 %16285, %v2461_v36   ;;  %v21602_v33 = vunpack.c.h.bf16 %v17813_v58 }
  0x9c   : > { %2249 = vmatmul.mubr.bf16.gmra.mxu1 %v16576_v37  ;;  %v11119_v37 = vsel %vm2321_vm2, %v21604_v30, 0.0 }
  0x9d   : > { %2256 = vmatprep.mubr.bf16.mxu1 %v16577_v39 }
  0x9f   : > { %1464 = vperm.xlu1 %16286, %v1434_v38   ;;  %1459 = vperm.xlu0 %16285, %v1433_v41   ;;  %v21600_v38 = vunpack.c.l.bf16 %v17813_v58  ;;  %v11128_v41 = vsel %vm2321_vm2, %v21602_v33, 0.0  ;;  %v11572_v58 = vld [vmem:[%s17674_s12 + $0x58] sm:$0xff] }
  0xa0   : > { %v18172_v24 = vadd.f32 1e-05, %v11572_v58 }
  0xa3   : > { %2494 = vperm.xlu1 %16286, %v2464_v43   ;;  %2489 = vperm.xlu0 %16285, %v2463_v44   ;;  %v21598_v43 = vunpack.c.h.bf16 %v17802_v53  ;;  %v11125_v44 = vsel %vm2321_vm2, %v21600_v38, 0.0 }
  0xa4   : > { %2257 = vmatmul.mubr.bf16.gmra.mxu1 %v16579_v45  ;;  %v21596_v45 = vunpack.c.l.bf16 %v17802_v53 }
  0xa5   : > { %2264 = vmatprep.mubr.bf16.mxu1 %v16580_v49 }
  0xa7   : > { %1474 = vperm.xlu1 %16286, %v1436_v46   ;;  %1469 = vperm.xlu0 %16285, %v1435_v50   ;;  %v11134_v50 = vsel %vm2321_vm2, %v21598_v43, 0.0 }
  0xab   : > { %2504 = vperm.xlu1 %16286, %v2466_v51   ;;  %2499 = vperm.xlu0 %16285, %v2465_v52   ;;  %v21595_v51 = vunpack.c.h.bf16 %v17789_v47  ;;  %v11131_v52 = vsel %vm2321_vm2, %v21596_v45, 0.0 }
  0xac   : > { %2265 = vmatmul.mubr.bf16.gmra.mxu1 %v16582_v55  ;;  %v21592_v55 = vunpack.c.l.bf16 %v17789_v47  ;;  %v18157_v47 = vadd.f32 1e-05, %v11573_v6 }
  0xad   : > { %2272 = vmatprep.mubr.bf16.mxu1 %v16583_v59 }
  0xaf   : > { %1328 = vperm.xlu1 %16286, %v1310_v56   ;;  %1323 = vperm.xlu0 %16285, %v1309_v57   ;;  %v11140_v56 = vsel %vm2321_vm2, %v21595_v51, 0.0  ;;  %v17961_v57 = vld [vmem:[%s17735_s2 + $0x28] sm:$0xff]  }
  0xb0   : > { %21758 = vst [vmem:[#allocation41_spill] sm:$0xff] %v17961_v57  ;;  %v21591_v59 = vunpack.c.h.bf16 %v17961_v57 }
  0xb3   : > { %2774 = vperm.xlu1 %16286, %v2756_v61   ;;  %2769 = vperm.xlu0 %16285, %v2755_v62   ;;  %v11137_v62 = vsel %vm2321_vm2, %v21592_v55, 0.0 }
  0xb4   : > { %2273 = vmatmul.mubr.bf16.gmra.mxu1 %v16585_v63  ;;  %v21589_v63 = vunpack.c.l.bf16 %v17961_v57 }
  0xb5   : > { %2280 = vmatprep.mubr.bf16.mxu1 %v16586_v4  ;;  %v11146_v4 = vsel %vm2321_vm2, %v21591_v59, 0.0 }
  0xb7   : > { %1318 = vperm.xlu1 %16286, %v1308_v1   ;;  %1313 = vperm.xlu0 %16285, %v1307_v5   ;;  %v17976_v5 = vld [vmem:[%s17735_s2 + $0x30] sm:$0xff]  }
  0xb8   : > { %21759 = vst [vmem:[#allocation42_spill] sm:$0xff] %v17976_v5 }
  0xbb   : > { %2764 = vperm.xlu1 %16286, %v2754_v7   ;;  %2759 = vperm.xlu0 %16285, %v2753_v8   ;;  %v21588_v7 = vunpack.c.h.bf16 %v17976_v5  ;;  %v11143_v8 = vsel %vm2321_vm2, %v21589_v63, 0.0 }
  0xbc   : > { %2281 = vmatmul.mubr.bf16.gmra.mxu1 %v16588_v9  ;;  %v21585_v9 = vunpack.c.l.bf16 %v17976_v5 }
  0xbd   : > { %2700 = vmatprep.mubr.bf16.mxu1 %v21611_v3 }
  0xbf   : > { %10880 = vperm.xlu0 %16285, %v14826_v10  }
  0xca   : > { %v17892_v11 = vpop.permute.xlu0 %1633  ;;  %v17894_v12 = vpop.permute.xlu1 %1938 }
  0xce   : > { %v17896_v13 = vpop.permute.xlu0 %1638  ;;  %v17898_v14 = vpop.permute.xlu1 %1943 }
  0xd2   : > { %v17900_v15 = vpop.permute.xlu0 %1643  ;;  %v17902_v16 = vpop.permute.xlu1 %1648 }
  0xd6   : > { %v17904_v17 = vpop.permute.xlu0 %1948  ;;  %v17906_v18 = vpop.permute.xlu1 %1953 }
  0xda   : > { %v17911_v22 = vpop.permute.xlu0 %1653  ;;  %v17913_v23 = vpop.permute.xlu1 %1658 }
  0xde   : > { %v17923_v31 = vpop.permute.xlu0 %1958  ;;  %11117 = vadd.xlane.f32.xlu0 %v11116_v28  ;;  %v17929_v36 = vpop.permute.xlu1 %1963  ;;  %v17991_v28 = vld [vmem:[%s17735_s2 + $0x38] sm:$0xff]  }
  0xdf   : > { %11114 = vadd.xlane.f32.xlu1 %v11113_v25  ;;  %v11152_v25 = vsel %vm2321_vm2, %v21588_v7, 0.0  ;;  %21760 = vst [vmem:[#allocation43_spill] sm:$0xff] %v17991_v28 }
  0xe2   : > { %v17935_v39 = vpop.permute.xlu0 %1663  ;;  %11120 = vadd.xlane.f32.xlu0 %v11119_v37  ;;  %v17945_v46 = vpop.permute.xlu1 %1668  ;;  %v11149_v37 = vsel %vm2321_vm2, %v21585_v9, 0.0 }
  0xe3   : > { %11123 = vadd.xlane.f32.xlu1 %v11122_v32  ;;  %v21583_v32 = vunpack.c.h.bf16 %v17991_v28 }
  0xe6   : > { %v17947_v49 = vpop.permute.xlu0 %1968  ;;  %11126 = vadd.xlane.f32.xlu0 %v11125_v44  ;;  %v17964_v61 = vpop.permute.xlu1 %1973  ;;  %v11158_v44 = vsel %vm2321_vm2, %v21583_v32, 0.0  ;;  %v18018_v32 = vld [vmem:[%s17735_s2 + $0x48] sm:$0xff]  }
  0xe7   : > { %11129 = vadd.xlane.f32.xlu1 %v11128_v41  ;;  %v21584_v41 = vunpack.c.l.bf16 %v17991_v28  ;;  %21761 = vst [vmem:[#allocation44_spill] sm:$0xff] %v18018_v32  ;;  %v5828_v28 = vld [vmem:[%s21768_s11] sm:$0xff] }
  0xea   : > { %11132 = vadd.xlane.f32.xlu0 %v11131_v52  ;;  %v17970_v1 = vpop.permute.xlu0 %1673  ;;  %v17983_v10 = vpop.permute.xlu1 %1678 }
  0xeb   : > { %11135 = vadd.xlane.f32.xlu1 %v11134_v50  ;;  %v21586_v50 = vunpack.c.h.bf16 %v17829_v2 }
  0xee   : > { %11138 = vadd.xlane.f32.xlu0 %v11137_v62  ;;  %v17985_v21 = vpop.permute.xlu0 %1978  ;;  %v18002_v52 = vpop.permute.xlu1 %1983  ;;  %v21587_v62 = vunpack.c.l.bf16 %v17829_v2  ;;  %v11574_v2 = vld [vmem:[%s17674_s12 + $0x68] sm:$0xff] }
  0xef   : > { %11141 = vadd.xlane.f32.xlu1 %v11140_v56  ;;  %v11155_v56 = vsel %vm2321_vm2, %v21584_v41, 0.0  ;;  %v21593_v41 = vunpack.c.l.bf16 %v18018_v32  ;;  %v11576_v32 = vld [vmem:[%s17674_s12 + $0x78] sm:$0xff] }
  0xf0   : > { %v18152_v53 = vadd.f32 1e-05, %v11576_v32  ;;  %v18168_v32 = vadd.f32 1e-05, %v11574_v2  ;;  %v18185_v2 = vadd.f32 1e-05, %v11592_v42 }
  0xf1   : > { %v11167_v7 = vsel %vm2321_vm2, %v21593_v41, 0.0 }
  0xf2   : > { %11144 = vadd.xlane.f32.xlu0 %v11143_v8  ;;  %v11164_v8 = vsel %vm2321_vm2, %v21586_v50, 0.0  ;;  %v18021_v9 = vpop.permute.xlu1 %1688  ;;  %v18029_v50 = vld [vmem:[%s17735_s2 + $0x50] sm:$0xff]   ;;  %21784 = vst [vmem:[#allocation65_spill] sm:$0xff] %v18185_v2 }
  0xf3   : > { %11147 = vadd.xlane.f32.xlu1 %v11146_v4  ;;  %v18008_v4 = vpop.permute.xlu0 %1683  ;;  %21762 = vst [vmem:[#allocation45_spill] sm:$0xff] %v18029_v50  ;;  %v21597_v63 = vunpack.c.l.bf16 %v18029_v50 }
  0xf5   : > { %v11173_v55 = vsel %vm2321_vm2, %v21597_v63, 0.0 }
  0xf6   : > { %11150 = vadd.xlane.f32.xlu0 %v11149_v37  ;;  %v11161_v37 = vsel %vm2321_vm2, %v21587_v62, 0.0  ;;  %v21594_v62 = vunpack.c.h.bf16 %v18029_v50 }
  0xf7   : > { %11153 = vadd.xlane.f32.xlu1 %v11152_v25  ;;  %v21590_v25 = vunpack.c.h.bf16 %v17817_v60 }
  0xfa   : > { %11156 = vadd.xlane.f32.xlu0 %v11155_v56  ;;  %v11170_v56 = vsel %vm2321_vm2, %v21590_v25, 0.0  ;;  %v18042_v25 = vld [vmem:[%s17735_s2 + $0x58] sm:$0xff]  }
  0xfb   : > { %11159 = vadd.xlane.f32.xlu1 %v11158_v44  ;;  %v18023_v44 = vpop.permute.xlu0 %1988  ;;  %21763 = vst [vmem:[#allocation46_spill] sm:$0xff] %v18042_v25  ;;  %v21599_v59 = vunpack.c.h.bf16 %v18042_v25 }
  0xfe   : > { %11162 = vadd.xlane.f32.xlu0 %v11161_v37  ;;  %v18039_v37 = vpop.permute.xlu1 %1993 }
  0xff   : > { %11165 = vadd.xlane.f32.xlu1 %v11164_v8  ;;  %v11176_v8 = vsel %vm2321_vm2, %v21594_v62, 0.0  ;;  %v18048_v41 = vpop.permute.xlu0 %1693  ;;  %v18055_v62 = vld [vmem:[%s17735_s2 + $0x60] sm:$0xff]  }
 0x100   : > { %21764 = vst [vmem:[#allocation47_spill] sm:$0xff] %v18055_v62  ;;  %v21603_v51 = vunpack.c.h.bf16 %v18055_v62  ;;  %v21606_v63 = vunpack.c.l.bf16 %v18055_v62 }
 0x102   : > { %11168 = vadd.xlane.f32.xlu0 %v11167_v7  ;;  %v11182_v7 = vsel %vm2321_vm2, %v21599_v59, 0.0  ;;  %v18062_v43 = vpop.permute.xlu1 %1698  ;;  %v18070_v59 = vld [vmem:[%s17735_s2 + $0x68] sm:$0xff]  }
 0x103   : > { %11171 = vadd.xlane.f32.xlu1 %v11170_v56  ;;  %v21601_v56 = vunpack.c.l.bf16 %v18042_v25  ;;  %21765 = vst [vmem:[#allocation48_spill] sm:$0xff] %v18070_v59  ;;  %v21608_v38 = vunpack.c.h.bf16 %v18070_v59  ;;  %v21610_v33 = vunpack.c.l.bf16 %v18070_v59  ;;  %v11575_v25 = vld [vmem:[%s17674_s12 + $0x70] sm:$0xff] }
 0x104   : > { %v18150_v54 = vadd.f32 1e-05, %v11575_v25  ;;  %v5829_v25 = vld [vmem:[%s21768_s11 + $0x8] sm:$0xff] }
 0x105   : > { %v11179_v45 = vsel %vm2321_vm2, %v21601_v56, 0.0  ;;  %v11185_v56 = vsel %vm2321_vm2, %v21606_v63, 0.0  ;;  %v11191_v63 = vsel %vm2321_vm2, %v21610_v33, 0.0 }
 0x106   : > { %11174 = vadd.xlane.f32.xlu0 %v11173_v55  ;;  %v11188_v55 = vsel %vm2321_vm2, %v21603_v51, 0.0  ;;  %v18083_v51 = vld [vmem:[%s17735_s2 + $0x70] sm:$0xff]  }
 0x107   : > { %11177 = vadd.xlane.f32.xlu1 %v11176_v8  ;;  %v18064_v8 = vpop.permute.xlu0 %1998  ;;  %21766 = vst [vmem:[#allocation49_spill] sm:$0xff] %v18083_v51  ;;  %v21613_v30 = vunpack.c.h.bf16 %v18083_v51  ;;  %v21614_v19 = vunpack.c.l.bf16 %v18083_v51 }
 0x109   : > { %v11197_v20 = vsel %vm2321_vm2, %v21614_v19, 0.0 }
 0x10a   : > { %11180 = vadd.xlane.f32.xlu0 %v11179_v45  ;;  %v11194_v45 = vsel %vm2321_vm2, %v21608_v38, 0.0 }
 0x10b   : > { %11183 = vadd.xlane.f32.xlu1 %v11182_v7  ;;  %v18077_v7 = vpop.permute.xlu1 %2003  ;;  %v18086_v26 = vpop.permute.xlu0 %1703 }
 0x10e   : > { %11186 = vadd.xlane.f32.xlu0 %v11185_v56  ;;  %v11200_v56 = vsel %vm2321_vm2, %v21613_v30, 0.0 }
 0x10f   : > { %11189 = vadd.xlane.f32.xlu1 %v11188_v55  ;;  %v18096_v55 = vld [vmem:[%s17735_s2 + $0x78] sm:$0xff]   ;;  %v18103_v3 = vpop.permute.xlu1 %1708  ;;  %s18353_s2 = scalar_lea.vmem %s17689_s10, %s16235_s30  ;;  %s21834_s30 = sld [smem:[#allocation9_spill]] }
 0x110   : > { %21767 = vst [vmem:[#allocation50_spill] sm:$0xff] %v18096_v55  ;;  %v21619_v38 = vunpack.c.h.bf16 %v18096_v55  ;;  %v21622_v33 = vunpack.c.l.bf16 %v18096_v55  ;;  %v11564_v55 = vld [vmem:[%s17674_s12 + $0x18] sm:$0xff] }
 0x112   : > { %11192 = vadd.xlane.f32.xlu0 %v11191_v63  ;;  %v18105_v63 = vpop.permute.xlu0 %2008  ;;  %v11203_v30 = vsel %vm2321_vm2, %v21622_v33, 0.0 }
 0x113   : > { %11195 = vadd.xlane.f32.xlu1 %v11194_v45  ;;  %v11206_v45 = vsel %vm2321_vm2, %v21619_v38, 0.0  ;;  %v18113_v19 = vpop.permute.xlu1 %2013  ;;  %v11561_v38 = vld [vmem:[%s17674_s12] sm:$0xff] }
 0x114   : > { %v18132_v50 = vadd.f32 1e-05, %v11561_v38  ;;  %v11571_v38 = vld [vmem:[%s17674_s12 + $0x50] sm:$0xff] }
 0x115   : > { %v18162_v35 = vadd.f32 1e-05, %v11571_v38 }
 0x116   : > { %11198 = vadd.xlane.f32.xlu0 %v11197_v20  ;;  %v18115_v51 = vpop.permute.xlu0 %1439  ;;  %v11562_v20 = vld [vmem:[%s17674_s12 + $0x8] sm:$0xff]  ;;  %17251 = vrsqrt.f32 %v18132_v50 }
 0x117   : > { %11201 = vadd.xlane.f32.xlu1 %v11200_v56  ;;  %21769 = vst [vmem:[#allocation51_spill] sm:$0xff] %v18115_v51  ;;  %v18120_v56 = vpop.permute.xlu1 %1444  ;;  %v18125_v33 = vadd.f32 1e-05, %v11562_v20  ;;  %v18140_v20 = vadd.f32 1e-05, %v11564_v55  ;;  %v5830_v55 = vld [vmem:[%s21768_s11 + $0x10] sm:$0xff] }
 0x118   : > { %21771 = vst [vmem:[#allocation53_spill] sm:$0xff] %v18120_v56 }
 0x119   : > { %17253 = vrsqrt.f32 %v18125_v33  ;;  %v10775_v33 = vld [vmem:[%s21793_s18 + $0x78] sm:$0xff] }
 0x11a   : > { %11204 = vadd.xlane.f32.xlu0 %v11203_v30  ;;  %v18123_v62 = vpop.permute.xlu0 %2469  ;;  %17255 = vrsqrt.f32 %v18140_v20 }
 0x11b   : > { %11207 = vadd.xlane.f32.xlu1 %v11206_v45  ;;  %21772 = vst [vmem:[#allocation54_spill] sm:$0xff] %v18123_v62  ;;  %v11563_v45 = vld [vmem:[%s17674_s12 + $0x10] sm:$0xff]  ;;  %v18136_v5 = vpop.permute.xlu1 %2474 }
 0x11c   : > { %21774 = vst [vmem:[#allocation56_spill] sm:$0xff] %v18136_v5  ;;  %v18138_v57 = vadd.f32 1e-05, %v11563_v45  ;;  %v11591_v45 = vld [vmem:[%s17674_s12 + $0xf0] sm:$0xff]  ;;  %v18190_v5 = vadd.f32 1e-05, %v11589_v34 }
 0x11d   : > { %v18117_v59 = vpop.f32.mrf.mxu0  ;;  %v18180_v38 = vadd.f32 1e-05, %v11591_v45  ;;  %v11587_v45 = vld [vmem:[%s17674_s12 + $0xd0] sm:$0xff]  ;;  %v7898_v34 = vld [vmem:[%s21777_s0 + $0x20] sm:$0xff] }
 0x11e   : > { %21770 = vst [vmem:[#allocation52_spill] sm:$0xff] %v18117_v59  ;;  %v18144_v0 = vpop.permute.xlu0 %1449  ;;  %21786 = vst [vmem:[#allocation67_spill] sm:$0xff] %v18190_v5  ;;  %17257 = vrsqrt.f32 %v18138_v57 }
 0x11f   : > { %v18130_v30 = vpop.f32.mrf.mxu0  ;;  %21775 = vst [vmem:[#allocation57_spill] sm:$0xff] %v18144_v0  ;;  %v18170_v27 = vpop.permute.xlu1 %1454  ;;  %21782 = vst [vmem:[#allocation63_spill] sm:$0xff] %v18180_v38  ;;  %v10761_v0 = vld [vmem:[%s21793_s18 + $0x8] sm:$0xff]  ;;  %v10763_v38 = vld [vmem:[%s21793_s18 + $0x18] sm:$0xff]  ;;  %17259 = vrsqrt.f32 %v18172_v24 }
 0x120   : > { %21773 = vst [vmem:[#allocation55_spill] sm:$0xff] %v18130_v30  ;;  %21780 = vst [vmem:[#allocation61_spill] sm:$0xff] %v18170_v27  ;;  %v7894_v30 = vld [vmem:[%s21777_s0] sm:$0xff]  ;;  %17261 = vrsqrt.f32 %v18162_v35 }
 0x121   : > { %v18146_v60 = vpop.f32.mrf.mxu0  ;;  %17263 = vrsqrt.f32 %v18168_v32 }
 0x122   : > { %21776 = vst [vmem:[#allocation58_spill] sm:$0xff] %v18146_v60  ;;  %v18174_v6 = vpop.permute.xlu0 %2479  ;;  %v18177_v60 = vadd.f32 1e-05, %v11585_v48  ;;  %v7896_v48 = vld [vmem:[%s21777_s0 + $0x10] sm:$0xff]  ;;  %17265 = vrsqrt.f32 %v18157_v47 }
 0x123   : > { %v18166_v29 = vpop.f32.mrf.mxu0  ;;  %21781 = vst [vmem:[#allocation62_spill] sm:$0xff] %v18174_v6  ;;  %v18196_v51 = vpop.permute.xlu1 %2484  ;;  %17267 = vrsqrt.f32 %v18152_v53  ;;  %v11848_v53 = vld [vmem:[%s17669_s4 + $0x58] sm:$0xff] }
 0x124   : > { %v18160_v40 = vpop.f32.mrf.mxu1  ;;  %21779 = vst [vmem:[#allocation60_spill] sm:$0xff] %v18166_v29  ;;  %v5831_v29 = vld [vmem:[%s21768_s11 + $0x18] sm:$0xff]  ;;  %21787 = vst [vmem:[#allocation68_spill] sm:$0xff] %v18196_v51  ;;  %17269 = vrsqrt.f32 %v18150_v54 }
 0x125   : > { %21778 = vst [vmem:[#allocation59_spill] sm:$0xff] %v18160_v40  ;;  %v18188_v58 = vpop.f32.mrf.mxu0 }
 0x126   : > { %v18183_v59 = vpop.f32.mrf.mxu1  ;;  %21785 = vst [vmem:[#allocation66_spill] sm:$0xff] %v18188_v58  ;;  %v18200_v42 = vpop.permute.xlu0 %1459  ;;  %v18206_v58 = vadd.f32 1e-05, %v11587_v45  ;;  %v7900_v45 = vld [vmem:[%s21777_s0 + $0x30] sm:$0xff] }
 0x127   : > { %21783 = vst [vmem:[#allocation64_spill] sm:$0xff] %v18183_v59  ;;  %21789 = vst [vmem:[#allocation70_spill] sm:$0xff] %v18200_v42  ;;  %v18203_v62 = vpop.f32.mrf.mxu0 }
 0x128   : > { %v18198_v59 = vpop.f32.mrf.mxu1  ;;  %21790 = vst [vmem:[#allocation71_spill] sm:$0xff] %v18203_v62  ;;  %21791 = vst [vmem:[#allocation72_spill] sm:$0xff] %v18206_v58  ;;  %v10768_v58 = vld [vmem:[%s21793_s18 + $0x40] sm:$0xff] }
 0x129   : > { %21788 = vst [vmem:[#allocation69_spill] sm:$0xff] %v18198_v59  ;;  %v18212_v51 = vpop.f32.mrf.mxu0  ;;  %v18215_v59 = vpop.permute.xlu1 %1464 }
 0x12a   : > { %v18210_v27 = vpop.f32.mrf.mxu1  ;;  %21794 = vst [vmem:[#allocation74_spill] sm:$0xff] %v18212_v51  ;;  %21795 = vst [vmem:[#allocation75_spill] sm:$0xff] %v18215_v59  ;;  %v7899_v51 = vld [vmem:[%s21777_s0 + $0x28] sm:$0xff] }
 0x12b   : > { %21792 = vst [vmem:[#allocation73_spill] sm:$0xff] %v18210_v27 }
 0x12c   : > { %5834 = vperm.xlu1 %16286, %v5828_v28   ;;  %v11586_v28 = vld [vmem:[%s17674_s12 + $0xc8] sm:$0xff]  ;;  %v18217_v42 = vpop.f32.mrf.mxu1 }
 0x12d   : > { %v18193_v56 = vadd.f32 1e-05, %v11586_v28  ;;  %v11590_v28 = vld [vmem:[%s17674_s12 + $0xe8] sm:$0xff]  ;;  %21796 = vst [vmem:[#allocation76_spill] sm:$0xff] %v18217_v42  ;;  %v18232_v59 = vpop.permute.xlu1 %2494 }
 0x12e   : > { %v18224_v40 = vadd.f32 1e-05, %v11590_v28  ;;  %v18229_v27 = vpop.f32.mrf.mxu1  ;;  %21802 = vst [vmem:[#allocation82_spill] sm:$0xff] %v18232_v59  ;;  %v10764_v59 = vld [vmem:[%s21793_s18 + $0x20] sm:$0xff] }
 0x12f   : > { %21801 = vst [vmem:[#allocation81_spill] sm:$0xff] %v18229_v27  ;;  %17271 = vrsqrt.f32 %v18193_v56 }
 0x130   : > { %5844 = vperm.xlu1 %16286, %v5830_v55   ;;  %5839 = vperm.xlu0 %16285, %v5829_v25   ;;  %v7895_v55 = vld [vmem:[%s21777_s0 + $0x8] sm:$0xff]  ;;  %v11588_v25 = vld [vmem:[%s17674_s12 + $0xd8] sm:$0xff]  ;;  %21799 = vst [vmem:[#allocation79_spill] sm:$0xff] %v18224_v40  ;;  %v18237_v28 = vpop.f32.mrf.mxu1  ;;  %17273 = vrsqrt.f32 %v18177_v60 }
 0x131   : > { %v18222_v62 = vadd.f32 1e-05, %v11588_v25  ;;  %v7901_v25 = vld [vmem:[%s21777_s0 + $0x38] sm:$0xff]  ;;  %21804 = vst [vmem:[#allocation84_spill] sm:$0xff] %v18237_v28  ;;  %v18241_v27 = vpop.permute.xlu1 %1474 }
 0x132   : > { %21805 = vst [vmem:[#allocation85_spill] sm:$0xff] %v18241_v27  ;;  %v10765_v27 = vld [vmem:[%s21793_s18 + $0x28] sm:$0xff] }
 0x133   : > { %21798 = vst [vmem:[#allocation78_spill] sm:$0xff] %v18222_v62 }
 0x134   : > { %7904 = vperm.xlu1 %16286, %v7894_v30   ;;  %5849 = vperm.xlu0 %16285, %v5831_v29   ;;  %v7897_v30 = vld [vmem:[%s21777_s0 + $0x18] sm:$0xff]  ;;  %v18219_v29 = vpop.permute.xlu0 %2489  ;;  %s21860_s0 = sld [smem:[#allocation6_spill]] }
 0x135   : > { %21797 = vst [vmem:[#allocation77_spill] sm:$0xff] %v18219_v29  ;;  %v18250_v2 = vpop.permute.xlu1 %2504 }
 0x136   : > { %21808 = vst [vmem:[#allocation88_spill] sm:$0xff] %v18250_v2 }
 0x138   : > { %7914 = vperm.xlu1 %16286, %v7896_v48   ;;  %7909 = vperm.xlu0 %16285, %v7895_v55   ;;  %v18226_v48 = vpop.f32.mrf.mxu0  ;;  %v10760_v55 = vld [vmem:[%s21793_s18] sm:$0xff]  ;;  %v18234_v29 = vpop.permute.xlu0 %1469 }
 0x139   : > { %21800 = vst [vmem:[#allocation80_spill] sm:$0xff] %v18226_v48  ;;  %21803 = vst [vmem:[#allocation83_spill] sm:$0xff] %v18234_v29  ;;  %v18263_v62 = vpop.permute.xlu1 %1328 }
 0x13a   : > { %v21824_v60 = vld [vmem:[#allocation78_spill] sm:$0xff] }
 0x13b   : > { %17275 = vrsqrt.f32 %v21824_v60 }
 0x13c   : > { %7924 = vperm.xlu1 %16286, %v7898_v34   ;;  %7919 = vperm.xlu0 %16285, %v7897_v30   ;;  %v10762_v34 = vld [vmem:[%s21793_s18 + $0x10] sm:$0xff]  ;;  %v18243_v30 = vpop.f32.mrf.mxu1 }
 0x13d   : > { %v15435_v42 = vpop.f32.mrf.mxu0  ;;  %21806 = vst [vmem:[#allocation86_spill] sm:$0xff] %v18243_v30 }
 0x13f   : > { %v1841_v48 = vpop.f32.mrf.mxu0 }
 0x140   : > { %7934 = vperm.xlu1 %16286, %v7900_v45   ;;  %7929 = vperm.xlu0 %16285, %v7899_v51   ;;  %v18245_v45 = vpop.permute.xlu0 %2499 }
 0x141   : > { %21807 = vst [vmem:[#allocation87_spill] sm:$0xff] %v18245_v45  ;;  %v15436_v6 = vpop.f32.mrf.mxu0 }
 0x144   : > { %10778 = vperm.xlu1 %16286, %v10760_v55   ;;  %7939 = vperm.xlu0 %16285, %v7901_v25   ;;  %v14895_v29 = vpop.f32.mrf.mxu1  ;;  %v10766_v55 = vld [vmem:[%s21793_s18 + $0x30] sm:$0xff]  ;;  %v18252_v30 = vpop.permute.xlu0 %1323 }
 0x145   : > { %21809 = vst [vmem:[#allocation89_spill] sm:$0xff] %v18252_v30  ;;  %v1844_v25 = vpop.f32.mrf.mxu0  ;;  %v10767_v30 = vld [vmem:[%s21793_s18 + $0x38] sm:$0xff] }
 0x146   : > { %v14896_v51 = vpop.f32.mrf.mxu1 }
 0x147   : > { %v14897_v28 = vadd.f32 %v14896_v51, %v14895_v29  ;;  %v1845_v51 = vadd.f32 %v1844_v25, %v17896_v13  ;;  %v18259_v2 = vpop.f32.mrf.mxu0  ;;  %v10769_v25 = vld [vmem:[%s21793_s18 + $0x48] sm:$0xff] }
 0x148   : > { %10788 = vperm.xlu1 %16286, %v10762_v34   ;;  %10783 = vperm.xlu0 %16285, %v10761_v0   ;;  %v14898_v5 = vpop.f32.mrf.mxu1  ;;  %v1842_v34 = vadd.f32 %v1841_v48, %v17892_v11  ;;  %v18265_v11 = vpop.permute.xlu0 %2769 }
 0x149   : > { %v2227_v40 = vadd.f32 %v14897_v28, %v17894_v12  ;;  %v10770_v28 = vld [vmem:[%s21793_s18 + $0x50] sm:$0xff]  ;;  %v1857_v13 = vpop.f32.mrf.mxu0 }
 0x14a   : > { %v14899_v45 = vpop.f32.mrf.mxu1  ;;  %v1858_v50 = vadd.f32 %v1857_v13, %v17911_v22 }
 0x14b   : > { %v14900_v0 = vadd.f32 %v14899_v45, %v14898_v5  ;;  %v2289_v12 = vadd.f32 %v2227_v40, %v1842_v34  ;;  %v10772_v40 = vld [vmem:[%s21793_s18 + $0x60] sm:$0xff]  ;;  %v18275_v34 = vpop.permute.xlu1 %2774 }
 0x14c   : > { %10798 = vperm.xlu1 %16286, %v10764_v59   ;;  %10793 = vperm.xlu0 %16285, %v10763_v38   ;;  %v14901_v29 = vpop.f32.mrf.mxu1  ;;  %21811 = vst [vmem:[#allocation91_spill] sm:$0xff] %v18275_v34 }
 0x14d   : > { %v2230_v59 = vadd.f32 %v14900_v0, %v17898_v14 }
 0x14e   : > { %v14902_v38 = vpop.f32.mrf.mxu1 }
 0x14f   : > { %v2290_v5 = vadd.f32 %v2230_v59, %v1845_v51  ;;  %v14903_v48 = vadd.f32 %v14902_v38, %v14901_v29  ;;  %v18278_v51 = vpop.permute.xlu0 %1313  ;;  %v15440_v59 = vpop.f32.mrf.mxu0  ;;  %v10771_v38 = vld [vmem:[%s21793_s18 + $0x58] sm:$0xff] }
 0x150   : > { %10808 = vperm.xlu1 %16286, %v10766_v55   ;;  %10803 = vperm.xlu0 %16285, %v10765_v27   ;;  %v14904_v45 = vpop.f32.mrf.mxu1 }
 0x151   : > { %v18268_v55 = vpack.c.bf16 %v2290_v5, %v2289_v12  ;;  %v2235_v0 = vadd.f32 %v14903_v48, %v17904_v17 }
 0x152   : > { %v14905_v14 = vpop.f32.mrf.mxu1 }
 0x153   : > { %21810 = vst [vmem:[#allocation90_spill] sm:$0xff] %v18268_v55  ;;  %v14906_v27 = vadd.f32 %v14905_v14, %v14904_v45  ;;  %15451 = vmatprep.mubr.msk.bf16.mxu0 %vm2321_vm2, %v18268_v55  ;;  %v10774_v14 = vld [vmem:[%s21793_s18 + $0x70] sm:$0xff] }
 0x154   : > { %10818 = vperm.xlu1 %16286, %v10768_v58   ;;  %10813 = vperm.xlu0 %16285, %v10767_v30   ;;  %v14907_v29 = vpop.f32.mrf.mxu1  ;;  %v1850_v58 = vadd.f32 %v15435_v42, %v17900_v15  ;;  %v1853_v30 = vadd.f32 %v15436_v6, %v17902_v16  ;;  %v10773_v15 = vld [vmem:[%s21793_s18 + $0x68] sm:$0xff]  ;;  %v18288_v16 = vpop.permute.xlu1 %1318 }
 0x155   : > { %v2238_v17 = vadd.f32 %v14906_v27, %v17906_v18  ;;  %v18291_v6 = vpop.permute.xlu0 %2759 }
 0x156   : > { %v14908_v12 = vpop.f32.mrf.mxu1  ;;  %v2291_v5 = vadd.f32 %v2235_v0, %v1850_v58 }
 0x157   : > { %v2292_v48 = vadd.f32 %v2238_v17, %v1853_v30  ;;  %v14909_v45 = vadd.f32 %v14908_v12, %v14907_v29 }
 0x158   : > { %10828 = vperm.xlu1 %16286, %v10770_v28   ;;  %10823 = vperm.xlu0 %16285, %v10769_v25   ;;  %v14910_v55 = vpop.f32.mrf.mxu1  ;;  %v1860_v28 = vpop.f32.mrf.mxu0 }
 0x159   : > { %v18284_v34 = vpack.c.bf16 %v2292_v48, %v2291_v5  ;;  %v2243_v42 = vadd.f32 %v14909_v45, %v17923_v31  ;;  %v1861_v27 = vadd.f32 %v1860_v28, %v17913_v23  ;;  %v18304_v13 = vpop.permute.xlu1 %2764  ;;  %v18306_v30 = vpop.permute.xlu0 %10880  ;;  %v11838_v5 = vld [vmem:[%s17669_s4 + $0x8] sm:$0xff]  ;;  %v1869_v28 = vadd.f32 %v15440_v59, %v17945_v46 }
 0x15a   : > { %v14911_v18 = vpop.f32.mrf.mxu1 }
 0x15b   : > { %v14912_v25 = vadd.f32 %v14911_v18, %v14910_v55  ;;  %15452 = vmatmul.mubr.msk.bf16.vlgmr.msra.gmra.mxu0 %vm2321_vm2, %v18284_v34  ;;  %v2293_v55 = vadd.f32 %v2243_v42, %v1858_v50  ;;  %v12113_v50 = vld [vmem:[%s21813_s23] sm:$0xff] }
 0x15c   : > { %10838 = vperm.xlu1 %16286, %v10772_v40   ;;  %10833 = vperm.xlu0 %16285, %v10771_v38   ;;  %v14913_v0 = vpop.f32.mrf.mxu1  ;;  %v18298_v40 = vpop.f32.mrf.mxu0  ;;  %v11837_v38 = vld [vmem:[%s17669_s4] sm:$0xff] }
 0x15d   : > { %v2246_v29 = vadd.f32 %v14912_v25, %v17929_v36  ;;  %v17252_v25 = vpop.eup %17251  ;;  %v1882_v47 = vadd.f32 %v18298_v40, %v18008_v4 }
 0x15e   : > { %v14914_v31 = vpop.f32.mrf.mxu1  ;;  %v1873_v36 = vpop.f32.mrf.mxu0 }
 0x15f   : > { %v2294_v58 = vadd.f32 %v2246_v29, %v1861_v27  ;;  %v14915_v22 = vadd.f32 %v14914_v31, %v14913_v0  ;;  %v11840_v29 = vld [vmem:[%s17669_s4 + $0x18] sm:$0xff] }
 0x160   : > { %10848 = vperm.xlu1 %16286, %v10774_v14   ;;  %10843 = vperm.xlu0 %16285, %v10773_v15   ;;  %v14916_v23 = vpop.f32.mrf.mxu1  ;;  %v1866_v14 = vadd.f32 %v18259_v2, %v17935_v39  ;;  %v18323_v15 = vpop.f32.mrf.mxu0  ;;  %v12114_v2 = vld [vmem:[%s21813_s23 + $0x8] sm:$0xff] }
 0x161   : > { %v18308_v17 = vpack.c.bf16 %v2294_v58, %v2293_v55  ;;  %v2251_v12 = vadd.f32 %v14915_v22, %v17947_v49 }
 0x162   : > { %v14917_v20 = vpop.f32.mrf.mxu1 }
 0x163   : > { %v14918_v57 = vadd.f32 %v14917_v20, %v14916_v23  ;;  %15455 = vmatprep.mubr.msk.bf16.mxu0 %vm2321_vm2, %v18308_v17  ;;  %v2295_v31 = vadd.f32 %v2251_v12, %v1866_v14  ;;  %v12297_v23 = vld [vmem:[%s21814_s28] sm:$0xff]  ;;  %v1876_v20 = vpop.f32.mrf.mxu0 }
 0x164   : > { %10853 = vperm.xlu0 %16285, %v10775_v33   ;;  %v14919_v48 = vpop.f32.mrf.mxu1  ;;  %v17254_v33 = vpop.eup %17253  ;;  %v1877_v24 = vadd.f32 %v1876_v20, %v17983_v10  ;;  %v12299_v10 = vld [vmem:[%s21814_s28 + $0x10] sm:$0xff] }
 0x165   : > { %v2254_v49 = vadd.f32 %v14918_v57, %v17964_v61  ;;  %v11839_v61 = vld [vmem:[%s17669_s4 + $0x10] sm:$0xff] }
 0x166   : > { %v14920_v27 = vpop.f32.mrf.mxu1 }
 0x167   : > { %v11118_v18 = vpop.xlane.xlu0 %11117  ;;  %v2296_v39 = vadd.f32 %v2254_v49, %v1869_v28  ;;  %v14921_v59 = vadd.f32 %v14920_v27, %v14919_v48  ;;  %v17256_v28 = vpop.eup %17255 }
 0x168   : > { %v11115_v45 = vpop.xlane.xlu1 %11114  ;;  %v11210_v0 = vmul.f32 0.0625, %v11118_v18  ;;  %v14922_v58 = vpop.f32.mrf.mxu1  ;;  %v12116_v18 = vld [vmem:[%s21813_s23 + $0x18] sm:$0xff] }
 0x169   : > { %v11209_v42 = vmul.f32 0.0625, %v11115_v45  ;;  %v18335_v57 = vpack.c.bf16 %v2296_v39, %v2295_v31  ;;  %v2259_v27 = vadd.f32 %v14921_v59, %v17985_v21  ;;  %v12115_v31 = vld [vmem:[%s21813_s23 + $0x10] sm:$0xff] }
 0x16a   : > { %v11930_v55 = vsub.f32 %v11210_v0, %v11838_v5  ;;  %13151 = vst.msk [vmem:[%s18318_s26 + $0x8] sm:$0xff] %vm13149_vm3, %v11210_v0  ;;  %v14923_v5 = vpop.f32.mrf.mxu1 }
 0x16b   : > { %v11929_v46 = vsub.f32 %v11209_v42, %v11837_v38  ;;  %13150 = vst.msk [vmem:[%s18318_s26] sm:$0xff] %vm13149_vm3, %v11209_v42  ;;  %v11121_v45 = vpop.xlane.xlu0 %11120  ;;  %v12298_v38 = vld [vmem:[%s21814_s28 + $0x8] sm:$0xff]  ;;  %v17258_v42 = vpop.eup %17257  ;;  %15456 = vmatmul.mubr.msk.bf16.gmra.mxu0 %vm2321_vm2, %v18335_v57 }
 0x16c   : > { %v11124_v22 = vpop.xlane.xlu1 %11123  ;;  %v12022_v49 = vmul.f32 %v17254_v33, %v11930_v55  ;;  %v11211_v48 = vmul.f32 0.0625, %v11121_v45  ;;  %v1874_v33 = vadd.f32 %v1873_v36, %v17970_v1  ;;  %v12300_v36 = vld [vmem:[%s21814_s28 + $0x18] sm:$0xff]  ;;  %v17260_v4 = vpop.eup %17259 }
 0x16d   : > { %v12021_v12 = vmul.f32 %v17252_v25, %v11929_v46  ;;  %v11212_v14 = vmul.f32 0.0625, %v11124_v22  ;;  %v14924_v25 = vadd.f32 %v14923_v5, %v14922_v58 }
 0x16e   : > { %v12206_v46 = vmul.f32 %v12114_v2, %v12022_v49  ;;  %v11931_v55 = vsub.f32 %v11211_v48, %v11839_v61  ;;  %13152 = vst.msk [vmem:[%s18318_s26 + $0x10] sm:$0xff] %vm13149_vm3, %v11211_v48  ;;  %v18360_v2 = vpop.f32.mrf.mxu0 }
 0x16f   : > { %v12205_v0 = vmul.f32 %v12113_v50, %v12021_v12  ;;  %v11932_v39 = vsub.f32 %v11212_v14, %v11840_v29  ;;  %13153 = vst.msk [vmem:[%s18318_s26 + $0x18] sm:$0xff] %vm13149_vm3, %v11212_v14  ;;  %v14925_v50 = vpop.f32.mrf.mxu1  ;;  %v2262_v59 = vadd.f32 %v14924_v25, %v18002_v52  ;;  %v11127_v58 = vpop.xlane.xlu0 %11126  ;;  %v2297_v14 = vadd.f32 %v2259_v27, %v1874_v33 }
 0x170   : > { %v11130_v21 = vpop.xlane.xlu1 %11129  ;;  %v12023_v61 = vmul.f32 %v17258_v42, %v11931_v55  ;;  %v18362_v20 = vmul.f32 0.0625, %v11127_v58  ;;  %v12390_v45 = vadd.f32 %v12298_v38, %v12206_v46 }
 0x171   : > { %v12024_v29 = vmul.f32 %v17256_v28, %v11932_v39  ;;  %v18356_v22 = vmul.f32 0.0625, %v11130_v21  ;;  %v12389_v1 = vadd.f32 %v12297_v23, %v12205_v0  ;;  %v14926_v12 = vpop.f32.mrf.mxu1  ;;  %v2298_v28 = vadd.f32 %v2262_v59, %v1877_v24  ;;  %v1889_v0 = vpop.f32.mrf.mxu0 }
 0x172   : > { %v14927_v23 = vadd.f32 %v14926_v12, %v14925_v50  ;;  %v12207_v49 = vmul.f32 %v12115_v31, %v12023_v61  ;;  %13154 = vst.msk [vmem:[%s18318_s26 + $0x20] sm:$0xff] %vm13149_vm3, %v18362_v20  ;;  %13243 = vst.msk [vmem:[%s18353_s2 + $0x8] sm:$0xff] %vm13149_vm3, %v12390_v45 }
 0x173   : > { %v12208_v52 = vmul.f32 %v12116_v18, %v12024_v29  ;;  %13155 = vst.msk [vmem:[%s18318_s26 + $0x28] sm:$0xff] %vm13149_vm3, %v18356_v22  ;;  %13242 = vst.msk [vmem:[%s18353_s2] sm:$0xff] %vm13149_vm3, %v12389_v1  ;;  %v14928_v48 = vpop.f32.mrf.mxu1  ;;  %v16287_v38 = vpack.i.bf16 %v12390_v45, %v12389_v1  ;;  %v18375_v35 = vpack.c.bf16 %v2298_v28, %v2297_v14  ;;  %v11133_v18 = vpop.xlane.xlu0 %11132  ;;  %v12124_v28 = vld [vmem:[%s21813_s23 + $0x58] sm:$0xff] }
 0x174   : > { %v11136_v5 = vpop.xlane.xlu1 %11135  ;;  %v18380_v27 = vmul.f32 0.0625, %v11133_v18  ;;  %v12391_v39 = vadd.f32 %v12299_v10, %v12207_v49  ;;  %v2267_v33 = vadd.f32 %v14927_v23, %v18023_v44  ;;  %v1885_v44 = vadd.f32 %v18323_v15, %v18021_v9  ;;  %v18404_v59 = vpop.f32.mrf.mxu0  ;;  %v11847_v15 = vld [vmem:[%s17669_s4 + $0x50] sm:$0xff]  ;;  %v11850_v49 = vld [vmem:[%s17669_s4 + $0x68] sm:$0xff] }
 0x175   : > { %v18377_v42 = vmul.f32 0.0625, %v11136_v5  ;;  %v14929_v31 = vpop.f32.mrf.mxu1  ;;  %16288 = vperm.xlu0 %16285, %v16287_v38   ;;  %v12392_v25 = vadd.f32 %v12300_v36, %v12208_v52  ;;  %15459 = vmatprep.mubr.msk.bf16.mxu0 %vm2321_vm2, %v18375_v35  ;;  %v12123_v5 = vld [vmem:[%s21813_s23 + $0x50] sm:$0xff] }
 0x176   : > { %21816 = vst [vmem:[#allocation93_spill] sm:$0xff] %v18380_v27  ;;  %v14930_v24 = vadd.f32 %v14929_v31, %v14928_v48  ;;  %13156 = vst.msk [vmem:[%s18318_s26 + $0x30] sm:$0xff] %vm13149_vm3, %v18380_v27  ;;  %v2299_v40 = vadd.f32 %v2267_v33, %v1882_v47  ;;  %v1892_v45 = vpop.f32.mrf.mxu0  ;;  %v17262_v48 = vpop.eup %17261  ;;  %v11849_v31 = vld [vmem:[%s17669_s4 + $0x60] sm:$0xff] }
 0x177   : > { %21815 = vst [vmem:[#allocation92_spill] sm:$0xff] %v18377_v42  ;;  %13157 = vst.msk [vmem:[%s18318_s26 + $0x38] sm:$0xff] %vm13149_vm3, %v18377_v42  ;;  %v14931_v32 = vpop.f32.mrf.mxu1  ;;  %v16292_v55 = vpack.i.bf16 %v12392_v25, %v12391_v39  ;;  %v11139_v21 = vpop.xlane.xlu0 %11138 }
 0x178   : > { %v11142_v46 = vpop.xlane.xlu1 %11141  ;;  %13244 = vst.msk [vmem:[%s18353_s2 + $0x10] sm:$0xff] %vm13149_vm3, %v12391_v39  ;;  %13245 = vst.msk [vmem:[%s18353_s2 + $0x18] sm:$0xff] %vm13149_vm3, %v12392_v25  ;;  %v2270_v50 = vadd.f32 %v14930_v24, %v18039_v37  ;;  %v18406_v58 = vmul.f32 0.0625, %v11139_v21  ;;  %v1890_v39 = vadd.f32 %v1889_v0, %v18048_v41  ;;  %v1893_v24 = vadd.f32 %v1892_v45, %v18062_v43  ;;  %v17264_v41 = vpop.eup %17263 }
 0x179   : > { %v18402_v29 = vmul.f32 0.0625, %v11142_v46  ;;  %v14932_v1 = vpop.f32.mrf.mxu1  ;;  %16293 = vperm.xlu1 %16286, %v16292_v55  }
 0x17a   : > { %21818 = vst [vmem:[#allocation95_spill] sm:$0xff] %v18406_v58  ;;  %v2300_v9 = vadd.f32 %v2270_v50, %v1885_v44  ;;  %v14933_v37 = vadd.f32 %v14932_v1, %v14931_v32  ;;  %13158 = vst.msk [vmem:[%s18318_s26 + $0x40] sm:$0xff] %vm13149_vm3, %v18406_v58  ;;  %v12307_v44 = vld [vmem:[%s21814_s28 + $0x50] sm:$0xff]  ;;  %v12308_v50 = vld [vmem:[%s21814_s28 + $0x58] sm:$0xff] }
 0x17b   : > { %21817 = vst [vmem:[#allocation94_spill] sm:$0xff] %v18402_v29  ;;  %13159 = vst.msk [vmem:[%s18318_s26 + $0x48] sm:$0xff] %vm13149_vm3, %v18402_v29  ;;  %v14934_v10 = vpop.f32.mrf.mxu1  ;;  %v11145_v54 = vpop.xlane.xlu0 %11144 }
 0x17c   : > { %v11148_v36 = vpop.xlane.xlu1 %11147  ;;  %v18417_v61 = vpack.c.bf16 %v2300_v9, %v2299_v40  ;;  %v2275_v14 = vadd.f32 %v14933_v37, %v18064_v8  ;;  %v11219_v52 = vmul.f32 0.0625, %v11145_v54  ;;  %v11852_v9 = vld [vmem:[%s17669_s4 + $0x78] sm:$0xff]  ;;  %v17266_v37 = vpop.eup %17265 }
 0x17d   : > { %v11220_v12 = vmul.f32 0.0625, %v11148_v36  ;;  %v14935_v23 = vpop.f32.mrf.mxu1  ;;  %v11851_v36 = vld [vmem:[%s17669_s4 + $0x70] sm:$0xff] }
 0x17e   : > { %v14936_v18 = vadd.f32 %v14935_v23, %v14934_v10  ;;  %15460 = vmatmul.mubr.msk.bf16.gmra.mxu0 %vm2321_vm2, %v18417_v61  ;;  %v11939_v8 = vsub.f32 %v11219_v52, %v11847_v15  ;;  %13160 = vst.msk [vmem:[%s18318_s26 + $0x50] sm:$0xff] %vm13149_vm3, %v11219_v52  ;;  %v2301_v0 = vadd.f32 %v2275_v14, %v1890_v39  ;;  %v12125_v15 = vld [vmem:[%s21813_s23 + $0x60] sm:$0xff]  ;;  %v17268_v52 = vpop.eup %17267 }
 0x17f   : > { %v11940_v38 = vsub.f32 %v11220_v12, %v11848_v53  ;;  %13161 = vst.msk [vmem:[%s18318_s26 + $0x58] sm:$0xff] %vm13149_vm3, %v11220_v12  ;;  %v14937_v25 = vpop.f32.mrf.mxu1  ;;  %v11151_v55 = vpop.xlane.xlu0 %11150  ;;  %v12126_v53 = vld [vmem:[%s21813_s23 + $0x68] sm:$0xff] }
 0x180   : > { %v11154_v33 = vpop.xlane.xlu1 %11153  ;;  %v2278_v46 = vadd.f32 %v14936_v18, %v18077_v7  ;;  %v12031_v21 = vmul.f32 %v17262_v48, %v11939_v8  ;;  %v11221_v1 = vmul.f32 0.0625, %v11151_v55  ;;  %v12128_v8 = vld [vmem:[%s21813_s23 + $0x78] sm:$0xff]  ;;  %v12127_v55 = vld [vmem:[%s21813_s23 + $0x70] sm:$0xff] }
 0x181   : > { %v12032_v32 = vmul.f32 %v17260_v4, %v11940_v38  ;;  %v11222_v47 = vmul.f32 0.0625, %v11154_v33  ;;  %v14938_v40 = vpop.f32.mrf.mxu1  ;;  %v12309_v38 = vld [vmem:[%s21814_s28 + $0x60] sm:$0xff] }
 0x182   : > { %v2302_v4 = vadd.f32 %v2278_v46, %v1893_v24  ;;  %v14939_v10 = vadd.f32 %v14938_v40, %v14937_v25  ;;  %v12215_v54 = vmul.f32 %v12123_v5, %v12031_v21  ;;  %v11941_v12 = vsub.f32 %v11221_v1, %v11849_v31  ;;  %13162 = vst.msk [vmem:[%s18318_s26 + $0x60] sm:$0xff] %vm13149_vm3, %v11221_v1  ;;  %v12310_v5 = vld [vmem:[%s21814_s28 + $0x68] sm:$0xff]  ;;  %v17270_v24 = vpop.eup %17269 }
 0x183   : > { %v12216_v43 = vmul.f32 %v12124_v28, %v12032_v32  ;;  %v11942_v7 = vsub.f32 %v11222_v47, %v11850_v49  ;;  %13163 = vst.msk [vmem:[%s18318_s26 + $0x68] sm:$0xff] %vm13149_vm3, %v11222_v47  ;;  %v14940_v45 = vpop.f32.mrf.mxu1  ;;  %v11157_v48 = vpop.xlane.xlu0 %11156 }
 0x184   : > { %v11160_v14 = vpop.xlane.xlu1 %11159  ;;  %v18443_v23 = vpack.c.bf16 %v2302_v4, %v2301_v0  ;;  %v12033_v18 = vmul.f32 %v17266_v37, %v11941_v12  ;;  %v11223_v39 = vmul.f32 0.0625, %v11157_v48  ;;  %v18448_v31 = vadd.f32 %v12307_v44, %v12215_v54  ;;  %v12312_v37 = vld [vmem:[%s21814_s28 + $0x78] sm:$0xff] }
 0x185   : > { %v12034_v28 = vmul.f32 %v17264_v41, %v11942_v7  ;;  %v11224_v49 = vmul.f32 0.0625, %v11160_v14  ;;  %v14941_v25 = vpop.f32.mrf.mxu1  ;;  %v18450_v33 = vadd.f32 %v12308_v50, %v12216_v43  ;;  %v2283_v46 = vadd.f32 %v14939_v10, %v18105_v63 }
 0x186   : > { %v14942_v41 = vadd.f32 %v14941_v25, %v14940_v45  ;;  %15463 = vmatprep.mubr.msk.bf16.mxu0 %vm2321_vm2, %v18443_v23  ;;  %v1898_v44 = vadd.f32 %v18360_v2, %v18086_v26  ;;  %v1901_v50 = vadd.f32 %v18404_v59, %v18103_v3  ;;  %v12217_v0 = vmul.f32 %v12125_v15, %v12033_v18  ;;  %v12311_v59 = vld [vmem:[%s21814_s28 + $0x70] sm:$0xff] }
 0x187   : > { %v12218_v32 = vmul.f32 %v12126_v53, %v12034_v28  ;;  %v11944_v47 = vsub.f32 %v11224_v49, %v11852_v9  ;;  %13165 = vst.msk [vmem:[%s18318_s26 + $0x78] sm:$0xff] %vm13149_vm3, %v11224_v49  ;;  %v11943_v21 = vsub.f32 %v11223_v39, %v11851_v36  ;;  %13164 = vst.msk [vmem:[%s18318_s26 + $0x70] sm:$0xff] %vm13149_vm3, %v11223_v39  ;;  %v11163_v2 = vpop.xlane.xlu0 %11162  ;;  %v21826_v39 = vld [vmem:[#allocation72_spill] sm:$0xff] }
 0x188   : > { %v11166_v63 = vpop.xlane.xlu1 %11165  ;;  %13252 = vst.msk [vmem:[%s18353_s2 + $0x50] sm:$0xff] %vm13149_vm3, %v18448_v31  ;;  %13253 = vst.msk [vmem:[%s18353_s2 + $0x58] sm:$0xff] %vm13149_vm3, %v18450_v33  ;;  %v2286_v26 = vadd.f32 %v14942_v41, %v18113_v19  ;;  %v18474_v9 = vmul.f32 0.0625, %v11163_v2  ;;  %v12401_v43 = vadd.f32 %v12309_v38, %v12217_v0  ;;  %v2303_v4 = vadd.f32 %v2283_v46, %v1898_v44  ;;  %v11862_v46 = vld [vmem:[%s17669_s4 + $0xc8] sm:$0xff]  ;;  %v11861_v44 = vld [vmem:[%s17669_s4 + $0xc0] sm:$0xff] }
 0x189   : > { %v12036_v1 = vmul.f32 %v17268_v52, %v11944_v47  ;;  %v18471_v3 = vmul.f32 0.0625, %v11166_v63  ;;  %v12402_v53 = vadd.f32 %v12310_v5, %v12218_v32  ;;  %v12035_v40 = vmul.f32 %v17270_v24, %v11943_v21  ;;  %v21828_v24 = vld [vmem:[#allocation79_spill] sm:$0xff]  ;;  %v21831_v21 = vld [vmem:[#allocation65_spill] sm:$0xff]  ;;  %v17272_v63 = vpop.eup %17271 }
 0x18a   : > { %21820 = vst [vmem:[#allocation97_spill] sm:$0xff] %v18474_v9  ;;  %v2304_v7 = vadd.f32 %v2286_v26, %v1901_v50  ;;  %13166 = vst.msk [vmem:[%s18318_s26 + $0x80] sm:$0xff] %vm13149_vm3, %v18474_v9  ;;  %17277 = vrsqrt.f32 %v21826_v39  ;;  %v21830_v47 = vld [vmem:[#allocation67_spill] sm:$0xff]  ;;  %v17274_v2 = vpop.eup %17273 }
 0x18b   : > { %21819 = vst [vmem:[#allocation96_spill] sm:$0xff] %v18471_v3  ;;  %v12220_v15 = vmul.f32 %v12128_v8, %v12036_v1  ;;  %13167 = vst.msk [vmem:[%s18318_s26 + $0x88] sm:$0xff] %vm13149_vm3, %v18471_v3  ;;  %v12219_v19 = vmul.f32 %v12127_v55, %v12035_v40  ;;  %v11169_v54 = vpop.xlane.xlu0 %11168  ;;  %v16312_v18 = vpack.i.bf16 %v12402_v53, %v12401_v43  ;;  %17279 = vrsqrt.f32 %v21828_v24  ;;  %v11864_v1 = vld [vmem:[%s17669_s4 + $0xd8] sm:$0xff]  ;;  %v11863_v40 = vld [vmem:[%s17669_s4 + $0xd0] sm:$0xff] }
 0x18c   : > { %13255 = vst.msk [vmem:[%s18353_s2 + $0x68] sm:$0xff] %vm13149_vm3, %v12402_v53  ;;  %v11172_v10 = vpop.xlane.xlu1 %11171  ;;  %13254 = vst.msk [vmem:[%s18353_s2 + $0x60] sm:$0xff] %vm13149_vm3, %v12401_v43  ;;  %v18487_v36 = vpack.c.bf16 %v2304_v7, %v2303_v4  ;;  %v18492_v14 = vmul.f32 0.0625, %v11169_v54  ;;  %v16322_v55 = vpack.i.bf16 %v18450_v33, %v18448_v31  ;;  %17281 = vrsqrt.f32 %v21830_v47  ;;  %v12138_v33 = vld [vmem:[%s21813_s23 + $0xc8] sm:$0xff]  ;;  %v21832_v26 = vld [vmem:[#allocation63_spill] sm:$0xff] }
 0x18d   : > { %v18489_v12 = vmul.f32 0.0625, %v11172_v10  ;;  %v12404_v45 = vadd.f32 %v12312_v37, %v12220_v15  ;;  %v12403_v52 = vadd.f32 %v12311_v59, %v12219_v19  ;;  %17283 = vrsqrt.f32 %v21831_v21  ;;  %v12137_v59 = vld [vmem:[%s21813_s23 + $0xc0] sm:$0xff]  ;;  %v17276_v10 = vpop.eup %17275 }
 0x18e   : > { %21822 = vst [vmem:[#allocation99_spill] sm:$0xff] %v18492_v14  ;;  %15464 = vmatmul.mubr.msk.bf16.gmra.mxu0 %vm2321_vm2, %v18487_v36  ;;  %13168 = vst.msk [vmem:[%s18318_s26 + $0x90] sm:$0xff] %vm13149_vm3, %v18492_v14  ;;  %17285 = vrsqrt.f32 %v21832_v26  ;;  %v12321_v19 = vld [vmem:[%s21814_s28 + $0xc0] sm:$0xff] }
 0x18f   : > { %21821 = vst [vmem:[#allocation98_spill] sm:$0xff] %v18489_v12  ;;  %13169 = vst.msk [vmem:[%s18318_s26 + $0x98] sm:$0xff] %vm13149_vm3, %v18489_v12  ;;  %v16302_v56 = vpack.i.bf16 %v12404_v45, %v12403_v52  ;;  %v11175_v48 = vpop.xlane.xlu0 %11174 }
 0x190   : > { %13257 = vst.msk [vmem:[%s18353_s2 + $0x78] sm:$0xff] %vm13149_vm3, %v12404_v45  ;;  %v11178_v28 = vpop.xlane.xlu1 %11177  ;;  %13256 = vst.msk [vmem:[%s18353_s2 + $0x70] sm:$0xff] %vm13149_vm3, %v12403_v52  ;;  %v18510_v38 = vmul.f32 0.0625, %v11175_v48  ;;  %v12140_v52 = vld [vmem:[%s21813_s23 + $0xd8] sm:$0xff] }
 0x191   : > { %v18507_v49 = vmul.f32 0.0625, %v11178_v28  ;;  %16303 = vperm.xlu0 %16285, %v16302_v56   ;;  %v11866_v28 = vld [vmem:[%s17669_s4 + $0xe8] sm:$0xff] }
 0x192   : > { %21825 = vst [vmem:[#allocation78_spill] sm:$0xff] %v18510_v38  ;;  %13170 = vst.msk [vmem:[%s18318_s26 + $0xa0] sm:$0xff] %vm13149_vm3, %v18510_v38  ;;  %v12322_v56 = vld [vmem:[%s21814_s28 + $0xc8] sm:$0xff] }
 0x193   : > { %21823 = vst [vmem:[#allocation100_spill] sm:$0xff] %v18507_v49  ;;  %13171 = vst.msk [vmem:[%s18318_s26 + $0xa8] sm:$0xff] %vm13149_vm3, %v18507_v49  ;;  %v11181_v25 = vpop.xlane.xlu0 %11180 }
 0x194   : > { %v11184_v8 = vpop.xlane.xlu1 %11183  ;;  %v18522_v32 = vmul.f32 0.0625, %v11181_v25 }
 0x195   : > { %v18519_v5 = vmul.f32 0.0625, %v11184_v8  ;;  %16313 = vperm.xlu0 %16285, %v16312_v18   ;;  %v12139_v18 = vld [vmem:[%s21813_s23 + $0xd0] sm:$0xff] }
 0x196   : > { %21829 = vst [vmem:[#allocation79_spill] sm:$0xff] %v18522_v32  ;;  %13172 = vst.msk [vmem:[%s18318_s26 + $0xb0] sm:$0xff] %vm13149_vm3, %v18522_v32 }
 0x197   : > { %21827 = vst [vmem:[#allocation72_spill] sm:$0xff] %v18519_v5  ;;  %13173 = vst.msk [vmem:[%s18318_s26 + $0xb8] sm:$0xff] %vm13149_vm3, %v18519_v5  ;;  %v11187_v50 = vpop.xlane.xlu0 %11186  ;;  %v17278_v48 = vpop.eup %17277 }
 0x198   : > { %v11190_v41 = vpop.xlane.xlu1 %11189  ;;  %v11233_v31 = vmul.f32 0.0625, %v11187_v50  ;;  %v17280_v50 = vpop.eup %17279 }
 0x199   : > { %v11234_v0 = vmul.f32 0.0625, %v11190_v41  ;;  %16323 = vperm.xlu0 %16285, %v16322_v55   ;;  %v11865_v55 = vld [vmem:[%s17669_s4 + $0xe0] sm:$0xff] }
 0x19a   : > { %v11953_v37 = vsub.f32 %v11233_v31, %v11861_v44  ;;  %13174 = vst.msk [vmem:[%s18318_s26 + $0xc0] sm:$0xff] %vm13149_vm3, %v11233_v31 }
 0x19b   : > { %v11954_v53 = vsub.f32 %v11234_v0, %v11862_v46  ;;  %13175 = vst.msk [vmem:[%s18318_s26 + $0xc8] sm:$0xff] %vm13149_vm3, %v11234_v0  ;;  %v11193_v15 = vpop.xlane.xlu0 %11192 }
 0x19c   : > { %v11196_v43 = vpop.xlane.xlu1 %11195  ;;  %v12045_v54 = vmul.f32 %v17274_v2, %v11953_v37  ;;  %v11235_v45 = vmul.f32 0.0625, %v11193_v15  ;;  %v12323_v2 = vld [vmem:[%s21814_s28 + $0xd0] sm:$0xff]  ;;  %v11868_v37 = vld [vmem:[%s17669_s4 + $0xf8] sm:$0xff] }
 0x19d   : > { %v12046_v4 = vmul.f32 %v17272_v63, %v11954_v53  ;;  %v11236_v7 = vmul.f32 0.0625, %v11196_v43  ;;  %v12324_v63 = vld [vmem:[%s21814_s28 + $0xd8] sm:$0xff] }
 0x19e   : > { %v12229_v8 = vmul.f32 %v12137_v59, %v12045_v54  ;;  %v11955_v25 = vsub.f32 %v11235_v45, %v11863_v40  ;;  %13176 = vst.msk [vmem:[%s18318_s26 + $0xd0] sm:$0xff] %vm13149_vm3, %v11235_v45  ;;  %v12142_v40 = vld [vmem:[%s21813_s23 + $0xe8] sm:$0xff] }
 0x19f   : > { %v12230_v60 = vmul.f32 %v12138_v33, %v12046_v4  ;;  %v11956_v39 = vsub.f32 %v11236_v7, %v11864_v1  ;;  %13177 = vst.msk [vmem:[%s18318_s26 + $0xd8] sm:$0xff] %vm13149_vm3, %v11236_v7  ;;  %v11199_v47 = vpop.xlane.xlu0 %11198  ;;  %v17282_v33 = vpop.eup %17281  ;;  %v12141_v4 = vld [vmem:[%s21813_s23 + $0xe0] sm:$0xff]  ;;  %v11867_v7 = vld [vmem:[%s17669_s4 + $0xf0] sm:$0xff] }
 0x1a0   : > { %v11202_v24 = vpop.xlane.xlu1 %11201  ;;  %v12047_v0 = vmul.f32 %v17278_v48, %v11955_v25  ;;  %v11237_v21 = vmul.f32 0.0625, %v11199_v47  ;;  %v12413_v31 = vadd.f32 %v12321_v19, %v12229_v8  ;;  %v17284_v45 = vpop.eup %17283  ;;  %v12325_v8 = vld [vmem:[%s21814_s28 + $0xe0] sm:$0xff] }
 0x1a1   : > { %v12048_v46 = vmul.f32 %v17276_v10, %v11956_v39  ;;  %v11238_v41 = vmul.f32 0.0625, %v11202_v24  ;;  %v18555_v44 = vadd.f32 %v12322_v56, %v12230_v60  ;;  %v12326_v56 = vld [vmem:[%s21814_s28 + $0xe8] sm:$0xff]  ;;  %v17286_v60 = vpop.eup %17285 }
 0x1a2   : > { %v12231_v59 = vmul.f32 %v12139_v18, %v12047_v0  ;;  %v11957_v53 = vsub.f32 %v11237_v21, %v11865_v55  ;;  %13178 = vst.msk [vmem:[%s18318_s26 + $0xe0] sm:$0xff] %vm13149_vm3, %v11237_v21  ;;  %13266 = vst.msk [vmem:[%s18353_s2 + $0xc0] sm:$0xff] %vm13149_vm3, %v12413_v31  ;;  %v12143_v55 = vld [vmem:[%s21813_s23 + $0xf0] sm:$0xff]  ;;  %v12328_v0 = vld [vmem:[%s21814_s28 + $0xf8] sm:$0xff] }
 0x1a3   : > { %v12232_v1 = vmul.f32 %v12140_v52, %v12048_v46  ;;  %v11958_v26 = vsub.f32 %v11238_v41, %v11866_v28  ;;  %13179 = vst.msk [vmem:[%s18318_s26 + $0xe8] sm:$0xff] %vm13149_vm3, %v11238_v41  ;;  %13267 = vst.msk [vmem:[%s18353_s2 + $0xc8] sm:$0xff] %vm13149_vm3, %v18555_v44  ;;  %v11205_v19 = vpop.xlane.xlu0 %11204  ;;  %v12144_v46 = vld [vmem:[%s21813_s23 + $0xf8] sm:$0xff] }
 0x1a4   : > { %v11208_v43 = vpop.xlane.xlu1 %11207  ;;  %v12049_v52 = vmul.f32 %v17282_v33, %v11957_v53  ;;  %v11239_v28 = vmul.f32 0.0625, %v11205_v19  ;;  %v12415_v48 = vadd.f32 %v12323_v2, %v12231_v59  ;;  %v12327_v33 = vld [vmem:[%s21814_s28 + $0xf0] sm:$0xff]  ;;  %v16597_v19 = vld [vmem:[%s21834_s30 + $0x20] ss:$8 sps:$4 sm:$0xff]  }
 0x1a5   : > { %v12050_v15 = vmul.f32 %v17280_v50, %v11958_v26  ;;  %v11240_v10 = vmul.f32 0.0625, %v11208_v43  ;;  %v12416_v54 = vadd.f32 %v12324_v63, %v12232_v1  ;;  %v16590_v43 = vld [vmem:[%s21833_s7] sm:$0xff]  }
 0x1a6   : > { %v12233_v25 = vmul.f32 %v12141_v4, %v12049_v52  ;;  %v11959_v24 = vsub.f32 %v11239_v28, %v11867_v7  ;;  %13180 = vst.msk [vmem:[%s18318_s26 + $0xf0] sm:$0xff] %vm13149_vm3, %v11239_v28  ;;  %13268 = vst.msk [vmem:[%s18353_s2 + $0xd0] sm:$0xff] %vm13149_vm3, %v12415_v48  ;;  %15483 = vmatprep.mubr.bf16.mxu0 %v16590_v43  ;;  %v16594_v4 = vld [vmem:[%s21834_s30 + $0x30] ss:$8 sps:$4 sm:$0xff]   ;;  %v16599_v7 = vld [vmem:[%s21834_s30 + $0x24] ss:$8 sps:$4 sm:$0xff]  }
 0x1a7   : > { %v12234_v18 = vmul.f32 %v12142_v40, %v12050_v15  ;;  %v11960_v39 = vsub.f32 %v11240_v10, %v11868_v37  ;;  %13181 = vst.msk [vmem:[%s18318_s26 + $0xf8] sm:$0xff] %vm13149_vm3, %v11240_v10  ;;  %13269 = vst.msk [vmem:[%s18353_s2 + $0xd8] sm:$0xff] %vm13149_vm3, %v12416_v54  ;;  %v16317_v40 = vpack.i.bf16 %v12416_v54, %v12415_v48  ;;  %v16596_v15 = vld [vmem:[%s21834_s30 + $0x34] ss:$8 sps:$4 sm:$0xff]   ;;  %v16603_v43 = vld [vmem:[%s21834_s30] ss:$8 sps:$4 sm:$0xff]  }
 0x1a8   : > { %v12051_v50 = vmul.f32 %v17286_v60, %v11959_v24  ;;  %v12417_v21 = vadd.f32 %v12325_v8, %v12233_v25  ;;  %v16327_v37 = vpack.i.bf16 %v18555_v44, %v12413_v31  ;;  %2676 = vmatprep.subr.bf16.mxu1 %v16596_v15 }
 0x1a9   : > { %v12052_v47 = vmul.f32 %v17284_v45, %v11960_v39  ;;  %v12418_v41 = vadd.f32 %v12326_v56, %v12234_v18  ;;  %2677 = vmatpush1.bf16.msra.mxu1 %v16594_v4 }
 0x1aa   : > { %v12235_v1 = vmul.f32 %v12143_v55, %v12051_v50  ;;  %13270 = vst.msk [vmem:[%s18353_s2 + $0xe0] sm:$0xff] %vm13149_vm3, %v12417_v21  ;;  %2678 = vmatprep.subr.bf16.mxu1 %v16599_v7  ;;  %v21836_v7 = vld [vmem:[#allocation62_spill] sm:$0xff] }
 0x1ab   : > { %v12236_v63 = vmul.f32 %v12144_v46, %v12052_v47  ;;  %13271 = vst.msk [vmem:[%s18353_s2 + $0xe8] sm:$0xff] %vm13149_vm3, %v12418_v41  ;;  %v16307_v53 = vpack.i.bf16 %v12418_v41, %v12417_v21 }
 0x1ac   : > { %v12419_v2 = vadd.f32 %v12327_v33, %v12235_v1  ;;  %v16591_v1 = vld [vmem:[%s21833_s7 + $0x8] sm:$0xff]  }
 0x1ad   : > { %v12420_v26 = vadd.f32 %v12328_v0, %v12236_v63  ;;  %2679 = vmatpush1.bf16.msra.mxu1 %v16597_v19 }
 0x1ae   : > { %13272 = vst.msk [vmem:[%s18353_s2 + $0xf0] sm:$0xff] %vm13149_vm3, %v12419_v2 }
 0x1af   : > { %13273 = vst.msk [vmem:[%s18353_s2 + $0xf8] sm:$0xff] %vm13149_vm3, %v12420_v26  ;;  %v16297_v59 = vpack.i.bf16 %v12420_v26, %v12419_v2  ;;  %v16592_v26 = vld [vmem:[%s21833_s7 + $0x10] sm:$0xff]   ;;  %v16593_v2 = vld [vmem:[%s21833_s7 + $0x18] sm:$0xff]  }
 0x1b1   : > { %16298 = vperm.xlu1 %16286, %v16297_v59   ;;  %v21835_v59 = vmov 0  }
 0x1b5   : > { %16308 = vperm.xlu1 %16286, %v16307_v53   ;;  %v16602_v53 = vld [vmem:[%s21834_s30 + $0x14] ss:$8 sps:$4 sm:$0xff]  }
 0x1b6   : > { %2680 = vmatprep.subr.bf16.mxu1 %v16602_v53 }
 0x1b9   : > { %16318 = vperm.xlu1 %16286, %v16317_v40   ;;  %v16600_v40 = vld [vmem:[%s21834_s30 + $0x10] ss:$8 sps:$4 sm:$0xff]  }
 0x1ba   : > { %2681 = vmatpush1.bf16.msra.mxu1 %v16600_v40  ;;  %v21848_v40 = vld [vmem:[#allocation87_spill] sm:$0xff] }
 0x1bd   : > { %16328 = vperm.xlu1 %16286, %v16327_v37   ;;  %v16605_v37 = vld [vmem:[%s21834_s30 + $0x4] ss:$8 sps:$4 sm:$0xff]  }
 0x1be   : > { %2682 = vmatprep.subr.bf16.mxu1 %v16605_v37 }
 0x1bf   : > { %2683 = vmatpush1.bf16.msra.mxu1 %v16603_v43 }
 0x21b   : > { %v15453_v10 = vpop.f32.mrf.mxu0 }
 0x21d   : > { %v2380_v45 = vpop.f32.mrf.mxu0 }
 0x21f   : > { %v15454_v52 = vpop.f32.mrf.mxu0 }
 0x220   : > { %v2452_v63 = vpack.c.bf16 %v15454_v52, %v15453_v10  ;;  %v21838_v52 = vld [vmem:[#allocation59_spill] sm:$0xff] }
 0x221   : > { %v2383_v28 = vpop.f32.mrf.mxu0 }
 0x222   : > { %v2451_v33 = vpack.c.bf16 %v2383_v28, %v2380_v45  ;;  %v21837_v45 = vld [vmem:[#allocation57_spill] sm:$0xff] }
 0x223   : > { %v1577_v28 = vadd.f32 %v21838_v52, %v21837_v45  ;;  %v21852_v45 = vld [vmem:[#allocation84_spill] sm:$0xff] }
 0x224   : > { %v21853_v52 = vld [vmem:[#allocation88_spill] sm:$0xff] }
 0x22b   : > { %v15457_v56 = vpop.f32.mrf.mxu0 }
 0x22d   : > { %v2396_v54 = vpop.f32.mrf.mxu0 }
 0x22f   : > { %v15458_v48 = vpop.f32.mrf.mxu0 }
 0x230   : > { %v2454_v0 = vpack.c.bf16 %v15458_v48, %v15457_v56  ;;  %v21839_v56 = vld [vmem:[#allocation61_spill] sm:$0xff] }
 0x231   : > { %v2399_v60 = vpop.f32.mrf.mxu0 }
 0x232   : > { %v2453_v21 = vpack.c.bf16 %v2399_v60, %v2396_v54  ;;  %v21840_v54 = vld [vmem:[#allocation69_spill] sm:$0xff]  ;;  %v21841_v60 = vld [vmem:[#allocation54_spill] sm:$0xff] }
 0x233   : > { %v1580_v48 = vadd.f32 %v21840_v54, %v21839_v56 }
 0x23e   : > { %v15461_v44 = vpop.f32.mrf.mxu0 }
 0x240   : > { %v2412_v31 = vpop.f32.mrf.mxu0 }
 0x242   : > { %v15462_v18 = vpop.f32.mrf.mxu0 }
 0x243   : > { %v2456_v41 = vpack.c.bf16 %v15462_v18, %v15461_v44 }
 0x244   : > { %v2415_v39 = vpop.f32.mrf.mxu0 }
 0x245   : > { %v2455_v50 = vpack.c.bf16 %v2415_v39, %v2412_v31  ;;  %v21842_v31 = vld [vmem:[#allocation68_spill] sm:$0xff]  ;;  %v21843_v39 = vld [vmem:[#allocation51_spill] sm:$0xff] }
 0x24e   : > { %v15465_v8 = vpop.f32.mrf.mxu0 }
 0x250   : > { %v2428_v25 = vpop.f32.mrf.mxu0 }
 0x252   : > { %v15466_v24 = vpop.f32.mrf.mxu0 }
 0x253   : > { %v2458_v46 = vpack.c.bf16 %v15466_v24, %v15465_v8  ;;  %v21844_v8 = vld [vmem:[#allocation64_spill] sm:$0xff] }
 0x254   : > { %v2431_v55 = vpop.f32.mrf.mxu0 }
 0x255   : > { %v2457_v47 = vpack.c.bf16 %v2431_v55, %v2428_v25  ;;  %15467 = vmatprep.subr.bf16.mxu0 %v2458_v46  ;;  %v1569_v25 = vadd.f32 %v21844_v8, %v21843_v39  ;;  %v21846_v55 = vld [vmem:[#allocation73_spill] sm:$0xff]  ;;  %v21856_v39 = vld [vmem:[#allocation86_spill] sm:$0xff] }
 0x256   : > { %15468 = vmatpush3.bf16.msra.mxu0 %v2458_v46  ;;  %v21845_v46 = vld [vmem:[#allocation53_spill] sm:$0xff] }
 0x257   : > { %15469 = vmatprep.subr.bf16.mxu0 %v2457_v47 }
 0x25a   : > { %15470 = vmatpush3.bf16.msra.mxu0 %v2457_v47  ;;  %v1572_v47 = vadd.f32 %v21846_v55, %v21845_v46  ;;  %v21858_v46 = vld [vmem:[#allocation70_spill] sm:$0xff]  ;;  %v21859_v55 = vld [vmem:[#allocation81_spill] sm:$0xff] }
 0x25b   : > { %15471 = vmatprep.subr.bf16.mxu0 %v2456_v41 }
 0x25e   : > { %15472 = vmatpush3.bf16.msra.mxu0 %v2456_v41 }
 0x25f   : > { %15473 = vmatprep.subr.bf16.mxu0 %v2455_v50 }
 0x262   : > { %15474 = vmatpush3.bf16.msra.mxu0 %v2455_v50 }
 0x263   : > { %15475 = vmatprep.subr.bf16.mxu0 %v2454_v0 }
 0x266   : > { %15476 = vmatpush3.bf16.msra.mxu0 %v2454_v0  ;;  %v21847_v0 = vld [vmem:[#allocation56_spill] sm:$0xff] }
 0x267   : > { %15477 = vmatprep.subr.bf16.mxu0 %v2453_v21 }
 0x26a   : > { %15478 = vmatpush3.bf16.msra.mxu0 %v2453_v21 }
 0x26b   : > { %15479 = vmatprep.subr.bf16.mxu0 %v2452_v63 }
 0x26e   : > { %15480 = vmatpush3.bf16.msra.mxu0 %v2452_v63 }
 0x26f   : > { %15481 = vmatprep.subr.bf16.mxu0 %v2451_v33 }
 0x272   : > { %15482 = vmatpush3.bf16.msra.mxu0 %v2451_v33 }
 0x275   : > { %15484 = vmatmul.mubr.bf16.vlgmr.msra.gmra.mxu0 %v16591_v1 }
 0x276   : > { %15487 = vmatprep.mubr.bf16.mxu0 %v16592_v26 }
 0x27d   : > { %15488 = vmatmul.mubr.bf16.gmra.mxu0 %v16593_v2 }
 0x27e   : > { %2825 = vmatprep.mubr.bf16.mxu0 %v21835_v59 }
 0x335   : > { %v15485_v4 = vpop.f32.mrf.mxu0 }
 0x336   : > { %v2574_v19 = vadd.f32 %v15485_v4, %v21836_v7  ;;  %v21849_v4 = vld [vmem:[#allocation83_spill] sm:$0xff] }
 0x337   : > { %v2565_v15 = vpop.f32.mrf.mxu0 }
 0x338   : > { %v2566_v44 = vadd.f32 %v2565_v15, %v21841_v60  ;;  %v2598_v41 = vadd.f32 %v2574_v19, %v1577_v28  ;;  %v21850_v15 = vld [vmem:[#allocation76_spill] sm:$0xff] }
 0x339   : > { %v15486_v10 = vpop.f32.mrf.mxu0  ;;  %v1593_v7 = vadd.f32 %v21850_v15, %v21849_v4 }
 0x33a   : > { %v2577_v18 = vadd.f32 %v15486_v10, %v21842_v31  ;;  %v2596_v33 = vadd.f32 %v2566_v44, %v1569_v25  ;;  %v21851_v10 = vld [vmem:[#allocation85_spill] sm:$0xff]  ;;  %v21854_v44 = vld [vmem:[#allocation82_spill] sm:$0xff] }
 0x33b   : > { %v2568_v24 = vpop.f32.mrf.mxu0  ;;  %v1596_v19 = vadd.f32 %v21852_v45, %v21851_v10  ;;  %v21857_v25 = vld [vmem:[#allocation77_spill] sm:$0xff] }
 0x33c   : > { %v2599_v50 = vadd.f32 %v2577_v18, %v1580_v48  ;;  %v2569_v21 = vadd.f32 %v2568_v24, %v21847_v0  ;;  %v21855_v18 = vld [vmem:[#allocation75_spill] sm:$0xff] }
 0x33d   : > { %v15489_v63 = vpop.f32.mrf.mxu0  ;;  %v1588_v8 = vadd.f32 %v21856_v39, %v21855_v18 }
 0x33e   : > { %v18620_v1 = vpack.c.bf16 %v2599_v50, %v2598_v41  ;;  %v2597_v26 = vadd.f32 %v2569_v21, %v1572_v47  ;;  %v2590_v37 = vadd.f32 %v15489_v63, %v21848_v40  ;;  %v1585_v47 = vadd.f32 %v21859_v55, %v21858_v46 }
 0x33f   : > { %v2581_v2 = vpop.f32.mrf.mxu0 }
 0x340   : > { %v18622_v53 = vpack.c.bf16 %v2597_v26, %v2596_v33  ;;  %v2602_v56 = vadd.f32 %v2590_v37, %v1593_v7  ;;  %v2582_v24 = vadd.f32 %v2581_v2, %v21857_v25  ;;  %v16606_v25 = vld [vmem:[%s21860_s0] sm:$0xff]  }
 0x341   : > { %v15490_v43 = vpop.f32.mrf.mxu0 }
 0x342   : > { %v2593_v28 = vadd.f32 %v15490_v43, %v21853_v52  ;;  %13637 = vmatmul.mubr.msk.bf16.vlgmr.msra.gmra.mxu1 %vm1521_vm0, %v18622_v53  ;;  %v2600_v50 = vadd.f32 %v2582_v24, %v1585_v47  ;;  %v16607_v24 = vld [vmem:[%s21860_s0 + $0x8] sm:$0xff]   ;;  %s21870_s0 = sld [smem:[#allocation16_spill]] }
 0x343   : > { %2710 = vmatprep.mubr.bf16.mxu1 %v21835_v59  ;;  %v2584_v48 = vpop.f32.mrf.mxu0 }
 0x344   : > { %v2603_v54 = vadd.f32 %v2593_v28, %v1596_v19  ;;  %v2585_v31 = vadd.f32 %v2584_v48, %v21854_v44 }
 0x346   : > { %v18633_v60 = vpack.c.bf16 %v2603_v54, %v2602_v56  ;;  %v2601_v41 = vadd.f32 %v2585_v31, %v1588_v8 }
 0x348   : > { %v18644_v0 = vpack.c.bf16 %v2601_v41, %v2600_v50  ;;  %v21861_v50 = vld [vmem:[#allocation52_spill] sm:$0xff] }
 0x34a   : > { %13638 = vmatmul.mubr.msk.bf16.gmra.mxu1 %vm1521_vm0, %v18620_v1 }
 0x34b   : > { %2720 = vmatprep.mubr.bf16.mxu1 %v21835_v59 }
 0x352   : > { %13639 = vmatmul.mubr.msk.bf16.gmra.mxu1 %vm1521_vm0, %v18644_v0 }
 0x353   : > { %2730 = vmatprep.mubr.bf16.mxu1 %v21835_v59 }
 0x35a   : > { %13640 = vmatmul.mubr.msk.bf16.gmra.mxu1 %vm1521_vm0, %v18633_v60 }
 0x35b   : > { %3020 = vmatprep.mubr.bf16.mxu1 %v21835_v59 }
 0x402   : > { %v2702_v21 = vpop.f32.mrf.mxu1 }
 0x404   : > { %v2704_v63 = vpop.f32.mrf.mxu1 }
 0x406   : > { %v2706_v33 = vpop.f32.mrf.mxu1 }
 0x407   : > { %v2745_v8 = vpack.c.bf16 %v2706_v33, %v2702_v21  ;;  %v21862_v21 = vld [vmem:[#allocation58_spill] sm:$0xff] }
 0x408   : > { %v2708_v26 = vpop.f32.mrf.mxu1  ;;  %v1407_v33 = vadd.f32 %v21862_v21, %v18288_v16 }
 0x409   : > { %v2746_v39 = vpack.c.bf16 %v2708_v26, %v2704_v63  ;;  %v1403_v63 = vadd.f32 %v21861_v50, %v18278_v51 }
 0x40a   : > { %v2712_v2 = vpop.f32.mrf.mxu1 }
 0x40c   : > { %v2714_v40 = vpop.f32.mrf.mxu1 }
 0x40e   : > { %v2716_v37 = vpop.f32.mrf.mxu1 }
 0x40f   : > { %v2747_v18 = vpack.c.bf16 %v2716_v37, %v2712_v2 }
 0x410   : > { %v2718_v43 = vpop.f32.mrf.mxu1 }
 0x411   : > { %v2748_v31 = vpack.c.bf16 %v2718_v43, %v2714_v40 }
 0x412   : > { %v2722_v4 = vpop.f32.mrf.mxu1 }
 0x414   : > { %v2724_v15 = vpop.f32.mrf.mxu1 }
 0x416   : > { %v2726_v7 = vpop.f32.mrf.mxu1 }
 0x417   : > { %v2749_v44 = vpack.c.bf16 %v2726_v7, %v2722_v4 }
 0x418   : > { %v2728_v10 = vpop.f32.mrf.mxu1 }
 0x419   : > { %v2750_v48 = vpack.c.bf16 %v2728_v10, %v2724_v15  ;;  %v21863_v10 = vld [vmem:[#allocation89_spill] sm:$0xff] }
 0x41a   : > { %v2732_v45 = vpop.f32.mrf.mxu1 }
 0x41c   : > { %v2734_v19 = vpop.f32.mrf.mxu1 }
 0x41e   : > { %v2736_v52 = vpop.f32.mrf.mxu1 }
 0x41f   : > { %v2751_v54 = vpack.c.bf16 %v2736_v52, %v2732_v45  ;;  %v21864_v45 = vld [vmem:[#allocation66_spill] sm:$0xff] }
 0x420   : > { %v2738_v28 = vpop.f32.mrf.mxu1 }
 0x421   : > { %v2752_v56 = vpack.c.bf16 %v2738_v28, %v2734_v19  ;;  %v1413_v19 = vadd.f32 %v21864_v45, %v21863_v10  ;;  %v21865_v28 = vld [vmem:[#allocation74_spill] sm:$0xff] }
 0x422   : > { %v16665_v45 = vld [vmem:[%s21870_s0 + $0x64] ss:$8 sps:$4 sm:$0xff]  }
 0x423   : > { %2801 = vmatprep.subr.bf16.mxu0 %v2752_v56  ;;  %v1417_v56 = vadd.f32 %v21865_v28, %v18263_v62  ;;  %v16663_v28 = vld [vmem:[%s21870_s0 + $0x60] ss:$8 sps:$4 sm:$0xff]  }
 0x424   : > { %2802 = vmatpush1.bf16.msra.mxu0 %v2751_v54 }
 0x425   : > { %2803 = vmatprep.subr.bf16.mxu0 %v2750_v48 }
 0x428   : > { %2804 = vmatpush1.bf16.msra.mxu0 %v2749_v44  ;;  %v21866_v44 = vld [vmem:[#allocation91_spill] sm:$0xff] }
 0x429   : > { %2805 = vmatprep.subr.bf16.mxu0 %v2748_v31 }
 0x42c   : > { %2806 = vmatpush1.bf16.msra.mxu0 %v2747_v18  ;;  %v21867_v18 = vld [vmem:[#allocation71_spill] sm:$0xff] }
 0x42d   : > { %2807 = vmatprep.subr.bf16.mxu0 %v2746_v39  ;;  %v1415_v39 = vadd.f32 %v21867_v18, %v21863_v10  ;;  %v16660_v10 = vld [vmem:[%s21870_s0 + $0x70] ss:$8 sps:$4 sm:$0xff]  }
 0x42e   : > { %v16666_v18 = vld [vmem:[%s21870_s0 + $0x50] ss:$8 sps:$4 sm:$0xff]  }
 0x430   : > { %2808 = vmatpush1.bf16.msra.mxu0 %v2745_v8  ;;  %v21868_v8 = vld [vmem:[#allocation80_spill] sm:$0xff] }
 0x433   : > { %13643 = vmatmul.mubr.msk.bf16.vlgmr.msra.gmra.mxu0 %vm1521_vm0, %v16606_v25  ;;  %v1419_v25 = vadd.f32 %v21868_v8, %v18263_v62  ;;  %v16620_v8 = vld [vmem:[%s21870_s0 + $0x140] ss:$8 sps:$4 sm:$0xff]  }
 0x434   : > { %2835 = vmatprep.mubr.bf16.mxu0 %v21835_v59 }
 0x43b   : > { %13644 = vmatmul.mubr.msk.bf16.gmra.mxu0 %vm1521_vm0, %v16607_v24  ;;  %v21869_v24 = vld [vmem:[#allocation60_spill] sm:$0xff] }
 0x43c   : > { %2910 = vmatprep.mubr.bf16.mxu0 %v21835_v59 }
 0x4f3   : > { %v2827_v46 = vpop.f32.mrf.mxu0 }
 0x4f4   : > { %v2828_v47 = vadd.f32 %v2827_v46, %v18291_v6  ;;  %v1409_v46 = vadd.f32 %v21869_v24, %v18288_v16  ;;  %v16669_v24 = vld [vmem:[%s21870_s0 + $0x40] ss:$8 sps:$4 sm:$0xff]  }
 0x4f5   : > { %v2829_v55 = vpop.f32.mrf.mxu0 }
 0x4f6   : > { %v2846_v40 = vadd.f32 %v2828_v47, %v1403_v63 }
 0x4f7   : > { %v2831_v41 = vpop.f32.mrf.mxu0 }
 0x4f8   : > { %v2832_v26 = vadd.f32 %v2831_v41, %v18304_v13  ;;  %v2830_v41 = vadd.f32 %v2829_v55, %v18291_v6  ;;  %v16662_v55 = vld [vmem:[%s21870_s0 + $0x74] ss:$8 sps:$4 sm:$0xff]  }
 0x4f9   : > { %v2833_v2 = vpop.f32.mrf.mxu0 }
 0x4fa   : > { %v2848_v37 = vadd.f32 %v2832_v26, %v1407_v33  ;;  %v2834_v54 = vadd.f32 %v2833_v2, %v18304_v13 }
 0x4fb   : > { %v2837_v43 = vpop.f32.mrf.mxu0 }
 0x4fc   : > { %v18664_v4 = vpack.c.bf16 %v2848_v37, %v2846_v40  ;;  %v2838_v7 = vadd.f32 %v2837_v43, %v18265_v11  ;;  %v2849_v33 = vadd.f32 %v2834_v54, %v1409_v46  ;;  %v16608_v37 = vld [vmem:[%s21872_s1] sm:$0xff]   ;;  %v16609_v43 = vld [vmem:[%s21872_s1 + $0x10] sm:$0xff]   ;;  %v16626_v54 = vld [vmem:[%s21872_s1 + $0x8] sm:$0xff]  }
 0x4fd   : > { %v2839_v15 = vpop.f32.mrf.mxu0  ;;  %v16674_v46 = vld [vmem:[%s21870_s0 + $0x34] ss:$8 sps:$4 sm:$0xff]  }
 0x4fe   : > { %v2840_v48 = vadd.f32 %v2839_v15, %v18265_v11  ;;  %v2850_v50 = vadd.f32 %v2838_v7, %v1413_v19  ;;  %v21871_v11 = vld [vmem:[#allocation55_spill] sm:$0xff]  ;;  %v16615_v7 = vld [vmem:[%s21870_s0 + $0x164] ss:$8 sps:$4 sm:$0xff]   ;;  %v16613_v19 = vld [vmem:[%s21870_s0 + $0x160] ss:$8 sps:$4 sm:$0xff]  }
 0x4ff   : > { %v2841_v52 = vpop.f32.mrf.mxu0  ;;  %v1405_v21 = vadd.f32 %v21871_v11, %v18278_v51  ;;  %v16612_v51 = vld [vmem:[%s21870_s0 + $0x174] ss:$8 sps:$4 sm:$0xff]   ;;  %v16610_v15 = vld [vmem:[%s21870_s0 + $0x170] ss:$8 sps:$4 sm:$0xff]  }
 0x500   : > { %v2842_v31 = vadd.f32 %v2841_v52, %v21866_v44  ;;  %v2851_v26 = vadd.f32 %v2840_v48, %v1415_v39  ;;  %v16619_v52 = vld [vmem:[%s21870_s0 + $0x154] ss:$8 sps:$4 sm:$0xff]   ;;  %v16617_v48 = vld [vmem:[%s21870_s0 + $0x150] ss:$8 sps:$4 sm:$0xff]   ;;  %v16671_v39 = vld [vmem:[%s21870_s0 + $0x44] ss:$8 sps:$4 sm:$0xff]  }
 0x501   : > { %v2843_v47 = vpop.f32.mrf.mxu0  ;;  %v2847_v16 = vadd.f32 %v2830_v41, %v1405_v21  ;;  %v16629_v41 = vld [vmem:[%s21870_s0 + $0x124] ss:$8 sps:$4 sm:$0xff]   ;;  %v16632_v11 = vld [vmem:[%s21870_s0 + $0x114] ss:$8 sps:$4 sm:$0xff]   ;;  %v16675_v21 = vld [vmem:[%s21870_s0 + $0x20] ss:$8 sps:$4 sm:$0xff]  }
 0x502   : > { %v2852_v63 = vadd.f32 %v2842_v31, %v1417_v56  ;;  %v2844_v13 = vadd.f32 %v2843_v47, %v21866_v44  ;;  %v16616_v56 = vld [vmem:[%s21872_s1 + $0x18] sm:$0xff]   ;;  %v16622_v31 = vld [vmem:[%s21870_s0 + $0x144] ss:$8 sps:$4 sm:$0xff]  }
 0x503   : > { %v18688_v6 = vpack.c.bf16 %v2849_v33, %v2847_v16  ;;  %v16668_v44 = vld [vmem:[%s21870_s0 + $0x54] ss:$8 sps:$4 sm:$0xff]   ;;  %v16623_v47 = vld [vmem:[%s21870_s0 + $0x130] ss:$8 sps:$4 sm:$0xff]  }
 0x504   : > { %v18684_v62 = vpack.c.bf16 %v2852_v63, %v2850_v50  ;;  %v2853_v2 = vadd.f32 %v2844_v13, %v1419_v25  ;;  %v16625_v25 = vld [vmem:[%s21870_s0 + $0x134] ss:$8 sps:$4 sm:$0xff]   ;;  %v16672_v50 = vld [vmem:[%s21870_s0 + $0x30] ss:$8 sps:$4 sm:$0xff]   ;;  %v16677_v63 = vld [vmem:[%s21870_s0 + $0x24] ss:$8 sps:$4 sm:$0xff]  }
 0x505   : > { %v16627_v13 = vld [vmem:[%s21870_s0 + $0x120] ss:$8 sps:$4 sm:$0xff]   ;;  %v16680_v33 = vld [vmem:[%s21870_s0 + $0x14] ss:$8 sps:$4 sm:$0xff]   ;;  %v16678_v16 = vld [vmem:[%s21870_s0 + $0x10] ss:$8 sps:$4 sm:$0xff]  }
 0x506   : > { %v18686_v40 = vpack.c.bf16 %v2853_v2, %v2851_v26  ;;  %v16630_v26 = vld [vmem:[%s21870_s0 + $0x110] ss:$8 sps:$4 sm:$0xff]   ;;  %v16635_v2 = vld [vmem:[%s21870_s0 + $0x104] ss:$8 sps:$4 sm:$0xff]  }
 0x508   : > { %2890 = vmatprep.subr.bf16.mxu0 %v18686_v40  ;;  %3000 = vmatprep.subr.bf16.mxu1 %v18686_v40 }
 0x509   : > { %2891 = vmatpush1.bf16.msra.mxu0 %v18684_v62  ;;  %3001 = vmatpush1.bf16.msra.mxu1 %v18684_v62 }
 0x50a   : > { %2892 = vmatprep.subr.bf16.mxu0 %v18688_v6  ;;  %3002 = vmatprep.subr.bf16.mxu1 %v18688_v6 }
 0x50d   : > { %2893 = vmatpush1.bf16.msra.mxu0 %v18664_v4  ;;  %3003 = vmatpush1.bf16.msra.mxu1 %v18664_v4 }
 0x50e   : > { %3238 = vmatprep.subr.bf16.mxu0 %v16612_v51  ;;  %3451 = vmatprep.subr.bf16.mxu1 %v16662_v55  ;;  %v16683_v51 = vld [vmem:[%s21870_s0 + $0x4] ss:$8 sps:$4 sm:$0xff]   ;;  %v16633_v55 = vld [vmem:[%s21870_s0 + $0x100] ss:$8 sps:$4 sm:$0xff]  }
 0x510   : > { %13647 = vmatmul.mubr.msk.bf16.vlgmr.msra.gmra.mxu0 %vm1361_vm1, %v16608_v37  ;;  %13655 = vmatmul.mubr.msk.bf16.vlgmr.msra.gmra.mxu1 %vm1361_vm1, %v16609_v43  ;;  %v16638_v37 = vld [vmem:[%s21870_s0 + $0x1f4] ss:$8 sps:$4 sm:$0xff]   ;;  %v16681_v43 = vld [vmem:[%s21870_s0] ss:$8 sps:$4 sm:$0xff]  }
 0x511   : > { %3239 = vmatpush1.bf16.msra.mxu0 %v16610_v15  ;;  %3030 = vmatprep.mubr.bf16.mxu1 %v21835_v59  ;;  %v16686_v15 = vld [vmem:[%s21870_s0 + $0xf4] ss:$8 sps:$4 sm:$0xff]  }
 0x512   : > { %3240 = vmatprep.subr.bf16.mxu0 %v16615_v7  ;;  %2920 = vmatprep.mubr.bf16.mxu0 %v21835_v59  ;;  %v16636_v7 = vld [vmem:[%s21870_s0 + $0x1f0] ss:$8 sps:$4 sm:$0xff]  }
 0x513   : > { %3452 = vmatpush1.bf16.msra.mxu1 %v16660_v10  ;;  %v16641_v10 = vld [vmem:[%s21870_s0 + $0x1e4] ss:$8 sps:$4 sm:$0xff]  }
 0x514   : > { %3453 = vmatprep.subr.bf16.mxu1 %v16665_v45  ;;  %v16684_v45 = vld [vmem:[%s21870_s0 + $0xf0] ss:$8 sps:$4 sm:$0xff]  }
 0x515   : > { %3241 = vmatpush1.bf16.msra.mxu0 %v16613_v19  ;;  %v16689_v19 = vld [vmem:[%s21870_s0 + $0xe4] ss:$8 sps:$4 sm:$0xff]  }
 0x516   : > { %3242 = vmatprep.subr.bf16.mxu0 %v16619_v52  ;;  %v16639_v52 = vld [vmem:[%s21870_s0 + $0x1e0] ss:$8 sps:$4 sm:$0xff]  }
 0x517   : > { %3454 = vmatpush1.bf16.msra.mxu1 %v16663_v28  ;;  %v16644_v28 = vld [vmem:[%s21870_s0 + $0x1d4] ss:$8 sps:$4 sm:$0xff]  }
 0x518   : > { %13656 = vmatmul.mubr.msk.bf16.gmra.mxu1 %vm1361_vm1, %v16616_v56  ;;  %13648 = vmatmul.mubr.msk.bf16.gmra.mxu0 %vm1361_vm1, %v16626_v54  ;;  %v16687_v56 = vld [vmem:[%s21870_s0 + $0xe0] ss:$8 sps:$4 sm:$0xff]   ;;  %v16692_v54 = vld [vmem:[%s21870_s0 + $0xd4] ss:$8 sps:$4 sm:$0xff]  }
 0x519   : > { %3243 = vmatpush1.bf16.msra.mxu0 %v16617_v48  ;;  %3455 = vmatprep.subr.bf16.mxu1 %v16668_v44  ;;  %v16642_v48 = vld [vmem:[%s21870_s0 + $0x1d0] ss:$8 sps:$4 sm:$0xff]   ;;  %v16647_v44 = vld [vmem:[%s21870_s0 + $0x1c4] ss:$8 sps:$4 sm:$0xff]  }
 0x51a   : > { %3244 = vmatprep.subr.bf16.mxu0 %v16622_v31  ;;  %v16690_v31 = vld [vmem:[%s21870_s0 + $0xd0] ss:$8 sps:$4 sm:$0xff]  }
 0x51b   : > { %3456 = vmatpush1.bf16.msra.mxu1 %v16666_v18  ;;  %v16695_v18 = vld [vmem:[%s21870_s0 + $0xc4] ss:$8 sps:$4 sm:$0xff]  }
 0x51c   : > { %3457 = vmatprep.subr.bf16.mxu1 %v16671_v39  ;;  %v16645_v39 = vld [vmem:[%s21870_s0 + $0x1c0] ss:$8 sps:$4 sm:$0xff]  }
 0x51d   : > { %3245 = vmatpush1.bf16.msra.mxu0 %v16620_v8  ;;  %v16650_v8 = vld [vmem:[%s21870_s0 + $0x1b4] ss:$8 sps:$4 sm:$0xff]  }
 0x51e   : > { %3246 = vmatprep.subr.bf16.mxu0 %v16625_v25  ;;  %v16693_v25 = vld [vmem:[%s21870_s0 + $0xc0] ss:$8 sps:$4 sm:$0xff]  }
 0x51f   : > { %3458 = vmatpush1.bf16.msra.mxu1 %v16669_v24  ;;  %v16698_v24 = vld [vmem:[%s21870_s0 + $0xb4] ss:$8 sps:$4 sm:$0xff]  }
 0x520   : > { %3459 = vmatprep.subr.bf16.mxu1 %v16674_v46  ;;  %v16648_v46 = vld [vmem:[%s21870_s0 + $0x1b0] ss:$8 sps:$4 sm:$0xff]  }
 0x521   : > { %3247 = vmatpush1.bf16.msra.mxu0 %v16623_v47  ;;  %v16653_v47 = vld [vmem:[%s21870_s0 + $0x1a4] ss:$8 sps:$4 sm:$0xff]  }
 0x522   : > { %3248 = vmatprep.subr.bf16.mxu0 %v16629_v41  ;;  %v16696_v41 = vld [vmem:[%s21870_s0 + $0xb0] ss:$8 sps:$4 sm:$0xff]  }
 0x523   : > { %3460 = vmatpush1.bf16.msra.mxu1 %v16672_v50  ;;  %v16701_v50 = vld [vmem:[%s21870_s0 + $0xa4] ss:$8 sps:$4 sm:$0xff]  }
 0x524   : > { %3461 = vmatprep.subr.bf16.mxu1 %v16677_v63  ;;  %v16651_v63 = vld [vmem:[%s21870_s0 + $0x1a0] ss:$8 sps:$4 sm:$0xff]  }
 0x525   : > { %3249 = vmatpush1.bf16.msra.mxu0 %v16627_v13  ;;  %v16656_v13 = vld [vmem:[%s21870_s0 + $0x194] ss:$8 sps:$4 sm:$0xff]  }
 0x526   : > { %3250 = vmatprep.subr.bf16.mxu0 %v16632_v11  ;;  %v16699_v11 = vld [vmem:[%s21870_s0 + $0xa0] ss:$8 sps:$4 sm:$0xff]  }
 0x527   : > { %3462 = vmatpush1.bf16.msra.mxu1 %v16675_v21  ;;  %v16654_v21 = vld [vmem:[%s21870_s0 + $0x190] ss:$8 sps:$4 sm:$0xff]  }
 0x528   : > { %3463 = vmatprep.subr.bf16.mxu1 %v16680_v33  ;;  %v16659_v33 = vld [vmem:[%s21870_s0 + $0x184] ss:$8 sps:$4 sm:$0xff]  }
 0x529   : > { %3251 = vmatpush1.bf16.msra.mxu0 %v16630_v26  ;;  %v16657_v26 = vld [vmem:[%s21870_s0 + $0x180] ss:$8 sps:$4 sm:$0xff]  }
 0x52a   : > { %3252 = vmatprep.subr.bf16.mxu0 %v16635_v2  ;;  %v16704_v2 = vld [vmem:[%s21870_s0 + $0x94] ss:$8 sps:$4 sm:$0xff]  }
 0x52b   : > { %3464 = vmatpush1.bf16.msra.mxu1 %v16678_v16  ;;  %v16702_v16 = vld [vmem:[%s21870_s0 + $0x90] ss:$8 sps:$4 sm:$0xff]  }
 0x52c   : > { %3465 = vmatprep.subr.bf16.mxu1 %v16683_v51  ;;  %v16707_v51 = vld [vmem:[%s21870_s0 + $0x84] ss:$8 sps:$4 sm:$0xff]  }
 0x52d   : > { %3253 = vmatpush1.bf16.msra.mxu0 %v16633_v55  ;;  %v16705_v55 = vld [vmem:[%s21870_s0 + $0x80] ss:$8 sps:$4 sm:$0xff]  }
 0x52e   : > { %3254 = vmatprep.subr.bf16.mxu0 %v16638_v37  ;;  %v16710_v37 = vld [vmem:[%s21870_s0 + $0x274] ss:$8 sps:$4 sm:$0xff]  }
 0x52f   : > { %3466 = vmatpush1.bf16.msra.mxu1 %v16681_v43 }
 0x530   : > { %3467 = vmatprep.subr.bf16.mxu1 %v16686_v15 }
 0x531   : > { %3255 = vmatpush2.bf16.msra.mxu0 %v16636_v7 }
 0x532   : > { %3256 = vmatprep.subr.bf16.mxu0 %v16641_v10 }
 0x533   : > { %3468 = vmatpush2.bf16.msra.mxu1 %v16684_v45 }
 0x534   : > { %3469 = vmatprep.subr.bf16.mxu1 %v16689_v19 }
 0x535   : > { %3257 = vmatpush2.bf16.msra.mxu0 %v16639_v52 }
 0x536   : > { %3258 = vmatprep.subr.bf16.mxu0 %v16644_v28 }
 0x537   : > { %3470 = vmatpush2.bf16.msra.mxu1 %v16687_v56 }
 0x538   : > { %3471 = vmatprep.subr.bf16.mxu1 %v16692_v54 }
 0x539   : > { %3259 = vmatpush2.bf16.msra.mxu0 %v16642_v48 }
 0x53a   : > { %3260 = vmatprep.subr.bf16.mxu0 %v16647_v44  ;;  %v16708_v44 = vld [vmem:[%s21870_s0 + $0x270] ss:$8 sps:$4 sm:$0xff]  }
 0x53b   : > { %3472 = vmatpush2.bf16.msra.mxu1 %v16690_v31 }
 0x53c   : > { %3473 = vmatprep.subr.bf16.mxu1 %v16695_v18 }
 0x53d   : > { %3261 = vmatpush2.bf16.msra.mxu0 %v16645_v39  ;;  %v16713_v39 = vld [vmem:[%s21870_s0 + $0x264] ss:$8 sps:$4 sm:$0xff]  }
 0x53e   : > { %3262 = vmatprep.subr.bf16.mxu0 %v16650_v8 }
 0x53f   : > { %3474 = vmatpush2.bf16.msra.mxu1 %v16693_v25 }
 0x540   : > { %3475 = vmatprep.subr.bf16.mxu1 %v16698_v24 }
 0x541   : > { %3263 = vmatpush2.bf16.msra.mxu0 %v16648_v46  ;;  %v16711_v46 = vld [vmem:[%s21870_s0 + $0x260] ss:$8 sps:$4 sm:$0xff]  }
 0x542   : > { %3264 = vmatprep.subr.bf16.mxu0 %v16653_v47 }
 0x543   : > { %3476 = vmatpush2.bf16.msra.mxu1 %v16696_v41  ;;  %v16716_v41 = vld [vmem:[%s21870_s0 + $0x254] ss:$8 sps:$4 sm:$0xff]  }
 0x544   : > { %3477 = vmatprep.subr.bf16.mxu1 %v16701_v50 }
 0x545   : > { %3265 = vmatpush2.bf16.msra.mxu0 %v16651_v63 }
 0x546   : > { %3266 = vmatprep.subr.bf16.mxu0 %v16656_v13 }
 0x547   : > { %3478 = vmatpush2.bf16.msra.mxu1 %v16699_v11 }
 0x548   : > { %3479 = vmatprep.subr.bf16.mxu1 %v16704_v2 }
 0x549   : > { %3267 = vmatpush2.bf16.msra.mxu0 %v16654_v21 }
 0x54a   : > { %3268 = vmatprep.subr.bf16.mxu0 %v16659_v33  ;;  %v16714_v33 = vld [vmem:[%s21870_s0 + $0x250] ss:$8 sps:$4 sm:$0xff]  }
 0x54b   : > { %3480 = vmatpush2.bf16.msra.mxu1 %v16702_v16  ;;  %v16719_v16 = vld [vmem:[%s21870_s0 + $0x244] ss:$8 sps:$4 sm:$0xff]  }
 0x54c   : > { %3481 = vmatprep.subr.bf16.mxu1 %v16707_v51  ;;  %v16717_v51 = vld [vmem:[%s21870_s0 + $0x240] ss:$8 sps:$4 sm:$0xff]  }
 0x54d   : > { %3269 = vmatpush2.bf16.msra.mxu0 %v16657_v26 }
 0x54e   : > { %3537 = vmatprep.subr.bf16.mxu0 %v18686_v40 }
 0x54f   : > { %3482 = vmatpush2.bf16.msra.mxu1 %v16705_v55  ;;  %v16722_v55 = vld [vmem:[%s21870_s0 + $0x234] ss:$8 sps:$4 sm:$0xff]  }
 0x550   : > { %3775 = vmatprep.subr.bf16.mxu1 %v16710_v37  ;;  %v16723_v37 = vld [vmem:[%s21872_s1 + $0x20] sm:$0xff]  }
 0x5d0   : > { %v2912_v43 = vpop.f32.mrf.mxu0  ;;  %v3022_v15 = vpop.f32.mrf.mxu1 }
 0x5d2   : > { %v2914_v7 = vpop.f32.mrf.mxu0  ;;  %v3024_v10 = vpop.f32.mrf.mxu1 }
 0x5d4   : > { %v2916_v45 = vpop.f32.mrf.mxu0  ;;  %v3026_v19 = vpop.f32.mrf.mxu1 }
 0x5d5   : > { %v2963_v52 = vpack.c.bf16 %v2916_v45, %v2912_v43  ;;  %v3074_v31 = vpack.c.bf16 %v3026_v19, %v3022_v15  ;;  %v16720_v43 = vld [vmem:[%s21870_s0 + $0x230] ss:$8 sps:$4 sm:$0xff]   ;;  %v16726_v15 = vld [vmem:[%s21870_s0 + $0x224] ss:$8 sps:$4 sm:$0xff]   ;;  %v16739_v45 = vld [vmem:[%s21870_s0 + $0x374] ss:$8 sps:$4 sm:$0xff]  }
 0x5d6   : > { %v2918_v28 = vpop.f32.mrf.mxu0  ;;  %v3028_v56 = vpop.f32.mrf.mxu1  ;;  %v16730_v19 = vld [vmem:[%s21872_s1 + $0x28] sm:$0xff]  }
 0x5d7   : > { %v2964_v54 = vpack.c.bf16 %v2918_v28, %v2914_v7  ;;  %v3075_v48 = vpack.c.bf16 %v3028_v56, %v3024_v10  ;;  %v16724_v7 = vld [vmem:[%s21870_s0 + $0x220] ss:$8 sps:$4 sm:$0xff]   ;;  %v16729_v10 = vld [vmem:[%s21870_s0 + $0x214] ss:$8 sps:$4 sm:$0xff]   ;;  %v16733_v28 = vld [vmem:[%s21870_s0 + $0x204] ss:$8 sps:$4 sm:$0xff]  }
 0x5d8   : > { %v3032_v18 = vpop.f32.mrf.mxu1  ;;  %v2922_v8 = vpop.f32.mrf.mxu0  ;;  %v16731_v56 = vld [vmem:[%s21870_s0 + $0x200] ss:$8 sps:$4 sm:$0xff]  }
 0x5d9   : > { %3270 = vmatprep.mubr.bf16.mxu0 %v3075_v48  ;;  %3483 = vmatprep.mubr.bf16.mxu1 %v2964_v54  ;;  %v16736_v54 = vld [vmem:[%s21870_s0 + $0x2f4] ss:$8 sps:$4 sm:$0xff]  }
 0x5da   : > { %v3034_v25 = vpop.f32.mrf.mxu1  ;;  %3271 = vmatmul.mubr.bf16.vlgmr.msra.gmra.mxu0 %v3074_v31  ;;  %3484 = vmatmul.mubr.bf16.vlgmr.msra.gmra.mxu1 %v2963_v52  ;;  %v2924_v24 = vpop.f32.mrf.mxu0  ;;  %v16727_v52 = vld [vmem:[%s21870_s0 + $0x210] ss:$8 sps:$4 sm:$0xff]  }
 0x5db   : > { %3538 = vmatpush1.bf16.msra.mxu0 %v18684_v62  ;;  %3776 = vmatpush1.bf16.msra.mxu1 %v16708_v44  ;;  %v16740_v48 = vld [vmem:[%s21872_s1 + $0x30] sm:$0xff]  }
 0x5dc   : > { %3539 = vmatprep.subr.bf16.mxu0 %v18688_v6  ;;  %v3036_v47 = vpop.f32.mrf.mxu1  ;;  %3777 = vmatprep.subr.bf16.mxu1 %v16713_v39  ;;  %v2926_v50 = vpop.f32.mrf.mxu0  ;;  %v16734_v44 = vld [vmem:[%s21870_s0 + $0x2f0] ss:$8 sps:$4 sm:$0xff]   ;;  %v16746_v39 = vld [vmem:[%s21870_s0 + $0x364] ss:$8 sps:$4 sm:$0xff]  }
 0x5dd   : > { %v2965_v13 = vpack.c.bf16 %v2926_v50, %v2922_v8  ;;  %v3076_v2 = vpack.c.bf16 %v3036_v47, %v3032_v18  ;;  %v16737_v31 = vld [vmem:[%s21870_s0 + $0x370] ss:$8 sps:$4 sm:$0xff]   ;;  %v16743_v18 = vld [vmem:[%s21870_s0 + $0x2e4] ss:$8 sps:$4 sm:$0xff]   ;;  %v16741_v8 = vld [vmem:[%s21870_s0 + $0x2e0] ss:$8 sps:$4 sm:$0xff]  }
 0x5de   : > { %v3038_v63 = vpop.f32.mrf.mxu1  ;;  %v2928_v11 = vpop.f32.mrf.mxu0  ;;  %v16753_v47 = vld [vmem:[%s21872_s1 + $0x38] sm:$0xff]  }
 0x5df   : > { %v3077_v21 = vpack.c.bf16 %v3038_v63, %v3034_v25  ;;  %3540 = vmatpush1.bf16.msra.mxu0 %v18664_v4  ;;  %3778 = vmatpush1.bf16.msra.mxu1 %v16711_v46  ;;  %v2966_v26 = vpack.c.bf16 %v2928_v11, %v2924_v24  ;;  %v16744_v25 = vld [vmem:[%s21870_s0 + $0x360] ss:$8 sps:$4 sm:$0xff]   ;;  %v16749_v24 = vld [vmem:[%s21870_s0 + $0x2d4] ss:$8 sps:$4 sm:$0xff]   ;;  %v16750_v50 = vld [vmem:[%s21870_s0 + $0x350] ss:$8 sps:$4 sm:$0xff]  }
 0x5e0   : > { %3869 = vmatprep.subr.bf16.mxu0 %v18686_v40  ;;  %3779 = vmatprep.subr.bf16.mxu1 %v16716_v41  ;;  %v16752_v46 = vld [vmem:[%s21870_s0 + $0x354] ss:$8 sps:$4 sm:$0xff]   ;;  %v16747_v41 = vld [vmem:[%s21870_s0 + $0x2d0] ss:$8 sps:$4 sm:$0xff]   ;;  %v16756_v63 = vld [vmem:[%s21870_s0 + $0x2c4] ss:$8 sps:$4 sm:$0xff]  }
 0x5e1   : > { %3280 = vmatprep.mubr.bf16.mxu0 %v3077_v21  ;;  %3493 = vmatprep.mubr.bf16.mxu1 %v2966_v26  ;;  %v16754_v11 = vld [vmem:[%s21870_s0 + $0x2c0] ss:$8 sps:$4 sm:$0xff]   ;;  %v16765_v26 = vld [vmem:[%s21870_s0 + $0x334] ss:$8 sps:$4 sm:$0xff]  }
 0x5e2   : > { %3281 = vmatmul.mubr.bf16.gmra.mxu0 %v3076_v2  ;;  %3494 = vmatmul.mubr.bf16.gmra.mxu1 %v2965_v13  ;;  %v16759_v13 = vld [vmem:[%s21870_s0 + $0x344] ss:$8 sps:$4 sm:$0xff]   ;;  %v16757_v21 = vld [vmem:[%s21870_s0 + $0x340] ss:$8 sps:$4 sm:$0xff]   ;;  %v16760_v2 = vld [vmem:[%s21870_s0 + $0x2b0] ss:$8 sps:$4 sm:$0xff]  }
 0x5e3   : > { %3780 = vmatpush1.bf16.msra.mxu1 %v16714_v33  ;;  %3557 = vmatprep.mubr.bf16.mxu0 %v21835_v59  ;;  %v16762_v33 = vld [vmem:[%s21870_s0 + $0x2b4] ss:$8 sps:$4 sm:$0xff]  }
 0x5e4   : > { %3781 = vmatprep.subr.bf16.mxu1 %v16719_v16  ;;  %v16763_v16 = vld [vmem:[%s21870_s0 + $0x330] ss:$8 sps:$4 sm:$0xff]  }
 0x5e7   : > { %3782 = vmatpush1.bf16.msra.mxu1 %v16717_v51  ;;  %v16768_v51 = vld [vmem:[%s21870_s0 + $0x2a4] ss:$8 sps:$4 sm:$0xff]  }
 0x5e8   : > { %3783 = vmatprep.subr.bf16.mxu1 %v16722_v55  ;;  %v16771_v55 = vld [vmem:[%s21870_s0 + $0x324] ss:$8 sps:$4 sm:$0xff]  }
 0x5ea   : > { %13759 = vmatmul.mubr.msk.bf16.vlgmr.msra.gmra.mxu0 %vm1361_vm1, %v16723_v37  ;;  %v16766_v37 = vld [vmem:[%s21870_s0 + $0x2a0] ss:$8 sps:$4 sm:$0xff]  }
 0x5eb   : > { %3784 = vmatpush1.bf16.msra.mxu1 %v16720_v43  ;;  %3870 = vmatpush1.bf16.msra.mxu0 %v18684_v62  ;;  %v16769_v43 = vld [vmem:[%s21870_s0 + $0x320] ss:$8 sps:$4 sm:$0xff]  }
 0x5ec   : > { %3871 = vmatprep.subr.bf16.mxu0 %v18688_v6  ;;  %3785 = vmatprep.subr.bf16.mxu1 %v16726_v15  ;;  %v16774_v15 = vld [vmem:[%s21870_s0 + $0x294] ss:$8 sps:$4 sm:$0xff]  }
 0x5ed   : > { %3567 = vmatprep.mubr.bf16.mxu0 %v21835_v59 }
 0x5ef   : > { %3786 = vmatpush1.bf16.msra.mxu1 %v16724_v7  ;;  %3872 = vmatpush1.bf16.msra.mxu0 %v18664_v4  ;;  %v16777_v7 = vld [vmem:[%s21870_s0 + $0x314] ss:$8 sps:$4 sm:$0xff]  }
 0x5f0   : > { %3787 = vmatprep.subr.bf16.mxu1 %v16729_v10  ;;  %4107 = vmatprep.subr.bf16.mxu0 %v16739_v45  ;;  %v16772_v10 = vld [vmem:[%s21870_s0 + $0x290] ss:$8 sps:$4 sm:$0xff]  }
 0x5f1   : > { %v16775_v45 = vld [vmem:[%s21870_s0 + $0x310] ss:$8 sps:$4 sm:$0xff]  }
 0x5f2   : > { %13760 = vmatmul.mubr.msk.bf16.gmra.mxu0 %vm1361_vm1, %v16730_v19  ;;  %v16780_v19 = vld [vmem:[%s21870_s0 + $0x284] ss:$8 sps:$4 sm:$0xff]  }
 0x5f3   : > { %3788 = vmatpush1.bf16.msra.mxu1 %v16727_v52  ;;  %3889 = vmatprep.mubr.bf16.mxu0 %v21835_v59  ;;  %v16783_v52 = vld [vmem:[%s21870_s0 + $0x304] ss:$8 sps:$4 sm:$0xff]  }
 0x5f4   : > { %3789 = vmatprep.subr.bf16.mxu1 %v16733_v28  ;;  %v16778_v28 = vld [vmem:[%s21870_s0 + $0x280] ss:$8 sps:$4 sm:$0xff]  }
 0x5f7   : > { %3790 = vmatpush1.bf16.msra.mxu1 %v16731_v56  ;;  %v16781_v56 = vld [vmem:[%s21870_s0 + $0x300] ss:$8 sps:$4 sm:$0xff]  }
 0x5f8   : > { %3791 = vmatprep.subr.bf16.mxu1 %v16736_v54  ;;  %v16786_v54 = vld [vmem:[%s21870_s0 + $0x3f4] ss:$8 sps:$4 sm:$0xff]  }
 0x5fa   : > { %13831 = vmatmul.mubr.msk.bf16.vlgmr.msra.gmra.mxu0 %vm1361_vm1, %v16740_v48  ;;  %v16784_v48 = vld [vmem:[%s21870_s0 + $0x3f0] ss:$8 sps:$4 sm:$0xff]  }
 0x5fb   : > { %3792 = vmatpush2.bf16.msra.mxu1 %v16734_v44  ;;  %4108 = vmatpush1.bf16.msra.mxu0 %v16737_v31  ;;  %v16789_v44 = vld [vmem:[%s21870_s0 + $0x3e4] ss:$8 sps:$4 sm:$0xff]   ;;  %v16787_v31 = vld [vmem:[%s21870_s0 + $0x3e0] ss:$8 sps:$4 sm:$0xff]  }
 0x5fc   : > { %3793 = vmatprep.subr.bf16.mxu1 %v16743_v18  ;;  %4109 = vmatprep.subr.bf16.mxu0 %v16746_v39  ;;  %v16792_v18 = vld [vmem:[%s21870_s0 + $0x3d4] ss:$8 sps:$4 sm:$0xff]   ;;  %v16790_v39 = vld [vmem:[%s21870_s0 + $0x3d0] ss:$8 sps:$4 sm:$0xff]  }
 0x5fd   : > { %3899 = vmatprep.mubr.bf16.mxu0 %v21835_v59 }
 0x5ff   : > { %3794 = vmatpush2.bf16.msra.mxu1 %v16741_v8  ;;  %4110 = vmatpush1.bf16.msra.mxu0 %v16744_v25  ;;  %v16795_v8 = vld [vmem:[%s21870_s0 + $0x3c4] ss:$8 sps:$4 sm:$0xff]   ;;  %v16793_v25 = vld [vmem:[%s21870_s0 + $0x3c0] ss:$8 sps:$4 sm:$0xff]  }
 0x600   : > { %3795 = vmatprep.subr.bf16.mxu1 %v16749_v24  ;;  %4111 = vmatprep.subr.bf16.mxu0 %v16752_v46  ;;  %v16798_v24 = vld [vmem:[%s21870_s0 + $0x3b4] ss:$8 sps:$4 sm:$0xff]   ;;  %v16796_v46 = vld [vmem:[%s21870_s0 + $0x3b0] ss:$8 sps:$4 sm:$0xff]  }
 0x602   : > { %13832 = vmatmul.mubr.msk.bf16.gmra.mxu0 %vm1361_vm1, %v16753_v47  ;;  %v16801_v47 = vld [vmem:[%s21870_s0 + $0x3a4] ss:$8 sps:$4 sm:$0xff]  }
 0x603   : > { %3796 = vmatpush2.bf16.msra.mxu1 %v16747_v41  ;;  %4112 = vmatpush1.bf16.msra.mxu0 %v16750_v50  ;;  %v16799_v41 = vld [vmem:[%s21870_s0 + $0x3a0] ss:$8 sps:$4 sm:$0xff]   ;;  %v16804_v50 = vld [vmem:[%s21870_s0 + $0x394] ss:$8 sps:$4 sm:$0xff]  }
 0x604   : > { %3797 = vmatprep.subr.bf16.mxu1 %v16756_v63  ;;  %4113 = vmatprep.subr.bf16.mxu0 %v16759_v13  ;;  %v16802_v63 = vld [vmem:[%s21870_s0 + $0x390] ss:$8 sps:$4 sm:$0xff]   ;;  %v16807_v13 = vld [vmem:[%s21870_s0 + $0x384] ss:$8 sps:$4 sm:$0xff]  }
 0x607   : > { %3798 = vmatpush2.bf16.msra.mxu1 %v16754_v11  ;;  %4114 = vmatpush1.bf16.msra.mxu0 %v16757_v21  ;;  %v16805_v11 = vld [vmem:[%s21870_s0 + $0x380] ss:$8 sps:$4 sm:$0xff]  }
 0x608   : > { %3799 = vmatprep.subr.bf16.mxu1 %v16762_v33  ;;  %4115 = vmatprep.subr.bf16.mxu0 %v16765_v26 }
 0x60b   : > { %3800 = vmatpush2.bf16.msra.mxu1 %v16760_v2  ;;  %4116 = vmatpush1.bf16.msra.mxu0 %v16763_v16 }
 0x60c   : > { %3801 = vmatprep.subr.bf16.mxu1 %v16768_v51  ;;  %4117 = vmatprep.subr.bf16.mxu0 %v16771_v55 }
 0x60f   : > { %3802 = vmatpush2.bf16.msra.mxu1 %v16766_v37  ;;  %4118 = vmatpush1.bf16.msra.mxu0 %v16769_v43 }
 0x610   : > { %3803 = vmatprep.subr.bf16.mxu1 %v16774_v15  ;;  %4119 = vmatprep.subr.bf16.mxu0 %v16777_v7 }
 0x613   : > { %3804 = vmatpush2.bf16.msra.mxu1 %v16772_v10  ;;  %4120 = vmatpush1.bf16.msra.mxu0 %v16775_v45 }
 0x614   : > { %3805 = vmatprep.subr.bf16.mxu1 %v16780_v19  ;;  %4121 = vmatprep.subr.bf16.mxu0 %v16783_v52 }
 0x617   : > { %3806 = vmatpush2.bf16.msra.mxu1 %v16778_v28  ;;  %4122 = vmatpush1.bf16.msra.mxu0 %v16781_v56 }
 0x618   : > { %4201 = vmatprep.subr.bf16.mxu1 %v18686_v40  ;;  %4123 = vmatprep.subr.bf16.mxu0 %v16786_v54 }
 0x61b   : > { %4124 = vmatpush2.bf16.msra.mxu0 %v16784_v48 }
 0x61c   : > { %4125 = vmatprep.subr.bf16.mxu0 %v16789_v44 }
 0x61f   : > { %4126 = vmatpush2.bf16.msra.mxu0 %v16787_v31 }
 0x620   : > { %4127 = vmatprep.subr.bf16.mxu0 %v16792_v18 }
 0x623   : > { %4128 = vmatpush2.bf16.msra.mxu0 %v16790_v39 }
 0x624   : > { %4129 = vmatprep.subr.bf16.mxu0 %v16795_v8 }
 0x627   : > { %4130 = vmatpush2.bf16.msra.mxu0 %v16793_v25 }
 0x628   : > { %4131 = vmatprep.subr.bf16.mxu0 %v16798_v24 }
 0x62b   : > { %4132 = vmatpush2.bf16.msra.mxu0 %v16796_v46 }
 0x62c   : > { %4133 = vmatprep.subr.bf16.mxu0 %v16801_v47 }
 0x62f   : > { %4134 = vmatpush2.bf16.msra.mxu0 %v16799_v41 }
 0x630   : > { %4135 = vmatprep.subr.bf16.mxu0 %v16804_v50 }
 0x633   : > { %4136 = vmatpush2.bf16.msra.mxu0 %v16802_v63  ;;  %v16810_v63 = vld [vmem:[%s21870_s0 + $0x474] ss:$8 sps:$4 sm:$0xff]  }
 0x634   : > { %4137 = vmatprep.subr.bf16.mxu0 %v16807_v13 }
 0x637   : > { %4138 = vmatpush2.bf16.msra.mxu0 %v16805_v11 }
 0x638   : > { %4533 = vmatprep.subr.bf16.mxu0 %v18686_v40 }
 0x69a   : > { %v3272_v21 = vpop.f32.mrf.mxu0  ;;  %v3485_v33 = vpop.f32.mrf.mxu1 }
 0x69b   : > { %v18858_v26 = vadd.f32 %v3485_v33, %v3272_v21 }
 0x69c   : > { %v3274_v2 = vpop.f32.mrf.mxu0  ;;  %v3487_v16 = vpop.f32.mrf.mxu1 }
 0x69d   : > { %v18860_v51 = vadd.f32 %v3487_v16, %v3274_v2 }
 0x69e   : > { %v3276_v55 = vpop.f32.mrf.mxu0  ;;  %v3489_v37 = vpop.f32.mrf.mxu1 }
 0x69f   : > { %v18862_v43 = vadd.f32 %v3489_v37, %v3276_v55 }
 0x6a0   : > { %v18864_v15 = vpop.f32.mrf.mxu0  ;;  %v18866_v7 = vpop.f32.mrf.mxu1 }
 0x6a1   : > { %21873 = vst [vmem:[#allocation67_spill] sm:$0xff] %v18864_v15  ;;  %21874 = vst [vmem:[#allocation65_spill] sm:$0xff] %v18866_v7  ;;  %v21926_v15 = vld [vmem:[#allocation25_spill] sm:$0xff] }
 0x6a2   : > { %v3282_v10 = vpop.f32.mrf.mxu0  ;;  %v3495_v45 = vpop.f32.mrf.mxu1 }
 0x6a3   : > { %v18868_v19 = vadd.f32 %v3495_v45, %v3282_v10  ;;  %v16811_v10 = vld [vmem:[%s21872_s1 + $0x40] sm:$0xff]  }
 0x6a4   : > { %v3284_v52 = vpop.f32.mrf.mxu0  ;;  %v3497_v28 = vpop.f32.mrf.mxu1 }
 0x6a5   : > { %v18870_v56 = vadd.f32 %v3497_v28, %v3284_v52  ;;  %v16808_v52 = vld [vmem:[%s21870_s0 + $0x470] ss:$8 sps:$4 sm:$0xff]  }
 0x6a6   : > { %v3286_v54 = vpop.f32.mrf.mxu0  ;;  %v3499_v48 = vpop.f32.mrf.mxu1 }
 0x6a7   : > { %v18872_v44 = vadd.f32 %v3499_v48, %v3286_v54  ;;  %v16814_v54 = vld [vmem:[%s21870_s0 + $0x464] ss:$8 sps:$4 sm:$0xff]  }
 0x6a8   : > { %v18874_v31 = vpop.f32.mrf.mxu0 }
 0x6a9   : > { %21875 = vst [vmem:[#allocation63_spill] sm:$0xff] %v18874_v31 }
 0x6aa   : > { %v3559_v18 = vpop.f32.mrf.mxu0 }
 0x6ac   : > { %v3561_v39 = vpop.f32.mrf.mxu0 }
 0x6ae   : > { %v3563_v8 = vpop.f32.mrf.mxu0 }
 0x6af   : > { %v3611_v46 = vpack.c.bf16 %v3563_v8, %v3559_v18  ;;  %v16812_v18 = vld [vmem:[%s21870_s0 + $0x460] ss:$8 sps:$4 sm:$0xff]   ;;  %v16817_v8 = vld [vmem:[%s21870_s0 + $0x454] ss:$8 sps:$4 sm:$0xff]  }
 0x6b0   : > { %v3565_v25 = vpop.f32.mrf.mxu0 }
 0x6b1   : > { %v3612_v24 = vpack.c.bf16 %v3565_v25, %v3561_v39  ;;  %v16827_v25 = vld [vmem:[%s21870_s0 + $0x574] ss:$8 sps:$4 sm:$0xff]  }
 0x6b2   : > { %v3569_v47 = vpop.f32.mrf.mxu0 }
 0x6b3   : > { %3807 = vmatprep.mubr.bf16.mxu1 %v3612_v24 }
 0x6b4   : > { %v3571_v41 = vpop.f32.mrf.mxu0  ;;  %3808 = vmatmul.mubr.bf16.vlgmr.msra.gmra.mxu1 %v3611_v46 }
 0x6b5   : > { %4202 = vmatpush1.bf16.msra.mxu1 %v18684_v62 }
 0x6b6   : > { %4203 = vmatprep.subr.bf16.mxu1 %v18688_v6  ;;  %v3573_v50 = vpop.f32.mrf.mxu0 }
 0x6b7   : > { %v3613_v21 = vpack.c.bf16 %v3573_v50, %v3569_v47  ;;  %v16818_v47 = vld [vmem:[%s21872_s1 + $0x48] sm:$0xff]   ;;  %v16815_v50 = vld [vmem:[%s21870_s0 + $0x450] ss:$8 sps:$4 sm:$0xff]  }
 0x6b8   : > { %v3575_v13 = vpop.f32.mrf.mxu0 }
 0x6b9   : > { %v3614_v11 = vpack.c.bf16 %v3575_v13, %v3571_v41  ;;  %4204 = vmatpush1.bf16.msra.mxu1 %v18664_v4  ;;  %v16819_v13 = vld [vmem:[%s21870_s0 + $0x440] ss:$8 sps:$4 sm:$0xff]  }
 0x6ba   : > { %v3891_v33 = vpop.f32.mrf.mxu0  ;;  %4439 = vmatprep.subr.bf16.mxu1 %v16810_v63  ;;  %v16821_v63 = vld [vmem:[%s21870_s0 + $0x444] ss:$8 sps:$4 sm:$0xff]  }
 0x6bb   : > { %3817 = vmatprep.mubr.bf16.mxu1 %v3614_v11  ;;  %v16824_v11 = vld [vmem:[%s21870_s0 + $0x434] ss:$8 sps:$4 sm:$0xff]  }
 0x6bc   : > { %3818 = vmatmul.mubr.bf16.gmra.mxu1 %v3613_v21  ;;  %v3893_v2 = vpop.f32.mrf.mxu0  ;;  %v16828_v21 = vld [vmem:[%s21872_s1 + $0x50] sm:$0xff]  }
 0x6bd   : > { %4221 = vmatprep.mubr.bf16.mxu1 %v21835_v59 }
 0x6be   : > { %v3895_v16 = vpop.f32.mrf.mxu0 }
 0x6bf   : > { %v3943_v55 = vpack.c.bf16 %v3895_v16, %v3891_v33  ;;  %v16822_v33 = vld [vmem:[%s21870_s0 + $0x430] ss:$8 sps:$4 sm:$0xff]   ;;  %v16831_v16 = vld [vmem:[%s21870_s0 + $0x424] ss:$8 sps:$4 sm:$0xff]  }
 0x6c0   : > { %v3897_v37 = vpop.f32.mrf.mxu0 }
 0x6c1   : > { %v3944_v45 = vpack.c.bf16 %v3897_v37, %v3893_v2  ;;  %v16825_v2 = vld [vmem:[%s21870_s0 + $0x570] ss:$8 sps:$4 sm:$0xff]   ;;  %v16829_v37 = vld [vmem:[%s21870_s0 + $0x420] ss:$8 sps:$4 sm:$0xff]  }
 0x6c2   : > { %v3901_v28 = vpop.f32.mrf.mxu0 }
 0x6c3   : > { %4139 = vmatprep.mubr.bf16.mxu0 %v3944_v45  ;;  %v16837_v45 = vld [vmem:[%s21870_s0 + $0x414] ss:$8 sps:$4 sm:$0xff]  }
 0x6c4   : > { %v3903_v48 = vpop.f32.mrf.mxu0  ;;  %4140 = vmatmul.mubr.bf16.vlgmr.msra.gmra.mxu0 %v3943_v55  ;;  %13903 = vmatmul.mubr.msk.bf16.vlgmr.msra.gmra.mxu1 %vm1361_vm1, %v16811_v10  ;;  %v16834_v55 = vld [vmem:[%s21870_s0 + $0x564] ss:$8 sps:$4 sm:$0xff]   ;;  %v16832_v10 = vld [vmem:[%s21870_s0 + $0x560] ss:$8 sps:$4 sm:$0xff]  }
 0x6c5   : > { %4440 = vmatpush1.bf16.msra.mxu1 %v16808_v52  ;;  %4534 = vmatpush1.bf16.msra.mxu0 %v18684_v62  ;;  %v16840_v52 = vld [vmem:[%s21870_s0 + $0x554] ss:$8 sps:$4 sm:$0xff]  }
 0x6c6   : > { %4535 = vmatprep.subr.bf16.mxu0 %v18688_v6  ;;  %v3905_v39 = vpop.f32.mrf.mxu0  ;;  %4441 = vmatprep.subr.bf16.mxu1 %v16814_v54  ;;  %v16835_v54 = vld [vmem:[%s21870_s0 + $0x410] ss:$8 sps:$4 sm:$0xff]  }
 0x6c7   : > { %4231 = vmatprep.mubr.bf16.mxu1 %v21835_v59  ;;  %v3945_v24 = vpack.c.bf16 %v3905_v39, %v3901_v28  ;;  %v16841_v28 = vld [vmem:[%s21872_s1 + $0x58] sm:$0xff]   ;;  %v16847_v39 = vld [vmem:[%s21870_s0 + $0x544] ss:$8 sps:$4 sm:$0xff]  }
 0x6c8   : > { %v3907_v46 = vpop.f32.mrf.mxu0 }
 0x6c9   : > { %v3946_v41 = vpack.c.bf16 %v3907_v46, %v3903_v48  ;;  %4442 = vmatpush1.bf16.msra.mxu1 %v16812_v18  ;;  %4536 = vmatpush1.bf16.msra.mxu0 %v18664_v4  ;;  %v16838_v48 = vld [vmem:[%s21870_s0 + $0x550] ss:$8 sps:$4 sm:$0xff]   ;;  %v16844_v18 = vld [vmem:[%s21870_s0 + $0x404] ss:$8 sps:$4 sm:$0xff]   ;;  %v16853_v46 = vld [vmem:[%s21870_s0 + $0x534] ss:$8 sps:$4 sm:$0xff]  }
 0x6ca   : > { %4443 = vmatprep.subr.bf16.mxu1 %v16817_v8  ;;  %4771 = vmatprep.subr.bf16.mxu0 %v16827_v25  ;;  %v16842_v8 = vld [vmem:[%s21870_s0 + $0x400] ss:$8 sps:$4 sm:$0xff]  }
 0x6cb   : > { %4149 = vmatprep.mubr.bf16.mxu0 %v3946_v41  ;;  %v16845_v25 = vld [vmem:[%s21870_s0 + $0x540] ss:$8 sps:$4 sm:$0xff]   ;;  %v16851_v41 = vld [vmem:[%s21870_s0 + $0x530] ss:$8 sps:$4 sm:$0xff]  }
 0x6cc   : > { %4150 = vmatmul.mubr.bf16.gmra.mxu0 %v3945_v24  ;;  %13904 = vmatmul.mubr.msk.bf16.gmra.mxu1 %vm1361_vm1, %v16818_v47  ;;  %v16850_v24 = vld [vmem:[%s21870_s0 + $0x4f4] ss:$8 sps:$4 sm:$0xff]   ;;  %v16848_v47 = vld [vmem:[%s21870_s0 + $0x4f0] ss:$8 sps:$4 sm:$0xff]  }
 0x6cd   : > { %4444 = vmatpush1.bf16.msra.mxu1 %v16815_v50  ;;  %4553 = vmatprep.mubr.bf16.mxu0 %v21835_v59  ;;  %v16856_v50 = vld [vmem:[%s21870_s0 + $0x4e4] ss:$8 sps:$4 sm:$0xff]  }
 0x6ce   : > { %4445 = vmatprep.subr.bf16.mxu1 %v16821_v63  ;;  %v16859_v63 = vld [vmem:[%s21870_s0 + $0x524] ss:$8 sps:$4 sm:$0xff]  }
 0x6d1   : > { %4446 = vmatpush1.bf16.msra.mxu1 %v16819_v13  ;;  %v16854_v13 = vld [vmem:[%s21870_s0 + $0x4e0] ss:$8 sps:$4 sm:$0xff]  }
 0x6d2   : > { %4447 = vmatprep.subr.bf16.mxu1 %v16824_v11  ;;  %v16857_v11 = vld [vmem:[%s21870_s0 + $0x520] ss:$8 sps:$4 sm:$0xff]  }
 0x6d4   : > { %13975 = vmatmul.mubr.msk.bf16.vlgmr.msra.gmra.mxu0 %vm1361_vm1, %v16828_v21  ;;  %v16862_v21 = vld [vmem:[%s21870_s0 + $0x4d4] ss:$8 sps:$4 sm:$0xff]  }
 0x6d5   : > { %4448 = vmatpush1.bf16.msra.mxu1 %v16822_v33  ;;  %4772 = vmatpush1.bf16.msra.mxu0 %v16825_v2  ;;  %v16865_v33 = vld [vmem:[%s21870_s0 + $0x514] ss:$8 sps:$4 sm:$0xff]   ;;  %v16860_v2 = vld [vmem:[%s21870_s0 + $0x4d0] ss:$8 sps:$4 sm:$0xff]  }
 0x6d6   : > { %4449 = vmatprep.subr.bf16.mxu1 %v16831_v16  ;;  %4773 = vmatprep.subr.bf16.mxu0 %v16834_v55  ;;  %v16863_v16 = vld [vmem:[%s21870_s0 + $0x510] ss:$8 sps:$4 sm:$0xff]   ;;  %v16868_v55 = vld [vmem:[%s21870_s0 + $0x4c4] ss:$8 sps:$4 sm:$0xff]  }
 0x6d7   : > { %4563 = vmatprep.mubr.bf16.mxu0 %v21835_v59 }
 0x6d9   : > { %4450 = vmatpush1.bf16.msra.mxu1 %v16829_v37  ;;  %4774 = vmatpush1.bf16.msra.mxu0 %v16832_v10  ;;  %v16871_v37 = vld [vmem:[%s21870_s0 + $0x504] ss:$8 sps:$4 sm:$0xff]   ;;  %v16866_v10 = vld [vmem:[%s21870_s0 + $0x4c0] ss:$8 sps:$4 sm:$0xff]  }
 0x6da   : > { %4451 = vmatprep.subr.bf16.mxu1 %v16837_v45  ;;  %4775 = vmatprep.subr.bf16.mxu0 %v16840_v52  ;;  %v16869_v45 = vld [vmem:[%s21870_s0 + $0x500] ss:$8 sps:$4 sm:$0xff]   ;;  %v16874_v52 = vld [vmem:[%s21870_s0 + $0x4b4] ss:$8 sps:$4 sm:$0xff]  }
 0x6dc   : > { %13976 = vmatmul.mubr.msk.bf16.gmra.mxu0 %vm1361_vm1, %v16841_v28  ;;  %v16877_v28 = vld [vmem:[%s21870_s0 + $0x5f4] ss:$8 sps:$4 sm:$0xff]  }
 0x6dd   : > { %4452 = vmatpush1.bf16.msra.mxu1 %v16835_v54  ;;  %4776 = vmatpush1.bf16.msra.mxu0 %v16838_v48  ;;  %v16872_v54 = vld [vmem:[%s21870_s0 + $0x4b0] ss:$8 sps:$4 sm:$0xff]  }
 0x6de   : > { %4453 = vmatprep.subr.bf16.mxu1 %v16844_v18  ;;  %4777 = vmatprep.subr.bf16.mxu0 %v16847_v39  ;;  %v16875_v48 = vld [vmem:[%s21870_s0 + $0x5f0] ss:$8 sps:$4 sm:$0xff]   ;;  %v16880_v18 = vld [vmem:[%s21870_s0 + $0x4a4] ss:$8 sps:$4 sm:$0xff]  }
 0x6df   : > { %v16883_v39 = vld [vmem:[%s21870_s0 + $0x5e4] ss:$8 sps:$4 sm:$0xff]  }
 0x6e1   : > { %4454 = vmatpush1.bf16.msra.mxu1 %v16842_v8  ;;  %4778 = vmatpush1.bf16.msra.mxu0 %v16845_v25  ;;  %v16878_v8 = vld [vmem:[%s21870_s0 + $0x4a0] ss:$8 sps:$4 sm:$0xff]  }
 0x6e2   : > { %4455 = vmatprep.subr.bf16.mxu1 %v16850_v24  ;;  %4779 = vmatprep.subr.bf16.mxu0 %v16853_v46  ;;  %v16881_v25 = vld [vmem:[%s21870_s0 + $0x5e0] ss:$8 sps:$4 sm:$0xff]   ;;  %v16886_v24 = vld [vmem:[%s21870_s0 + $0x494] ss:$8 sps:$4 sm:$0xff]  }
 0x6e3   : > { %v16889_v46 = vld [vmem:[%s21870_s0 + $0x5d4] ss:$8 sps:$4 sm:$0xff]  }
 0x6e5   : > { %4456 = vmatpush2.bf16.msra.mxu1 %v16848_v47  ;;  %4780 = vmatpush1.bf16.msra.mxu0 %v16851_v41  ;;  %v16884_v47 = vld [vmem:[%s21870_s0 + $0x490] ss:$8 sps:$4 sm:$0xff]  }
 0x6e6   : > { %4457 = vmatprep.subr.bf16.mxu1 %v16856_v50  ;;  %4781 = vmatprep.subr.bf16.mxu0 %v16859_v63  ;;  %v16887_v41 = vld [vmem:[%s21870_s0 + $0x5d0] ss:$8 sps:$4 sm:$0xff]   ;;  %v16892_v50 = vld [vmem:[%s21870_s0 + $0x484] ss:$8 sps:$4 sm:$0xff]  }
 0x6e7   : > { %v16895_v63 = vld [vmem:[%s21870_s0 + $0x5c4] ss:$8 sps:$4 sm:$0xff]  }
 0x6e9   : > { %4458 = vmatpush2.bf16.msra.mxu1 %v16854_v13  ;;  %4782 = vmatpush1.bf16.msra.mxu0 %v16857_v11  ;;  %v16890_v13 = vld [vmem:[%s21870_s0 + $0x480] ss:$8 sps:$4 sm:$0xff]  }
 0x6ea   : > { %4459 = vmatprep.subr.bf16.mxu1 %v16862_v21  ;;  %4783 = vmatprep.subr.bf16.mxu0 %v16865_v33  ;;  %v16893_v11 = vld [vmem:[%s21870_s0 + $0x5c0] ss:$8 sps:$4 sm:$0xff]   ;;  %v16898_v21 = vld [vmem:[%s21870_s0 + $0x5b4] ss:$8 sps:$4 sm:$0xff]   ;;  %v16896_v33 = vld [vmem:[%s21870_s0 + $0x5b0] ss:$8 sps:$4 sm:$0xff]  }
 0x6ed   : > { %4460 = vmatpush2.bf16.msra.mxu1 %v16860_v2  ;;  %4784 = vmatpush1.bf16.msra.mxu0 %v16863_v16  ;;  %v16901_v2 = vld [vmem:[%s21870_s0 + $0x5a4] ss:$8 sps:$4 sm:$0xff]   ;;  %v16899_v16 = vld [vmem:[%s21870_s0 + $0x5a0] ss:$8 sps:$4 sm:$0xff]  }
 0x6ee   : > { %4461 = vmatprep.subr.bf16.mxu1 %v16868_v55  ;;  %4785 = vmatprep.subr.bf16.mxu0 %v16871_v37  ;;  %v16904_v55 = vld [vmem:[%s21870_s0 + $0x594] ss:$8 sps:$4 sm:$0xff]   ;;  %v16902_v37 = vld [vmem:[%s21870_s0 + $0x590] ss:$8 sps:$4 sm:$0xff]  }
 0x6f1   : > { %4462 = vmatpush2.bf16.msra.mxu1 %v16866_v10  ;;  %4786 = vmatpush1.bf16.msra.mxu0 %v16869_v45  ;;  %v16907_v10 = vld [vmem:[%s21870_s0 + $0x584] ss:$8 sps:$4 sm:$0xff]   ;;  %v16905_v45 = vld [vmem:[%s21870_s0 + $0x580] ss:$8 sps:$4 sm:$0xff]  }
 0x6f2   : > { %4463 = vmatprep.subr.bf16.mxu1 %v16874_v52  ;;  %4787 = vmatprep.subr.bf16.mxu0 %v16877_v28  ;;  %v18960_v52 = vpop.f32.mrf.mxu1 }
 0x6f3   : > { %21876 = vst [vmem:[#allocation62_spill] sm:$0xff] %v18960_v52 }
 0x6f5   : > { %4464 = vmatpush2.bf16.msra.mxu1 %v16872_v54  ;;  %4788 = vmatpush2.bf16.msra.mxu0 %v16875_v48 }
 0x6f6   : > { %4465 = vmatprep.subr.bf16.mxu1 %v16880_v18  ;;  %4789 = vmatprep.subr.bf16.mxu0 %v16883_v39 }
 0x6f9   : > { %4466 = vmatpush2.bf16.msra.mxu1 %v16878_v8  ;;  %4790 = vmatpush2.bf16.msra.mxu0 %v16881_v25 }
 0x6fa   : > { %4467 = vmatprep.subr.bf16.mxu1 %v16886_v24  ;;  %4791 = vmatprep.subr.bf16.mxu0 %v16889_v46 }
 0x6fd   : > { %4468 = vmatpush2.bf16.msra.mxu1 %v16884_v47  ;;  %4792 = vmatpush2.bf16.msra.mxu0 %v16887_v41 }
 0x6fe   : > { %4469 = vmatprep.subr.bf16.mxu1 %v16892_v50  ;;  %4793 = vmatprep.subr.bf16.mxu0 %v16895_v63 }
 0x701   : > { %4470 = vmatpush2.bf16.msra.mxu1 %v16890_v13  ;;  %4794 = vmatpush2.bf16.msra.mxu0 %v16893_v11 }
 0x702   : > { %4865 = vmatprep.subr.bf16.mxu1 %v18686_v40  ;;  %4795 = vmatprep.subr.bf16.mxu0 %v16898_v21 }
 0x705   : > { %4796 = vmatpush2.bf16.msra.mxu0 %v16896_v33 }
 0x706   : > { %4797 = vmatprep.subr.bf16.mxu0 %v16901_v2 }
 0x709   : > { %4798 = vmatpush2.bf16.msra.mxu0 %v16899_v16 }
 0x70a   : > { %4799 = vmatprep.subr.bf16.mxu0 %v16904_v55 }
 0x70d   : > { %4800 = vmatpush2.bf16.msra.mxu0 %v16902_v37 }
 0x70e   : > { %4801 = vmatprep.subr.bf16.mxu0 %v16907_v10 }
 0x711   : > { %4802 = vmatpush2.bf16.msra.mxu0 %v16905_v45 }
 0x712   : > { %5197 = vmatprep.subr.bf16.mxu0 %v18686_v40 }
 0x774   : > { %v3809_v28 = vpop.f32.mrf.mxu1 }
 0x775   : > { %v3828_v54 = vadd.f32 %v3809_v28, %v18858_v26 }
 0x776   : > { %v3811_v48 = vpop.f32.mrf.mxu1 }
 0x777   : > { %v3829_v18 = vadd.f32 %v3811_v48, %v18860_v51 }
 0x778   : > { %v3813_v39 = vpop.f32.mrf.mxu1 }
 0x779   : > { %v3830_v8 = vadd.f32 %v3813_v39, %v18862_v43 }
 0x77a   : > { %v18965_v25 = vpop.f32.mrf.mxu1 }
 0x77b   : > { %21877 = vst [vmem:[#allocation57_spill] sm:$0xff] %v18965_v25 }
 0x77c   : > { %v3819_v24 = vpop.f32.mrf.mxu1 }
 0x77d   : > { %v3832_v46 = vadd.f32 %v3819_v24, %v18868_v19  ;;  %v16910_v24 = vld [vmem:[%s21870_s0 + $0x674] ss:$8 sps:$4 sm:$0xff]  }
 0x77e   : > { %v3821_v47 = vpop.f32.mrf.mxu1 }
 0x77f   : > { %v3833_v41 = vadd.f32 %v3821_v47, %v18870_v56 }
 0x780   : > { %v3823_v50 = vpop.f32.mrf.mxu1 }
 0x781   : > { %v3834_v63 = vadd.f32 %v3823_v50, %v18872_v44 }
 0x782   : > { %v18970_v13 = vpop.f32.mrf.mxu1 }
 0x783   : > { %21878 = vst [vmem:[#allocation59_spill] sm:$0xff] %v18970_v13 }
 0x784   : > { %v4141_v26 = vpop.f32.mrf.mxu0  ;;  %v4223_v11 = vpop.f32.mrf.mxu1 }
 0x785   : > { %v18972_v21 = vadd.f32 %v4141_v26, %v3828_v54 }
 0x786   : > { %v4143_v51 = vpop.f32.mrf.mxu0  ;;  %v4225_v33 = vpop.f32.mrf.mxu1 }
 0x787   : > { %v18974_v43 = vadd.f32 %v4143_v51, %v3829_v18 }
 0x788   : > { %v4145_v2 = vpop.f32.mrf.mxu0  ;;  %v4227_v16 = vpop.f32.mrf.mxu1 }
 0x789   : > { %v18976_v55 = vadd.f32 %v4145_v2, %v3830_v8  ;;  %v4275_v44 = vpack.c.bf16 %v4227_v16, %v4223_v11  ;;  %v16911_v16 = vld [vmem:[%s21872_s1 + $0x60] sm:$0xff]  }
 0x78a   : > { %v18978_v19 = vpop.f32.mrf.mxu0  ;;  %v4229_v56 = vpop.f32.mrf.mxu1 }
 0x78b   : > { %21879 = vst [vmem:[#allocation61_spill] sm:$0xff] %v18978_v19  ;;  %v4276_v37 = vpack.c.bf16 %v4229_v56, %v4225_v33 }
 0x78c   : > { %v4151_v10 = vpop.f32.mrf.mxu0  ;;  %v4233_v45 = vpop.f32.mrf.mxu1 }
 0x78d   : > { %v18980_v28 = vadd.f32 %v4151_v10, %v3832_v46  ;;  %4471 = vmatprep.mubr.bf16.mxu1 %v4276_v37  ;;  %v16908_v37 = vld [vmem:[%s21870_s0 + $0x670] ss:$8 sps:$4 sm:$0xff]   ;;  %v16914_v10 = vld [vmem:[%s21870_s0 + $0x664] ss:$8 sps:$4 sm:$0xff]  }
 0x78e   : > { %v4153_v54 = vpop.f32.mrf.mxu0  ;;  %v4235_v48 = vpop.f32.mrf.mxu1  ;;  %4472 = vmatmul.mubr.bf16.vlgmr.msra.gmra.mxu1 %v4275_v44 }
 0x78f   : > { %v18982_v18 = vadd.f32 %v4153_v54, %v3833_v41  ;;  %4866 = vmatpush1.bf16.msra.mxu1 %v18684_v62  ;;  %v16912_v54 = vld [vmem:[%s21870_s0 + $0x660] ss:$8 sps:$4 sm:$0xff]  }
 0x790   : > { %4867 = vmatprep.subr.bf16.mxu1 %v18688_v6  ;;  %v4155_v39 = vpop.f32.mrf.mxu0  ;;  %v4237_v8 = vpop.f32.mrf.mxu1 }
 0x791   : > { %v18987_v47 = vadd.f32 %v4155_v39, %v3834_v63  ;;  %v4277_v41 = vpack.c.bf16 %v4237_v8, %v4233_v45  ;;  %v16917_v39 = vld [vmem:[%s21870_s0 + $0x654] ss:$8 sps:$4 sm:$0xff]  }
 0x792   : > { %v18989_v50 = vpop.f32.mrf.mxu0  ;;  %v4239_v46 = vpop.f32.mrf.mxu1  ;;  %v16927_v8 = vld [vmem:[%s21870_s0 + $0x774] ss:$8 sps:$4 sm:$0xff]  }
 0x793   : > { %21880 = vst [vmem:[#allocation69_spill] sm:$0xff] %v18989_v50  ;;  %v4278_v26 = vpack.c.bf16 %v4239_v46, %v4235_v48  ;;  %4868 = vmatpush1.bf16.msra.mxu1 %v18664_v4 }
 0x794   : > { %v4555_v11 = vpop.f32.mrf.mxu0  ;;  %5103 = vmatprep.subr.bf16.mxu1 %v16910_v24 }
 0x795   : > { %4481 = vmatprep.mubr.bf16.mxu1 %v4278_v26  ;;  %v16918_v26 = vld [vmem:[%s21872_s1 + $0x68] sm:$0xff]  }
 0x796   : > { %4482 = vmatmul.mubr.bf16.gmra.mxu1 %v4277_v41  ;;  %v4557_v51 = vpop.f32.mrf.mxu0 }
 0x797   : > { %4885 = vmatprep.mubr.bf16.mxu1 %v21835_v59 }
 0x798   : > { %v4559_v33 = vpop.f32.mrf.mxu0 }
 0x799   : > { %v4607_v63 = vpack.c.bf16 %v4559_v33, %v4555_v11  ;;  %v16915_v11 = vld [vmem:[%s21870_s0 + $0x650] ss:$8 sps:$4 sm:$0xff]   ;;  %v16919_v33 = vld [vmem:[%s21870_s0 + $0x640] ss:$8 sps:$4 sm:$0xff]  }
 0x79a   : > { %v4561_v2 = vpop.f32.mrf.mxu0 }
 0x79b   : > { %v4608_v56 = vpack.c.bf16 %v4561_v2, %v4557_v51  ;;  %v16921_v51 = vld [vmem:[%s21870_s0 + $0x644] ss:$8 sps:$4 sm:$0xff]   ;;  %v16928_v2 = vld [vmem:[%s21872_s1 + $0x70] sm:$0xff]  }
 0x79c   : > { %v4565_v44 = vpop.f32.mrf.mxu0 }
 0x79d   : > { %4803 = vmatprep.mubr.bf16.mxu0 %v4608_v56  ;;  %v16925_v56 = vld [vmem:[%s21870_s0 + $0x770] ss:$8 sps:$4 sm:$0xff]  }
 0x79e   : > { %v4567_v45 = vpop.f32.mrf.mxu0  ;;  %4804 = vmatmul.mubr.bf16.vlgmr.msra.gmra.mxu0 %v4607_v63  ;;  %14047 = vmatmul.mubr.msk.bf16.vlgmr.msra.gmra.mxu1 %vm1361_vm1, %v16911_v16  ;;  %v16924_v63 = vld [vmem:[%s21870_s0 + $0x634] ss:$8 sps:$4 sm:$0xff]   ;;  %v16922_v16 = vld [vmem:[%s21870_s0 + $0x630] ss:$8 sps:$4 sm:$0xff]  }
 0x79f   : > { %5104 = vmatpush1.bf16.msra.mxu1 %v16908_v37  ;;  %5198 = vmatpush1.bf16.msra.mxu0 %v18684_v62  ;;  %v16931_v37 = vld [vmem:[%s21870_s0 + $0x624] ss:$8 sps:$4 sm:$0xff]  }
 0x7a0   : > { %5199 = vmatprep.subr.bf16.mxu0 %v18688_v6  ;;  %v4569_v48 = vpop.f32.mrf.mxu0  ;;  %5105 = vmatprep.subr.bf16.mxu1 %v16914_v10  ;;  %v16929_v10 = vld [vmem:[%s21870_s0 + $0x620] ss:$8 sps:$4 sm:$0xff]  }
 0x7a1   : > { %4895 = vmatprep.mubr.bf16.mxu1 %v21835_v59  ;;  %v4609_v24 = vpack.c.bf16 %v4569_v48, %v4565_v44  ;;  %v16934_v44 = vld [vmem:[%s21870_s0 + $0x764] ss:$8 sps:$4 sm:$0xff]   ;;  %v16940_v48 = vld [vmem:[%s21870_s0 + $0x754] ss:$8 sps:$4 sm:$0xff]  }
 0x7a2   : > { %v4571_v46 = vpop.f32.mrf.mxu0 }
 0x7a3   : > { %v4610_v41 = vpack.c.bf16 %v4571_v46, %v4567_v45  ;;  %5106 = vmatpush1.bf16.msra.mxu1 %v16912_v54  ;;  %5200 = vmatpush1.bf16.msra.mxu0 %v18664_v4  ;;  %v16932_v45 = vld [vmem:[%s21870_s0 + $0x760] ss:$8 sps:$4 sm:$0xff]   ;;  %v16937_v54 = vld [vmem:[%s21870_s0 + $0x614] ss:$8 sps:$4 sm:$0xff]   ;;  %v16944_v46 = vld [vmem:[%s21870_s0 + $0x604] ss:$8 sps:$4 sm:$0xff]  }
 0x7a4   : > { %5107 = vmatprep.subr.bf16.mxu1 %v16917_v39  ;;  %5435 = vmatprep.subr.bf16.mxu0 %v16927_v8  ;;  %v16941_v39 = vld [vmem:[%s21872_s1 + $0x78] sm:$0xff]  }
 0x7a5   : > { %4813 = vmatprep.mubr.bf16.mxu0 %v4610_v41  ;;  %v16935_v8 = vld [vmem:[%s21870_s0 + $0x610] ss:$8 sps:$4 sm:$0xff]   ;;  %v16942_v41 = vld [vmem:[%s21870_s0 + $0x600] ss:$8 sps:$4 sm:$0xff]  }
 0x7a6   : > { %4814 = vmatmul.mubr.bf16.gmra.mxu0 %v4609_v24  ;;  %14048 = vmatmul.mubr.msk.bf16.gmra.mxu1 %vm1361_vm1, %v16918_v26  ;;  %v16938_v24 = vld [vmem:[%s21870_s0 + $0x750] ss:$8 sps:$4 sm:$0xff]   ;;  %v16947_v26 = vld [vmem:[%s21870_s0 + $0x744] ss:$8 sps:$4 sm:$0xff]  }
 0x7a7   : > { %5108 = vmatpush1.bf16.msra.mxu1 %v16915_v11  ;;  %5217 = vmatprep.mubr.bf16.mxu0 %v21835_v59  ;;  %v16945_v11 = vld [vmem:[%s21870_s0 + $0x740] ss:$8 sps:$4 sm:$0xff]  }
 0x7a8   : > { %5109 = vmatprep.subr.bf16.mxu1 %v16921_v51  ;;  %v16950_v51 = vld [vmem:[%s21870_s0 + $0x6f4] ss:$8 sps:$4 sm:$0xff]  }
 0x7ab   : > { %5110 = vmatpush1.bf16.msra.mxu1 %v16919_v33  ;;  %v16953_v33 = vld [vmem:[%s21870_s0 + $0x734] ss:$8 sps:$4 sm:$0xff]  }
 0x7ac   : > { %5111 = vmatprep.subr.bf16.mxu1 %v16924_v63  ;;  %v16948_v63 = vld [vmem:[%s21870_s0 + $0x6f0] ss:$8 sps:$4 sm:$0xff]  }
 0x7ae   : > { %14119 = vmatmul.mubr.msk.bf16.vlgmr.msra.gmra.mxu0 %vm1361_vm1, %v16928_v2  ;;  %v16951_v2 = vld [vmem:[%s21870_s0 + $0x730] ss:$8 sps:$4 sm:$0xff]  }
 0x7af   : > { %5112 = vmatpush1.bf16.msra.mxu1 %v16922_v16  ;;  %5436 = vmatpush1.bf16.msra.mxu0 %v16925_v56  ;;  %v16956_v16 = vld [vmem:[%s21870_s0 + $0x6e4] ss:$8 sps:$4 sm:$0xff]  }
 0x7b0   : > { %5113 = vmatprep.subr.bf16.mxu1 %v16931_v37  ;;  %5437 = vmatprep.subr.bf16.mxu0 %v16934_v44  ;;  %v16959_v56 = vld [vmem:[%s21870_s0 + $0x724] ss:$8 sps:$4 sm:$0xff]   ;;  %v16954_v37 = vld [vmem:[%s21870_s0 + $0x6e0] ss:$8 sps:$4 sm:$0xff]  }
 0x7b1   : > { %5227 = vmatprep.mubr.bf16.mxu0 %v21835_v59  ;;  %v16957_v44 = vld [vmem:[%s21870_s0 + $0x720] ss:$8 sps:$4 sm:$0xff]  }
 0x7b3   : > { %5114 = vmatpush1.bf16.msra.mxu1 %v16929_v10  ;;  %5438 = vmatpush1.bf16.msra.mxu0 %v16932_v45  ;;  %v16962_v10 = vld [vmem:[%s21870_s0 + $0x6d4] ss:$8 sps:$4 sm:$0xff]  }
 0x7b4   : > { %5115 = vmatprep.subr.bf16.mxu1 %v16937_v54  ;;  %5439 = vmatprep.subr.bf16.mxu0 %v16940_v48  ;;  %v16965_v45 = vld [vmem:[%s21870_s0 + $0x714] ss:$8 sps:$4 sm:$0xff]   ;;  %v16960_v54 = vld [vmem:[%s21870_s0 + $0x6d0] ss:$8 sps:$4 sm:$0xff]  }
 0x7b5   : > { %v16963_v48 = vld [vmem:[%s21870_s0 + $0x710] ss:$8 sps:$4 sm:$0xff]  }
 0x7b6   : > { %14120 = vmatmul.mubr.msk.bf16.gmra.mxu0 %vm1361_vm1, %v16941_v39  ;;  %v16968_v39 = vld [vmem:[%s21870_s0 + $0x6c4] ss:$8 sps:$4 sm:$0xff]  }
 0x7b7   : > { %5116 = vmatpush1.bf16.msra.mxu1 %v16935_v8  ;;  %5440 = vmatpush1.bf16.msra.mxu0 %v16938_v24  ;;  %v16971_v8 = vld [vmem:[%s21870_s0 + $0x704] ss:$8 sps:$4 sm:$0xff]   ;;  %v16966_v24 = vld [vmem:[%s21870_s0 + $0x6c0] ss:$8 sps:$4 sm:$0xff]  }
 0x7b8   : > { %5117 = vmatprep.subr.bf16.mxu1 %v16944_v46  ;;  %5441 = vmatprep.subr.bf16.mxu0 %v16947_v26  ;;  %v16969_v46 = vld [vmem:[%s21870_s0 + $0x700] ss:$8 sps:$4 sm:$0xff]   ;;  %v16974_v26 = vld [vmem:[%s21870_s0 + $0x6b4] ss:$8 sps:$4 sm:$0xff]  }
 0x7bb   : > { %5118 = vmatpush1.bf16.msra.mxu1 %v16942_v41  ;;  %5442 = vmatpush1.bf16.msra.mxu0 %v16945_v11  ;;  %v16977_v41 = vld [vmem:[%s21870_s0 + $0x7f4] ss:$8 sps:$4 sm:$0xff]   ;;  %v16972_v11 = vld [vmem:[%s21870_s0 + $0x6b0] ss:$8 sps:$4 sm:$0xff]  }
 0x7bc   : > { %5119 = vmatprep.subr.bf16.mxu1 %v16950_v51  ;;  %5443 = vmatprep.subr.bf16.mxu0 %v16953_v33  ;;  %v16975_v51 = vld [vmem:[%s21870_s0 + $0x7f0] ss:$8 sps:$4 sm:$0xff]   ;;  %v16980_v33 = vld [vmem:[%s21870_s0 + $0x6a4] ss:$8 sps:$4 sm:$0xff]  }
 0x7bf   : > { %5120 = vmatpush2.bf16.msra.mxu1 %v16948_v63  ;;  %5444 = vmatpush1.bf16.msra.mxu0 %v16951_v2  ;;  %v16983_v63 = vld [vmem:[%s21870_s0 + $0x7e4] ss:$8 sps:$4 sm:$0xff]   ;;  %v16978_v2 = vld [vmem:[%s21870_s0 + $0x6a0] ss:$8 sps:$4 sm:$0xff]  }
 0x7c0   : > { %5121 = vmatprep.subr.bf16.mxu1 %v16956_v16  ;;  %5445 = vmatprep.subr.bf16.mxu0 %v16959_v56  ;;  %v16981_v16 = vld [vmem:[%s21870_s0 + $0x7e0] ss:$8 sps:$4 sm:$0xff]   ;;  %v16986_v56 = vld [vmem:[%s21870_s0 + $0x694] ss:$8 sps:$4 sm:$0xff]  }
 0x7c3   : > { %5122 = vmatpush2.bf16.msra.mxu1 %v16954_v37  ;;  %5446 = vmatpush1.bf16.msra.mxu0 %v16957_v44  ;;  %v16989_v37 = vld [vmem:[%s21870_s0 + $0x7d4] ss:$8 sps:$4 sm:$0xff]   ;;  %v16984_v44 = vld [vmem:[%s21870_s0 + $0x690] ss:$8 sps:$4 sm:$0xff]  }
 0x7c4   : > { %5123 = vmatprep.subr.bf16.mxu1 %v16962_v10  ;;  %5447 = vmatprep.subr.bf16.mxu0 %v16965_v45  ;;  %v16987_v10 = vld [vmem:[%s21870_s0 + $0x7d0] ss:$8 sps:$4 sm:$0xff]   ;;  %v16992_v45 = vld [vmem:[%s21870_s0 + $0x684] ss:$8 sps:$4 sm:$0xff]  }
 0x7c7   : > { %5124 = vmatpush2.bf16.msra.mxu1 %v16960_v54  ;;  %5448 = vmatpush1.bf16.msra.mxu0 %v16963_v48  ;;  %v16995_v54 = vld [vmem:[%s21870_s0 + $0x7c4] ss:$8 sps:$4 sm:$0xff]   ;;  %v16990_v48 = vld [vmem:[%s21870_s0 + $0x680] ss:$8 sps:$4 sm:$0xff]  }
 0x7c8   : > { %5125 = vmatprep.subr.bf16.mxu1 %v16968_v39  ;;  %5449 = vmatprep.subr.bf16.mxu0 %v16971_v8  ;;  %v16993_v39 = vld [vmem:[%s21870_s0 + $0x7c0] ss:$8 sps:$4 sm:$0xff]   ;;  %v16998_v8 = vld [vmem:[%s21870_s0 + $0x7b4] ss:$8 sps:$4 sm:$0xff]  }
 0x7cb   : > { %5126 = vmatpush2.bf16.msra.mxu1 %v16966_v24  ;;  %5450 = vmatpush1.bf16.msra.mxu0 %v16969_v46  ;;  %v16996_v24 = vld [vmem:[%s21870_s0 + $0x7b0] ss:$8 sps:$4 sm:$0xff]   ;;  %v17001_v46 = vld [vmem:[%s21870_s0 + $0x7a4] ss:$8 sps:$4 sm:$0xff]  }
 0x7cc   : > { %5127 = vmatprep.subr.bf16.mxu1 %v16974_v26  ;;  %5451 = vmatprep.subr.bf16.mxu0 %v16977_v41  ;;  %v16999_v26 = vld [vmem:[%s21870_s0 + $0x7a0] ss:$8 sps:$4 sm:$0xff]   ;;  %v17004_v41 = vld [vmem:[%s21870_s0 + $0x794] ss:$8 sps:$4 sm:$0xff]  }
 0x7cf   : > { %5128 = vmatpush2.bf16.msra.mxu1 %v16972_v11  ;;  %5452 = vmatpush2.bf16.msra.mxu0 %v16975_v51  ;;  %v17002_v11 = vld [vmem:[%s21870_s0 + $0x790] ss:$8 sps:$4 sm:$0xff]   ;;  %v17007_v51 = vld [vmem:[%s21870_s0 + $0x784] ss:$8 sps:$4 sm:$0xff]  }
 0x7d0   : > { %5129 = vmatprep.subr.bf16.mxu1 %v16980_v33  ;;  %5453 = vmatprep.subr.bf16.mxu0 %v16983_v63  ;;  %v17005_v33 = vld [vmem:[%s21870_s0 + $0x780] ss:$8 sps:$4 sm:$0xff]  }
 0x7d3   : > { %5130 = vmatpush2.bf16.msra.mxu1 %v16978_v2  ;;  %5454 = vmatpush2.bf16.msra.mxu0 %v16981_v16 }
 0x7d4   : > { %5131 = vmatprep.subr.bf16.mxu1 %v16986_v56  ;;  %5455 = vmatprep.subr.bf16.mxu0 %v16989_v37 }
 0x7d7   : > { %5132 = vmatpush2.bf16.msra.mxu1 %v16984_v44  ;;  %5456 = vmatpush2.bf16.msra.mxu0 %v16987_v10 }
 0x7d8   : > { %5133 = vmatprep.subr.bf16.mxu1 %v16992_v45  ;;  %5457 = vmatprep.subr.bf16.mxu0 %v16995_v54 }
 0x7db   : > { %5134 = vmatpush2.bf16.msra.mxu1 %v16990_v48  ;;  %5458 = vmatpush2.bf16.msra.mxu0 %v16993_v39 }
 0x7dc   : > { %5529 = vmatprep.subr.bf16.mxu1 %v18686_v40  ;;  %5459 = vmatprep.subr.bf16.mxu0 %v16998_v8 }
 0x7df   : > { %5460 = vmatpush2.bf16.msra.mxu0 %v16996_v24 }
 0x7e0   : > { %5461 = vmatprep.subr.bf16.mxu0 %v17001_v46 }
 0x7e3   : > { %5462 = vmatpush2.bf16.msra.mxu0 %v16999_v26 }
 0x7e4   : > { %5463 = vmatprep.subr.bf16.mxu0 %v17004_v41 }
 0x7e7   : > { %5464 = vmatpush2.bf16.msra.mxu0 %v17002_v11 }
 0x7e8   : > { %5465 = vmatprep.subr.bf16.mxu0 %v17007_v51 }
 0x7eb   : > { %5466 = vmatpush2.bf16.msra.mxu0 %v17005_v33 }
 0x7ec   : > { %15491 = vmatprep.subr.bf16.mxu0 %v18633_v60 }
 0x84e   : > { %v4473_v63 = vpop.f32.mrf.mxu1 }
 0x84f   : > { %v4492_v2 = vadd.f32 %v4473_v63, %v18972_v21 }
 0x850   : > { %v4475_v40 = vpop.f32.mrf.mxu1 }
 0x851   : > { %v4493_v16 = vadd.f32 %v4475_v40, %v18974_v43 }
 0x852   : > { %v4477_v56 = vpop.f32.mrf.mxu1 }
 0x853   : > { %v4494_v37 = vadd.f32 %v4477_v56, %v18976_v55 }
 0x854   : > { %v19075_v44 = vpop.f32.mrf.mxu1 }
 0x855   : > { %21881 = vst [vmem:[#allocation54_spill] sm:$0xff] %v19075_v44 }
 0x856   : > { %v4483_v10 = vpop.f32.mrf.mxu1 }
 0x857   : > { %v4496_v45 = vadd.f32 %v4483_v10, %v18980_v28 }
 0x858   : > { %v4485_v54 = vpop.f32.mrf.mxu1 }
 0x859   : > { %v4497_v48 = vadd.f32 %v4485_v54, %v18982_v18 }
 0x85a   : > { %v4487_v39 = vpop.f32.mrf.mxu1 }
 0x85b   : > { %v4498_v8 = vadd.f32 %v4487_v39, %v18987_v47 }
 0x85c   : > { %v19080_v24 = vpop.f32.mrf.mxu1 }
 0x85d   : > { %21882 = vst [vmem:[#allocation68_spill] sm:$0xff] %v19080_v24 }
 0x85e   : > { %v4805_v21 = vpop.f32.mrf.mxu0  ;;  %v4887_v46 = vpop.f32.mrf.mxu1 }
 0x85f   : > { %v19082_v26 = vadd.f32 %v4805_v21, %v4492_v2  ;;  %v17010_v21 = vld [vmem:[%s21870_s0 + $0x874] ss:$8 sps:$4 sm:$0xff]  }
 0x860   : > { %v4807_v43 = vpop.f32.mrf.mxu0  ;;  %v4889_v41 = vpop.f32.mrf.mxu1 }
 0x861   : > { %v19084_v55 = vadd.f32 %v4807_v43, %v4493_v16 }
 0x862   : > { %v4809_v11 = vpop.f32.mrf.mxu0  ;;  %v4891_v51 = vpop.f32.mrf.mxu1 }
 0x863   : > { %v19086_v33 = vadd.f32 %v4809_v11, %v4494_v37  ;;  %v4939_v47 = vpack.c.bf16 %v4891_v51, %v4887_v46 }
 0x864   : > { %v19088_v28 = vpop.f32.mrf.mxu0  ;;  %v4893_v18 = vpop.f32.mrf.mxu1 }
 0x865   : > { %21883 = vst [vmem:[#allocation51_spill] sm:$0xff] %v19088_v28  ;;  %v4940_v63 = vpack.c.bf16 %v4893_v18, %v4889_v41  ;;  %v17011_v18 = vld [vmem:[%s21872_s1 + $0x80] sm:$0xff]  }
 0x866   : > { %v4815_v40 = vpop.f32.mrf.mxu0  ;;  %v4897_v56 = vpop.f32.mrf.mxu1 }
 0x867   : > { %v19090_v10 = vadd.f32 %v4815_v40, %v4496_v45  ;;  %5135 = vmatprep.mubr.bf16.mxu1 %v4940_v63 }
 0x868   : > { %v4817_v2 = vpop.f32.mrf.mxu0  ;;  %v4899_v54 = vpop.f32.mrf.mxu1  ;;  %5136 = vmatmul.mubr.bf16.vlgmr.msra.gmra.mxu1 %v4939_v47  ;;  %v17008_v47 = vld [vmem:[%s21870_s0 + $0x870] ss:$8 sps:$4 sm:$0xff]  }
 0x869   : > { %v19092_v16 = vadd.f32 %v4817_v2, %v4497_v48  ;;  %5530 = vmatpush1.bf16.msra.mxu1 %v18684_v62  ;;  %v17014_v2 = vld [vmem:[%s21870_s0 + $0x864] ss:$8 sps:$4 sm:$0xff]  }
 0x86a   : > { %5531 = vmatprep.subr.bf16.mxu1 %v18688_v6  ;;  %v4819_v37 = vpop.f32.mrf.mxu0  ;;  %v4901_v39 = vpop.f32.mrf.mxu1 }
 0x86b   : > { %v19097_v43 = vadd.f32 %v4819_v37, %v4498_v8  ;;  %v4941_v48 = vpack.c.bf16 %v4901_v39, %v4897_v56  ;;  %v17012_v56 = vld [vmem:[%s21870_s0 + $0x860] ss:$8 sps:$4 sm:$0xff]   ;;  %v17017_v37 = vld [vmem:[%s21870_s0 + $0x854] ss:$8 sps:$4 sm:$0xff]  }
 0x86c   : > { %v19099_v46 = vpop.f32.mrf.mxu0  ;;  %v4903_v45 = vpop.f32.mrf.mxu1 }
 0x86d   : > { %21884 = vst [vmem:[#allocation64_spill] sm:$0xff] %v19099_v46  ;;  %v4942_v41 = vpack.c.bf16 %v4903_v45, %v4899_v54  ;;  %5532 = vmatpush1.bf16.msra.mxu1 %v18664_v4  ;;  %v17018_v45 = vld [vmem:[%s21872_s1 + $0x88] sm:$0xff]   ;;  %v17072_v46 = vld [vmem:[%s21885_s3 + $0x70] sm:$0xff]   ;;  %s21891_s1 = sld [smem:[#allocation14_spill]] }
 0x86e   : > { %v5219_v11 = vpop.f32.mrf.mxu0  ;;  %5767 = vmatprep.subr.bf16.mxu1 %v17010_v21 }
 0x86f   : > { %5145 = vmatprep.mubr.bf16.mxu1 %v4942_v41 }
 0x870   : > { %5146 = vmatmul.mubr.bf16.gmra.mxu1 %v4941_v48  ;;  %v5221_v62 = vpop.f32.mrf.mxu0  ;;  %v17015_v48 = vld [vmem:[%s21870_s0 + $0x850] ss:$8 sps:$4 sm:$0xff]  }
 0x871   : > { %5549 = vmatprep.mubr.bf16.mxu1 %v21835_v59 }
 0x872   : > { %v5223_v6 = vpop.f32.mrf.mxu0 }
 0x873   : > { %v5271_v8 = vpack.c.bf16 %v5223_v6, %v5219_v11  ;;  %v17021_v11 = vld [vmem:[%s21870_s0 + $0x844] ss:$8 sps:$4 sm:$0xff]   ;;  %v17019_v6 = vld [vmem:[%s21870_s0 + $0x840] ss:$8 sps:$4 sm:$0xff]  }
 0x874   : > { %v5225_v51 = vpop.f32.mrf.mxu0 }
 0x875   : > { %v5272_v63 = vpack.c.bf16 %v5225_v51, %v5221_v62  ;;  %v17025_v62 = vld [vmem:[%s21885_s3] sm:$0xff]   ;;  %v17026_v51 = vld [vmem:[%s21885_s3 + $0x8] sm:$0xff]  }
 0x876   : > { %v5229_v40 = vpop.f32.mrf.mxu0 }
 0x877   : > { %5467 = vmatprep.mubr.bf16.mxu0 %v5272_v63  ;;  %v17029_v63 = vld [vmem:[%s21870_s0 + $0x824] ss:$8 sps:$4 sm:$0xff]  }
 0x878   : > { %v5231_v4 = vpop.f32.mrf.mxu0  ;;  %5468 = vmatmul.mubr.bf16.vlgmr.msra.gmra.mxu0 %v5271_v8  ;;  %14191 = vmatmul.mubr.msk.bf16.vlgmr.msra.gmra.mxu1 %vm1361_vm1, %v17011_v18  ;;  %v17024_v8 = vld [vmem:[%s21870_s0 + $0x834] ss:$8 sps:$4 sm:$0xff]   ;;  %v17022_v18 = vld [vmem:[%s21870_s0 + $0x830] ss:$8 sps:$4 sm:$0xff]  }
 0x879   : > { %5768 = vmatpush1.bf16.msra.mxu1 %v17008_v47  ;;  %15492 = vmatpush3.bf16.msra.mxu0 %v18633_v60  ;;  %v17060_v47 = vld [vmem:[%s21885_s3 + $0x10] sm:$0xff]  }
 0x87a   : > { %15493 = vmatprep.subr.bf16.mxu0 %v18644_v0  ;;  %v5233_v54 = vpop.f32.mrf.mxu0  ;;  %5769 = vmatprep.subr.bf16.mxu1 %v17014_v2  ;;  %v17032_v2 = vld [vmem:[%s21870_s0 + $0x814] ss:$8 sps:$4 sm:$0xff]  }
 0x87b   : > { %5559 = vmatprep.mubr.bf16.mxu1 %v21835_v59  ;;  %v5273_v39 = vpack.c.bf16 %v5233_v54, %v5229_v40  ;;  %v17027_v40 = vld [vmem:[%s21870_s0 + $0x820] ss:$8 sps:$4 sm:$0xff]   ;;  %v17035_v54 = vld [vmem:[%s21870_s0 + $0x804] ss:$8 sps:$4 sm:$0xff]  }
 0x87c   : > { %v5235_v21 = vpop.f32.mrf.mxu0 }
 0x87d   : > { %v5274_v41 = vpack.c.bf16 %v5235_v21, %v5231_v4  ;;  %5770 = vmatpush1.bf16.msra.mxu1 %v17012_v56  ;;  %15494 = vmatpush3.bf16.msra.mxu0 %v18644_v0  ;;  %v17061_v4 = vld [vmem:[%s21885_s3 + $0x18] sm:$0xff]  }
 0x87e   : > { %15495 = vmatprep.subr.bf16.mxu0 %v18620_v1  ;;  %5771 = vmatprep.subr.bf16.mxu1 %v17017_v37  ;;  %v17030_v56 = vld [vmem:[%s21870_s0 + $0x810] ss:$8 sps:$4 sm:$0xff]   ;;  %v17062_v37 = vld [vmem:[%s21885_s3 + $0x20] sm:$0xff]   ;;  %v17038_v21 = vld [vmem:[%s21870_s0 + $0x8f4] ss:$8 sps:$4 sm:$0xff]  }
 0x87f   : > { %5477 = vmatprep.mubr.bf16.mxu0 %v5274_v41  ;;  %v17036_v41 = vld [vmem:[%s21870_s0 + $0x8f0] ss:$8 sps:$4 sm:$0xff]  }
 0x880   : > { %5478 = vmatmul.mubr.bf16.gmra.mxu0 %v5273_v39  ;;  %14192 = vmatmul.mubr.msk.bf16.gmra.mxu1 %vm1361_vm1, %v17018_v45  ;;  %v17033_v39 = vld [vmem:[%s21870_s0 + $0x800] ss:$8 sps:$4 sm:$0xff]  }
 0x881   : > { %5772 = vmatpush1.bf16.msra.mxu1 %v17015_v48  ;;  %15496 = vmatpush3.bf16.msra.mxu0 %v18620_v1  ;;  %v17063_v45 = vld [vmem:[%s21885_s3 + $0x28] sm:$0xff]   ;;  %v17064_v48 = vld [vmem:[%s21885_s3 + $0x30] sm:$0xff]  }
 0x882   : > { %15497 = vmatprep.subr.bf16.mxu0 %v18622_v53  ;;  %5773 = vmatprep.subr.bf16.mxu1 %v17021_v11  ;;  %v17041_v11 = vld [vmem:[%s21870_s0 + $0x8e4] ss:$8 sps:$4 sm:$0xff]  }
 0x883   : > { %15499 = vmatprep.mubr.msk.bf16.mxu0 %vm1521_vm0, %v17025_v62  ;;  %v17039_v62 = vld [vmem:[%s21870_s0 + $0x8e0] ss:$8 sps:$4 sm:$0xff]  }
 0x885   : > { %5774 = vmatpush1.bf16.msra.mxu1 %v17019_v6  ;;  %15498 = vmatpush3.bf16.msra.mxu0 %v18622_v53  ;;  %v17044_v6 = vld [vmem:[%s21870_s0 + $0x8d4] ss:$8 sps:$4 sm:$0xff]  }
 0x886   : > { %15507 = vmatprep.subr.bf16.mxu0 %v18633_v60  ;;  %5775 = vmatprep.subr.bf16.mxu1 %v17024_v8  ;;  %v17065_v8 = vld [vmem:[%s21885_s3 + $0x38] sm:$0xff]  }
 0x888   : > { %15500 = vmatmul.mubr.msk.bf16.vlgmr.msra.gmra.mxu0 %vm1521_vm0, %v17026_v51  ;;  %v17042_v51 = vld [vmem:[%s21870_s0 + $0x8d0] ss:$8 sps:$4 sm:$0xff]  }
 0x889   : > { %5776 = vmatpush1.bf16.msra.mxu1 %v17022_v18  ;;  %15508 = vmatpush3.bf16.msra.mxu0 %v18633_v60  ;;  %v17047_v18 = vld [vmem:[%s21870_s0 + $0x8c4] ss:$8 sps:$4 sm:$0xff]  }
 0x88a   : > { %15509 = vmatprep.subr.bf16.mxu0 %v18644_v0  ;;  %5777 = vmatprep.subr.bf16.mxu1 %v17029_v63  ;;  %v17045_v63 = vld [vmem:[%s21870_s0 + $0x8c0] ss:$8 sps:$4 sm:$0xff]  }
 0x88b   : > { %15503 = vmatprep.mubr.msk.bf16.mxu0 %vm1521_vm0, %v17060_v47  ;;  %v17050_v47 = vld [vmem:[%s21870_s0 + $0x8b4] ss:$8 sps:$4 sm:$0xff]  }
 0x88d   : > { %5778 = vmatpush1.bf16.msra.mxu1 %v17027_v40  ;;  %15510 = vmatpush3.bf16.msra.mxu0 %v18644_v0  ;;  %v17048_v40 = vld [vmem:[%s21870_s0 + $0x8b0] ss:$8 sps:$4 sm:$0xff]  }
 0x88e   : > { %15511 = vmatprep.subr.bf16.mxu0 %v18620_v1  ;;  %5779 = vmatprep.subr.bf16.mxu1 %v17032_v2  ;;  %v17053_v2 = vld [vmem:[%s21870_s0 + $0x8a4] ss:$8 sps:$4 sm:$0xff]  }
 0x890   : > { %15504 = vmatmul.mubr.msk.bf16.gmra.mxu0 %vm1521_vm0, %v17061_v4  ;;  %v17051_v4 = vld [vmem:[%s21870_s0 + $0x8a0] ss:$8 sps:$4 sm:$0xff]  }
 0x891   : > { %5780 = vmatpush1.bf16.msra.mxu1 %v17030_v56  ;;  %15512 = vmatpush3.bf16.msra.mxu0 %v18620_v1  ;;  %v17056_v56 = vld [vmem:[%s21870_s0 + $0x894] ss:$8 sps:$4 sm:$0xff]  }
 0x892   : > { %15513 = vmatprep.subr.bf16.mxu0 %v18622_v53  ;;  %5781 = vmatprep.subr.bf16.mxu1 %v17035_v54  ;;  %v17054_v54 = vld [vmem:[%s21870_s0 + $0x890] ss:$8 sps:$4 sm:$0xff]  }
 0x893   : > { %15515 = vmatprep.mubr.msk.bf16.mxu0 %vm1521_vm0, %v17062_v37  ;;  %v17059_v37 = vld [vmem:[%s21870_s0 + $0x884] ss:$8 sps:$4 sm:$0xff]  }
 0x895   : > { %5782 = vmatpush1.bf16.msra.mxu1 %v17033_v39  ;;  %15514 = vmatpush3.bf16.msra.mxu0 %v18622_v53  ;;  %v17057_v39 = vld [vmem:[%s21870_s0 + $0x880] ss:$8 sps:$4 sm:$0xff]   ;;  %s21887_s0 = sld [smem:[#allocation17_spill]] }
 0x896   : > { %5783 = vmatprep.subr.bf16.mxu1 %v17038_v21 }
 0x898   : > { %15516 = vmatmul.mubr.msk.bf16.vlgmr.msra.gmra.mxu0 %vm1521_vm0, %v17063_v45 }
 0x899   : > { %5784 = vmatpush2.bf16.msra.mxu1 %v17036_v41  ;;  %15519 = vmatprep.mubr.msk.bf16.mxu0 %vm1521_vm0, %v17064_v48 }
 0x89a   : > { %5785 = vmatprep.subr.bf16.mxu1 %v17041_v11 }
 0x89b   : > { %v17102_v50 = vld [vmem:[%s21887_s0 + $0x10] sm:$0xff]  }
 0x89d   : > { %5786 = vmatpush2.bf16.msra.mxu1 %v17039_v62 }
 0x89e   : > { %5787 = vmatprep.subr.bf16.mxu1 %v17044_v6 }
 0x8a0   : > { %15520 = vmatmul.mubr.msk.bf16.gmra.mxu0 %vm1521_vm0, %v17065_v8 }
 0x8a1   : > { %5788 = vmatpush2.bf16.msra.mxu1 %v17042_v51 }
 0x8a2   : > { %5789 = vmatprep.subr.bf16.mxu1 %v17047_v18 }
 0x8a5   : > { %5790 = vmatpush2.bf16.msra.mxu1 %v17045_v63 }
 0x8a6   : > { %5791 = vmatprep.subr.bf16.mxu1 %v17050_v47 }
 0x8a9   : > { %5792 = vmatpush2.bf16.msra.mxu1 %v17048_v40 }
 0x8aa   : > { %5793 = vmatprep.subr.bf16.mxu1 %v17053_v2 }
 0x8ad   : > { %5794 = vmatpush2.bf16.msra.mxu1 %v17051_v4 }
 0x8ae   : > { %5795 = vmatprep.subr.bf16.mxu1 %v17056_v56 }
 0x8b1   : > { %5796 = vmatpush2.bf16.msra.mxu1 %v17054_v54 }
 0x8b2   : > { %5797 = vmatprep.subr.bf16.mxu1 %v17059_v37 }
 0x8b5   : > { %5798 = vmatpush2.bf16.msra.mxu1 %v17057_v39 }
 0x8b6   : > { %15555 = vmatprep.subr.bf16.mxu1 %v18633_v60 }
 0x928   : > { %v5137_v21 = vpop.f32.mrf.mxu1 }
 0x929   : > { %v5156_v45 = vadd.f32 %v5137_v21, %v19082_v26 }
 0x92a   : > { %v5139_v41 = vpop.f32.mrf.mxu1 }
 0x92b   : > { %v5157_v48 = vadd.f32 %v5139_v41, %v19084_v55  ;;  %v17097_v41 = vld [vmem:[%s21887_s0 + $0x38] sm:$0xff]  }
 0x92c   : > { %v5141_v11 = vpop.f32.mrf.mxu1  ;;  %15523 = vmatprep.subr.bf16.mxu0 %v17097_v41 }
 0x92d   : > { %v5158_v62 = vadd.f32 %v5141_v11, %v19086_v33  ;;  %15524 = vmatpush3.bf16.msra.mxu0 %v17097_v41 }
 0x92e   : > { %v19174_v6 = vpop.f32.mrf.mxu1 }
 0x92f   : > { %21886 = vst [vmem:[#allocation53_spill] sm:$0xff] %v19174_v6 }
 0x930   : > { %v5147_v8 = vpop.f32.mrf.mxu1 }
 0x931   : > { %v5160_v51 = vadd.f32 %v5147_v8, %v19090_v10 }
 0x932   : > { %v5149_v18 = vpop.f32.mrf.mxu1 }
 0x933   : > { %v5161_v63 = vadd.f32 %v5149_v18, %v19092_v16 }
 0x934   : > { %v5151_v47 = vpop.f32.mrf.mxu1 }
 0x935   : > { %v5162_v40 = vadd.f32 %v5151_v47, %v19097_v43 }
 0x936   : > { %v19179_v2 = vpop.f32.mrf.mxu1 }
 0x937   : > { %21888 = vst [vmem:[#allocation73_spill] sm:$0xff] %v19179_v2 }
 0x938   : > { %v5469_v26 = vpop.f32.mrf.mxu0  ;;  %v5551_v4 = vpop.f32.mrf.mxu1 }
 0x939   : > { %v19181_v55 = vadd.f32 %v5469_v26, %v5156_v45 }
 0x93a   : > { %v5471_v56 = vpop.f32.mrf.mxu0  ;;  %v5553_v33 = vpop.f32.mrf.mxu1 }
 0x93b   : > { %v19183_v54 = vadd.f32 %v5471_v56, %v5157_v48 }
 0x93c   : > { %v5473_v37 = vpop.f32.mrf.mxu0  ;;  %v5555_v39 = vpop.f32.mrf.mxu1 }
 0x93d   : > { %v19185_v10 = vadd.f32 %v5473_v37, %v5158_v62  ;;  %v5603_v11 = vpack.c.bf16 %v5555_v39, %v5551_v4  ;;  %v17098_v62 = vld [vmem:[%s21887_s0 + $0x30] sm:$0xff]   ;;  %v17099_v39 = vld [vmem:[%s21887_s0 + $0x28] sm:$0xff]  }
 0x93e   : > { %v19187_v21 = vpop.f32.mrf.mxu0  ;;  %v5557_v16 = vpop.f32.mrf.mxu1  ;;  %15525 = vmatprep.subr.bf16.mxu0 %v17098_v62 }
 0x93f   : > { %21889 = vst [vmem:[#allocation56_spill] sm:$0xff] %v19187_v21  ;;  %v5604_v43 = vpack.c.bf16 %v5557_v16, %v5553_v33  ;;  %15526 = vmatpush3.bf16.msra.mxu0 %v17098_v62  ;;  %v17068_v62 = vld [vmem:[%s21885_s3 + $0x50] sm:$0xff]  }
 0x940   : > { %v5479_v8 = vpop.f32.mrf.mxu0  ;;  %v5561_v18 = vpop.f32.mrf.mxu1  ;;  %15527 = vmatprep.subr.bf16.mxu0 %v17099_v39 }
 0x941   : > { %v19190_v45 = vadd.f32 %v5479_v8, %v5160_v51  ;;  %5799 = vmatprep.mubr.bf16.mxu1 %v5604_v43 }
 0x942   : > { %v5481_v48 = vpop.f32.mrf.mxu0  ;;  %v5563_v47 = vpop.f32.mrf.mxu1  ;;  %5800 = vmatmul.mubr.bf16.vlgmr.msra.gmra.mxu1 %v5603_v11  ;;  %v17100_v11 = vld [vmem:[%s21887_s0 + $0x20] sm:$0xff]  }
 0x943   : > { %v19193_v26 = vadd.f32 %v5481_v48, %v5161_v63  ;;  %15556 = vmatpush3.bf16.msra.mxu1 %v18633_v60  ;;  %v17066_v63 = vld [vmem:[%s21885_s3 + $0x40] sm:$0xff]   ;;  %15528 = vmatpush3.bf16.msra.mxu0 %v17099_v39  ;;  %v17069_v39 = vld [vmem:[%s21885_s3 + $0x58] sm:$0xff]  }
 0x944   : > { %15557 = vmatprep.subr.bf16.mxu1 %v18644_v0  ;;  %v5483_v4 = vpop.f32.mrf.mxu0  ;;  %v5565_v56 = vpop.f32.mrf.mxu1  ;;  %15529 = vmatprep.subr.bf16.mxu0 %v17100_v11 }
 0x945   : > { %v19197_v33 = vadd.f32 %v5483_v4, %v5162_v40  ;;  %v5605_v41 = vpack.c.bf16 %v5565_v56, %v5561_v18  ;;  %v17067_v18 = vld [vmem:[%s21885_s3 + $0x48] sm:$0xff]  }
 0x946   : > { %v19199_v51 = vpop.f32.mrf.mxu0  ;;  %v5567_v37 = vpop.f32.mrf.mxu1 }
 0x947   : > { %21890 = vst [vmem:[#allocation87_spill] sm:$0xff] %v19199_v51  ;;  %v5606_v16 = vpack.c.bf16 %v5567_v37, %v5563_v47  ;;  %15558 = vmatpush3.bf16.msra.mxu1 %v18644_v0  ;;  %15530 = vmatpush3.bf16.msra.mxu0 %v17100_v11  ;;  %v17101_v47 = vld [vmem:[%s21887_s0 + $0x18] sm:$0xff]  }
 0x948   : > { %15559 = vmatprep.subr.bf16.mxu1 %v18620_v1  ;;  %v19205_v43 = vpop.f32.mrf.mxu0  ;;  %15539 = vmatprep.subr.bf16.mxu0 %v17101_v47 }
 0x949   : > { %5809 = vmatprep.mubr.bf16.mxu1 %v5606_v16 }
 0x94a   : > { %5810 = vmatmul.mubr.bf16.gmra.mxu1 %v5605_v41  ;;  %v19207_v40 = vpop.f32.mrf.mxu0 }
 0x94b   : > { %15560 = vmatpush3.bf16.msra.mxu1 %v18620_v1  ;;  %15563 = vmatprep.mubr.msk.bf16.mxu1 %vm1521_vm0, %v17066_v63  ;;  %v17070_v63 = vld [vmem:[%s21885_s3 + $0x60] sm:$0xff]  }
 0x94c   : > { %15561 = vmatprep.subr.bf16.mxu1 %v18622_v53  ;;  %v19213_v8 = vpop.f32.mrf.mxu0 }
 0x94e   : > { %v19216_v48 = vpop.f32.mrf.mxu0 }
 0x94f   : > { %15562 = vmatpush3.bf16.msra.mxu1 %v18622_v53 }
 0x950   : > { %15587 = vmatprep.subr.bf16.mxu1 %v18633_v60  ;;  %v19222_v4 = vpop.f32.mrf.mxu0 }
 0x952   : > { %15564 = vmatmul.mubr.msk.bf16.vlgmr.msra.gmra.mxu1 %vm1521_vm0, %v17067_v18  ;;  %v19225_v56 = vpop.f32.mrf.mxu0 }
 0x953   : > { %15588 = vmatpush3.bf16.msra.mxu1 %v18633_v60  ;;  %15567 = vmatprep.mubr.msk.bf16.mxu1 %vm1521_vm0, %v17068_v62  ;;  %v17071_v62 = vld [vmem:[%s21885_s3 + $0x68] sm:$0xff]  }
 0x954   : > { %15589 = vmatprep.subr.bf16.mxu1 %v18644_v0  ;;  %v19230_v37 = vpop.f32.mrf.mxu0 }
 0x956   : > { %v19233_v16 = vpop.f32.mrf.mxu0 }
 0x957   : > { %15590 = vmatpush3.bf16.msra.mxu1 %v18644_v0 }
 0x958   : > { %15591 = vmatprep.subr.bf16.mxu1 %v18620_v1  ;;  %v15517_v41 = vpop.f32.mrf.mxu0 }
 0x95a   : > { %15568 = vmatmul.mubr.msk.bf16.gmra.mxu1 %vm1521_vm0, %v17069_v39  ;;  %v6052_v11 = vpop.f32.mrf.mxu0 }
 0x95b   : > { %15592 = vmatpush3.bf16.msra.mxu1 %v18620_v1  ;;  %15595 = vmatprep.mubr.msk.bf16.mxu1 %vm1521_vm0, %v17070_v63 }
 0x95c   : > { %15593 = vmatprep.subr.bf16.mxu1 %v18622_v53  ;;  %v15518_v18 = vpop.f32.mrf.mxu0 }
 0x95d   : > { %v6093_v51 = vpack.c.bf16 %v15518_v18, %v15517_v41  ;;  %v17103_v41 = vld [vmem:[%s21887_s0 + $0x8] sm:$0xff]  }
 0x95e   : > { %v6055_v2 = vpop.f32.mrf.mxu0 }
 0x95f   : > { %15594 = vmatpush3.bf16.msra.mxu1 %v18622_v53  ;;  %v6092_v24 = vpack.c.bf16 %v6055_v2, %v6052_v11  ;;  %v17073_v11 = vld [vmem:[%s21885_s3 + $0x78] sm:$0xff]  }
 0x960   : > { %15619 = vmatprep.subr.bf16.mxu1 %v18633_v60  ;;  %v15521_v39 = vpop.f32.mrf.mxu0 }
 0x961   : > { %15531 = vmatprep.mubr.msk.bf16.mxu0 %vm1521_vm0, %v6092_v24 }
 0x962   : > { %15596 = vmatmul.mubr.msk.bf16.vlgmr.msra.gmra.mxu1 %vm1521_vm0, %v17071_v62  ;;  %v6068_v63 = vpop.f32.mrf.mxu0  ;;  %15532 = vmatmul.mubr.msk.bf16.vlgmr.msra.gmra.mxu0 %vm1521_vm0, %v6093_v51  ;;  %v17074_v62 = vld [vmem:[%s21885_s3 + $0x80] sm:$0xff]  }
 0x963   : > { %15620 = vmatpush3.bf16.msra.mxu1 %v18633_v60  ;;  %15599 = vmatprep.mubr.msk.bf16.mxu1 %vm1521_vm0, %v17072_v46  ;;  %v5973_v46 = vpack.c.bf16 %v19216_v48, %v19207_v40  ;;  %v17104_v51 = vld [vmem:[%s21887_s0] sm:$0xff]   ;;  %v5974_v40 = vpack.c.bf16 %v19213_v8, %v19205_v43  ;;  %v5975_v48 = vpack.c.bf16 %v19233_v16, %v19225_v56  ;;  %v17079_v56 = vld [vmem:[%s21885_s3 + $0xa8] sm:$0xff]   ;;  %v17080_v16 = vld [vmem:[%s21885_s3 + $0xb0] sm:$0xff]  }
 0x964   : > { %15621 = vmatprep.subr.bf16.mxu1 %v18644_v0  ;;  %15540 = vmatpush3.bf16.msra.mxu0 %v17101_v47  ;;  %v15522_v2 = vpop.f32.mrf.mxu0  ;;  %v17077_v47 = vld [vmem:[%s21885_s3 + $0x98] sm:$0xff]   ;;  %v17078_v43 = vld [vmem:[%s21885_s3 + $0xa0] sm:$0xff]   ;;  %v5976_v8 = vpack.c.bf16 %v19230_v37, %v19222_v4 }
 0x965   : > { %15541 = vmatprep.subr.bf16.mxu0 %v17102_v50  ;;  %v6095_v24 = vpack.c.bf16 %v15522_v2, %v15521_v39  ;;  %v17081_v4 = vld [vmem:[%s21885_s3 + $0xb8] sm:$0xff]   ;;  %v17082_v37 = vld [vmem:[%s21885_s3 + $0xc0] sm:$0xff]   ;;  %v17106_v2 = vld [vmem:[%s21887_s0 + $0x50] sm:$0xff]  }
 0x966   : > { %v6071_v18 = vpop.f32.mrf.mxu0  ;;  %v17105_v39 = vld [vmem:[%s21887_s0 + $0x58] sm:$0xff]  }
 0x967   : > { %15622 = vmatpush3.bf16.msra.mxu1 %v18644_v0  ;;  %v6094_v13 = vpack.c.bf16 %v6071_v18, %v6068_v63  ;;  %v17083_v63 = vld [vmem:[%s21885_s3 + $0xc8] sm:$0xff]   ;;  %v17108_v18 = vld [vmem:[%s21887_s0 + $0x40] sm:$0xff]  }
 0x968   : > { %15623 = vmatprep.subr.bf16.mxu1 %v18620_v1  ;;  %15542 = vmatpush3.bf16.msra.mxu0 %v17102_v50  ;;  %v17075_v50 = vld [vmem:[%s21885_s3 + $0x88] sm:$0xff]  }
 0x969   : > { %15535 = vmatprep.mubr.msk.bf16.mxu0 %vm1521_vm0, %v6094_v13  ;;  %15543 = vmatprep.subr.bf16.mxu0 %v17103_v41  ;;  %v17076_v13 = vld [vmem:[%s21885_s3 + $0x90] sm:$0xff]  }
 0x96a   : > { %15600 = vmatmul.mubr.msk.bf16.gmra.mxu1 %vm1521_vm0, %v17073_v11  ;;  %15536 = vmatmul.mubr.msk.bf16.gmra.mxu0 %vm1521_vm0, %v6095_v24  ;;  %v17107_v11 = vld [vmem:[%s21887_s0 + $0x48] sm:$0xff]   ;;  %v17085_v24 = vld [vmem:[%s21885_s3 + $0xd8] sm:$0xff]  }
 0x96b   : > { %15624 = vmatpush3.bf16.msra.mxu1 %v18620_v1  ;;  %15627 = vmatprep.mubr.msk.bf16.mxu1 %vm1521_vm0, %v17074_v62  ;;  %v17086_v62 = vld [vmem:[%s21885_s3 + $0xe0] sm:$0xff]  }
 0x96c   : > { %15625 = vmatprep.subr.bf16.mxu1 %v18622_v53  ;;  %15544 = vmatpush3.bf16.msra.mxu0 %v17103_v41  ;;  %v17084_v41 = vld [vmem:[%s21885_s3 + $0xd0] sm:$0xff]  }
 0x96d   : > { %15545 = vmatprep.subr.bf16.mxu0 %v17104_v51  ;;  %15547 = vmatprep.mubr.msk.bf16.mxu0 %vm1521_vm0, %v5973_v46  ;;  %v19327_v46 = vld [vmem:[%s21887_s0 + $0x78] sm:$0xff]  }
 0x96f   : > { %15626 = vmatpush3.bf16.msra.mxu1 %v18622_v53 }
 0x970   : > { %15651 = vmatprep.subr.bf16.mxu1 %v18633_v60  ;;  %15546 = vmatpush3.bf16.msra.mxu0 %v17104_v51  ;;  %v17087_v51 = vld [vmem:[%s21885_s3 + $0xe8] sm:$0xff]  }
 0x971   : > { %15571 = vmatprep.subr.bf16.mxu0 %v17105_v39 }
 0x972   : > { %15628 = vmatmul.mubr.msk.bf16.vlgmr.msra.gmra.mxu1 %vm1521_vm0, %v17075_v50  ;;  %v17088_v50 = vld [vmem:[%s21885_s3 + $0xf0] sm:$0xff]  }
 0x973   : > { %15652 = vmatpush3.bf16.msra.mxu1 %v18633_v60  ;;  %15631 = vmatprep.mubr.msk.bf16.mxu1 %vm1521_vm0, %v17076_v13  ;;  %v17089_v13 = vld [vmem:[%s21885_s3 + $0xf8] sm:$0xff]  }
 0x974   : > { %15653 = vmatprep.subr.bf16.mxu1 %v18644_v0  ;;  %15548 = vmatmul.mubr.msk.bf16.vlgmr.msra.gmra.mxu0 %vm1521_vm0, %v5974_v40  ;;  %v17090_v40 = vld [vmem:[%s21885_s3 + $0x100] sm:$0xff]  }
 0x975   : > { %15551 = vmatprep.mubr.msk.bf16.mxu0 %vm1521_vm0, %v5975_v48  ;;  %15572 = vmatpush3.bf16.msra.mxu0 %v17105_v39  ;;  %v17092_v48 = vld [vmem:[%s21885_s3 + $0x110] sm:$0xff]  }
 0x976   : > { %15573 = vmatprep.subr.bf16.mxu0 %v17106_v2 }
 0x977   : > { %15654 = vmatpush3.bf16.msra.mxu1 %v18644_v0 }
 0x978   : > { %15655 = vmatprep.subr.bf16.mxu1 %v18620_v1 }
 0x979   : > { %15574 = vmatpush3.bf16.msra.mxu0 %v17106_v2 }
 0x97a   : > { %15632 = vmatmul.mubr.msk.bf16.gmra.mxu1 %vm1521_vm0, %v17077_v47  ;;  %15575 = vmatprep.subr.bf16.mxu0 %v17107_v11  ;;  %v17095_v47 = vld [vmem:[%s21892_s5 + $0x8] sm:$0xff]  }
 0x97b   : > { %15656 = vmatpush3.bf16.msra.mxu1 %v18620_v1  ;;  %15659 = vmatprep.mubr.msk.bf16.mxu1 %vm1521_vm0, %v17078_v43  ;;  %v17096_v43 = vld [vmem:[%s21891_s1 + $0x8] sm:$0xff]  }
 0x97c   : > { %15657 = vmatprep.subr.bf16.mxu1 %v18622_v53  ;;  %15552 = vmatmul.mubr.msk.bf16.gmra.mxu0 %vm1521_vm0, %v5976_v8 }
 0x97d   : > { %15576 = vmatpush3.bf16.msra.mxu0 %v17107_v11 }
 0x97e   : > { %15577 = vmatprep.subr.bf16.mxu0 %v17108_v18 }
 0x97f   : > { %15658 = vmatpush3.bf16.msra.mxu1 %v18622_v53 }
 0x980   : > { %15683 = vmatprep.subr.bf16.mxu1 %v18633_v60 }
 0x981   : > { %15578 = vmatpush3.bf16.msra.mxu0 %v17108_v18 }
 0x982   : > { %15660 = vmatmul.mubr.msk.bf16.vlgmr.msra.gmra.mxu1 %vm1521_vm0, %v17079_v56  ;;  %15603 = vmatprep.subr.bf16.mxu0 %v19327_v46 }
 0x983   : > { %15684 = vmatpush3.bf16.msra.mxu1 %v18633_v60  ;;  %15663 = vmatprep.mubr.msk.bf16.mxu1 %vm1521_vm0, %v17080_v16 }
 0x984   : > { %15685 = vmatprep.subr.bf16.mxu1 %v18644_v0 }
 0x987   : > { %15686 = vmatpush3.bf16.msra.mxu1 %v18644_v0 }
 0x988   : > { %15687 = vmatprep.subr.bf16.mxu1 %v18620_v1 }
 0x98a   : > { %15664 = vmatmul.mubr.msk.bf16.gmra.mxu1 %vm1521_vm0, %v17081_v4 }
 0x98b   : > { %15688 = vmatpush3.bf16.msra.mxu1 %v18620_v1  ;;  %15691 = vmatprep.mubr.msk.bf16.mxu1 %vm1521_vm0, %v17082_v37 }
 0x98c   : > { %15689 = vmatprep.subr.bf16.mxu1 %v18622_v53 }
 0x98f   : > { %15690 = vmatpush3.bf16.msra.mxu1 %v18622_v53 }
 0x990   : > { %15715 = vmatprep.subr.bf16.mxu1 %v18633_v60 }
 0x992   : > { %15692 = vmatmul.mubr.msk.bf16.vlgmr.msra.gmra.mxu1 %vm1521_vm0, %v17083_v63 }
 0x993   : > { %15716 = vmatpush3.bf16.msra.mxu1 %v18633_v60  ;;  %15695 = vmatprep.mubr.msk.bf16.mxu1 %vm1521_vm0, %v17084_v41 }
 0x994   : > { %15717 = vmatprep.subr.bf16.mxu1 %v18644_v0 }
 0x997   : > { %15718 = vmatpush3.bf16.msra.mxu1 %v18644_v0 }
 0x998   : > { %15719 = vmatprep.subr.bf16.mxu1 %v18620_v1 }
 0x99a   : > { %15696 = vmatmul.mubr.msk.bf16.gmra.mxu1 %vm1521_vm0, %v17085_v24 }
 0x99b   : > { %15720 = vmatpush3.bf16.msra.mxu1 %v18620_v1  ;;  %15723 = vmatprep.mubr.msk.bf16.mxu1 %vm1521_vm0, %v17086_v62 }
 0x99c   : > { %15721 = vmatprep.subr.bf16.mxu1 %v18622_v53 }
 0x99f   : > { %15722 = vmatpush3.bf16.msra.mxu1 %v18622_v53 }
 0x9a0   : > { %15747 = vmatprep.subr.bf16.mxu1 %v18633_v60 }
 0x9a2   : > { %15724 = vmatmul.mubr.msk.bf16.vlgmr.msra.gmra.mxu1 %vm1521_vm0, %v17087_v51 }
 0x9a3   : > { %15748 = vmatpush3.bf16.msra.mxu1 %v18633_v60  ;;  %15727 = vmatprep.mubr.msk.bf16.mxu1 %vm1521_vm0, %v17088_v50  ;;  %v17091_v60 = vld [vmem:[%s21885_s3 + $0x108] sm:$0xff]  }
 0x9a4   : > { %15749 = vmatprep.subr.bf16.mxu1 %v18644_v0 }
 0x9a7   : > { %15750 = vmatpush3.bf16.msra.mxu1 %v18644_v0  ;;  %v17093_v0 = vld [vmem:[%s21885_s3 + $0x118] sm:$0xff]  }
 0x9a8   : > { %15751 = vmatprep.subr.bf16.mxu1 %v18620_v1 }
 0x9aa   : > { %15728 = vmatmul.mubr.msk.bf16.gmra.mxu1 %vm1521_vm0, %v17089_v13 }
 0x9ab   : > { %15752 = vmatpush3.bf16.msra.mxu1 %v18620_v1  ;;  %15755 = vmatprep.mubr.msk.bf16.mxu1 %vm1521_vm0, %v17090_v40  ;;  %v17094_v1 = vld [vmem:[%s21891_s1] sm:$0xff]  }
 0x9ac   : > { %15753 = vmatprep.subr.bf16.mxu1 %v18622_v53 }
 0x9af   : > { %15754 = vmatpush3.bf16.msra.mxu1 %v18622_v53  ;;  %v21893_v53 = vld [vmem:[#allocation90_spill] sm:$0xff] }
 0x9b0   : > { %15779 = vmatprep.subr.bf16.mxu1 %v18487_v36 }
 0x9b2   : > { %15756 = vmatmul.mubr.msk.bf16.vlgmr.msra.gmra.mxu1 %vm1521_vm0, %v17091_v60  ;;  %v17110_v60 = vld [vmem:[%s21887_s0 + $0x70] sm:$0xff]  }
 0x9b3   : > { %15780 = vmatpush3.bf16.msra.mxu1 %v18487_v36  ;;  %15759 = vmatprep.mubr.msk.bf16.mxu1 %vm1521_vm0, %v17092_v48  ;;  %v17111_v48 = vld [vmem:[%s21887_s0 + $0x68] sm:$0xff]  }
 0x9b4   : > { %15781 = vmatprep.subr.bf16.mxu1 %v18443_v23 }
 0x9b7   : > { %15782 = vmatpush3.bf16.msra.mxu1 %v18443_v23 }
 0x9b8   : > { %15783 = vmatprep.subr.bf16.mxu1 %v18417_v61 }
 0x9ba   : > { %15760 = vmatmul.mubr.msk.bf16.gmra.mxu1 %vm1521_vm0, %v17093_v0 }
 0x9bb   : > { %15784 = vmatpush3.bf16.msra.mxu1 %v18417_v61  ;;  %15795 = vmatprep.mubr.bf16.mxu1 %v17094_v1 }
 0x9bc   : > { %15785 = vmatprep.subr.bf16.mxu1 %v18375_v35 }
 0x9bf   : > { %15786 = vmatpush3.bf16.msra.mxu1 %v18375_v35 }
 0x9c0   : > { %15787 = vmatprep.subr.bf16.mxu1 %v18335_v57 }
 0x9c3   : > { %15788 = vmatpush3.bf16.msra.mxu1 %v18335_v57 }
 0x9c4   : > { %15789 = vmatprep.subr.bf16.mxu1 %v18308_v17 }
 0x9c7   : > { %15790 = vmatpush3.bf16.msra.mxu1 %v18308_v17 }
 0x9c8   : > { %15791 = vmatprep.subr.bf16.mxu1 %v18284_v34 }
 0x9cb   : > { %15792 = vmatpush3.bf16.msra.mxu1 %v18284_v34 }
 0x9cc   : > { %15793 = vmatprep.subr.bf16.mxu1 %v21893_v53 }
 0x9cf   : > { %15794 = vmatpush3.bf16.msra.mxu1 %v21893_v53 }
 0x9d0   : > { %15843 = vmatprep.subr.bf16.mxu1 %v17095_v47 }
 0x9d2   : > { %15796 = vmatmul.mubr.bf16.vlgmr.msra.gmra.mxu1 %v17096_v43 }
 0x9d3   : > { %15844 = vmatpush3.bf16.msra.mxu1 %v17095_v47  ;;  %v17139_v47 = vld [vmem:[%s21891_s1 + $0x10] sm:$0xff]  }
 0x9d4   : > { %15879 = vmatprep.subr.bf16.mxu1 %v18487_v36  ;;  %15799 = vmatprep.mubr.bf16.mxu1 %v17139_v47 }
 0xa02   : > { %v5801_v8 = vpop.f32.mrf.mxu1 }
 0xa03   : > { %v19377_v56 = vadd.f32 %v5801_v8, %v19181_v55 }
 0xa04   : > { %v5803_v16 = vpop.f32.mrf.mxu1 }
 0xa05   : > { %21894 = vst [vmem:[#allocation83_spill] sm:$0xff] %v19377_v56  ;;  %v19380_v4 = vadd.f32 %v5803_v16, %v19183_v54  ;;  %v17112_v16 = vld [vmem:[%s21887_s0 + $0x60] sm:$0xff]  }
 0xa06   : > { %v5805_v37 = vpop.f32.mrf.mxu1 }
 0xa07   : > { %21895 = vst [vmem:[#allocation76_spill] sm:$0xff] %v19380_v4  ;;  %v19383_v39 = vadd.f32 %v5805_v37, %v19185_v10 }
 0xa08   : > { %v19385_v63 = vpop.f32.mrf.mxu1 }
 0xa09   : > { %21896 = vst [vmem:[#allocation85_spill] sm:$0xff] %v19383_v39  ;;  %21897 = vst [vmem:[#allocation84_spill] sm:$0xff] %v19385_v63 }
 0xa0a   : > { %v5811_v2 = vpop.f32.mrf.mxu1 }
 0xa0b   : > { %v19388_v41 = vadd.f32 %v5811_v2, %v19190_v45  ;;  %v17140_v2 = vld [vmem:[%s21891_s1 + $0x18] sm:$0xff]  }
 0xa0c   : > { %v5813_v11 = vpop.f32.mrf.mxu1  ;;  %15800 = vmatmul.mubr.bf16.gmra.mxu1 %v17140_v2 }
 0xa0d   : > { %21898 = vst [vmem:[#allocation88_spill] sm:$0xff] %v19388_v41  ;;  %v19391_v24 = vadd.f32 %v5813_v11, %v19193_v26 }
 0xa0e   : > { %v5815_v55 = vpop.f32.mrf.mxu1 }
 0xa0f   : > { %21899 = vst [vmem:[#allocation82_spill] sm:$0xff] %v19391_v24  ;;  %v19394_v18 = vadd.f32 %v5815_v55, %v19197_v33 }
 0xa10   : > { %v19396_v54 = vpop.f32.mrf.mxu1 }
 0xa11   : > { %21900 = vst [vmem:[#allocation75_spill] sm:$0xff] %v19394_v18  ;;  %21901 = vst [vmem:[#allocation86_spill] sm:$0xff] %v19396_v54 }
 0xa12   : > { %v15565_v10 = vpop.f32.mrf.mxu1 }
 0xa14   : > { %v6373_v62 = vpop.f32.mrf.mxu1 }
 0xa16   : > { %v15566_v51 = vpop.f32.mrf.mxu1 }
 0xa17   : > { %v6414_v40 = vpack.c.bf16 %v15566_v51, %v15565_v10  ;;  %v17113_v10 = vld [vmem:[%s21887_s0 + $0x98] sm:$0xff]  }
 0xa18   : > { %v6376_v50 = vpop.f32.mrf.mxu1 }
 0xa19   : > { %v6413_v13 = vpack.c.bf16 %v6376_v50, %v6373_v62 }
 0xa1a   : > { %v15569_v45 = vpop.f32.mrf.mxu1 }
 0xa1b   : > { %15579 = vmatprep.mubr.msk.bf16.mxu0 %vm1521_vm0, %v6413_v13 }
 0xa1c   : > { %v6389_v26 = vpop.f32.mrf.mxu1  ;;  %15580 = vmatmul.mubr.msk.bf16.vlgmr.msra.gmra.mxu0 %vm1521_vm0, %v6414_v40  ;;  %v17143_v40 = vld [vmem:[%s21891_s1 + $0x20] sm:$0xff]  }
 0xa1d   : > { %15604 = vmatpush3.bf16.msra.mxu0 %v19327_v46  ;;  %15803 = vmatprep.mubr.bf16.mxu1 %v17143_v40  ;;  %v17116_v40 = vld [vmem:[%s21887_s0 + $0x80] sm:$0xff]  }
 0xa1e   : > { %v15570_v33 = vpop.f32.mrf.mxu1  ;;  %15605 = vmatprep.subr.bf16.mxu0 %v17110_v60 }
 0xa1f   : > { %v6416_v43 = vpack.c.bf16 %v15570_v33, %v15569_v45 }
 0xa20   : > { %v6392_v0 = vpop.f32.mrf.mxu1 }
 0xa21   : > { %v6415_v1 = vpack.c.bf16 %v6392_v0, %v6389_v26  ;;  %15606 = vmatpush3.bf16.msra.mxu0 %v17110_v60  ;;  %v17114_v26 = vld [vmem:[%s21887_s0 + $0x90] sm:$0xff]   ;;  %v17144_v0 = vld [vmem:[%s21891_s1 + $0x28] sm:$0xff]  }
 0xa22   : > { %v15597_v8 = vpop.f32.mrf.mxu1  ;;  %15607 = vmatprep.subr.bf16.mxu0 %v17111_v48  ;;  %v15533_v37 = vpop.f32.mrf.mxu0  ;;  %15804 = vmatmul.mubr.bf16.gmra.mxu1 %v17144_v0 }
 0xa23   : > { %15583 = vmatprep.mubr.msk.bf16.mxu0 %vm1521_vm0, %v6415_v1 }
 0xa24   : > { %15584 = vmatmul.mubr.msk.bf16.gmra.mxu0 %vm1521_vm0, %v6416_v43  ;;  %v6601_v46 = vpop.f32.mrf.mxu1  ;;  %v6166_v11 = vpop.f32.mrf.mxu0  ;;  %v17115_v43 = vld [vmem:[%s21887_s0 + $0x88] sm:$0xff]  }
 0xa25   : > { %15608 = vmatpush3.bf16.msra.mxu0 %v17111_v48 }
 0xa26   : > { %v15598_v55 = vpop.f32.mrf.mxu1  ;;  %15609 = vmatprep.subr.bf16.mxu0 %v17112_v16  ;;  %v15534_v62 = vpop.f32.mrf.mxu0 }
 0xa27   : > { %v6642_v45 = vpack.c.bf16 %v15598_v55, %v15597_v8  ;;  %v17145_v55 = vld [vmem:[%s21891_s1 + $0x30] sm:$0xff]  }
 0xa28   : > { %v6604_v51 = vpop.f32.mrf.mxu1  ;;  %v19409_v50 = vpop.f32.mrf.mxu0  ;;  %15807 = vmatprep.mubr.bf16.mxu1 %v17145_v55 }
 0xa29   : > { %21902 = vst [vmem:[#allocation77_spill] sm:$0xff] %v19409_v50  ;;  %v6641_v13 = vpack.c.bf16 %v6604_v51, %v6601_v46  ;;  %15610 = vmatpush3.bf16.msra.mxu0 %v17112_v16 }
 0xa2a   : > { %v15601_v60 = vpop.f32.mrf.mxu1  ;;  %15635 = vmatprep.subr.bf16.mxu0 %v17113_v10  ;;  %v15537_v33 = vpop.f32.mrf.mxu0 }
 0xa2b   : > { %15611 = vmatprep.mubr.msk.bf16.mxu0 %vm1521_vm0, %v6641_v13 }
 0xa2c   : > { %v6617_v48 = vpop.f32.mrf.mxu1  ;;  %15612 = vmatmul.mubr.msk.bf16.vlgmr.msra.gmra.mxu0 %vm1521_vm0, %v6642_v45  ;;  %v6182_v1 = vpop.f32.mrf.mxu0  ;;  %v17146_v45 = vld [vmem:[%s21891_s1 + $0x38] sm:$0xff]  }
 0xa2d   : > { %15636 = vmatpush3.bf16.msra.mxu0 %v17113_v10  ;;  %15808 = vmatmul.mubr.bf16.gmra.mxu1 %v17146_v45  ;;  %v17118_v45 = vld [vmem:[%s21887_s0 + $0xb0] sm:$0xff]  }
 0xa2e   : > { %v15602_v47 = vpop.f32.mrf.mxu1  ;;  %15637 = vmatprep.subr.bf16.mxu0 %v17114_v26  ;;  %v15538_v8 = vpop.f32.mrf.mxu0 }
 0xa2f   : > { %v6644_v51 = vpack.c.bf16 %v15602_v47, %v15601_v60 }
 0xa30   : > { %v6620_v16 = vpop.f32.mrf.mxu1  ;;  %v19417_v2 = vpop.f32.mrf.mxu0 }
 0xa31   : > { %21903 = vst [vmem:[#allocation70_spill] sm:$0xff] %v19417_v2  ;;  %v6643_v46 = vpack.c.bf16 %v6620_v16, %v6617_v48  ;;  %15638 = vmatpush3.bf16.msra.mxu0 %v17114_v26  ;;  %v17117_v48 = vld [vmem:[%s21887_s0 + $0xb8] sm:$0xff]  }
 0xa32   : > { %v15629_v13 = vpop.f32.mrf.mxu1  ;;  %15639 = vmatprep.subr.bf16.mxu0 %v17115_v43 }
 0xa33   : > { %15615 = vmatprep.mubr.msk.bf16.mxu0 %vm1521_vm0, %v6643_v46 }
 0xa34   : > { %15616 = vmatmul.mubr.msk.bf16.gmra.mxu0 %vm1521_vm0, %v6644_v51  ;;  %v6829_v10 = vpop.f32.mrf.mxu1  ;;  %v15549_v0 = vpop.f32.mrf.mxu0 }
 0xa35   : > { %15640 = vmatpush3.bf16.msra.mxu0 %v17115_v43  ;;  %v19424_v18 = vadd.f32 %v15549_v0, %v15533_v37 }
 0xa36   : > { %v15630_v26 = vpop.f32.mrf.mxu1  ;;  %15641 = vmatprep.subr.bf16.mxu0 %v17116_v40  ;;  %v6267_v60 = vpop.f32.mrf.mxu0 }
 0xa37   : > { %v19427_v47 = vadd.f32 %v6267_v60, %v6166_v11  ;;  %v6870_v55 = vpack.c.bf16 %v15630_v26, %v15629_v13 }
 0xa38   : > { %v6832_v16 = vpop.f32.mrf.mxu1  ;;  %v15550_v54 = vpop.f32.mrf.mxu0 }
 0xa39   : > { %v6869_v52 = vpack.c.bf16 %v6832_v16, %v6829_v10  ;;  %15642 = vmatpush3.bf16.msra.mxu0 %v17116_v40  ;;  %v19429_v46 = vadd.f32 %v15550_v54, %v15534_v62  ;;  %v17119_v54 = vld [vmem:[%s21887_s0 + $0xa8] sm:$0xff]  }
 0xa3a   : > { %v15633_v51 = vpop.f32.mrf.mxu1  ;;  %15667 = vmatprep.subr.bf16.mxu0 %v17117_v48  ;;  %v19432_v43 = vpop.f32.mrf.mxu0 }
 0xa3b   : > { %21904 = vst [vmem:[#allocation81_spill] sm:$0xff] %v19432_v43  ;;  %15643 = vmatprep.mubr.msk.bf16.mxu0 %vm1521_vm0, %v6869_v52 }
 0xa3c   : > { %v6845_v37 = vpop.f32.mrf.mxu1  ;;  %15644 = vmatmul.mubr.msk.bf16.vlgmr.msra.gmra.mxu0 %vm1521_vm0, %v6870_v55  ;;  %v15553_v11 = vpop.f32.mrf.mxu0 }
 0xa3d   : > { %15668 = vmatpush3.bf16.msra.mxu0 %v17117_v48  ;;  %v19436_v0 = vadd.f32 %v15553_v11, %v15537_v33  ;;  %v17120_v48 = vld [vmem:[%s21887_s0 + $0xa0] sm:$0xff]   ;;  %v17121_v11 = vld [vmem:[%s21887_s0 + $0xd8] sm:$0xff]  }
 0xa3e   : > { %v15634_v10 = vpop.f32.mrf.mxu1  ;;  %15669 = vmatprep.subr.bf16.mxu0 %v17118_v45  ;;  %v6283_v62 = vpop.f32.mrf.mxu0 }
 0xa3f   : > { %v19439_v13 = vadd.f32 %v6283_v62, %v6182_v1  ;;  %v6872_v16 = vpack.c.bf16 %v15634_v10, %v15633_v51  ;;  %v17122_v51 = vld [vmem:[%s21887_s0 + $0xd0] sm:$0xff]  }
 0xa40   : > { %v6848_v40 = vpop.f32.mrf.mxu1  ;;  %v15554_v26 = vpop.f32.mrf.mxu0 }
 0xa41   : > { %v6871_v60 = vpack.c.bf16 %v6848_v40, %v6845_v37  ;;  %15670 = vmatpush3.bf16.msra.mxu0 %v17118_v45  ;;  %v19441_v52 = vadd.f32 %v15554_v26, %v15538_v8 }
 0xa42   : > { %v15661_v55 = vpop.f32.mrf.mxu1  ;;  %15671 = vmatprep.subr.bf16.mxu0 %v17119_v54 }
 0xa43   : > { %15647 = vmatprep.mubr.msk.bf16.mxu0 %vm1521_vm0, %v6871_v60 }
 0xa44   : > { %15648 = vmatmul.mubr.msk.bf16.gmra.mxu0 %vm1521_vm0, %v6872_v16  ;;  %v7057_v33 = vpop.f32.mrf.mxu1 }
 0xa45   : > { %15672 = vmatpush3.bf16.msra.mxu0 %v17119_v54  ;;  %v17123_v54 = vld [vmem:[%s21887_s0 + $0xc8] sm:$0xff]  }
 0xa46   : > { %v15662_v1 = vpop.f32.mrf.mxu1  ;;  %15673 = vmatprep.subr.bf16.mxu0 %v17120_v48 }
 0xa47   : > { %v7098_v8 = vpack.c.bf16 %v15662_v1, %v15661_v55  ;;  %v17124_v55 = vld [vmem:[%s21887_s0 + $0xc0] sm:$0xff]  }
 0xa48   : > { %v7060_v62 = vpop.f32.mrf.mxu1 }
 0xa49   : > { %v7097_v37 = vpack.c.bf16 %v7060_v62, %v7057_v33  ;;  %15674 = vmatpush3.bf16.msra.mxu0 %v17120_v48 }
 0xa4a   : > { %v15665_v45 = vpop.f32.mrf.mxu1  ;;  %15699 = vmatprep.subr.bf16.mxu0 %v17121_v11 }
 0xa4b   : > { %15675 = vmatprep.mubr.msk.bf16.mxu0 %vm1521_vm0, %v7097_v37 }
 0xa4c   : > { %v7073_v10 = vpop.f32.mrf.mxu1  ;;  %15676 = vmatmul.mubr.msk.bf16.vlgmr.msra.gmra.mxu0 %vm1521_vm0, %v7098_v8 }
 0xa4d   : > { %15700 = vmatpush3.bf16.msra.mxu0 %v17121_v11  ;;  %v17125_v11 = vld [vmem:[%s21887_s0 + $0xf8] sm:$0xff]  }
 0xa4e   : > { %v15666_v40 = vpop.f32.mrf.mxu1  ;;  %15701 = vmatprep.subr.bf16.mxu0 %v17122_v51 }
 0xa4f   : > { %v7100_v16 = vpack.c.bf16 %v15666_v40, %v15665_v45  ;;  %v17126_v45 = vld [vmem:[%s21887_s0 + $0xf0] sm:$0xff]  }
 0xa50   : > { %v7076_v26 = vpop.f32.mrf.mxu1 }
 0xa51   : > { %v7099_v60 = vpack.c.bf16 %v7076_v26, %v7073_v10  ;;  %15702 = vmatpush3.bf16.msra.mxu0 %v17122_v51 }
 0xa52   : > { %v15693_v48 = vpop.f32.mrf.mxu1  ;;  %15703 = vmatprep.subr.bf16.mxu0 %v17123_v54 }
 0xa53   : > { %15679 = vmatprep.mubr.msk.bf16.mxu0 %vm1521_vm0, %v7099_v60 }
 0xa54   : > { %15680 = vmatmul.mubr.msk.bf16.gmra.mxu0 %vm1521_vm0, %v7100_v16  ;;  %v7285_v33 = vpop.f32.mrf.mxu1 }
 0xa55   : > { %15704 = vmatpush3.bf16.msra.mxu0 %v17123_v54  ;;  %v17127_v54 = vld [vmem:[%s21887_s0 + $0xe8] sm:$0xff]  }
 0xa56   : > { %v15694_v1 = vpop.f32.mrf.mxu1  ;;  %15705 = vmatprep.subr.bf16.mxu0 %v17124_v55 }
 0xa57   : > { %v7326_v8 = vpack.c.bf16 %v15694_v1, %v15693_v48  ;;  %v17128_v48 = vld [vmem:[%s21887_s0 + $0xe0] sm:$0xff]  }
 0xa58   : > { %v7288_v62 = vpop.f32.mrf.mxu1 }
 0xa59   : > { %v7325_v37 = vpack.c.bf16 %v7288_v62, %v7285_v33  ;;  %15706 = vmatpush3.bf16.msra.mxu0 %v17124_v55 }
 0xa5a   : > { %v15697_v51 = vpop.f32.mrf.mxu1  ;;  %15731 = vmatprep.subr.bf16.mxu0 %v17125_v11 }
 0xa5b   : > { %15707 = vmatprep.mubr.msk.bf16.mxu0 %vm1521_vm0, %v7325_v37 }
 0xa5c   : > { %v7301_v10 = vpop.f32.mrf.mxu1  ;;  %15708 = vmatmul.mubr.msk.bf16.vlgmr.msra.gmra.mxu0 %vm1521_vm0, %v7326_v8 }
 0xa5d   : > { %15732 = vmatpush3.bf16.msra.mxu0 %v17125_v11  ;;  %v17129_v11 = vld [vmem:[%s21887_s0 + $0x118] sm:$0xff]  }
 0xa5e   : > { %v15698_v40 = vpop.f32.mrf.mxu1  ;;  %15733 = vmatprep.subr.bf16.mxu0 %v17126_v45 }
 0xa5f   : > { %v7328_v16 = vpack.c.bf16 %v15698_v40, %v15697_v51  ;;  %v17130_v51 = vld [vmem:[%s21887_s0 + $0x110] sm:$0xff]  }
 0xa60   : > { %v7304_v26 = vpop.f32.mrf.mxu1 }
 0xa61   : > { %v7327_v60 = vpack.c.bf16 %v7304_v26, %v7301_v10  ;;  %15734 = vmatpush3.bf16.msra.mxu0 %v17126_v45 }
 0xa62   : > { %v15725_v55 = vpop.f32.mrf.mxu1  ;;  %15735 = vmatprep.subr.bf16.mxu0 %v17127_v54 }
 0xa63   : > { %15711 = vmatprep.mubr.msk.bf16.mxu0 %vm1521_vm0, %v7327_v60 }
 0xa64   : > { %15712 = vmatmul.mubr.msk.bf16.gmra.mxu0 %vm1521_vm0, %v7328_v16  ;;  %v7513_v33 = vpop.f32.mrf.mxu1 }
 0xa65   : > { %15736 = vmatpush3.bf16.msra.mxu0 %v17127_v54  ;;  %v17131_v54 = vld [vmem:[%s21887_s0 + $0x108] sm:$0xff]  }
 0xa66   : > { %v15726_v1 = vpop.f32.mrf.mxu1  ;;  %15737 = vmatprep.subr.bf16.mxu0 %v17128_v48 }
 0xa67   : > { %v7554_v8 = vpack.c.bf16 %v15726_v1, %v15725_v55  ;;  %v17132_v55 = vld [vmem:[%s21887_s0 + $0x100] sm:$0xff]   ;;  %s21934_s0 = sld [smem:[#allocation19_spill]] }
 0xa68   : > { %v7516_v62 = vpop.f32.mrf.mxu1 }
 0xa69   : > { %v7553_v37 = vpack.c.bf16 %v7516_v62, %v7513_v33  ;;  %15738 = vmatpush3.bf16.msra.mxu0 %v17128_v48 }
 0xa6a   : > { %v15729_v45 = vpop.f32.mrf.mxu1  ;;  %15763 = vmatprep.subr.bf16.mxu0 %v17129_v11 }
 0xa6b   : > { %15739 = vmatprep.mubr.msk.bf16.mxu0 %vm1521_vm0, %v7553_v37 }
 0xa6c   : > { %v7529_v10 = vpop.f32.mrf.mxu1  ;;  %15740 = vmatmul.mubr.msk.bf16.vlgmr.msra.gmra.mxu0 %vm1521_vm0, %v7554_v8 }
 0xa6d   : > { %15764 = vmatpush3.bf16.msra.mxu0 %v17129_v11 }
 0xa6e   : > { %v15730_v40 = vpop.f32.mrf.mxu1  ;;  %15765 = vmatprep.subr.bf16.mxu0 %v17130_v51 }
 0xa6f   : > { %v7556_v16 = vpack.c.bf16 %v15730_v40, %v15729_v45 }
 0xa70   : > { %v7532_v26 = vpop.f32.mrf.mxu1 }
 0xa71   : > { %v7555_v60 = vpack.c.bf16 %v7532_v26, %v7529_v10  ;;  %15766 = vmatpush3.bf16.msra.mxu0 %v17130_v51  ;;  %v17133_v26 = vld [vmem:[%s21891_s1 + $0x40] sm:$0xff]  }
 0xa72   : > { %v15757_v33 = vpop.f32.mrf.mxu1  ;;  %15767 = vmatprep.subr.bf16.mxu0 %v17131_v54 }
 0xa73   : > { %15743 = vmatprep.mubr.msk.bf16.mxu0 %vm1521_vm0, %v7555_v60  ;;  %v17134_v60 = vld [vmem:[%s21891_s1 + $0x48] sm:$0xff]  }
 0xa74   : > { %15744 = vmatmul.mubr.msk.bf16.gmra.mxu0 %vm1521_vm0, %v7556_v16  ;;  %v7741_v48 = vpop.f32.mrf.mxu1  ;;  %v17135_v16 = vld [vmem:[%s21891_s1 + $0x50] sm:$0xff]  }
 0xa75   : > { %15768 = vmatpush3.bf16.msra.mxu0 %v17131_v54 }
 0xa76   : > { %v15758_v1 = vpop.f32.mrf.mxu1  ;;  %15769 = vmatprep.subr.bf16.mxu0 %v17132_v55 }
 0xa77   : > { %v7782_v37 = vpack.c.bf16 %v15758_v1, %v15757_v33  ;;  %v17136_v33 = vld [vmem:[%s21891_s1 + $0x58] sm:$0xff]   ;;  %v17141_v1 = vld [vmem:[%s21891_s1 + $0x70] sm:$0xff]  }
 0xa78   : > { %v7744_v62 = vpop.f32.mrf.mxu1 }
 0xa79   : > { %v7781_v11 = vpack.c.bf16 %v7744_v62, %v7741_v48  ;;  %15770 = vmatpush3.bf16.msra.mxu0 %v17132_v55  ;;  %v17137_v55 = vld [vmem:[%s21891_s1 + $0x60] sm:$0xff]   ;;  %v17138_v48 = vld [vmem:[%s21891_s1 + $0x68] sm:$0xff]   ;;  %v17142_v62 = vld [vmem:[%s21891_s1 + $0x78] sm:$0xff]  }
 0xa7a   : > { %15811 = vmatprep.subr.bf16.mxu0 %v18487_v36  ;;  %v15761_v8 = vpop.f32.mrf.mxu1 }
 0xa7b   : > { %15771 = vmatprep.mubr.msk.bf16.mxu0 %vm1521_vm0, %v7781_v11  ;;  %v19498_v11 = vpop.f32.mrf.mxu0 }
 0xa7c   : > { %v7757_v45 = vpop.f32.mrf.mxu1  ;;  %15772 = vmatmul.mubr.msk.bf16.vlgmr.msra.gmra.mxu0 %vm1521_vm0, %v7782_v37  ;;  %21905 = vst [vmem:[#allocation52_spill] sm:$0xff] %v19498_v11  ;;  %v17496_v11 = vmov 0.0  }
 0xa7d   : > { %15812 = vmatpush3.bf16.msra.mxu0 %v18487_v36 }
 0xa7e   : > { %15813 = vmatprep.subr.bf16.mxu0 %v18443_v23  ;;  %v15762_v51 = vpop.f32.mrf.mxu1 }
 0xa7f   : > { %v7784_v10 = vpack.c.bf16 %v15762_v51, %v15761_v8 }
 0xa80   : > { %v7760_v40 = vpop.f32.mrf.mxu1 }
 0xa81   : > { %v7783_v54 = vpack.c.bf16 %v7760_v40, %v7757_v45  ;;  %15814 = vmatpush3.bf16.msra.mxu0 %v18443_v23 }
 0xa82   : > { %15815 = vmatprep.subr.bf16.mxu0 %v18417_v61 }
 0xa83   : > { %15775 = vmatprep.mubr.msk.bf16.mxu0 %vm1521_vm0, %v7783_v54 }
 0xa84   : > { %15776 = vmatmul.mubr.msk.bf16.gmra.mxu0 %vm1521_vm0, %v7784_v10 }
 0xa85   : > { %15816 = vmatpush3.bf16.msra.mxu0 %v18417_v61  ;;  %15827 = vmatprep.mubr.bf16.mxu0 %v17133_v26 }
 0xa86   : > { %15817 = vmatprep.subr.bf16.mxu0 %v18375_v35 }
 0xa89   : > { %15818 = vmatpush3.bf16.msra.mxu0 %v18375_v35 }
 0xa8a   : > { %15819 = vmatprep.subr.bf16.mxu0 %v18335_v57 }
 0xa8d   : > { %15820 = vmatpush3.bf16.msra.mxu0 %v18335_v57 }
 0xa8e   : > { %15821 = vmatprep.subr.bf16.mxu0 %v18308_v17 }
 0xa91   : > { %15822 = vmatpush3.bf16.msra.mxu0 %v18308_v17 }
 0xa92   : > { %15823 = vmatprep.subr.bf16.mxu0 %v18284_v34  ;;  %v15797_v45 = vpop.f32.mrf.mxu1 }
 0xa94   : > { %v8048_v40 = vpop.f32.mrf.mxu1 }
 0xa95   : > { %15824 = vmatpush3.bf16.msra.mxu0 %v18284_v34 }
 0xa96   : > { %15825 = vmatprep.subr.bf16.mxu0 %v21893_v53 }
 0xa99   : > { %15826 = vmatpush3.bf16.msra.mxu0 %v21893_v53 }
 0xa9c   : > { %15828 = vmatmul.mubr.bf16.vlgmr.msra.gmra.mxu0 %v17134_v60  ;;  %v15798_v60 = vpop.f32.mrf.mxu1 }
 0xa9d   : > { %15831 = vmatprep.mubr.bf16.mxu0 %v17135_v16  ;;  %v17147_v16 = vld [vmem:[%s21892_s5] sm:$0xff]  }
 0xa9e   : > { %15861 = vmatprep.subr.bf16.mxu0 %v17147_v16 }
 0xa9f   : > { %15862 = vmatpush3.bf16.msra.mxu0 %v17147_v16 }
 0xaa4   : > { %15832 = vmatmul.mubr.bf16.gmra.mxu0 %v17136_v33 }
 0xaa5   : > { %15835 = vmatprep.mubr.bf16.mxu0 %v17137_v55  ;;  %v8051_v55 = vpop.f32.mrf.mxu1 }
 0xaac   : > { %15836 = vmatmul.mubr.bf16.gmra.mxu0 %v17138_v48 }
 0xaad   : > { %15839 = vmatprep.mubr.bf16.mxu0 %v17141_v1  ;;  %v8113_v1 = vpack.c.bf16 %v8051_v55, %v8048_v40 }
 0xab4   : > { %15840 = vmatmul.mubr.bf16.gmra.mxu0 %v17142_v62 }
 0xab5   : > { %15863 = vmatprep.mubr.msk.bf16.mxu0 %vm2321_vm2, %v8113_v1 }
 0xadc   : > { %v15581_v37 = vpop.f32.mrf.mxu0 }
 0xadd   : > { %v6520_v8 = vadd.f32 %v15581_v37, %v19424_v18  ;;  %v8114_v18 = vpack.c.bf16 %v15798_v60, %v15797_v45  ;;  %v15801_v37 = vpop.f32.mrf.mxu1 }
 0xade   : > { %v6487_v51 = vpop.f32.mrf.mxu0 }
 0xadf   : > { %v6518_v10 = vadd.f32 %v6487_v51, %v19427_v47  ;;  %v8064_v51 = vpop.f32.mrf.mxu1  ;;  %15864 = vmatmul.mubr.msk.bf16.vlgmr.msra.gmra.mxu0 %vm2321_vm2, %v8114_v18 }
 0xae0   : > { %v15582_v54 = vpop.f32.mrf.mxu0 }
 0xae1   : > { %v6521_v26 = vadd.f32 %v15582_v54, %v19429_v46  ;;  %v15802_v24 = vpop.f32.mrf.mxu1 }
 0xae2   : > { %v19504_v33 = vpop.f32.mrf.mxu0  ;;  %v8116_v45 = vpack.c.bf16 %v15802_v24, %v15801_v37 }
 0xae3   : > { %21906 = vst [vmem:[#allocation58_spill] sm:$0xff] %v19504_v33  ;;  %v8067_v40 = vpop.f32.mrf.mxu1 }
 0xae4   : > { %v15585_v48 = vpop.f32.mrf.mxu0  ;;  %v8115_v55 = vpack.c.bf16 %v8067_v40, %v8064_v51 }
 0xae5   : > { %v6524_v62 = vadd.f32 %v15585_v48, %v19436_v0  ;;  %v15805_v60 = vpop.f32.mrf.mxu1 }
 0xae6   : > { %v6503_v31 = vpop.f32.mrf.mxu0  ;;  %15867 = vmatprep.mubr.msk.bf16.mxu0 %vm2321_vm2, %v8115_v55 }
 0xae7   : > { %v6522_v47 = vadd.f32 %v6503_v31, %v19439_v13  ;;  %v8080_v31 = vpop.f32.mrf.mxu1  ;;  %15868 = vmatmul.mubr.msk.bf16.gmra.mxu0 %vm2321_vm2, %v8116_v45 }
 0xae8   : > { %v15586_v46 = vpop.f32.mrf.mxu0 }
 0xae9   : > { %v6525_v54 = vadd.f32 %v15586_v46, %v19441_v52  ;;  %v15806_v39 = vpop.f32.mrf.mxu1 }
 0xaea   : > { %v19511_v41 = vpop.f32.mrf.mxu0  ;;  %v8118_v51 = vpack.c.bf16 %v15806_v39, %v15805_v60 }
 0xaeb   : > { %21907 = vst [vmem:[#allocation89_spill] sm:$0xff] %v19511_v41  ;;  %v8083_v46 = vpop.f32.mrf.mxu1  ;;  %v17209_v41 = vld [vmem:[%s21892_s5 + $0x28] sm:$0xff]  }
 0xaec   : > { %v15613_v16 = vpop.f32.mrf.mxu0  ;;  %v8117_v56 = vpack.c.bf16 %v8083_v46, %v8080_v31 }
 0xaed   : > { %v6748_v0 = vadd.f32 %v15613_v16, %v6520_v8  ;;  %v15809_v8 = vpop.f32.mrf.mxu1 }
 0xaee   : > { %v6715_v48 = vpop.f32.mrf.mxu0  ;;  %15871 = vmatprep.mubr.msk.bf16.mxu0 %vm2321_vm2, %v8117_v56 }
 0xaef   : > { %v6746_v1 = vadd.f32 %v6715_v48, %v6518_v10  ;;  %v8096_v40 = vpop.f32.mrf.mxu1  ;;  %15872 = vmatmul.mubr.msk.bf16.gmra.mxu0 %vm2321_vm2, %v8118_v51 }
 0xaf0   : > { %v15614_v13 = vpop.f32.mrf.mxu0 }
 0xaf1   : > { %v6749_v18 = vadd.f32 %v15614_v13, %v6521_v26  ;;  %v15810_v55 = vpop.f32.mrf.mxu1 }
 0xaf2   : > { %v19515_v52 = vpop.f32.mrf.mxu0  ;;  %v8120_v31 = vpack.c.bf16 %v15810_v55, %v15809_v8 }
 0xaf3   : > { %21908 = vst [vmem:[#allocation66_spill] sm:$0xff] %v19515_v52  ;;  %v8099_v45 = vpop.f32.mrf.mxu1 }
 0xaf4   : > { %v15617_v4 = vpop.f32.mrf.mxu0  ;;  %v8119_v13 = vpack.c.bf16 %v8099_v45, %v8096_v40 }
 0xaf5   : > { %v6752_v63 = vadd.f32 %v15617_v4, %v6524_v62 }
 0xaf6   : > { %v6731_v24 = vpop.f32.mrf.mxu0  ;;  %15875 = vmatprep.mubr.msk.bf16.mxu0 %vm2321_vm2, %v8119_v13 }
 0xaf7   : > { %v6750_v37 = vadd.f32 %v6731_v24, %v6522_v47  ;;  %15876 = vmatmul.mubr.msk.bf16.gmra.mxu0 %vm2321_vm2, %v8120_v31 }
 0xaf8   : > { %v15618_v10 = vpop.f32.mrf.mxu0 }
 0xaf9   : > { %v6753_v16 = vadd.f32 %v15618_v10, %v6525_v54 }
 0xafa   : > { %v19519_v26 = vpop.f32.mrf.mxu0 }
 0xafb   : > { %21909 = vst [vmem:[#allocation74_spill] sm:$0xff] %v19519_v26 }
 0xafc   : > { %v15645_v48 = vpop.f32.mrf.mxu0 }
 0xafd   : > { %v6976_v21 = vadd.f32 %v15645_v48, %v6748_v0 }
 0xafe   : > { %v6943_v4 = vpop.f32.mrf.mxu0 }
 0xaff   : > { %v6974_v39 = vadd.f32 %v6943_v4, %v6746_v1 }
 0xb00   : > { %v15646_v56 = vpop.f32.mrf.mxu0 }
 0xb01   : > { %v6977_v62 = vadd.f32 %v15646_v56, %v6749_v18 }
 0xb02   : > { %v19523_v47 = vpop.f32.mrf.mxu0 }
 0xb03   : > { %21910 = vst [vmem:[#allocation91_spill] sm:$0xff] %v19523_v47 }
 0xb04   : > { %v15649_v60 = vpop.f32.mrf.mxu0 }
 0xb05   : > { %v6980_v54 = vadd.f32 %v15649_v60, %v6752_v63 }
 0xb06   : > { %v6959_v46 = vpop.f32.mrf.mxu0 }
 0xb07   : > { %v6978_v51 = vadd.f32 %v6959_v46, %v6750_v37 }
 0xb08   : > { %v15650_v24 = vpop.f32.mrf.mxu0 }
 0xb09   : > { %v6981_v10 = vadd.f32 %v15650_v24, %v6753_v16 }
 0xb0a   : > { %v19525_v6 = vpop.f32.mrf.mxu0 }
 0xb0b   : > { %21911 = vst [vmem:[#allocation71_spill] sm:$0xff] %v19525_v6 }
 0xb0c   : > { %v15677_v0 = vpop.f32.mrf.mxu0 }
 0xb0d   : > { %v7204_v8 = vadd.f32 %v15677_v0, %v6976_v21 }
 0xb0e   : > { %v7171_v40 = vpop.f32.mrf.mxu0 }
 0xb0f   : > { %v7202_v55 = vadd.f32 %v7171_v40, %v6974_v39 }
 0xb10   : > { %v15678_v45 = vpop.f32.mrf.mxu0 }
 0xb11   : > { %v7205_v1 = vadd.f32 %v15678_v45, %v6977_v62 }
 0xb12   : > { %v19527_v48 = vpop.f32.mrf.mxu0 }
 0xb13   : > { %21912 = vst [vmem:[#allocation80_spill] sm:$0xff] %v19527_v48  ;;  %v17211_v48 = vld [vmem:[%s21892_s5 + $0x38] sm:$0xff]  }
 0xb14   : > { %v15681_v13 = vpop.f32.mrf.mxu0 }
 0xb15   : > { %v7208_v18 = vadd.f32 %v15681_v13, %v6980_v54 }
 0xb16   : > { %v7187_v31 = vpop.f32.mrf.mxu0 }
 0xb17   : > { %v7206_v4 = vadd.f32 %v7187_v31, %v6978_v51 }
 0xb18   : > { %v15682_v56 = vpop.f32.mrf.mxu0 }
 0xb19   : > { %v7209_v63 = vadd.f32 %v15682_v56, %v6981_v10 }
 0xb1a   : > { %v19529_v60 = vpop.f32.mrf.mxu0 }
 0xb1b   : > { %21913 = vst [vmem:[#allocation60_spill] sm:$0xff] %v19529_v60  ;;  %v17204_v60 = vld [vmem:[%s21891_s1 + $0x238] sm:$0xff]  }
 0xb1c   : > { %v15709_v37 = vpop.f32.mrf.mxu0 }
 0xb1d   : > { %v7432_v16 = vadd.f32 %v15709_v37, %v7204_v8 }
 0xb1e   : > { %v7399_v46 = vpop.f32.mrf.mxu0 }
 0xb1f   : > { %v7430_v24 = vadd.f32 %v7399_v46, %v7202_v55 }
 0xb20   : > { %v15710_v28 = vpop.f32.mrf.mxu0 }
 0xb21   : > { %v7433_v21 = vadd.f32 %v15710_v28, %v7205_v1 }
 0xb22   : > { %v19531_v0 = vpop.f32.mrf.mxu0 }
 0xb23   : > { %21914 = vst [vmem:[#allocation55_spill] sm:$0xff] %v19531_v0 }
 0xb24   : > { %v15713_v39 = vpop.f32.mrf.mxu0 }
 0xb25   : > { %v7436_v62 = vadd.f32 %v15713_v39, %v7208_v18 }
 0xb26   : > { %v7415_v40 = vpop.f32.mrf.mxu0 }
 0xb27   : > { %v7434_v45 = vadd.f32 %v7415_v40, %v7206_v4 }
 0xb28   : > { %v15714_v44 = vpop.f32.mrf.mxu0 }
 0xb29   : > { %v7437_v54 = vadd.f32 %v15714_v44, %v7209_v63 }
 0xb2a   : > { %v19533_v13 = vpop.f32.mrf.mxu0 }
 0xb2b   : > { %21915 = vst [vmem:[#allocation90_spill] sm:$0xff] %v19533_v13 }
 0xb2c   : > { %v15741_v51 = vpop.f32.mrf.mxu0 }
 0xb2d   : > { %v7660_v10 = vadd.f32 %v15741_v51, %v7432_v16 }
 0xb2e   : > { %v7627_v31 = vpop.f32.mrf.mxu0 }
 0xb2f   : > { %v7658_v56 = vadd.f32 %v7627_v31, %v7430_v24 }
 0xb30   : > { %v15742_v19 = vpop.f32.mrf.mxu0 }
 0xb31   : > { %v7661_v8 = vadd.f32 %v15742_v19, %v7433_v21 }
 0xb32   : > { %v19535_v37 = vpop.f32.mrf.mxu0 }
 0xb33   : > { %21916 = vst [vmem:[#allocation101_spill] sm:$0xff] %v19535_v37  ;;  %v21942_v37 = vld [vmem:[#allocation40_spill] sm:$0xff] }
 0xb34   : > { %v15745_v55 = vpop.f32.mrf.mxu0 }
 0xb35   : > { %v7664_v28 = vadd.f32 %v15745_v55, %v7436_v62 }
 0xb36   : > { %v7643_v1 = vpop.f32.mrf.mxu0 }
 0xb37   : > { %v7662_v46 = vadd.f32 %v7643_v1, %v7434_v45 }
 0xb38   : > { %v15746_v25 = vpop.f32.mrf.mxu0 }
 0xb39   : > { %v7665_v18 = vadd.f32 %v15746_v25, %v7437_v54 }
 0xb3a   : > { %v19537_v39 = vpop.f32.mrf.mxu0 }
 0xb3b   : > { %21917 = vst [vmem:[#allocation102_spill] sm:$0xff] %v19537_v39 }
 0xb3c   : > { %v15773_v4 = vpop.f32.mrf.mxu0 }
 0xb3d   : > { %v19539_v44 = vadd.f32 %v15773_v4, %v7660_v10 }
 0xb3e   : > { %v7855_v63 = vpop.f32.mrf.mxu0 }
 0xb3f   : > { %21918 = vst [vmem:[#allocation103_spill] sm:$0xff] %v19539_v44  ;;  %v19541_v40 = vadd.f32 %v7855_v63, %v7658_v56  ;;  %v17201_v44 = vld [vmem:[%s21891_s1 + $0x220] sm:$0xff]  }
 0xb40   : > { %v15774_v16 = vpop.f32.mrf.mxu0 }
 0xb41   : > { %21919 = vst [vmem:[#allocation104_spill] sm:$0xff] %v19541_v40  ;;  %v19543_v24 = vadd.f32 %v15774_v16, %v7661_v8  ;;  %v21938_v40 = vld [vmem:[#allocation36_spill] sm:$0xff] }
 0xb42   : > { %v19545_v19 = vpop.f32.mrf.mxu0 }
 0xb43   : > { %21920 = vst [vmem:[#allocation105_spill] sm:$0xff] %v19543_v24  ;;  %21921 = vst [vmem:[#allocation106_spill] sm:$0xff] %v19545_v19  ;;  %v21930_v24 = vld [vmem:[#allocation29_spill] sm:$0xff] }
 0xb44   : > { %v15777_v21 = vpop.f32.mrf.mxu0  ;;  %v10872_v19 = vld [vmem:[%s21934_s0] sm:$0xff]  ;;  %s21955_s0 = sld [smem:[#allocation20_spill]] }
 0xb45   : > { %v19547_v51 = vadd.f32 %v15777_v21, %v7664_v28  ;;  %v14827_v6 = vcombine.low %v10872_v19, %v10872_v19 }
 0xb46   : > { %v7871_v62 = vpop.f32.mrf.mxu0 }
 0xb47   : > { %21922 = vst [vmem:[#allocation107_spill] sm:$0xff] %v19547_v51  ;;  %v19549_v45 = vadd.f32 %v7871_v62, %v7662_v46 }
 0xb48   : > { %v15778_v25 = vpop.f32.mrf.mxu0 }
 0xb49   : > { %21923 = vst [vmem:[#allocation108_spill] sm:$0xff] %v19549_v45  ;;  %v19551_v54 = vadd.f32 %v15778_v25, %v7665_v18  ;;  %v21929_v45 = vld [vmem:[#allocation28_spill] sm:$0xff] }
 0xb4a   : > { %v19553_v31 = vpop.f32.mrf.mxu0 }
 0xb4b   : > { %21924 = vst [vmem:[#allocation109_spill] sm:$0xff] %v19551_v54  ;;  %21925 = vst [vmem:[#allocation110_spill] sm:$0xff] %v19553_v31  ;;  %v21928_v54 = vld [vmem:[#allocation27_spill] sm:$0xff] }
 0xb4c   : > { %v17200_v31 = vld [vmem:[%s21891_s1 + $0x218] sm:$0xff]  }
 0xb5c   : > { %v15829_v10 = vpop.f32.mrf.mxu0 }
 0xb5e   : > { %v8220_v55 = vpop.f32.mrf.mxu0 }
 0xb60   : > { %v15830_v56 = vpop.f32.mrf.mxu0 }
 0xb61   : > { %v8287_v8 = vpack.c.bf16 %v15830_v56, %v15829_v10 }
 0xb62   : > { %v8223_v1 = vpop.f32.mrf.mxu0 }
 0xb63   : > { %v8286_v4 = vpack.c.bf16 %v8223_v1, %v8220_v55 }
 0xb64   : > { %v15833_v63 = vpop.f32.mrf.mxu0 }
 0xb65   : > { %15845 = vmatprep.mubr.msk.bf16.mxu1 %vm2321_vm2, %v8286_v4 }
 0xb66   : > { %v8236_v16 = vpop.f32.mrf.mxu0  ;;  %15846 = vmatmul.mubr.msk.bf16.vlgmr.msra.gmra.mxu1 %vm2321_vm2, %v8287_v8 }
 0xb67   : > { %15880 = vmatpush3.bf16.msra.mxu1 %v18487_v36 }
 0xb68   : > { %15881 = vmatprep.subr.bf16.mxu1 %v18443_v23  ;;  %v15834_v28 = vpop.f32.mrf.mxu0 }
 0xb69   : > { %v8289_v21 = vpack.c.bf16 %v15834_v28, %v15833_v63 }
 0xb6a   : > { %v8239_v46 = vpop.f32.mrf.mxu0 }
 0xb6b   : > { %v8288_v18 = vpack.c.bf16 %v8239_v46, %v8236_v16  ;;  %15882 = vmatpush3.bf16.msra.mxu1 %v18443_v23  ;;  %v17148_v46 = vld [vmem:[%s21891_s1 + $0x80] sm:$0xff]  }
 0xb6c   : > { %15883 = vmatprep.subr.bf16.mxu1 %v18417_v61  ;;  %v15837_v62 = vpop.f32.mrf.mxu0 }
 0xb6d   : > { %15849 = vmatprep.mubr.msk.bf16.mxu1 %vm2321_vm2, %v8288_v18 }
 0xb6e   : > { %v8252_v25 = vpop.f32.mrf.mxu0  ;;  %15850 = vmatmul.mubr.msk.bf16.gmra.mxu1 %vm2321_vm2, %v8289_v21  ;;  %v17149_v21 = vld [vmem:[%s21891_s1 + $0x88] sm:$0xff]  }
 0xb6f   : > { %15884 = vmatpush3.bf16.msra.mxu1 %v18417_v61 }
 0xb70   : > { %15885 = vmatprep.subr.bf16.mxu1 %v18375_v35  ;;  %v15838_v10 = vpop.f32.mrf.mxu0 }
 0xb71   : > { %v8291_v1 = vpack.c.bf16 %v15838_v10, %v15837_v62  ;;  %v17150_v62 = vld [vmem:[%s21891_s1 + $0x90] sm:$0xff]   ;;  %v17152_v10 = vld [vmem:[%s21891_s1 + $0xa0] sm:$0xff]  }
 0xb72   : > { %v8255_v55 = vpop.f32.mrf.mxu0 }
 0xb73   : > { %v8290_v56 = vpack.c.bf16 %v8255_v55, %v8252_v25  ;;  %15886 = vmatpush3.bf16.msra.mxu1 %v18375_v35  ;;  %v17151_v25 = vld [vmem:[%s21891_s1 + $0x98] sm:$0xff]   ;;  %v17153_v55 = vld [vmem:[%s21891_s1 + $0xa8] sm:$0xff]  }
 0xb74   : > { %15887 = vmatprep.subr.bf16.mxu1 %v18335_v57  ;;  %v15841_v4 = vpop.f32.mrf.mxu0 }
 0xb75   : > { %15853 = vmatprep.mubr.msk.bf16.mxu1 %vm2321_vm2, %v8290_v56  ;;  %v17154_v56 = vld [vmem:[%s21891_s1 + $0xb0] sm:$0xff]  }
 0xb76   : > { %v8268_v8 = vpop.f32.mrf.mxu0  ;;  %15854 = vmatmul.mubr.msk.bf16.gmra.mxu1 %vm2321_vm2, %v8291_v1  ;;  %v17155_v1 = vld [vmem:[%s21891_s1 + $0xb8] sm:$0xff]  }
 0xb77   : > { %15888 = vmatpush3.bf16.msra.mxu1 %v18335_v57 }
 0xb78   : > { %15889 = vmatprep.subr.bf16.mxu1 %v18308_v17  ;;  %v15842_v63 = vpop.f32.mrf.mxu0 }
 0xb79   : > { %v8293_v18 = vpack.c.bf16 %v15842_v63, %v15841_v4  ;;  %v17156_v4 = vld [vmem:[%s21891_s1 + $0xc0] sm:$0xff]   ;;  %v17158_v63 = vld [vmem:[%s21891_s1 + $0xd0] sm:$0xff]  }
 0xb7a   : > { %v8271_v16 = vpop.f32.mrf.mxu0 }
 0xb7b   : > { %v8292_v28 = vpack.c.bf16 %v8271_v16, %v8268_v8  ;;  %15890 = vmatpush3.bf16.msra.mxu1 %v18308_v17  ;;  %v17157_v8 = vld [vmem:[%s21891_s1 + $0xc8] sm:$0xff]   ;;  %v17159_v16 = vld [vmem:[%s21891_s1 + $0xd8] sm:$0xff]  }
 0xb7c   : > { %15891 = vmatprep.subr.bf16.mxu1 %v18284_v34 }
 0xb7d   : > { %15857 = vmatprep.mubr.msk.bf16.mxu1 %vm2321_vm2, %v8292_v28  ;;  %v17160_v28 = vld [vmem:[%s21891_s1 + $0xe0] sm:$0xff]  }
 0xb7e   : > { %15858 = vmatmul.mubr.msk.bf16.gmra.mxu1 %vm2321_vm2, %v8293_v18  ;;  %v17162_v18 = vld [vmem:[%s21891_s1 + $0xf0] sm:$0xff]  }
 0xb7f   : > { %15892 = vmatpush3.bf16.msra.mxu1 %v18284_v34  ;;  %15895 = vmatprep.mubr.bf16.mxu1 %v17148_v46  ;;  %v17161_v46 = vld [vmem:[%s21891_s1 + $0xe8] sm:$0xff]  }
 0xb80   : > { %15893 = vmatprep.subr.bf16.mxu1 %v21893_v53 }
 0xb83   : > { %15894 = vmatpush3.bf16.msra.mxu1 %v21893_v53 }
 0xb84   : > { %15929 = vmatprep.subr.bf16.mxu1 %v18487_v36 }
 0xb86   : > { %15896 = vmatmul.mubr.bf16.vlgmr.msra.gmra.mxu1 %v17149_v21  ;;  %v17163_v21 = vld [vmem:[%s21891_s1 + $0xf8] sm:$0xff]  }
 0xb87   : > { %15930 = vmatpush3.bf16.msra.mxu1 %v18487_v36  ;;  %15899 = vmatprep.mubr.bf16.mxu1 %v17150_v62  ;;  %v17164_v62 = vld [vmem:[%s21891_s1 + $0x100] sm:$0xff]  }
 0xb88   : > { %15931 = vmatprep.subr.bf16.mxu1 %v18443_v23 }
 0xb8b   : > { %15932 = vmatpush3.bf16.msra.mxu1 %v18443_v23 }
 0xb8c   : > { %15933 = vmatprep.subr.bf16.mxu1 %v18417_v61 }
 0xb8e   : > { %15900 = vmatmul.mubr.bf16.gmra.mxu1 %v17151_v25  ;;  %v17165_v25 = vld [vmem:[%s21891_s1 + $0x108] sm:$0xff]  }
 0xb8f   : > { %15934 = vmatpush3.bf16.msra.mxu1 %v18417_v61  ;;  %15903 = vmatprep.mubr.bf16.mxu1 %v17152_v10  ;;  %v17166_v10 = vld [vmem:[%s21891_s1 + $0x110] sm:$0xff]  }
 0xb90   : > { %15935 = vmatprep.subr.bf16.mxu1 %v18375_v35 }
 0xb93   : > { %15936 = vmatpush3.bf16.msra.mxu1 %v18375_v35 }
 0xb94   : > { %15937 = vmatprep.subr.bf16.mxu1 %v18335_v57 }
 0xb96   : > { %15904 = vmatmul.mubr.bf16.gmra.mxu1 %v17153_v55  ;;  %v17167_v55 = vld [vmem:[%s21891_s1 + $0x118] sm:$0xff]  }
 0xb97   : > { %15938 = vmatpush3.bf16.msra.mxu1 %v18335_v57  ;;  %15907 = vmatprep.mubr.bf16.mxu1 %v17154_v56  ;;  %v17168_v56 = vld [vmem:[%s21891_s1 + $0x120] sm:$0xff]  }
 0xb98   : > { %15939 = vmatprep.subr.bf16.mxu1 %v18308_v17 }
 0xb9b   : > { %15940 = vmatpush3.bf16.msra.mxu1 %v18308_v17 }
 0xb9c   : > { %15941 = vmatprep.subr.bf16.mxu1 %v18284_v34 }
 0xb9e   : > { %15908 = vmatmul.mubr.bf16.gmra.mxu1 %v17155_v1  ;;  %v17198_v1 = vld [vmem:[%s21892_s5 + $0x10] sm:$0xff]  }
 0xb9f   : > { %15942 = vmatpush3.bf16.msra.mxu1 %v18284_v34  ;;  %15945 = vmatprep.mubr.bf16.mxu1 %v17156_v4  ;;  %v17169_v4 = vld [vmem:[%s21891_s1 + $0x128] sm:$0xff]  }
 0xba0   : > { %15943 = vmatprep.subr.bf16.mxu1 %v21893_v53  ;;  %15911 = vmatprep.subr.bf16.mxu0 %v17198_v1 }
 0xba1   : > { %15912 = vmatpush3.bf16.msra.mxu0 %v17198_v1  ;;  %v17181_v1 = vld [vmem:[%s21891_s1 + $0x188] sm:$0xff]  }
 0xba3   : > { %15944 = vmatpush3.bf16.msra.mxu1 %v21893_v53 }
 0xba4   : > { %15979 = vmatprep.subr.bf16.mxu1 %v18487_v36 }
 0xba6   : > { %15946 = vmatmul.mubr.bf16.vlgmr.msra.gmra.mxu1 %v17157_v8  ;;  %v17170_v8 = vld [vmem:[%s21891_s1 + $0x130] sm:$0xff]  }
 0xba7   : > { %15980 = vmatpush3.bf16.msra.mxu1 %v18487_v36  ;;  %15949 = vmatprep.mubr.bf16.mxu1 %v17158_v63  ;;  %v17171_v63 = vld [vmem:[%s21891_s1 + $0x138] sm:$0xff]  }
 0xba8   : > { %15981 = vmatprep.subr.bf16.mxu1 %v18443_v23 }
 0xbab   : > { %15982 = vmatpush3.bf16.msra.mxu1 %v18443_v23 }
 0xbac   : > { %15983 = vmatprep.subr.bf16.mxu1 %v18417_v61 }
 0xbae   : > { %15950 = vmatmul.mubr.bf16.gmra.mxu1 %v17159_v16  ;;  %v17172_v16 = vld [vmem:[%s21891_s1 + $0x140] sm:$0xff]  }
 0xbaf   : > { %15984 = vmatpush3.bf16.msra.mxu1 %v18417_v61  ;;  %15953 = vmatprep.mubr.bf16.mxu1 %v17160_v28  ;;  %v17173_v28 = vld [vmem:[%s21891_s1 + $0x148] sm:$0xff]  }
 0xbb0   : > { %15985 = vmatprep.subr.bf16.mxu1 %v18375_v35 }
 0xbb3   : > { %15986 = vmatpush3.bf16.msra.mxu1 %v18375_v35 }
 0xbb4   : > { %15987 = vmatprep.subr.bf16.mxu1 %v18335_v57 }
 0xbb6   : > { %15954 = vmatmul.mubr.bf16.gmra.mxu1 %v17161_v46  ;;  %v17174_v46 = vld [vmem:[%s21891_s1 + $0x150] sm:$0xff]  }
 0xbb7   : > { %15988 = vmatpush3.bf16.msra.mxu1 %v18335_v57  ;;  %15957 = vmatprep.mubr.bf16.mxu1 %v17162_v18  ;;  %v17175_v18 = vld [vmem:[%s21891_s1 + $0x158] sm:$0xff]  }
 0xbb8   : > { %15989 = vmatprep.subr.bf16.mxu1 %v18308_v17 }
 0xbbb   : > { %15990 = vmatpush3.bf16.msra.mxu1 %v18308_v17 }
 0xbbc   : > { %15991 = vmatprep.subr.bf16.mxu1 %v18284_v34 }
 0xbbe   : > { %15958 = vmatmul.mubr.bf16.gmra.mxu1 %v17163_v21  ;;  %v17176_v21 = vld [vmem:[%s21891_s1 + $0x160] sm:$0xff]  }
 0xbbf   : > { %15992 = vmatpush3.bf16.msra.mxu1 %v18284_v34  ;;  %15995 = vmatprep.mubr.bf16.mxu1 %v17164_v62  ;;  %v19661_v62 = vld [vmem:[%s21892_s5 + $0x18] sm:$0xff]  }
 0xbc0   : > { %15993 = vmatprep.subr.bf16.mxu1 %v21893_v53  ;;  %15961 = vmatprep.subr.bf16.mxu0 %v19661_v62 }
 0xbc3   : > { %15994 = vmatpush3.bf16.msra.mxu1 %v21893_v53 }
 0xbc4   : > { %16029 = vmatprep.subr.bf16.mxu1 %v18487_v36 }
 0xbc6   : > { %15996 = vmatmul.mubr.bf16.vlgmr.msra.gmra.mxu1 %v17165_v25  ;;  %v17177_v25 = vld [vmem:[%s21891_s1 + $0x168] sm:$0xff]  }
 0xbc7   : > { %16030 = vmatpush3.bf16.msra.mxu1 %v18487_v36  ;;  %15999 = vmatprep.mubr.bf16.mxu1 %v17166_v10  ;;  %v17178_v10 = vld [vmem:[%s21891_s1 + $0x170] sm:$0xff]  }
 0xbc8   : > { %16031 = vmatprep.subr.bf16.mxu1 %v18443_v23 }
 0xbcb   : > { %16032 = vmatpush3.bf16.msra.mxu1 %v18443_v23 }
 0xbcc   : > { %16033 = vmatprep.subr.bf16.mxu1 %v18417_v61 }
 0xbce   : > { %16000 = vmatmul.mubr.bf16.gmra.mxu1 %v17167_v55  ;;  %v17179_v55 = vld [vmem:[%s21891_s1 + $0x178] sm:$0xff]  }
 0xbcf   : > { %16034 = vmatpush3.bf16.msra.mxu1 %v18417_v61  ;;  %16003 = vmatprep.mubr.bf16.mxu1 %v17168_v56  ;;  %v17180_v56 = vld [vmem:[%s21891_s1 + $0x180] sm:$0xff]  }
 0xbd0   : > { %16035 = vmatprep.subr.bf16.mxu1 %v18375_v35 }
 0xbd3   : > { %16036 = vmatpush3.bf16.msra.mxu1 %v18375_v35 }
 0xbd4   : > { %16037 = vmatprep.subr.bf16.mxu1 %v18335_v57 }
 0xbd6   : > { %16004 = vmatmul.mubr.bf16.gmra.mxu1 %v17169_v4  ;;  %v17182_v4 = vld [vmem:[%s21891_s1 + $0x190] sm:$0xff]  }
 0xbd7   : > { %16038 = vmatpush3.bf16.msra.mxu1 %v18335_v57  ;;  %16007 = vmatprep.mubr.bf16.mxu1 %v17170_v8  ;;  %v17183_v8 = vld [vmem:[%s21891_s1 + $0x198] sm:$0xff]  }
 0xbd8   : > { %16039 = vmatprep.subr.bf16.mxu1 %v18308_v17 }
 0xbdb   : > { %16040 = vmatpush3.bf16.msra.mxu1 %v18308_v17 }
 0xbdc   : > { %16041 = vmatprep.subr.bf16.mxu1 %v18284_v34 }
 0xbde   : > { %16008 = vmatmul.mubr.bf16.gmra.mxu1 %v17171_v63  ;;  %v17184_v63 = vld [vmem:[%s21891_s1 + $0x1a0] sm:$0xff]  }
 0xbdf   : > { %16042 = vmatpush3.bf16.msra.mxu1 %v18284_v34  ;;  %16045 = vmatprep.mubr.bf16.mxu1 %v17172_v16  ;;  %v17185_v16 = vld [vmem:[%s21891_s1 + $0x1a8] sm:$0xff]  }
 0xbe0   : > { %16043 = vmatprep.subr.bf16.mxu1 %v21893_v53 }
 0xbe3   : > { %16044 = vmatpush3.bf16.msra.mxu1 %v21893_v53 }
 0xbe4   : > { %16079 = vmatprep.subr.bf16.mxu1 %v18487_v36 }
 0xbe6   : > { %16046 = vmatmul.mubr.bf16.vlgmr.msra.gmra.mxu1 %v17173_v28  ;;  %v17186_v28 = vld [vmem:[%s21891_s1 + $0x1b0] sm:$0xff]  }
 0xbe7   : > { %16080 = vmatpush3.bf16.msra.mxu1 %v18487_v36  ;;  %16049 = vmatprep.mubr.bf16.mxu1 %v17174_v46  ;;  %v17187_v46 = vld [vmem:[%s21891_s1 + $0x1b8] sm:$0xff]  }
 0xbe8   : > { %16081 = vmatprep.subr.bf16.mxu1 %v18443_v23 }
 0xbeb   : > { %16082 = vmatpush3.bf16.msra.mxu1 %v18443_v23 }
 0xbec   : > { %16083 = vmatprep.subr.bf16.mxu1 %v18417_v61 }
 0xbee   : > { %16050 = vmatmul.mubr.bf16.gmra.mxu1 %v17175_v18  ;;  %v17188_v18 = vld [vmem:[%s21891_s1 + $0x1c0] sm:$0xff]  }
 0xbef   : > { %16084 = vmatpush3.bf16.msra.mxu1 %v18417_v61  ;;  %16053 = vmatprep.mubr.bf16.mxu1 %v17176_v21  ;;  %v17189_v21 = vld [vmem:[%s21891_s1 + $0x1c8] sm:$0xff]  }
 0xbf0   : > { %16085 = vmatprep.subr.bf16.mxu1 %v18375_v35 }
 0xbf3   : > { %16086 = vmatpush3.bf16.msra.mxu1 %v18375_v35 }
 0xbf4   : > { %16087 = vmatprep.subr.bf16.mxu1 %v18335_v57 }
 0xbf6   : > { %16054 = vmatmul.mubr.bf16.gmra.mxu1 %v17177_v25  ;;  %v17190_v25 = vld [vmem:[%s21891_s1 + $0x1d0] sm:$0xff]  }
 0xbf7   : > { %16088 = vmatpush3.bf16.msra.mxu1 %v18335_v57  ;;  %16057 = vmatprep.mubr.bf16.mxu1 %v17178_v10 }
 0xbf8   : > { %16089 = vmatprep.subr.bf16.mxu1 %v18308_v17 }
 0xbfb   : > { %16090 = vmatpush3.bf16.msra.mxu1 %v18308_v17 }
 0xbfc   : > { %16091 = vmatprep.subr.bf16.mxu1 %v18284_v34 }
 0xbfe   : > { %16058 = vmatmul.mubr.bf16.gmra.mxu1 %v17179_v55 }
 0xbff   : > { %16092 = vmatpush3.bf16.msra.mxu1 %v18284_v34  ;;  %16095 = vmatprep.mubr.bf16.mxu1 %v17180_v56 }
 0xc00   : > { %16093 = vmatprep.subr.bf16.mxu1 %v21893_v53 }
 0xc03   : > { %16094 = vmatpush3.bf16.msra.mxu1 %v21893_v53 }
 0xc04   : > { %16129 = vmatprep.subr.bf16.mxu1 %v18487_v36 }
 0xc06   : > { %16096 = vmatmul.mubr.bf16.vlgmr.msra.gmra.mxu1 %v17181_v1  ;;  %v17191_v1 = vld [vmem:[%s21891_s1 + $0x1d8] sm:$0xff]  }
 0xc07   : > { %16130 = vmatpush3.bf16.msra.mxu1 %v18487_v36  ;;  %16099 = vmatprep.mubr.bf16.mxu1 %v17182_v4  ;;  %v17192_v4 = vld [vmem:[%s21891_s1 + $0x1e0] sm:$0xff]  }
 0xc08   : > { %16131 = vmatprep.subr.bf16.mxu1 %v18443_v23 }
 0xc0b   : > { %16132 = vmatpush3.bf16.msra.mxu1 %v18443_v23 }
 0xc0c   : > { %16133 = vmatprep.subr.bf16.mxu1 %v18417_v61 }
 0xc0e   : > { %16100 = vmatmul.mubr.bf16.gmra.mxu1 %v17183_v8 }
 0xc0f   : > { %16134 = vmatpush3.bf16.msra.mxu1 %v18417_v61  ;;  %16103 = vmatprep.mubr.bf16.mxu1 %v17184_v63 }
 0xc10   : > { %16135 = vmatprep.subr.bf16.mxu1 %v18375_v35 }
 0xc13   : > { %16136 = vmatpush3.bf16.msra.mxu1 %v18375_v35 }
 0xc14   : > { %16137 = vmatprep.subr.bf16.mxu1 %v18335_v57 }
 0xc16   : > { %16104 = vmatmul.mubr.bf16.gmra.mxu1 %v17185_v16 }
 0xc17   : > { %16138 = vmatpush3.bf16.msra.mxu1 %v18335_v57  ;;  %16107 = vmatprep.mubr.bf16.mxu1 %v17186_v28  ;;  %v17194_v28 = vld [vmem:[%s21891_s1 + $0x1f0] sm:$0xff]  }
 0xc18   : > { %16139 = vmatprep.subr.bf16.mxu1 %v18308_v17 }
 0xc1b   : > { %16140 = vmatpush3.bf16.msra.mxu1 %v18308_v17 }
 0xc1c   : > { %16141 = vmatprep.subr.bf16.mxu1 %v18284_v34 }
 0xc1e   : > { %16108 = vmatmul.mubr.bf16.gmra.mxu1 %v17187_v46 }
 0xc1f   : > { %16142 = vmatpush3.bf16.msra.mxu1 %v18284_v34  ;;  %16145 = vmatprep.mubr.bf16.mxu1 %v17188_v18 }
 0xc20   : > { %16143 = vmatprep.subr.bf16.mxu1 %v21893_v53 }
 0xc23   : > { %16144 = vmatpush3.bf16.msra.mxu1 %v21893_v53 }
 0xc24   : > { %16179 = vmatprep.subr.bf16.mxu1 %v18487_v36 }
 0xc26   : > { %v19707_v10 = vpop.f32.mrf.mxu1  ;;  %16146 = vmatmul.mubr.bf16.vlgmr.msra.gmra.mxu1 %v17189_v21 }
 0xc27   : > { %16180 = vmatpush3.bf16.msra.mxu1 %v18487_v36  ;;  %16149 = vmatprep.mubr.bf16.mxu1 %v17190_v25  ;;  %v17196_v25 = vld [vmem:[%s21891_s1 + $0x200] sm:$0xff]  }
 0xc28   : > { %16181 = vmatprep.subr.bf16.mxu1 %v18443_v23  ;;  %v19711_v55 = vpop.f32.mrf.mxu1 }
 0xc2a   : > { %v19713_v56 = vpop.f32.mrf.mxu1 }
 0xc2b   : > { %16182 = vmatpush3.bf16.msra.mxu1 %v18443_v23  ;;  %v17193_v23 = vld [vmem:[%s21891_s1 + $0x1e8] sm:$0xff]  }
 0xc2c   : > { %16183 = vmatprep.subr.bf16.mxu1 %v18417_v61  ;;  %v19719_v8 = vpop.f32.mrf.mxu1 }
 0xc2e   : > { %v19721_v63 = vpop.f32.mrf.mxu1  ;;  %16150 = vmatmul.mubr.bf16.gmra.mxu1 %v17191_v1 }
 0xc2f   : > { %16184 = vmatpush3.bf16.msra.mxu1 %v18417_v61  ;;  %16153 = vmatprep.mubr.bf16.mxu1 %v17192_v4 }
 0xc30   : > { %16185 = vmatprep.subr.bf16.mxu1 %v18375_v35  ;;  %v19725_v36 = vpop.f32.mrf.mxu1 }
 0xc32   : > { %v19727_v16 = vpop.f32.mrf.mxu1 }
 0xc33   : > { %16186 = vmatpush3.bf16.msra.mxu1 %v18375_v35  ;;  %v17195_v35 = vld [vmem:[%s21891_s1 + $0x1f8] sm:$0xff]  }
 0xc34   : > { %16187 = vmatprep.subr.bf16.mxu1 %v18335_v57  ;;  %v19733_v46 = vpop.f32.mrf.mxu1 }
 0xc36   : > { %v19735_v18 = vpop.f32.mrf.mxu1  ;;  %16154 = vmatmul.mubr.bf16.gmra.mxu1 %v17193_v23 }
 0xc37   : > { %16188 = vmatpush3.bf16.msra.mxu1 %v18335_v57  ;;  %16157 = vmatprep.mubr.bf16.mxu1 %v17194_v28  ;;  %v17197_v28 = vld [vmem:[%s21891_s1 + $0x208] sm:$0xff]  }
 0xc38   : > { %16189 = vmatprep.subr.bf16.mxu1 %v18308_v17  ;;  %v19739_v61 = vpop.f32.mrf.mxu1 }
 0xc3a   : > { %v19741_v21 = vpop.f32.mrf.mxu1 }
 0xc3b   : > { %16190 = vmatpush3.bf16.msra.mxu1 %v18308_v17  ;;  %v17199_v17 = vld [vmem:[%s21891_s1 + $0x210] sm:$0xff]  }
 0xc3c   : > { %16191 = vmatprep.subr.bf16.mxu1 %v18284_v34  ;;  %v19747_v1 = vpop.f32.mrf.mxu1 }
 0xc3e   : > { %v19749_v4 = vpop.f32.mrf.mxu1  ;;  %16158 = vmatmul.mubr.bf16.gmra.mxu1 %v17195_v35 }
 0xc3f   : > { %16192 = vmatpush3.bf16.msra.mxu1 %v18284_v34  ;;  %16195 = vmatprep.mubr.bf16.mxu1 %v17196_v25  ;;  %v21927_v34 = vld [vmem:[#allocation26_spill] sm:$0xff] }
 0xc40   : > { %16193 = vmatprep.subr.bf16.mxu1 %v21893_v53  ;;  %v19753_v57 = vpop.f32.mrf.mxu1 }
 0xc42   : > { %v19755_v23 = vpop.f32.mrf.mxu1 }
 0xc43   : > { %16194 = vmatpush3.bf16.msra.mxu1 %v21893_v53 }
 0xc44   : > { %v19760_v7 = vpop.f32.mrf.mxu1  ;;  %15333 = vmatprep.subr.bf16.mxu1 %v21926_v15 }
 0xc46   : > { %v15897_v35 = vpop.f32.mrf.mxu1  ;;  %16196 = vmatmul.mubr.bf16.vlgmr.msra.gmra.mxu1 %v17197_v28  ;;  %v17208_v28 = vld [vmem:[%s21892_s5 + $0x20] sm:$0xff]  }
 0xc47   : > { %15334 = vmatpush3.bf16.msra.mxu1 %v21927_v34  ;;  %16199 = vmatprep.mubr.bf16.mxu1 %v17199_v17  ;;  %v21931_v17 = vld [vmem:[#allocation30_spill] sm:$0xff]  ;;  %v21932_v34 = vld [vmem:[#allocation31_spill] sm:$0xff] }
 0xc48   : > { %v8647_v25 = vpop.f32.mrf.mxu1  ;;  %15335 = vmatprep.subr.bf16.mxu1 %v21928_v54 }
 0xc4a   : > { %v15898_v51 = vpop.f32.mrf.mxu1 }
 0xc4b   : > { %15336 = vmatpush3.bf16.msra.mxu1 %v21929_v45  ;;  %v8714_v15 = vpack.c.bf16 %v15898_v51, %v15897_v35  ;;  %v17202_v45 = vld [vmem:[%s21891_s1 + $0x228] sm:$0xff]   ;;  %v21933_v51 = vld [vmem:[#allocation32_spill] sm:$0xff] }
 0xc4c   : > { %v8650_v53 = vpop.f32.mrf.mxu1  ;;  %15337 = vmatprep.subr.bf16.mxu1 %v21930_v24  ;;  %v21935_v35 = vld [vmem:[#allocation33_spill] sm:$0xff] }
 0xc4d   : > { %v8713_v39 = vpack.c.bf16 %v8650_v53, %v8647_v25  ;;  %v17203_v25 = vld [vmem:[%s21891_s1 + $0x230] sm:$0xff]  }
 0xc4e   : > { %v15901_v13 = vpop.f32.mrf.mxu1  ;;  %16200 = vmatmul.mubr.bf16.gmra.mxu1 %v17200_v31 }
 0xc4f   : > { %15913 = vmatprep.mubr.msk.bf16.mxu0 %vm2321_vm2, %v8713_v39  ;;  %15338 = vmatpush3.bf16.msra.mxu1 %v21931_v17 }
 0xc50   : > { %v8663_v54 = vpop.f32.mrf.mxu1  ;;  %15914 = vmatmul.mubr.msk.bf16.vlgmr.msra.gmra.mxu0 %vm2321_vm2, %v8714_v15  ;;  %15339 = vmatprep.subr.bf16.mxu1 %v21932_v34  ;;  %v21937_v15 = vld [vmem:[#allocation35_spill] sm:$0xff] }
 0xc51   : > { %16203 = vmatprep.mubr.bf16.mxu1 %v17201_v44  ;;  %15962 = vmatpush3.bf16.msra.mxu0 %v19661_v62  ;;  %v21936_v44 = vld [vmem:[#allocation34_spill] sm:$0xff] }
 0xc52   : > { %v15902_v24 = vpop.f32.mrf.mxu1  ;;  %16011 = vmatprep.subr.bf16.mxu0 %v17208_v28 }
 0xc53   : > { %15340 = vmatpush3.bf16.msra.mxu1 %v21933_v51  ;;  %v8716_v53 = vpack.c.bf16 %v15902_v24, %v15901_v13  ;;  %v14828_v24 = vcombine.high %v10872_v19, %v10872_v19 }
 0xc54   : > { %v8666_v31 = vpop.f32.mrf.mxu1  ;;  %15341 = vmatprep.subr.bf16.mxu1 %v21935_v35 }
 0xc55   : > { %v8715_v39 = vpack.c.bf16 %v8666_v31, %v8663_v54  ;;  %v21939_v31 = vld [vmem:[#allocation37_spill] sm:$0xff] }
 0xc56   : > { %v15905_v17 = vpop.f32.mrf.mxu1  ;;  %16204 = vmatmul.mubr.bf16.gmra.mxu1 %v17202_v45 }
 0xc57   : > { %15917 = vmatprep.mubr.msk.bf16.mxu0 %vm2321_vm2, %v8715_v39  ;;  %15342 = vmatpush3.bf16.msra.mxu1 %v21936_v44  ;;  %v21940_v39 = vld [vmem:[#allocation38_spill] sm:$0xff] }
 0xc58   : > { %v8679_v62 = vpop.f32.mrf.mxu1  ;;  %15918 = vmatmul.mubr.msk.bf16.gmra.mxu0 %vm2321_vm2, %v8716_v53  ;;  %15343 = vmatprep.subr.bf16.mxu1 %v21937_v15 }
 0xc59   : > { %16207 = vmatprep.mubr.bf16.mxu1 %v17203_v25  ;;  %v21941_v25 = vld [vmem:[#allocation39_spill] sm:$0xff] }
 0xc5a   : > { %v15906_v34 = vpop.f32.mrf.mxu1 }
 0xc5b   : > { %15344 = vmatpush3.bf16.msra.mxu1 %v21938_v40  ;;  %v8718_v45 = vpack.c.bf16 %v15906_v34, %v15905_v17 }
 0xc5c   : > { %v8682_v54 = vpop.f32.mrf.mxu1  ;;  %15345 = vmatprep.subr.bf16.mxu1 %v21939_v31 }
 0xc5d   : > { %v8717_v13 = vpack.c.bf16 %v8682_v54, %v8679_v62 }
 0xc5e   : > { %v15909_v35 = vpop.f32.mrf.mxu1  ;;  %16208 = vmatmul.mubr.bf16.gmra.mxu1 %v17204_v60 }
 0xc5f   : > { %15921 = vmatprep.mubr.msk.bf16.mxu0 %vm2321_vm2, %v8717_v13  ;;  %15346 = vmatpush3.bf16.msra.mxu1 %v21940_v39 }
 0xc60   : > { %v8695_v53 = vpop.f32.mrf.mxu1  ;;  %15922 = vmatmul.mubr.msk.bf16.gmra.mxu0 %vm2321_vm2, %v8718_v45  ;;  %15347 = vmatprep.subr.bf16.mxu1 %v21941_v25 }
 0xc61   : > { %10922 = vmatprep.mubr.bf16.mxu1 %v14828_v24 }
 0xc62   : > { %v15910_v15 = vpop.f32.mrf.mxu1 }
 0xc63   : > { %15348 = vmatpush3.bf16.msra.mxu1 %v21942_v37  ;;  %v8720_v17 = vpack.c.bf16 %v15910_v15, %v15909_v35 }
 0xc64   : > { %v8698_v62 = vpop.f32.mrf.mxu1  ;;  %16229 = vmatprep.subr.bf16.mxu1 %v17496_v11 }
 0xc65   : > { %v8719_v54 = vpack.c.bf16 %v8698_v62, %v8695_v53 }
 0xc66   : > { %v15947_v34 = vpop.f32.mrf.mxu1  ;;  %10923 = vmatmul.mubr.bf16.vlgmr.msra.gmra.mxu1 %v14827_v6 }
 0xc67   : > { %15925 = vmatprep.mubr.msk.bf16.mxu0 %vm2321_vm2, %v8719_v54  ;;  %16231 = vmatprep.mubr.msk.bf16.mxu1 %vm17497_vm4, %v17496_v11 }
 0xc68   : > { %15926 = vmatmul.mubr.msk.bf16.gmra.mxu0 %vm2321_vm2, %v8720_v17  ;;  %v8963_v60 = vpop.f32.mrf.mxu1 }
 0xc6a   : > { %v15948_v13 = vpop.f32.mrf.mxu1 }
 0xc6b   : > { %v9030_v0 = vpack.c.bf16 %v15948_v13, %v15947_v34 }
 0xc6c   : > { %v8966_v45 = vpop.f32.mrf.mxu1 }
 0xc6d   : > { %v9029_v26 = vpack.c.bf16 %v8966_v45, %v8963_v60 }
 0xc6e   : > { %v15951_v24 = vpop.f32.mrf.mxu1 }
 0xc6f   : > { %15963 = vmatprep.mubr.msk.bf16.mxu0 %vm2321_vm2, %v9029_v26 }
 0xc70   : > { %v8979_v19 = vpop.f32.mrf.mxu1  ;;  %15964 = vmatmul.mubr.msk.bf16.vlgmr.msra.gmra.mxu0 %vm2321_vm2, %v9030_v0 }
 0xc71   : > { %16012 = vmatpush3.bf16.msra.mxu0 %v17208_v28 }
 0xc72   : > { %v15952_v35 = vpop.f32.mrf.mxu1  ;;  %16061 = vmatprep.subr.bf16.mxu0 %v17209_v41 }
 0xc73   : > { %v9032_v15 = vpack.c.bf16 %v15952_v35, %v15951_v24 }
 0xc74   : > { %v8982_v6 = vpop.f32.mrf.mxu1 }
 0xc75   : > { %v9031_v53 = vpack.c.bf16 %v8982_v6, %v8979_v19 }
 0xc76   : > { %v15955_v62 = vpop.f32.mrf.mxu1 }
 0xc77   : > { %15967 = vmatprep.mubr.msk.bf16.mxu0 %vm2321_vm2, %v9031_v53 }
 0xc78   : > { %v8995_v54 = vpop.f32.mrf.mxu1  ;;  %15968 = vmatmul.mubr.msk.bf16.gmra.mxu0 %vm2321_vm2, %v9032_v15 }
 0xc7a   : > { %v15956_v17 = vpop.f32.mrf.mxu1 }
 0xc7b   : > { %v9034_v13 = vpack.c.bf16 %v15956_v17, %v15955_v62 }
 0xc7c   : > { %v8998_v34 = vpop.f32.mrf.mxu1 }
 0xc7d   : > { %v9033_v60 = vpack.c.bf16 %v8998_v34, %v8995_v54  ;;  %v17210_v34 = vld [vmem:[%s21892_s5 + $0x30] sm:$0xff]  }
 0xc7e   : > { %v15959_v26 = vpop.f32.mrf.mxu1 }
 0xc7f   : > { %15971 = vmatprep.mubr.msk.bf16.mxu0 %vm2321_vm2, %v9033_v60 }
 0xc80   : > { %v9011_v0 = vpop.f32.mrf.mxu1  ;;  %15972 = vmatmul.mubr.msk.bf16.gmra.mxu0 %vm2321_vm2, %v9034_v13 }
 0xc82   : > { %v15960_v28 = vpop.f32.mrf.mxu1 }
 0xc83   : > { %v9036_v19 = vpack.c.bf16 %v15960_v28, %v15959_v26  ;;  %v19806_v26 = vpop.permute.xlu1 %5834 }
 0xc84   : > { %v9014_v45 = vpop.f32.mrf.mxu1  ;;  %21943 = vst [vmem:[#allocation25_spill] sm:$0xff] %v19806_v26 }
 0xc85   : > { %v9035_v24 = vpack.c.bf16 %v9014_v45, %v9011_v0 }
 0xc86   : > { %v15997_v35 = vpop.f32.mrf.mxu1 }
 0xc87   : > { %15975 = vmatprep.mubr.msk.bf16.mxu0 %vm2321_vm2, %v9035_v24 }
 0xc88   : > { %15976 = vmatmul.mubr.msk.bf16.gmra.mxu0 %vm2321_vm2, %v9036_v19  ;;  %v9279_v6 = vpop.f32.mrf.mxu1 }
 0xc8a   : > { %v15998_v53 = vpop.f32.mrf.mxu1 }
 0xc8b   : > { %v9346_v54 = vpack.c.bf16 %v15998_v53, %v15997_v35  ;;  %v19810_v35 = vpop.permute.xlu1 %5844 }
 0xc8c   : > { %v9282_v15 = vpop.f32.mrf.mxu1  ;;  %21944 = vst [vmem:[#allocation26_spill] sm:$0xff] %v19810_v35 }
 0xc8d   : > { %v9345_v62 = vpack.c.bf16 %v9282_v15, %v9279_v6 }
 0xc8e   : > { %v16001_v17 = vpop.f32.mrf.mxu1 }
 0xc8f   : > { %16013 = vmatprep.mubr.msk.bf16.mxu0 %vm2321_vm2, %v9345_v62 }
 0xc90   : > { %v9295_v60 = vpop.f32.mrf.mxu1  ;;  %16014 = vmatmul.mubr.msk.bf16.vlgmr.msra.gmra.mxu0 %vm2321_vm2, %v9346_v54  ;;  %v19812_v54 = vpop.permute.xlu1 %7904 }
 0xc91   : > { %16062 = vmatpush3.bf16.msra.mxu0 %v17209_v41  ;;  %21945 = vst [vmem:[#allocation27_spill] sm:$0xff] %v19812_v54 }
 0xc92   : > { %v16002_v13 = vpop.f32.mrf.mxu1  ;;  %16111 = vmatprep.subr.bf16.mxu0 %v17210_v34 }
 0xc93   : > { %v9348_v45 = vpack.c.bf16 %v16002_v13, %v16001_v17 }
 0xc94   : > { %v9298_v0 = vpop.f32.mrf.mxu1  ;;  %v19816_v13 = vpop.permute.xlu1 %7914 }
 0xc95   : > { %v9347_v28 = vpack.c.bf16 %v9298_v0, %v9295_v60  ;;  %21946 = vst [vmem:[#allocation28_spill] sm:$0xff] %v19816_v13 }
 0xc96   : > { %v16005_v24 = vpop.f32.mrf.mxu1 }
 0xc97   : > { %16017 = vmatprep.mubr.msk.bf16.mxu0 %vm2321_vm2, %v9347_v28 }
 0xc98   : > { %v9311_v19 = vpop.f32.mrf.mxu1  ;;  %16018 = vmatmul.mubr.msk.bf16.gmra.mxu0 %vm2321_vm2, %v9348_v45 }
 0xc9a   : > { %v16006_v6 = vpop.f32.mrf.mxu1 }
 0xc9b   : > { %v9350_v62 = vpack.c.bf16 %v16006_v6, %v16005_v24  ;;  %v19820_v6 = vpop.permute.xlu1 %7924 }
 0xc9c   : > { %v9314_v53 = vpop.f32.mrf.mxu1  ;;  %21947 = vst [vmem:[#allocation29_spill] sm:$0xff] %v19820_v6 }
 0xc9d   : > { %v9349_v15 = vpack.c.bf16 %v9314_v53, %v9311_v19 }
 0xc9e   : > { %v16009_v41 = vpop.f32.mrf.mxu1 }
 0xc9f   : > { %16021 = vmatprep.mubr.msk.bf16.mxu0 %vm2321_vm2, %v9349_v15  ;;  %v19822_v15 = vpop.permute.xlu0 %5839 }
 0xca0   : > { %v9327_v26 = vpop.f32.mrf.mxu1  ;;  %16022 = vmatmul.mubr.msk.bf16.gmra.mxu0 %vm2321_vm2, %v9350_v62  ;;  %21948 = vst [vmem:[#allocation30_spill] sm:$0xff] %v19822_v15 }
 0xca2   : > { %v16010_v17 = vpop.f32.mrf.mxu1 }
 0xca3   : > { %v9352_v28 = vpack.c.bf16 %v16010_v17, %v16009_v41  ;;  %v19827_v41 = vpop.permute.xlu1 %7934 }
 0xca4   : > { %v9330_v60 = vpop.f32.mrf.mxu1  ;;  %21949 = vst [vmem:[#allocation31_spill] sm:$0xff] %v19827_v41 }
 0xca5   : > { %v9351_v0 = vpack.c.bf16 %v9330_v60, %v9327_v26  ;;  %v19829_v60 = vpop.permute.xlu0 %5849 }
 0xca6   : > { %v16047_v45 = vpop.f32.mrf.mxu1  ;;  %21950 = vst [vmem:[#allocation33_spill] sm:$0xff] %v19829_v60 }
 0xca7   : > { %16025 = vmatprep.mubr.msk.bf16.mxu0 %vm2321_vm2, %v9351_v0 }
 0xca8   : > { %16026 = vmatmul.mubr.msk.bf16.gmra.mxu0 %vm2321_vm2, %v9352_v28  ;;  %v9595_v24 = vpop.f32.mrf.mxu1 }
 0xcaa   : > { %v16048_v19 = vpop.f32.mrf.mxu1 }
 0xcab   : > { %v9662_v35 = vpack.c.bf16 %v16048_v19, %v16047_v45  ;;  %v19835_v19 = vpop.permute.xlu0 %7909 }
 0xcac   : > { %v9598_v53 = vpop.f32.mrf.mxu1  ;;  %21952 = vst [vmem:[#allocation35_spill] sm:$0xff] %v19835_v19 }
 0xcad   : > { %v9661_v62 = vpack.c.bf16 %v9598_v53, %v9595_v24  ;;  %v19831_v24 = vpop.permute.xlu1 %10778 }
 0xcae   : > { %v16051_v54 = vpop.f32.mrf.mxu1  ;;  %21951 = vst [vmem:[#allocation34_spill] sm:$0xff] %v19831_v24 }
 0xcaf   : > { %16063 = vmatprep.mubr.msk.bf16.mxu0 %vm2321_vm2, %v9661_v62  ;;  %v19839_v13 = vpop.permute.xlu0 %7919 }
 0xcb0   : > { %v9611_v26 = vpop.f32.mrf.mxu1  ;;  %16064 = vmatmul.mubr.msk.bf16.vlgmr.msra.gmra.mxu0 %vm2321_vm2, %v9662_v35  ;;  %21954 = vst [vmem:[#allocation38_spill] sm:$0xff] %v19839_v13 }
 0xcb1   : > { %16112 = vmatpush3.bf16.msra.mxu0 %v17210_v34  ;;  %v19837_v34 = vpop.permute.xlu1 %10788 }
 0xcb2   : > { %v16052_v17 = vpop.f32.mrf.mxu1  ;;  %16161 = vmatprep.subr.bf16.mxu0 %v17211_v48  ;;  %21953 = vst [vmem:[#allocation36_spill] sm:$0xff] %v19837_v34 }
 0xcb3   : > { %v9664_v6 = vpack.c.bf16 %v16052_v17, %v16051_v54 }
 0xcb4   : > { %v9614_v0 = vpop.f32.mrf.mxu1 }
 0xcb5   : > { %v9663_v28 = vpack.c.bf16 %v9614_v0, %v9611_v26  ;;  %v19843_v17 = vpop.permute.xlu1 %10798  ;;  %v19845_v0 = vpop.permute.xlu0 %7929 }
 0xcb6   : > { %v16055_v15 = vpop.f32.mrf.mxu1  ;;  %21956 = vst [vmem:[#allocation40_spill] sm:$0xff] %v19843_v17  ;;  %21957 = vst [vmem:[#allocation111_spill] sm:$0xff] %v19845_v0 }
 0xcb7   : > { %16067 = vmatprep.mubr.msk.bf16.mxu0 %vm2321_vm2, %v9663_v28 }
 0xcb8   : > { %v9627_v45 = vpop.f32.mrf.mxu1  ;;  %16068 = vmatmul.mubr.msk.bf16.gmra.mxu0 %vm2321_vm2, %v9664_v6 }
 0xcba   : > { %v16056_v35 = vpop.f32.mrf.mxu1 }
 0xcbb   : > { %v9666_v41 = vpack.c.bf16 %v16056_v35, %v16055_v15  ;;  %v19849_v35 = vpop.permute.xlu1 %10808 }
 0xcbc   : > { %v9630_v53 = vpop.f32.mrf.mxu1  ;;  %21958 = vst [vmem:[#allocation112_spill] sm:$0xff] %v19849_v35 }
 0xcbd   : > { %v9665_v62 = vpack.c.bf16 %v9630_v53, %v9627_v45 }
 0xcbe   : > { %v16059_v60 = vpop.f32.mrf.mxu1 }
 0xcbf   : > { %16071 = vmatprep.mubr.msk.bf16.mxu0 %vm2321_vm2, %v9665_v62  ;;  %v19851_v62 = vpop.permute.xlu0 %7939 }
 0xcc0   : > { %v9643_v54 = vpop.f32.mrf.mxu1  ;;  %16072 = vmatmul.mubr.msk.bf16.gmra.mxu0 %vm2321_vm2, %v9666_v41  ;;  %21959 = vst [vmem:[#allocation113_spill] sm:$0xff] %v19851_v62  ;;  %v17213_v41 = vld [vmem:[%s21955_s0] sm:$0xff]   ;;  %v19863_v62 = vpop.f32.mrf.mxu0  ;;  %s22040_s0 = sld [smem:[#allocation21_spill]] }
 0xcc1   : > { %16230 = vmatpush3.bf16.msra.mxu1 %v17213_v41  ;;  %v8494_v29 = vadd.f32 %v19863_v62, %v19707_v10 }
 0xcc2   : > { %v16060_v26 = vpop.f32.mrf.mxu1  ;;  %v19868_v41 = vpop.f32.mrf.mxu0 }
 0xcc3   : > { %v9668_v19 = vpack.c.bf16 %v16060_v26, %v16059_v60  ;;  %v19855_v26 = vld [vmem:[%s21892_s5 + $0x40] sm:$0xff]  }
 0xcc4   : > { %v9646_v6 = vpop.f32.mrf.mxu1 }
 0xcc5   : > { %v9667_v28 = vpack.c.bf16 %v9646_v6, %v9643_v54  ;;  %v19857_v6 = vpop.permute.xlu1 %10818 }
 0xcc6   : > { %v16097_v45 = vpop.f32.mrf.mxu1  ;;  %21960 = vst [vmem:[#allocation114_spill] sm:$0xff] %v19857_v6 }
 0xcc7   : > { %16075 = vmatprep.mubr.msk.bf16.mxu0 %vm2321_vm2, %v9667_v28  ;;  %v19861_v28 = vpop.permute.xlu0 %10783 }
 0xcc8   : > { %16076 = vmatmul.mubr.msk.bf16.gmra.mxu0 %vm2321_vm2, %v9668_v19  ;;  %v9911_v15 = vpop.f32.mrf.mxu1  ;;  %21961 = vst [vmem:[#allocation115_spill] sm:$0xff] %v19861_v28 }
 0xcca   : > { %v16098_v53 = vpop.f32.mrf.mxu1 }
 0xccb   : > { %v9978_v54 = vpack.c.bf16 %v16098_v53, %v16097_v45  ;;  %v19870_v11 = vpop.permute.xlu0 %10793 }
 0xccc   : > { %v9914_v13 = vpop.f32.mrf.mxu1  ;;  %21963 = vst [vmem:[#allocation117_spill] sm:$0xff] %v19870_v11 }
 0xccd   : > { %v9977_v2 = vpack.c.bf16 %v9914_v13, %v9911_v15  ;;  %v19866_v15 = vpop.permute.xlu1 %10828 }
 0xcce   : > { %v16101_v60 = vpop.f32.mrf.mxu1  ;;  %21962 = vst [vmem:[#allocation116_spill] sm:$0xff] %v19866_v15 }
 0xccf   : > { %16113 = vmatprep.mubr.msk.bf16.mxu0 %vm2321_vm2, %v9977_v2  ;;  %v19878_v43 = vpop.permute.xlu0 %10803 }
 0xcd0   : > { %v9927_v19 = vpop.f32.mrf.mxu1  ;;  %16114 = vmatmul.mubr.msk.bf16.vlgmr.msra.gmra.mxu0 %vm2321_vm2, %v9978_v54  ;;  %21965 = vst [vmem:[#allocation119_spill] sm:$0xff] %v19878_v43 }
 0xcd1   : > { %16162 = vmatpush3.bf16.msra.mxu0 %v17211_v48  ;;  %v19874_v48 = vpop.f32.mrf.mxu0  ;;  %v19876_v52 = vpop.permute.xlu1 %10838 }
 0xcd2   : > { %v16102_v13 = vpop.f32.mrf.mxu1  ;;  %16211 = vmatprep.subr.bf16.mxu0 %v19855_v26  ;;  %21964 = vst [vmem:[#allocation118_spill] sm:$0xff] %v19876_v52 }
 0xcd3   : > { %v9980_v2 = vpack.c.bf16 %v16102_v13, %v16101_v60  ;;  %v19888_v15 = vpop.permute.xlu0 %10813 }
 0xcd4   : > { %v9930_v45 = vpop.f32.mrf.mxu1  ;;  %21967 = vst [vmem:[#allocation121_spill] sm:$0xff] %v19888_v15 }
 0xcd5   : > { %v9979_v53 = vpack.c.bf16 %v9930_v45, %v9927_v19  ;;  %v19880_v45 = vpop.f32.mrf.mxu0 }
 0xcd6   : > { %v16105_v0 = vpop.f32.mrf.mxu1 }
 0xcd7   : > { %16117 = vmatprep.mubr.msk.bf16.mxu0 %vm2321_vm2, %v9979_v53  ;;  %v19884_v53 = vpop.permute.xlu1 %10848 }
 0xcd8   : > { %v9943_v54 = vpop.f32.mrf.mxu1  ;;  %16118 = vmatmul.mubr.msk.bf16.gmra.mxu0 %vm2321_vm2, %v9980_v2  ;;  %21966 = vst [vmem:[#allocation120_spill] sm:$0xff] %v19884_v53  ;;  %v19886_v2 = vpop.f32.mrf.mxu0 }
 0xcda   : > { %v16106_v47 = vpop.f32.mrf.mxu1 }
 0xcdb   : > { %v9982_v60 = vpack.c.bf16 %v16106_v47, %v16105_v0  ;;  %v19890_v17 = vpop.permute.xlu1 %16293 }
 0xcdc   : > { %v9946_v33 = vpop.f32.mrf.mxu1  ;;  %21968 = vst [vmem:[#allocation122_spill] sm:$0xff] %v19890_v17 }
 0xcdd   : > { %v9981_v19 = vpack.c.bf16 %v9946_v33, %v9943_v54  ;;  %v19892_v54 = vpop.f32.mrf.mxu0 }
 0xcde   : > { %v16109_v13 = vpop.f32.mrf.mxu1 }
 0xcdf   : > { %16121 = vmatprep.mubr.msk.bf16.mxu0 %vm2321_vm2, %v9981_v19  ;;  %v16299_v53 = vpop.permute.xlu1 %16298  ;;  %v19898_v43 = vpop.f32.mrf.mxu0 }
 0xce0   : > { %v9959_v50 = vpop.f32.mrf.mxu1  ;;  %16122 = vmatmul.mubr.msk.bf16.gmra.mxu0 %vm2321_vm2, %v9982_v60  ;;  %v19896_v60 = vpop.permute.xlu0 %10823  ;;  %v16301_v15 = vunpack.i.h.bf16 %v16299_v53  ;;  %v16300_v28 = vunpack.i.l.bf16 %v16299_v53 }
 0xce1   : > { %21969 = vst [vmem:[#allocation123_spill] sm:$0xff] %v19896_v60 }
 0xce2   : > { %v16110_v6 = vpop.f32.mrf.mxu1 }
 0xce3   : > { %v9984_v47 = vpack.c.bf16 %v16110_v6, %v16109_v13  ;;  %v16309_v5 = vpop.permute.xlu1 %16308 }
 0xce4   : > { %v9962_v52 = vpop.f32.mrf.mxu1  ;;  %v19902_v13 = vpop.permute.xlu0 %10833  ;;  %v16311_v14 = vunpack.i.h.bf16 %v16309_v5  ;;  %v16310_v3 = vunpack.i.l.bf16 %v16309_v5 }
 0xce5   : > { %v9983_v33 = vpack.c.bf16 %v9962_v52, %v9959_v50  ;;  %v19900_v50 = vpop.f32.mrf.mxu0  ;;  %21970 = vst [vmem:[#allocation124_spill] sm:$0xff] %v19902_v13 }
 0xce6   : > { %v16147_v0 = vpop.f32.mrf.mxu1  ;;  %v12961_v5 = vpack.c.bf16 %v16311_v14, %v16310_v3 }
 0xce7   : > { %16125 = vmatprep.mubr.msk.bf16.mxu0 %vm2321_vm2, %v9983_v33  ;;  %v19907_v60 = vpop.f32.mrf.mxu0  ;;  %v16319_v12 = vpop.permute.xlu1 %16318 }
 0xce8   : > { %16126 = vmatmul.mubr.msk.bf16.gmra.mxu0 %vm2321_vm2, %v9984_v47  ;;  %v10227_v19 = vpop.f32.mrf.mxu1  ;;  %v12962_v47 = vpack.c.bf16 %v16301_v15, %v16300_v28  ;;  %v16321_v58 = vunpack.i.h.bf16 %v16319_v12 }
 0xcea   : > { %v16148_v35 = vpop.f32.mrf.mxu1 }
 0xceb   : > { %v10294_v52 = vpack.c.bf16 %v16148_v35, %v16147_v0  ;;  %v19911_v35 = vpop.f32.mrf.mxu0 }
 0xcec   : > { %v10230_v11 = vpop.f32.mrf.mxu1 }
 0xced   : > { %v10293_v17 = vpack.c.bf16 %v10230_v11, %v10227_v19  ;;  %v19909_v11 = vpop.permute.xlu0 %10843  ;;  %v19915_v28 = vpop.f32.mrf.mxu0 }
 0xcee   : > { %v16151_v6 = vpop.f32.mrf.mxu1  ;;  %21971 = vst [vmem:[#allocation125_spill] sm:$0xff] %v19909_v11 }
 0xcef   : > { %16163 = vmatprep.mubr.msk.bf16.mxu0 %vm2321_vm2, %v10293_v17  ;;  %v19919_v34 = vpop.f32.mrf.mxu0 }
 0xcf0   : > { %v10243_v33 = vpop.f32.mrf.mxu1  ;;  %16164 = vmatmul.mubr.msk.bf16.vlgmr.msra.gmra.mxu0 %vm2321_vm2, %v10294_v52 }
 0xcf1   : > { %16212 = vmatpush3.bf16.msra.mxu0 %v19855_v26  ;;  %v19917_v15 = vpop.permute.xlu0 %10853 }
 0xcf2   : > { %15357 = vmatprep.subr.bf16.mxu0 %v12962_v47  ;;  %v16152_v53 = vpop.f32.mrf.mxu1  ;;  %21972 = vst [vmem:[#allocation126_spill] sm:$0xff] %v19917_v15 }
 0xcf3   : > { %v10296_v0 = vpack.c.bf16 %v16152_v53, %v16151_v6  ;;  %v19925_v53 = vpop.f32.mrf.mxu0 }
 0xcf4   : > { %v10246_v24 = vpop.f32.mrf.mxu1 }
 0xcf5   : > { %v10295_v19 = vpack.c.bf16 %v10246_v24, %v10243_v33  ;;  %v19921_v33 = vpop.permute.xlu0 %16288  ;;  %v19927_v49 = vpop.f32.mrf.mxu0 }
 0xcf6   : > { %v16155_v13 = vpop.f32.mrf.mxu1  ;;  %21973 = vst [vmem:[#allocation127_spill] sm:$0xff] %v19921_v33 }
 0xcf7   : > { %16167 = vmatprep.mubr.msk.bf16.mxu0 %vm2321_vm2, %v10295_v19 }
 0xcf8   : > { %v10259_v17 = vpop.f32.mrf.mxu1  ;;  %16168 = vmatmul.mubr.msk.bf16.gmra.mxu0 %vm2321_vm2, %v10296_v0 }
 0xcf9   : > { %v16304_v0 = vpop.permute.xlu0 %16303 }
 0xcfa   : > { %v16156_v26 = vpop.f32.mrf.mxu1  ;;  %v16306_v33 = vunpack.i.h.bf16 %v16304_v0  ;;  %v16305_v38 = vunpack.i.l.bf16 %v16304_v0  ;;  %v16320_v0 = vunpack.i.l.bf16 %v16319_v12  ;;  %v8497_v12 = vadd.f32 %v19874_v48, %v19713_v56 }
 0xcfb   : > { %v10298_v11 = vpack.c.bf16 %v16156_v26, %v16155_v13  ;;  %v8510_v56 = vadd.f32 %v19886_v2, %v19721_v63 }
 0xcfc   : > { %v10262_v52 = vpop.f32.mrf.mxu1  ;;  %v12954_v25 = vpack.c.bf16 %v16306_v33, %v16305_v38  ;;  %v12960_v27 = vpack.c.bf16 %v16321_v58, %v16320_v0  ;;  %v8502_v58 = vadd.f32 %v19892_v54, %v19725_v36  ;;  %v8513_v0 = vadd.f32 %v19898_v43, %v19727_v16 }
 0xcfd   : > { %v10297_v47 = vpack.c.bf16 %v10262_v52, %v10259_v17  ;;  %v16314_v26 = vpop.permute.xlu0 %16313  ;;  %v8526_v36 = vadd.f32 %v19907_v60, %v19735_v18  ;;  %v8518_v43 = vadd.f32 %v19911_v35, %v19739_v61  ;;  %v8521_v18 = vadd.f32 %v19919_v34, %v19747_v1 }
 0xcfe   : > { %v16159_v24 = vpop.f32.mrf.mxu1  ;;  %v16315_v9 = vunpack.i.l.bf16 %v16314_v26  ;;  %v8542_v61 = vadd.f32 %v19925_v53, %v19749_v4 }
 0xcff   : > { %16171 = vmatprep.mubr.msk.bf16.mxu0 %vm2321_vm2, %v10297_v47  ;;  %v19931_v47 = vpop.f32.mrf.mxu0 }
 0xd00   : > { %v10275_v6 = vpop.f32.mrf.mxu1  ;;  %16172 = vmatmul.mubr.msk.bf16.gmra.mxu0 %vm2321_vm2, %v10298_v11 }
 0xd02   : > { %v16160_v19 = vpop.f32.mrf.mxu1 }
 0xd03   : > { %v10300_v17 = vpack.c.bf16 %v16160_v19, %v16159_v24  ;;  %v19933_v24 = vpop.f32.mrf.mxu0 }
 0xd04   : > { %v10278_v32 = vpop.f32.mrf.mxu1 }
 0xd05   : > { %v10299_v15 = vpack.c.bf16 %v10278_v32, %v10275_v6  ;;  %v16316_v6 = vunpack.i.h.bf16 %v16314_v26 }
 0xd06   : > { %v16197_v52 = vpop.f32.mrf.mxu1 }
 0xd07   : > { %16175 = vmatprep.mubr.msk.bf16.mxu0 %vm2321_vm2, %v10299_v15  ;;  %v12953_v38 = vpack.c.bf16 %v16316_v6, %v16315_v9 }
 0xd08   : > { %16176 = vmatmul.mubr.msk.bf16.gmra.mxu0 %vm2321_vm2, %v10300_v17  ;;  %v10543_v13 = vpop.f32.mrf.mxu1  ;;  %v16324_v17 = vpop.permute.xlu0 %16323 }
 0xd09   : > { %v16326_v62 = vunpack.i.h.bf16 %v16324_v17  ;;  %v16325_v26 = vunpack.i.l.bf16 %v16324_v17 }
 0xd0a   : > { %v16198_v11 = vpop.f32.mrf.mxu1 }
 0xd0b   : > { %v10610_v19 = vpack.c.bf16 %v16198_v11, %v16197_v52 }
 0xd0c   : > { %v10546_v31 = vpop.f32.mrf.mxu1 }
 0xd0d   : > { %v10609_v32 = vpack.c.bf16 %v10546_v31, %v10543_v13  ;;  %v16329_v31 = vpop.permute.xlu1 %16328  ;;  %v8486_v13 = vadd.f32 %v19868_v41, %v19711_v55  ;;  %v12952_v41 = vpack.c.bf16 %v16326_v62, %v16325_v26 }
 0xd0e   : > { %v16201_v15 = vpop.f32.mrf.mxu1  ;;  %v16330_v3 = vunpack.i.l.bf16 %v16329_v31 }
 0xd0f   : > { %16213 = vmatprep.mubr.msk.bf16.mxu0 %vm2321_vm2, %v10609_v32  ;;  %v16331_v32 = vunpack.i.h.bf16 %v16329_v31 }
 0xd10   : > { %v15915_v42 = vpop.f32.mrf.mxu0  ;;  %v10559_v51 = vpop.f32.mrf.mxu1  ;;  %16214 = vmatmul.mubr.msk.bf16.vlgmr.msra.gmra.mxu0 %vm2321_vm2, %v10610_v19 }
 0xd11   : > { %v19941_v52 = vadd.f32 %v15915_v42, %v8494_v29  ;;  %15358 = vmatpush3.bf16.msra.mxu0 %v12954_v25  ;;  %v12959_v48 = vpack.c.bf16 %v16331_v32, %v16330_v3  ;;  %v8529_v32 = vadd.f32 %v19915_v28, %v19741_v21  ;;  %v8534_v28 = vadd.f32 %v19927_v49, %v19753_v57 }
 0xd12   : > { %15359 = vmatprep.subr.bf16.mxu0 %v12961_v5  ;;  %v8785_v33 = vpop.f32.mrf.mxu0  ;;  %v16202_v10 = vpop.f32.mrf.mxu1 }
 0xd13   : > { %v19945_v11 = vadd.f32 %v8785_v33, %v8486_v13  ;;  %v10612_v29 = vpack.c.bf16 %v16202_v10, %v16201_v15 }
 0xd14   : > { %v15916_v14 = vpop.f32.mrf.mxu0  ;;  %v10562_v19 = vpop.f32.mrf.mxu1 }
 0xd15   : > { %v19947_v55 = vadd.f32 %v15916_v14, %v8497_v12  ;;  %v10611_v42 = vpack.c.bf16 %v10562_v19, %v10559_v51  ;;  %15360 = vmatpush3.bf16.msra.mxu0 %v12953_v38 }
 0xd16   : > { %15361 = vmatprep.subr.bf16.mxu0 %v12960_v27  ;;  %v19949_v9 = vpop.f32.mrf.mxu0  ;;  %v16205_v25 = vpop.f32.mrf.mxu1 }
 0xd17   : > { %16217 = vmatprep.mubr.msk.bf16.mxu0 %vm2321_vm2, %v10611_v42 }
 0xd18   : > { %v15919_v6 = vpop.f32.mrf.mxu0  ;;  %v10575_v17 = vpop.f32.mrf.mxu1  ;;  %16218 = vmatmul.mubr.msk.bf16.gmra.mxu0 %vm2321_vm2, %v10612_v29 }
 0xd19   : > { %v19957_v51 = vadd.f32 %v15919_v6, %v8510_v56  ;;  %15362 = vmatpush3.bf16.msra.mxu0 %v12952_v41 }
 0xd1a   : > { %15363 = vmatprep.subr.bf16.mxu0 %v12959_v48  ;;  %v8801_v27 = vpop.f32.mrf.mxu0  ;;  %v16206_v15 = vpop.f32.mrf.mxu1 }
 0xd1b   : > { %v19961_v63 = vadd.f32 %v8801_v27, %v8502_v58  ;;  %v10614_v38 = vpack.c.bf16 %v16206_v15, %v16205_v25  ;;  %v8537_v15 = vadd.f32 %v19933_v24, %v19760_v7 }
 0xd1c   : > { %v15920_v2 = vpop.f32.mrf.mxu0  ;;  %v10578_v5 = vpop.f32.mrf.mxu1 }
 0xd1d   : > { %v19963_v31 = vadd.f32 %v15920_v2, %v8513_v0  ;;  %v10613_v13 = vpack.c.bf16 %v10578_v5, %v10575_v17  ;;  %v8545_v17 = vadd.f32 %v19931_v47, %v19755_v23  ;;  %v8489_v23 = vadd.f32 %v19880_v45, %v19719_v8 }
 0xd1e   : > { %v8804_v33 = vpop.f32.mrf.mxu0  ;;  %v16209_v10 = vpop.f32.mrf.mxu1  ;;  %v8505_v8 = vadd.f32 %v19900_v50, %v19733_v46  ;;  %v11565_v50 = vld [vmem:[%s17674_s12 + $0x20] sm:$0xff] }
 0xd1f   : > { %16221 = vmatprep.mubr.msk.bf16.mxu0 %vm2321_vm2, %v10613_v13 }
 0xd20   : > { %v15923_v54 = vpop.f32.mrf.mxu0  ;;  %v10591_v62 = vpop.f32.mrf.mxu1  ;;  %16222 = vmatmul.mubr.msk.bf16.gmra.mxu0 %vm2321_vm2, %v10614_v38 }
 0xd21   : > { %v8858_v16 = vadd.f32 %v15923_v54, %v8526_v36 }
 0xd22   : > { %v8817_v26 = vpop.f32.mrf.mxu0  ;;  %v16210_v12 = vpop.f32.mrf.mxu1 }
 0xd23   : > { %v8856_v3 = vadd.f32 %v8817_v26, %v8518_v43  ;;  %v10616_v29 = vpack.c.bf16 %v16210_v12, %v16209_v10  ;;  %v8849_v10 = vadd.f32 %v19949_v9, %v8489_v23 }
 0xd24   : > { %v15924_v14 = vpop.f32.mrf.mxu0  ;;  %v10594_v19 = vpop.f32.mrf.mxu1 }
 0xd25   : > { %v8859_v60 = vadd.f32 %v15924_v14, %v8529_v32  ;;  %v10615_v42 = vpack.c.bf16 %v10594_v19, %v10591_v62  ;;  %v11241_v14 = vlaneseq }
 0xd26   : > { %v8820_v25 = vpop.f32.mrf.mxu0  ;;  %v15349_v41 = vpop.f32.mrf.mxu1 }
 0xd27   : > { %v8857_v35 = vadd.f32 %v8820_v25, %v8521_v18  ;;  %16225 = vmatprep.mubr.msk.bf16.mxu0 %vm2321_vm2, %v10615_v42  ;;  %v11566_v18 = vld [vmem:[%s17674_s12 + $0x28] sm:$0xff]  ;;  %v11242_v42 = vshrl.u32 %v11241_v14, 7 }
 0xd28   : > { %v15927_v56 = vpop.f32.mrf.mxu0  ;;  %16226 = vmatmul.mubr.msk.bf16.gmra.mxu0 %vm2321_vm2, %v10616_v29  ;;  %v15350_v21 = vpop.f32.mrf.mxu1 }
 0xd29   : > { %v8862_v48 = vadd.f32 %v15927_v56, %v8542_v61  ;;  %v15351_v1 = vadd.f32 %v15350_v21, %v15349_v41  ;;  %v11658_v41 = vadd.f32 1e-05, %v11566_v18  ;;  %v11567_v21 = vld [vmem:[%s17674_s12 + $0x30] sm:$0xff] }
 0xd2a   : > { %v8833_v34 = vpop.f32.mrf.mxu0  ;;  %v15352_v6 = vpop.f32.mrf.mxu1 }
 0xd2b   : > { %v10925_v58 = vadd.f32 %v15351_v1, %v18306_v30  ;;  %v8860_v4 = vadd.f32 %v8833_v34, %v8534_v28  ;;  %v11568_v1 = vld [vmem:[%s17674_s12 + $0x38] sm:$0xff]  ;;  %v11659_v6 = vadd.f32 1e-05, %v11567_v21 }
 0xd2c   : > { %v15928_v53 = vpop.f32.mrf.mxu0  ;;  %v15353_v27 = vpop.f32.mrf.mxu1 }
 0xd2d   : > { %v14829_v0 = vmul.f32 -1.442695, %v10925_v58  ;;  %v8863_v2 = vadd.f32 %v15928_v53, %v8545_v17  ;;  %v11569_v58 = vld [vmem:[%s17674_s12 + $0x40] sm:$0xff] }
 0xd2e   : > { %v8836_v5 = vpop.f32.mrf.mxu0 }
 0xd2f   : > { %17287 = vpow2.f32 %v14829_v0  ;;  %v8861_v49 = vadd.f32 %v8836_v5, %v8537_v15  ;;  %v11660_v15 = vadd.f32 1e-05, %v11568_v1  ;;  %v11577_v1 = vld [vmem:[%s17674_s12 + $0x80] sm:$0xff] }
 0xd30   : > { %v15965_v57 = vpop.f32.mrf.mxu0 }
 0xd31   : > { %v19987_v13 = vadd.f32 %v15965_v57, %v19941_v52 }
 0xd32   : > { %v9101_v38 = vpop.f32.mrf.mxu0 }
 0xd33   : > { %v19992_v30 = vadd.f32 %v9101_v38, %v19945_v11  ;;  %v21975_v38 = vunpack.c.l.bf16 %v21942_v37 }
 0xd34   : > { %v15966_v47 = vpop.f32.mrf.mxu0 }
 0xd35   : > { %v19996_v7 = vadd.f32 %v15966_v47, %v19947_v55  ;;  %v8853_v55 = vadd.f32 %v8804_v33, %v8505_v8 }
 0xd36   : > { %v9104_v24 = vpop.f32.mrf.mxu0 }
 0xd37   : > { %v19998_v36 = vadd.f32 %v9104_v24, %v8849_v10  ;;  %v21976_v10 = vunpack.c.h.bf16 %v21940_v39 }
 0xd38   : > { %v15969_v54 = vpop.f32.mrf.mxu0 }
 0xd39   : > { %v20001_v52 = vadd.f32 %v15969_v54, %v19957_v51 }
 0xd3a   : > { %v9117_v62 = vpop.f32.mrf.mxu0 }
 0xd3b   : > { %v20006_v45 = vadd.f32 %v9117_v62, %v19961_v63  ;;  %v21977_v62 = vunpack.c.l.bf16 %v21940_v39 }
 0xd3c   : > { %v17288_v11 = vpop.eup %17287  ;;  %v15970_v9 = vpop.f32.mrf.mxu0 }
 0xd3d   : > { %v10933_v43 = vadd.f32 1.0, %v17288_v11  ;;  %v20009_v26 = vadd.f32 %v15970_v9, %v19963_v31  ;;  %v11657_v31 = vadd.f32 1e-05, %v11565_v50 }
 0xd3e   : > { %v9120_v12 = vpop.f32.mrf.mxu0 }
 0xd3f   : > { %17289 = vrcp.f32 %v10933_v43  ;;  %v20011_v51 = vadd.f32 %v9120_v12, %v8853_v55  ;;  %v11841_v43 = vld [vmem:[%s17669_s4 + $0x20] sm:$0xff]  ;;  %v11842_v12 = vld [vmem:[%s17669_s4 + $0x28] sm:$0xff] }
 0xd40   : > { %v15973_v32 = vpop.f32.mrf.mxu0  ;;  %17291 = vrsqrt.f32 %v11657_v31  ;;  %v11933_v31 = vsub.f32 %v18362_v20, %v11841_v43 }
 0xd41   : > { %v20013_v19 = vadd.f32 %v15973_v32, %v8858_v16  ;;  %v20024_v16 = vsub.s32 0, %v11242_v42  ;;  %17293 = vrsqrt.f32 %v11658_v41  ;;  %v21978_v32 = vunpack.c.h.bf16 %v21938_v40 }
 0xd42   : > { %v9133_v46 = vpop.f32.mrf.mxu0  ;;  %17295 = vrsqrt.f32 %v11659_v6 }
 0xd43   : > { %v20016_v63 = vadd.f32 %v9133_v46, %v8856_v3  ;;  %17297 = vrsqrt.f32 %v11660_v15  ;;  %v11844_v15 = vld [vmem:[%s17669_s4 + $0x38] sm:$0xff] }
 0xd44   : > { %v15974_v33 = vpop.f32.mrf.mxu0 }
 0xd45   : > { %v20019_v29 = vadd.f32 %v15974_v33, %v8859_v60 }
 0xd46   : > { %v9136_v25 = vpop.f32.mrf.mxu0 }
 0xd47   : > { %v20021_v61 = vadd.f32 %v9136_v25, %v8857_v35  ;;  %v11934_v25 = vsub.f32 %v18356_v22, %v11842_v12 }
 0xd48   : > { %v15977_v56 = vpop.f32.mrf.mxu0 }
 0xd49   : > { %v20026_v28 = vadd.f32 %v15977_v56, %v8862_v48  ;;  %v11570_v48 = vld [vmem:[%s17674_s12 + $0x48] sm:$0xff] }
 0xd4a   : > { %v9149_v3 = vpop.f32.mrf.mxu0  ;;  %v11662_v11 = vadd.f32 1e-05, %v11570_v48 }
 0xd4b   : > { %v20029_v34 = vadd.f32 %v9149_v3, %v8860_v4  ;;  %v21974_v4 = vunpack.c.h.bf16 %v21942_v37  ;;  %v11843_v3 = vld [vmem:[%s17669_s4 + $0x30] sm:$0xff] }
 0xd4c   : > { %v17290_v60 = vpop.eup %17289  ;;  %v15978_v17 = vpop.f32.mrf.mxu0 }
 0xd4d   : > { %v20033_v35 = vrot.slane %v17290_v60, %v20024_v16  ;;  %v20035_v53 = vadd.f32 %v15978_v17, %v8863_v2  ;;  %v10938_v27 = vpack.c.bf16 %v17290_v60, %v17290_v60  ;;  %v11661_v2 = vadd.f32 1e-05, %v11569_v58  ;;  %v17292_v42 = vpop.eup %17291 }
 0xd4e   : > { %v9152_v0 = vpop.f32.mrf.mxu0  ;;  %v17294_v41 = vpop.eup %17293  ;;  %v12025_v58 = vmul.f32 %v17292_v42, %v11933_v31  ;;  %v11580_v31 = vld [vmem:[%s17674_s12 + $0x98] sm:$0xff] }
 0xd4f   : > { %v20038_v5 = vadd.f32 %v9152_v0, %v8861_v49  ;;  %16232 = vmatmul.mubr.msk.bf16.vlgmr.msra.gmra.mxu1 %vm2321_vm2, %v10938_v27  ;;  %v11246_v57 = vmul.f32 %v20033_v35, %v21974_v4  ;;  %v11245_v23 = vmul.f32 %v20033_v35, %v21975_v38  ;;  %v11248_v49 = vmul.f32 %v20033_v35, %v21976_v10  ;;  %v11578_v0 = vld [vmem:[%s17674_s12 + $0x88] sm:$0xff]  ;;  %v11845_v10 = vld [vmem:[%s17669_s4 + $0x40] sm:$0xff] }
 0xd50   : > { %v16015_v47 = vpop.f32.mrf.mxu0  ;;  %11072 = vmatprep.mubr.bf16.mxu1 %v21835_v59  ;;  %v11247_v8 = vmul.f32 %v20033_v35, %v21977_v62  ;;  %17299 = vrsqrt.f32 %v11661_v2  ;;  %v11250_v14 = vmul.f32 %v20033_v35, %v21978_v32  ;;  %v12026_v27 = vmul.f32 %v17294_v41, %v11934_v25  ;;  %v12118_v4 = vld [vmem:[%s21813_s23 + $0x28] sm:$0xff]  ;;  %v11599_v59 = vld [vmem:[%s17674_s12 + $0x130] sm:$0xff] }
 0xd51   : > { %v20052_v24 = vadd.f32 %v16015_v47, %v19987_v13  ;;  %v11280_v54 = vsel %vm2321_vm2, %v11246_v57, 0.0  ;;  %v11277_v37 = vsel %vm2321_vm2, %v11245_v23, 0.0  ;;  %v11286_v46 = vsel %vm2321_vm2, %v11248_v49, 0.0  ;;  %v21982_v57 = vld [vmem:[#allocation93_spill] sm:$0xff]  ;;  %v17296_v47 = vpop.eup %17295 }
 0xd52   : > { %11281 = vadd.xlane.f32.xlu1 %v11280_v54  ;;  %11278 = vadd.xlane.f32.xlu0 %v11277_v37  ;;  %v9417_v9 = vpop.f32.mrf.mxu0  ;;  %v11283_v50 = vsel %vm2321_vm2, %v11247_v8, 0.0  ;;  %17301 = vrsqrt.f32 %v11662_v11  ;;  %v11292_v22 = vsel %vm2321_vm2, %v11250_v14, 0.0  ;;  %v11935_v38 = vsub.f32 %v21982_v57, %v11843_v3  ;;  %v21983_v37 = vld [vmem:[#allocation32_spill] sm:$0xff]  ;;  %v21988_v41 = vld [vmem:[#allocation41_spill] sm:$0xff]  ;;  %v12119_v3 = vld [vmem:[%s21813_s23 + $0x30] sm:$0xff] }
 0xd53   : > { %v20060_v55 = vadd.f32 %v9417_v9, %v19992_v30  ;;  %v21979_v30 = vunpack.c.l.bf16 %v21938_v40  ;;  %v21980_v40 = vunpack.c.h.bf16 %v21936_v44  ;;  %v11669_v23 = vadd.f32 1e-05, %v11577_v1  ;;  %v21986_v9 = vld [vmem:[#allocation92_spill] sm:$0xff] }
 0xd54   : > { %v16016_v13 = vpop.f32.mrf.mxu0  ;;  %v21985_v8 = vunpack.c.l.bf16 %v21983_v37  ;;  %v11936_v43 = vsub.f32 %v21986_v9, %v11844_v15  ;;  %v11670_v12 = vadd.f32 1e-05, %v11578_v0  ;;  %v12210_v14 = vmul.f32 %v12118_v4, %v12026_v27  ;;  %v12302_v0 = vld [vmem:[%s21814_s28 + $0x28] sm:$0xff]  ;;  %v12120_v4 = vld [vmem:[%s21813_s23 + $0x38] sm:$0xff]  ;;  %v12121_v9 = vld [vmem:[%s21813_s23 + $0x40] sm:$0xff] }
 0xd55   : > { %v20068_v39 = vadd.f32 %v16016_v13, %v19996_v7  ;;  %v11249_v18 = vmul.f32 %v20033_v35, %v21979_v30  ;;  %v11252_v21 = vmul.f32 %v20033_v35, %v21980_v40  ;;  %17303 = vrsqrt.f32 %v11669_v23 }
 0xd56   : > { %11287 = vadd.xlane.f32.xlu1 %v11286_v46  ;;  %11284 = vadd.xlane.f32.xlu0 %v11283_v50  ;;  %v9420_v33 = vpop.f32.mrf.mxu0  ;;  %v11253_v11 = vmul.f32 %v20033_v35, %v21985_v8  ;;  %v11846_v46 = vld [vmem:[%s17669_s4 + $0x48] sm:$0xff]  ;;  %v11579_v50 = vld [vmem:[%s17674_s12 + $0x90] sm:$0xff]  ;;  %17305 = vrsqrt.f32 %v11670_v12  ;;  %v11672_v57 = vadd.f32 1e-05, %v11580_v31 }
 0xd57   : > { %v20078_v7 = vadd.f32 %v9420_v33, %v19998_v36  ;;  %v11289_v20 = vsel %vm2321_vm2, %v11249_v18, 0.0  ;;  %v21981_v36 = vunpack.c.l.bf16 %v21936_v44  ;;  %v11298_v44 = vsel %vm2321_vm2, %v11252_v21, 0.0  ;;  %v21987_v33 = vld [vmem:[#allocation95_spill] sm:$0xff] }
 0xd58   : > { %v16019_v56 = vpop.f32.mrf.mxu0  ;;  %v12027_v18 = vmul.f32 %v17296_v47, %v11935_v38  ;;  %v11937_v42 = vsub.f32 %v21987_v33, %v11845_v10  ;;  %v11671_v27 = vadd.f32 1e-05, %v11579_v50  ;;  %v11581_v10 = vld [vmem:[%s17674_s12 + $0xa0] sm:$0xff]  ;;  %v11582_v50 = vld [vmem:[%s17674_s12 + $0xa8] sm:$0xff] }
 0xd59   : > { %v20086_v60 = vadd.f32 %v16019_v56, %v20001_v52  ;;  %v11251_v6 = vmul.f32 %v20033_v35, %v21981_v36  ;;  %v12117_v52 = vld [vmem:[%s21813_s23 + $0x20] sm:$0xff]  ;;  %v21989_v56 = vunpack.c.h.bf16 %v21988_v41 }
 0xd5a   : > { %11293 = vadd.xlane.f32.xlu1 %v11292_v22  ;;  %11290 = vadd.xlane.f32.xlu0 %v11289_v20  ;;  %v9433_v17 = vpop.f32.mrf.mxu0  ;;  %v12209_v32 = vmul.f32 %v12117_v52, %v12025_v58  ;;  %v11301_v22 = vsel %vm2321_vm2, %v11253_v11, 0.0  ;;  %v21990_v20 = vunpack.c.l.bf16 %v21988_v41  ;;  %17307 = vrsqrt.f32 %v11671_v27 }
 0xd5b   : > { %v20096_v48 = vadd.f32 %v9433_v17, %v20006_v45  ;;  %v11295_v54 = vsel %vm2321_vm2, %v11251_v6, 0.0  ;;  %v21984_v45 = vunpack.c.h.bf16 %v21983_v37  ;;  %v11256_v40 = vmul.f32 %v20033_v35, %v21989_v56  ;;  %v21991_v17 = vld [vmem:[#allocation94_spill] sm:$0xff] }
 0xd5c   : > { %v16020_v2 = vpop.f32.mrf.mxu0  ;;  %v11255_v36 = vmul.f32 %v20033_v35, %v21990_v20  ;;  %v11938_v58 = vsub.f32 %v21991_v17, %v11846_v46  ;;  %v21994_v37 = vld [vmem:[#allocation42_spill] sm:$0xff]  ;;  %17309 = vrsqrt.f32 %v11672_v57  ;;  %v11673_v46 = vadd.f32 1e-05, %v11581_v10 }
 0xd5d   : > { %v20104_v49 = vadd.f32 %v16020_v2, %v20009_v26  ;;  %v11254_v62 = vmul.f32 %v20033_v35, %v21984_v45  ;;  %v17298_v26 = vpop.eup %17297  ;;  %v20142_v2 = vadd.f32 %v12302_v0, %v12210_v14  ;;  %v21995_v45 = vunpack.c.h.bf16 %v21994_v37  ;;  %v12122_v14 = vld [vmem:[%s21813_s23 + $0x48] sm:$0xff]  ;;  %v12303_v56 = vld [vmem:[%s21814_s28 + $0x30] sm:$0xff] }
 0xd5e   : > { %11299 = vadd.xlane.f32.xlu1 %v11298_v44  ;;  %11296 = vadd.xlane.f32.xlu0 %v11295_v54  ;;  %v9436_v13 = vpop.f32.mrf.mxu0  ;;  %v17300_v21 = vpop.eup %17299  ;;  %v12028_v6 = vmul.f32 %v17298_v26, %v11936_v43  ;;  %v12211_v44 = vmul.f32 %v12119_v3, %v12027_v18  ;;  %v21996_v8 = vunpack.c.l.bf16 %v21994_v37  ;;  %v11310_v43 = vsel %vm2321_vm2, %v11256_v40, 0.0  ;;  %v11583_v40 = vld [vmem:[%s17674_s12 + $0xb0] sm:$0xff] }
 0xd5f   : > { %v20117_v30 = vadd.f32 %v9436_v13, %v20011_v51  ;;  %v11304_v51 = vsel %vm2321_vm2, %v11254_v62, 0.0  ;;  %v17302_v52 = vpop.eup %17301  ;;  %21993 = vst [vmem:[#allocation32_spill] sm:$0xff] %v20142_v2  ;;  %v12029_v47 = vmul.f32 %v17300_v21, %v11937_v42  ;;  %v11258_v62 = vmul.f32 %v20033_v35, %v21995_v45  ;;  %13247 = vst.msk [vmem:[%s18353_s2 + $0x28] sm:$0xff] %vm13149_vm3, %v20142_v2  ;;  %v11584_v42 = vld [vmem:[%s17674_s12 + $0xb8] sm:$0xff]  ;;  %v11853_v45 = vld [vmem:[%s17669_s4 + $0x80] sm:$0xff] }
 0xd60   : > { %v16023_v25 = vpop.f32.mrf.mxu0  ;;  %v11257_v11 = vmul.f32 %v20033_v35, %v21996_v8  ;;  %v11307_v12 = vsel %vm2321_vm2, %v11255_v36, 0.0  ;;  %v12212_v26 = vmul.f32 %v12120_v4, %v12028_v6  ;;  %v21997_v3 = vld [vmem:[#allocation43_spill] sm:$0xff]  ;;  %v20185_v6 = vadd.f32 %v12303_v56, %v12211_v44  ;;  %v11597_v13 = vld [vmem:[%s17674_s12 + $0x120] sm:$0xff] }
 0xd61   : > { %v20126_v1 = vadd.f32 %v16023_v25, %v20013_v19  ;;  %v12301_v19 = vld [vmem:[%s21814_s28 + $0x20] sm:$0xff]  ;;  %v12213_v33 = vmul.f32 %v12121_v9, %v12029_v47  ;;  %v11316_v25 = vsel %vm2321_vm2, %v11258_v62, 0.0  ;;  %v12304_v36 = vld [vmem:[%s21814_s28 + $0x38] sm:$0xff]  ;;  %17311 = vrsqrt.f32 %v11673_v46  ;;  %v12306_v9 = vld [vmem:[%s21814_s28 + $0x48] sm:$0xff] }
 0xd62   : > { %11305 = vadd.xlane.f32.xlu1 %v11304_v51  ;;  %11302 = vadd.xlane.f32.xlu0 %v11301_v22  ;;  %v9449_v15 = vpop.f32.mrf.mxu0  ;;  %v20140_v23 = vadd.f32 %v12301_v19, %v12209_v32  ;;  %v12030_v32 = vmul.f32 %v17302_v52, %v11938_v58  ;;  %v11313_v41 = vsel %vm2321_vm2, %v11257_v11, 0.0  ;;  %v21998_v51 = vunpack.c.h.bf16 %v21997_v3  ;;  %22000 = vst [vmem:[#allocation92_spill] sm:$0xff] %v20185_v6  ;;  %v22002_v4 = vld [vmem:[#allocation39_spill] sm:$0xff] }
 0xd63   : > { %v20138_v38 = vadd.f32 %v9449_v15, %v20016_v63  ;;  %v11674_v58 = vadd.f32 1e-05, %v11582_v50  ;;  %v20187_v27 = vadd.f32 %v12304_v36, %v12212_v26  ;;  %v11676_v15 = vadd.f32 1e-05, %v11584_v42  ;;  %13248 = vst.msk [vmem:[%s18353_s2 + $0x30] sm:$0xff] %vm13149_vm3, %v20185_v6  ;;  %v11855_v50 = vld [vmem:[%s17669_s4 + $0x90] sm:$0xff] }
 0xd64   : > { %21992 = vst [vmem:[#allocation93_spill] sm:$0xff] %v20140_v23  ;;  %v16024_v54 = vpop.f32.mrf.mxu0  ;;  %13246 = vst.msk [vmem:[%s18353_s2 + $0x20] sm:$0xff] %vm13149_vm3, %v20140_v23  ;;  %v11260_v22 = vmul.f32 %v20033_v35, %v21998_v51  ;;  %v12214_v17 = vmul.f32 %v12122_v14, %v12030_v32  ;;  %v11675_v0 = vadd.f32 1e-05, %v11583_v40  ;;  %v22003_v57 = vunpack.c.h.bf16 %v22002_v4  ;;  %v22005_v14 = vld [vmem:[#allocation97_spill] sm:$0xff]  ;;  %v22008_v51 = vld [vmem:[#allocation44_spill] sm:$0xff] }
 0xd65   : > { %v20153_v63 = vadd.f32 %v16024_v54, %v20019_v29  ;;  %22001 = vst [vmem:[#allocation95_spill] sm:$0xff] %v20187_v27  ;;  %v22004_v47 = vunpack.c.l.bf16 %v22002_v4  ;;  %v12305_v54 = vld [vmem:[%s21814_s28 + $0x40] sm:$0xff]  ;;  %13249 = vst.msk [vmem:[%s18353_s2 + $0x38] sm:$0xff] %vm13149_vm3, %v20187_v27  ;;  %17313 = vrsqrt.f32 %v11674_v58  ;;  %v11945_v46 = vsub.f32 %v22005_v14, %v11853_v45  ;;  %v12130_v14 = vld [vmem:[%s21813_s23 + $0x88] sm:$0xff] }
 0xd66   : > { %11311 = vadd.xlane.f32.xlu1 %v11310_v43  ;;  %11308 = vadd.xlane.f32.xlu0 %v11307_v12  ;;  %v9452_v29 = vpop.f32.mrf.mxu0  ;;  %v11262_v44 = vmul.f32 %v20033_v35, %v22003_v57  ;;  %v11322_v8 = vsel %vm2321_vm2, %v11260_v22, 0.0  ;;  %v20214_v43 = vadd.f32 %v12305_v54, %v12213_v33  ;;  %v20216_v26 = vadd.f32 %v12306_v9, %v12214_v17  ;;  %v11856_v33 = vld [vmem:[%s17669_s4 + $0x98] sm:$0xff]  ;;  %v12129_v45 = vld [vmem:[%s21813_s23 + $0x80] sm:$0xff] }
 0xd67   : > { %v20168_v18 = vadd.f32 %v9452_v29, %v20021_v61  ;;  %v21999_v61 = vunpack.c.l.bf16 %v21997_v3  ;;  %v11261_v10 = vmul.f32 %v20033_v35, %v22004_v47  ;;  %v11854_v29 = vld [vmem:[%s17669_s4 + $0x88] sm:$0xff]  ;;  %17315 = vrsqrt.f32 %v11676_v15  ;;  %v11600_v56 = vld [vmem:[%s17674_s12 + $0x138] sm:$0xff] }
 0xd68   : > { %v16027_v31 = vpop.f32.mrf.mxu0  ;;  %13250 = vst.msk [vmem:[%s18353_s2 + $0x40] sm:$0xff] %vm13149_vm3, %v20214_v43  ;;  %17317 = vrsqrt.f32 %v11675_v0  ;;  %13251 = vst.msk [vmem:[%s18353_s2 + $0x48] sm:$0xff] %vm13149_vm3, %v20216_v26  ;;  %v11328_v40 = vsel %vm2321_vm2, %v11262_v44, 0.0  ;;  %v22009_v22 = vunpack.c.l.bf16 %v22008_v51  ;;  %v22012_v0 = vld [vmem:[#allocation98_spill] sm:$0xff]  ;;  %v22013_v47 = vld [vmem:[#allocation45_spill] sm:$0xff] }
 0xd69   : > { %v20176_v21 = vadd.f32 %v16027_v31, %v20026_v28  ;;  %v11259_v20 = vmul.f32 %v20033_v35, %v21999_v61  ;;  %v22006_v31 = vld [vmem:[#allocation37_spill] sm:$0xff]  ;;  %v11325_v3 = vsel %vm2321_vm2, %v11261_v10, 0.0  ;;  %v22014_v10 = vunpack.c.h.bf16 %v22013_v47  ;;  %v11608_v6 = vld [vmem:[%s17674_s12 + $0x178] sm:$0xff] }
 0xd6a   : > { %11317 = vadd.xlane.f32.xlu1 %v11316_v25  ;;  %11314 = vadd.xlane.f32.xlu0 %v11313_v41  ;;  %v9465_v28 = vpop.f32.mrf.mxu0  ;;  %v22007_v25 = vunpack.c.h.bf16 %v22006_v31  ;;  %v11263_v61 = vmul.f32 %v20033_v35, %v22009_v22  ;;  %v22015_v9 = vunpack.c.l.bf16 %v22013_v47  ;;  %v11859_v22 = vld [vmem:[%s17669_s4 + $0xb0] sm:$0xff] }
 0xd6b   : > { %v20190_v19 = vadd.f32 %v9465_v28, %v20029_v34  ;;  %v17304_v34 = vpop.eup %17303  ;;  %v11319_v11 = vsel %vm2321_vm2, %v11259_v20, 0.0  ;;  %v22010_v20 = vld [vmem:[#allocation96_spill] sm:$0xff]  ;;  %v22011_v28 = vld [vmem:[#allocation99_spill] sm:$0xff]  ;;  %v11266_v54 = vmul.f32 %v20033_v35, %v22014_v10 }
 0xd6c   : > { %v16028_v52 = vpop.f32.mrf.mxu0  ;;  %v17306_v32 = vpop.eup %17305  ;;  %v11264_v41 = vmul.f32 %v20033_v35, %v22007_v25  ;;  %v11946_v36 = vsub.f32 %v22010_v20, %v11854_v29  ;;  %v11947_v15 = vsub.f32 %v22011_v28, %v11855_v50  ;;  %v12037_v57 = vmul.f32 %v17304_v34, %v11945_v46  ;;  %v11857_v50 = vld [vmem:[%s17669_s4 + $0xa0] sm:$0xff] }
 0xd6d   : > { %v20209_v62 = vadd.f32 %v16028_v52, %v20035_v53  ;;  %v17308_v58 = vpop.eup %17307  ;;  %v11265_v34 = vmul.f32 %v20033_v35, %v22015_v9  ;;  %v22022_v9 = vld [vmem:[#allocation79_spill] sm:$0xff] }
 0xd6e   : > { %11323 = vadd.xlane.f32.xlu1 %v11322_v8  ;;  %11320 = vadd.xlane.f32.xlu0 %v11319_v11  ;;  %v9468_v12 = vpop.f32.mrf.mxu0  ;;  %v17310_v4 = vpop.eup %17309  ;;  %v11334_v11 = vsel %vm2321_vm2, %v11264_v41, 0.0  ;;  %v12039_v46 = vmul.f32 %v17308_v58, %v11947_v15  ;;  %v12221_v25 = vmul.f32 %v12129_v45, %v12037_v57  ;;  %v12131_v41 = vld [vmem:[%s21813_s23 + $0x90] sm:$0xff] }
 0xd6f   : > { %v20220_v53 = vadd.f32 %v9468_v12, %v20038_v5  ;;  %v12038_v12 = vmul.f32 %v17306_v32, %v11946_v36  ;;  %v17312_v31 = vpop.eup %17311  ;;  %v11340_v32 = vsel %vm2321_vm2, %v11266_v54, 0.0  ;;  %v11337_v20 = vsel %vm2321_vm2, %v11265_v34, 0.0  ;;  %v22016_v36 = vld [vmem:[#allocation46_spill] sm:$0xff]  ;;  %v22021_v54 = vld [vmem:[#allocation72_spill] sm:$0xff] }
 0xd70   : > { %v16065_v42 = vpop.f32.mrf.mxu0  ;;  %v12223_v47 = vmul.f32 %v12131_v41, %v12039_v46  ;;  %v11951_v34 = vsub.f32 %v22022_v9, %v11859_v22 }
 0xd71   : > { %v20237_v5 = vadd.f32 %v16065_v42, %v20052_v24  ;;  %v11948_v24 = vsub.f32 %v22012_v0, %v11856_v33  ;;  %v11858_v33 = vld [vmem:[%s17669_s4 + $0xa8] sm:$0xff]  ;;  %v12222_v15 = vmul.f32 %v12130_v14, %v12038_v12 }
 0xd72   : > { %11329 = vadd.xlane.f32.xlu1 %v11328_v40  ;;  %11326 = vadd.xlane.f32.xlu0 %v11325_v3  ;;  %v9733_v17 = vpop.f32.mrf.mxu0  ;;  %v12132_v40 = vld [vmem:[%s21813_s23 + $0x98] sm:$0xff]  ;;  %v22019_v0 = vld [vmem:[#allocation78_spill] sm:$0xff] }
 0xd73   : > { %v20248_v52 = vadd.f32 %v9733_v17, %v20060_v55  ;;  %v11331_v55 = vsel %vm2321_vm2, %v11263_v61, 0.0  ;;  %v11860_v3 = vld [vmem:[%s17669_s4 + $0xb8] sm:$0xff]  ;;  %v22017_v17 = vunpack.c.h.bf16 %v22016_v36 }
 0xd74   : > { %v16066_v44 = vpop.f32.mrf.mxu0  ;;  %v11952_v45 = vsub.f32 %v22021_v54, %v11860_v3 }
 0xd75   : > { %v20255_v8 = vadd.f32 %v16066_v44, %v20068_v39  ;;  %v12040_v39 = vmul.f32 %v17310_v4, %v11948_v24  ;;  %v11268_v58 = vmul.f32 %v20033_v35, %v22017_v17  ;;  %v11949_v24 = vsub.f32 %v22019_v0, %v11857_v50  ;;  %v22020_v4 = vld [vmem:[#allocation100_spill] sm:$0xff]  ;;  %v17314_v44 = vpop.eup %17313 }
 0xd76   : > { %11335 = vadd.xlane.f32.xlu1 %v11334_v11  ;;  %11332 = vadd.xlane.f32.xlu0 %v11331_v55  ;;  %v9736_v29 = vpop.f32.mrf.mxu0  ;;  %v11950_v57 = vsub.f32 %v22020_v4, %v11858_v33  ;;  %v17316_v55 = vpop.eup %17315  ;;  %v12133_v0 = vld [vmem:[%s21813_s23 + $0xa0] sm:$0xff] }
 0xd77   : > { %v20266_v42 = vadd.f32 %v9736_v29, %v20078_v7  ;;  %v22018_v7 = vunpack.c.l.bf16 %v22016_v36  ;;  %v12224_v10 = vmul.f32 %v12132_v40, %v12040_v39  ;;  %v22023_v29 = vld [vmem:[#allocation47_spill] sm:$0xff]  ;;  %v12313_v39 = vld [vmem:[%s21814_s28 + $0x80] sm:$0xff]  ;;  %v17318_v41 = vpop.eup %17317  ;;  %v11346_v40 = vsel %vm2321_vm2, %v11268_v58, 0.0  ;;  %v12134_v58 = vld [vmem:[%s21813_s23 + $0xa8] sm:$0xff] }
 0xd78   : > { %v16069_v51 = vpop.f32.mrf.mxu0  ;;  %v22024_v14 = vunpack.c.h.bf16 %v22023_v29  ;;  %v22025_v33 = vunpack.c.l.bf16 %v22023_v29  ;;  %v12041_v22 = vmul.f32 %v17312_v31, %v11949_v24  ;;  %v12044_v4 = vmul.f32 %v17316_v55, %v11952_v45  ;;  %v12136_v55 = vld [vmem:[%s21813_s23 + $0xb8] sm:$0xff] }
 0xd79   : > { %v20274_v61 = vadd.f32 %v16069_v51, %v20086_v60  ;;  %v11267_v28 = vmul.f32 %v20033_v35, %v22018_v7  ;;  %v12314_v51 = vld [vmem:[%s21814_s28 + $0x88] sm:$0xff]  ;;  %v12315_v7 = vld [vmem:[%s21814_s28 + $0x90] sm:$0xff] }
 0xd7a   : > { %11341 = vadd.xlane.f32.xlu1 %v11340_v32  ;;  %11338 = vadd.xlane.f32.xlu0 %v11337_v20  ;;  %v9749_v60 = vpop.f32.mrf.mxu0  ;;  %v11270_v50 = vmul.f32 %v20033_v35, %v22024_v14  ;;  %v11269_v46 = vmul.f32 %v20033_v35, %v22025_v33  ;;  %v20303_v32 = vadd.f32 %v12313_v39, %v12221_v25 }
 0xd7b   : > { %v20287_v11 = vadd.f32 %v9749_v60, %v20096_v48  ;;  %v11343_v3 = vsel %vm2321_vm2, %v11267_v28, 0.0  ;;  %v12042_v20 = vmul.f32 %v17314_v44, %v11950_v57  ;;  %v20305_v17 = vadd.f32 %v12314_v51, %v12222_v15  ;;  %v22030_v57 = vld [vmem:[#allocation48_spill] sm:$0xff] }
 0xd7c   : > { %v16070_v12 = vpop.f32.mrf.mxu0  ;;  %22026 = vst [vmem:[#allocation41_spill] sm:$0xff] %v20303_v32  ;;  %13258 = vst.msk [vmem:[%s18353_s2 + $0x80] sm:$0xff] %vm13149_vm3, %v20303_v32  ;;  %v20317_v31 = vadd.f32 %v12315_v7, %v12223_v47  ;;  %v12043_v15 = vmul.f32 %v17318_v41, %v11951_v34  ;;  %v22031_v60 = vunpack.c.h.bf16 %v22030_v57  ;;  %v22032_v54 = vunpack.c.l.bf16 %v22030_v57  ;;  %v12135_v47 = vld [vmem:[%s21813_s23 + $0xb0] sm:$0xff]  ;;  %v22033_v41 = vld [vmem:[#allocation49_spill] sm:$0xff] }
 0xd7d   : > { %v20298_v48 = vadd.f32 %v16070_v12, %v20104_v49  ;;  %22027 = vst [vmem:[#allocation94_spill] sm:$0xff] %v20305_v17  ;;  %v12316_v49 = vld [vmem:[%s21814_s28 + $0x98] sm:$0xff]  ;;  %13259 = vst.msk [vmem:[%s18353_s2 + $0x88] sm:$0xff] %vm13149_vm3, %v20305_v17  ;;  %v11352_v9 = vsel %vm2321_vm2, %v11270_v50, 0.0  ;;  %v11349_v34 = vsel %vm2321_vm2, %v11269_v46, 0.0  ;;  %v12225_v29 = vmul.f32 %v12133_v0, %v12041_v22  ;;  %v12317_v51 = vld [vmem:[%s21814_s28 + $0xa0] sm:$0xff] }
 0xd7e   : > { %11347 = vadd.xlane.f32.xlu1 %v11346_v40  ;;  %11344 = vadd.xlane.f32.xlu0 %v11343_v3  ;;  %v9752_v36 = vpop.f32.mrf.mxu0  ;;  %22028 = vst [vmem:[#allocation42_spill] sm:$0xff] %v20317_v31  ;;  %v20319_v25 = vadd.f32 %v12316_v49, %v12224_v10  ;;  %v11272_v44 = vmul.f32 %v20033_v35, %v22031_v60  ;;  %13260 = vst.msk [vmem:[%s18353_s2 + $0x90] sm:$0xff] %vm13149_vm3, %v20317_v31  ;;  %v22034_v40 = vunpack.c.h.bf16 %v22033_v41  ;;  %v12318_v49 = vld [vmem:[%s21814_s28 + $0xa8] sm:$0xff]  ;;  %v11604_v17 = vld [vmem:[%s17674_s12 + $0x158] sm:$0xff] }
 0xd7f   : > { %v20312_v28 = vadd.f32 %v9752_v36, %v20117_v30  ;;  %v11271_v45 = vmul.f32 %v20033_v35, %v22032_v54  ;;  %v12226_v14 = vmul.f32 %v12134_v58, %v12042_v20  ;;  %v12227_v50 = vmul.f32 %v12135_v47, %v12043_v15  ;;  %v22037_v57 = vld [vmem:[#allocation50_spill] sm:$0xff] }
 0xd80   : > { %22029 = vst [vmem:[#allocation43_spill] sm:$0xff] %v20319_v25  ;;  %v16073_v24 = vpop.f32.mrf.mxu0  ;;  %13261 = vst.msk [vmem:[%s18353_s2 + $0x98] sm:$0xff] %vm13149_vm3, %v20319_v25  ;;  %v12228_v46 = vmul.f32 %v12136_v55, %v12044_v4  ;;  %v11274_v3 = vmul.f32 %v20033_v35, %v22034_v40  ;;  %v11358_v22 = vsel %vm2321_vm2, %v11272_v44, 0.0  ;;  %v20363_v58 = vadd.f32 %v12317_v51, %v12225_v29  ;;  %v12319_v47 = vld [vmem:[%s21814_s28 + $0xb0] sm:$0xff]  ;;  %v12320_v55 = vld [vmem:[%s21814_s28 + $0xb8] sm:$0xff] }
 0xd81   : > { %v20335_v10 = vadd.f32 %v16073_v24, %v20126_v1  ;;  %v11355_v20 = vsel %vm2321_vm2, %v11271_v45, 0.0  ;;  %v20365_v4 = vadd.f32 %v12318_v49, %v12226_v14  ;;  %v22038_v60 = vunpack.c.h.bf16 %v22037_v57  ;;  %v17222_v49 = vld [vmem:[%s22040_s0 + $0x14] ss:$8 sps:$4 sm:$0xff]   ;;  %v11598_v12 = vld [vmem:[%s17674_s12 + $0x128] sm:$0xff] }
 0xd82   : > { %11353 = vadd.xlane.f32.xlu1 %v11352_v9  ;;  %11350 = vadd.xlane.f32.xlu0 %v11349_v34  ;;  %v9765_v1 = vpop.f32.mrf.mxu0  ;;  %22036 = vst [vmem:[#allocation39_spill] sm:$0xff] %v20363_v58  ;;  %v11364_v24 = vsel %vm2321_vm2, %v11274_v3, 0.0  ;;  %v22039_v54 = vunpack.c.l.bf16 %v22037_v57  ;;  %13262 = vst.msk [vmem:[%s18353_s2 + $0xa0] sm:$0xff] %vm13149_vm3, %v20363_v58  ;;  %v20387_v29 = vadd.f32 %v12319_v47, %v12227_v50  ;;  %v17214_v50 = vld [vmem:[%s22040_s0 + $0x30] ss:$8 sps:$4 sm:$0xff]   ;;  %v11602_v25 = vld [vmem:[%s17674_s12 + $0x148] sm:$0xff] }
 0xd83   : > { %v20348_v33 = vadd.f32 %v9765_v1, %v20138_v38  ;;  %v22035_v38 = vunpack.c.l.bf16 %v22033_v41  ;;  %v11276_v44 = vmul.f32 %v20033_v35, %v22038_v60  ;;  %13263 = vst.msk [vmem:[%s18353_s2 + $0xa8] sm:$0xff] %vm13149_vm3, %v20365_v4  ;;  %v20389_v14 = vadd.f32 %v12320_v55, %v12228_v46  ;;  %v17216_v46 = vld [vmem:[%s22040_s0 + $0x34] ss:$8 sps:$4 sm:$0xff]   ;;  %v17223_v57 = vld [vmem:[%s22040_s0] ss:$8 sps:$4 sm:$0xff]  }
 0xd84   : > { %v16074_v39 = vpop.f32.mrf.mxu0  ;;  %v11275_v45 = vmul.f32 %v20033_v35, %v22039_v54  ;;  %13264 = vst.msk [vmem:[%s18353_s2 + $0xb0] sm:$0xff] %vm13149_vm3, %v20387_v29  ;;  %11048 = vmatprep.subr.bf16.mxu1 %v17216_v46  ;;  %v17225_v60 = vld [vmem:[%s22040_s0 + $0x4] ss:$8 sps:$4 sm:$0xff]   ;;  %v11690_v41 = vadd.f32 1e-05, %v11598_v12 }
 0xd85   : > { %v20355_v36 = vadd.f32 %v16074_v39, %v20153_v63  ;;  %v11273_v7 = vmul.f32 %v20033_v35, %v22035_v38  ;;  %13265 = vst.msk [vmem:[%s18353_s2 + $0xb8] sm:$0xff] %vm13149_vm3, %v20389_v14  ;;  %v11370_v3 = vsel %vm2321_vm2, %v11276_v44, 0.0  ;;  %11049 = vmatpush1.bf16.msra.mxu1 %v17214_v50  ;;  %v11694_v12 = vadd.f32 1e-05, %v11602_v25 }
 0xd86   : > { %11359 = vadd.xlane.f32.xlu1 %v11358_v22  ;;  %11356 = vadd.xlane.f32.xlu0 %v11355_v20  ;;  %v9768_v0 = vpop.f32.mrf.mxu0  ;;  %v17219_v20 = vld [vmem:[%s22040_s0 + $0x24] ss:$8 sps:$4 sm:$0xff]  }
 0xd87   : > { %v9805_v63 = vadd.f32 %v9768_v0, %v20168_v18  ;;  %v11361_v34 = vsel %vm2321_vm2, %v11273_v7, 0.0  ;;  %v17217_v7 = vld [vmem:[%s22040_s0 + $0x20] ss:$8 sps:$4 sm:$0xff]   ;;  %11050 = vmatprep.subr.bf16.mxu1 %v17219_v20 }
 0xd88   : > { %v16077_v15 = vpop.f32.mrf.mxu0 }
 0xd89   : > { %v9810_v9 = vadd.f32 %v16077_v15, %v20176_v21  ;;  %11051 = vmatpush1.bf16.msra.mxu1 %v17217_v7  ;;  %v17220_v15 = vld [vmem:[%s22040_s0 + $0x10] ss:$8 sps:$4 sm:$0xff]  }
 0xd8a   : > { %11365 = vadd.xlane.f32.xlu1 %v11364_v24  ;;  %11362 = vadd.xlane.f32.xlu0 %v11361_v34  ;;  %v9781_v1 = vpop.f32.mrf.mxu0 }
 0xd8b   : > { %v9808_v39 = vadd.f32 %v9781_v1, %v20190_v19  ;;  %v11367_v19 = vsel %vm2321_vm2, %v11275_v45, 0.0  ;;  %11052 = vmatprep.subr.bf16.mxu1 %v17222_v49 }
 0xd8c   : > { %v16078_v21 = vpop.f32.mrf.mxu0 }
 0xd8d   : > { %v9811_v40 = vadd.f32 %v16078_v21, %v20209_v62  ;;  %11053 = vmatpush1.bf16.msra.mxu1 %v17220_v15 }
 0xd8e   : > { %11371 = vadd.xlane.f32.xlu1 %v11370_v3  ;;  %11368 = vadd.xlane.f32.xlu0 %v11367_v19  ;;  %v9784_v51 = vpop.f32.mrf.mxu0 }
 0xd8f   : > { %v9809_v22 = vadd.f32 %v9784_v51, %v20220_v53  ;;  %11054 = vmatprep.subr.bf16.mxu1 %v17225_v60 }
 0xd90   : > { %v20407_v38 = vpop.f32.mrf.mxu0 }
 0xd91   : > { %11055 = vmatpush1.bf16.msra.mxu1 %v17223_v57 }
 0xd92   : > { %v20410_v62 = vpop.f32.mrf.mxu0 }
 0xd94   : > { %v20413_v0 = vpop.f32.mrf.mxu0 }
 0xd96   : > { %v20416_v24 = vpop.f32.mrf.mxu0 }
 0xd98   : > { %v20418_v53 = vpop.f32.mrf.mxu0 }
 0xd9a   : > { %v20422_v44 = vpop.f32.mrf.mxu0 }
 0xd9c   : > { %v20424_v54 = vpop.f32.mrf.mxu0 }
 0xd9e   : > { %v20426_v45 = vpop.f32.mrf.mxu0 }
 0xda0   : > { %v20428_v47 = vpop.f32.mrf.mxu0 }
 0xda2   : > { %v10081_v55 = vpop.f32.mrf.mxu0 }
 0xda3   : > { %v20431_v34 = vadd.f32 %v10081_v55, %v20348_v33 }
 0xda4   : > { %v16124_v1 = vpop.f32.mrf.mxu0 }
 0xda5   : > { %v20434_v21 = vadd.f32 %v16124_v1, %v20355_v36 }
 0xda6   : > { %v10084_v50 = vpop.f32.mrf.mxu0 }
 0xda7   : > { %v20436_v46 = vadd.f32 %v10084_v50, %v9805_v63  ;;  %v11596_v50 = vld [vmem:[%s17674_s12 + $0x118] sm:$0xff] }
 0xda8   : > { %v16127_v3 = vpop.f32.mrf.mxu0  ;;  %v11688_v30 = vadd.f32 1e-05, %v11596_v50  ;;  %v11601_v50 = vld [vmem:[%s17674_s12 + $0x140] sm:$0xff] }
 0xda9   : > { %v20438_v19 = vadd.f32 %v16127_v3, %v9810_v9 }
 0xdaa   : > { %v10097_v51 = vpop.f32.mrf.mxu0 }
 0xdab   : > { %v20440_v20 = vadd.f32 %v10097_v51, %v9808_v39  ;;  %v11595_v51 = vld [vmem:[%s17674_s12 + $0x110] sm:$0xff] }
 0xdac   : > { %v16128_v7 = vpop.f32.mrf.mxu0  ;;  %v11687_v18 = vadd.f32 1e-05, %v11595_v51  ;;  %v11691_v51 = vadd.f32 1e-05, %v11599_v59 }
 0xdad   : > { %v10127_v33 = vadd.f32 %v16128_v7, %v9811_v40  ;;  %v11594_v40 = vld [vmem:[%s17674_s12 + $0x108] sm:$0xff] }
 0xdae   : > { %v10100_v49 = vpop.f32.mrf.mxu0  ;;  %v11686_v3 = vadd.f32 1e-05, %v11594_v40  ;;  %v11689_v40 = vadd.f32 1e-05, %v11597_v13  ;;  %v11606_v13 = vld [vmem:[%s17674_s12 + $0x168] sm:$0xff] }
 0xdaf   : > { %v20442_v15 = vadd.f32 %v10100_v49, %v9809_v22  ;;  %v11593_v22 = vld [vmem:[%s17674_s12 + $0x100] sm:$0xff]  ;;  %v11698_v59 = vadd.f32 1e-05, %v11606_v13 }
 0xdb0   : > { %v20444_v36 = vpop.f32.mrf.mxu0  ;;  %v11685_v49 = vadd.f32 1e-05, %v11593_v22  ;;  %17319 = vrsqrt.f32 %v11686_v3  ;;  %v11692_v22 = vadd.f32 1e-05, %v11600_v56  ;;  %v11603_v3 = vld [vmem:[%s17674_s12 + $0x150] sm:$0xff]  ;;  %v11605_v56 = vld [vmem:[%s17674_s12 + $0x160] sm:$0xff] }
 0xdb1   : > { %v11697_v27 = vadd.f32 1e-05, %v11605_v56  ;;  %v11609_v13 = vld [vmem:[%s17674_s12 + $0x180] sm:$0xff] }
 0xdb2   : > { %v20446_v63 = vpop.f32.mrf.mxu0  ;;  %17321 = vrsqrt.f32 %v11685_v49  ;;  %v11693_v49 = vadd.f32 1e-05, %v11601_v50  ;;  %v11701_v56 = vadd.f32 1e-05, %v11609_v13 }
 0xdb3   : > { %17323 = vrsqrt.f32 %v11688_v30  ;;  %v11696_v30 = vadd.f32 1e-05, %v11604_v17  ;;  %v11700_v17 = vadd.f32 1e-05, %v11608_v6 }
 0xdb4   : > { %v20448_v57 = vpop.f32.mrf.mxu0  ;;  %17325 = vrsqrt.f32 %v11687_v18  ;;  %v11695_v18 = vadd.f32 1e-05, %v11603_v3 }
 0xdb5   : > { %17327 = vrsqrt.f32 %v11690_v41  ;;  %v11607_v41 = vld [vmem:[%s17674_s12 + $0x170] sm:$0xff] }
 0xdb6   : > { %v20450_v9 = vpop.f32.mrf.mxu0  ;;  %17329 = vrsqrt.f32 %v11689_v40  ;;  %v10114_v40 = vadd.f32 %v20407_v38, %v20237_v5 }
 0xdb7   : > { %17331 = vrsqrt.f32 %v11692_v22  ;;  %v11610_v22 = vld [vmem:[%s17674_s12 + $0x188] sm:$0xff] }
 0xdb8   : > { %v20452_v60 = vpop.f32.mrf.mxu0  ;;  %17333 = vrsqrt.f32 %v11691_v51  ;;  %v11699_v51 = vadd.f32 1e-05, %v11607_v41  ;;  %v10430_v3 = vadd.f32 %v20444_v36, %v10114_v40  ;;  %v11702_v6 = vadd.f32 1e-05, %v11610_v22  ;;  %v11612_v36 = vld [vmem:[%s17674_s12 + $0x198] sm:$0xff] }
 0xdb9   : > { %17335 = vrsqrt.f32 %v11694_v12  ;;  %v10112_v12 = vadd.f32 %v20410_v62, %v20248_v52  ;;  %v22041_v41 = vld [vmem:[#allocation36_spill] sm:$0xff]  ;;  %v10118_v40 = vadd.f32 %v20418_v53, %v20274_v61  ;;  %v11704_v22 = vadd.f32 1e-05, %v11612_v36 }
 0xdba   : > { %v20454_v39 = vpop.f32.mrf.mxu0  ;;  %17337 = vrsqrt.f32 %v11693_v49 }
 0xdbb   : > { %17339 = vrsqrt.f32 %v11696_v30  ;;  %v10115_v30 = vadd.f32 %v20413_v0, %v20255_v8  ;;  %v10428_v52 = vadd.f32 %v20446_v63, %v10112_v12  ;;  %v11611_v0 = vld [vmem:[%s17674_s12 + $0x190] sm:$0xff] }
 0xdbc   : > { %v20456_v55 = vpop.f32.mrf.mxu0  ;;  %17341 = vrsqrt.f32 %v11695_v18  ;;  %v20531_v53 = vadd.f32 1e-05, %v11611_v0 }
 0xdbd   : > { %17343 = vrsqrt.f32 %v11698_v59  ;;  %v20500_v5 = vpop.eup %17319  ;;  %v10431_v59 = vadd.f32 %v20448_v57, %v10115_v30  ;;  %v10434_v30 = vadd.f32 %v20452_v60, %v10118_v40  ;;  %v10122_v60 = vadd.f32 %v20428_v47, %v20335_v10 }
 0xdbe   : > { %v20460_v1 = vpop.f32.mrf.mxu0  ;;  %17345 = vrsqrt.f32 %v11697_v27  ;;  %v10113_v27 = vadd.f32 %v20416_v24, %v20266_v42 }
 0xdbf   : > { %17347 = vrsqrt.f32 %v11700_v17 }
 0xdc0   : > { %v20464_v7 = vpop.f32.mrf.mxu0  ;;  %17349 = vrsqrt.f32 %v11699_v51  ;;  %v10429_v12 = vadd.f32 %v20450_v9, %v10113_v27 }
 0xdc1   : > { %17351 = vrsqrt.f32 %v11702_v6 }
 0xdc2   : > { %v20468_v37 = vpop.f32.mrf.mxu0 }
 0xdc4   : > { %v20472_v31 = vpop.f32.mrf.mxu0 }
 0xdc6   : > { %v20476_v32 = vpop.f32.mrf.mxu0 }
 0xdc8   : > { %v20480_v23 = vpop.f32.mrf.mxu0 }
 0xdca   : > { %v20484_v2 = vpop.f32.mrf.mxu0 }
 0xdcc   : > { %v16178_v25 = vpop.f32.mrf.mxu0 }
 0xdcd   : > { %v20490_v50 = vadd.f32 %v16178_v25, %v10127_v33  ;;  %v20502_v33 = vpop.eup %17321  ;;  %17353 = vrsqrt.f32 %v11701_v56 }
 0xdce   : > { %v10416_v58 = vpop.f32.mrf.mxu0 }
 0xdcf   : > { %v20497_v49 = vadd.f32 %v10416_v58, %v20442_v15  ;;  %v20508_v58 = vpop.eup %17323  ;;  %17355 = vrsqrt.f32 %v11704_v22  ;;  %v22045_v22 = vld [vmem:[#allocation112_spill] sm:$0xff] }
 0xdd0   : > { %v16215_v38 = vpop.f32.mrf.mxu0  ;;  %v20510_v18 = vpop.eup %17325  ;;  %17357 = vrsqrt.f32 %v20531_v53 }
 0xdd1   : > { %v10746_v62 = vadd.f32 %v16215_v38, %v10430_v3  ;;  %v20517_v63 = vpop.eup %17327  ;;  %v22042_v3 = vld [vmem:[#allocation34_spill] sm:$0xff]  ;;  %v10116_v38 = vadd.f32 %v20422_v44, %v20287_v11  ;;  %v10119_v11 = vadd.f32 %v20424_v54, %v20298_v48  ;;  %v10117_v44 = vadd.f32 %v20426_v45, %v20312_v28 }
 0xdd2   : > { %v10681_v15 = vpop.f32.mrf.mxu0  ;;  %v20521_v51 = vpop.eup %17329  ;;  %v10438_v45 = vadd.f32 %v20464_v7, %v10122_v60  ;;  %v10436_v7 = vadd.f32 %v20468_v37, %v20431_v34 }
 0xdd3   : > { %v10858_v25 = vadd.f32 %v22041_v41, %v10746_v62  ;;  %v10744_v8 = vadd.f32 %v10681_v15, %v10428_v52  ;;  %v20526_v13 = vpop.eup %17331  ;;  %v22043_v52 = vld [vmem:[#allocation117_spill] sm:$0xff]  ;;  %v10432_v41 = vadd.f32 %v20454_v39, %v10116_v38  ;;  %v10435_v28 = vadd.f32 %v20456_v55, %v10119_v11 }
 0xdd4   : > { %v16216_v17 = vpop.f32.mrf.mxu0  ;;  %v20533_v6 = vpop.eup %17333  ;;  %v10433_v10 = vadd.f32 %v20460_v1, %v10117_v44  ;;  %v20584_v11 = vadd.f32 %v20480_v23, %v20438_v19  ;;  %v12146_v44 = vld [vmem:[%s21813_s23 + $0x108] sm:$0xff]  ;;  %v11872_v23 = vld [vmem:[%s17669_s4 + $0x118] sm:$0xff] }
 0xdd5   : > { %v10856_v42 = vadd.f32 %v22042_v3, %v10744_v8  ;;  %v10747_v24 = vadd.f32 %v16216_v17, %v10431_v59  ;;  %v11407_v57 = vmul.f32 %v20033_v35, %v10858_v25  ;;  %v20538_v27 = vpop.eup %17335  ;;  %v22044_v25 = vld [vmem:[#allocation115_spill] sm:$0xff]  ;;  %v11870_v3 = vld [vmem:[%s17669_s4 + $0x108] sm:$0xff] }
 0xdd6   : > { %v10684_v61 = vpop.f32.mrf.mxu0  ;;  %v20546_v59 = vpop.eup %17337 }
 0xdd7   : > { %v10859_v9 = vadd.f32 %v22043_v52, %v10747_v24  ;;  %v10745_v62 = vadd.f32 %v10684_v61, %v10429_v12  ;;  %v11427_v36 = vsel %vm2321_vm2, %v11407_v57, 0.0  ;;  %v11405_v15 = vmul.f32 %v20033_v35, %v10856_v42  ;;  %v20551_v54 = vpop.eup %17339  ;;  %v11869_v24 = vld [vmem:[%s17669_s4 + $0x100] sm:$0xff] }
 0xdd8   : > { %11428 = vadd.xlane.f32.xlu0 %v11427_v36  ;;  %v16219_v56 = vpop.f32.mrf.mxu0  ;;  %v20557_v17 = vpop.eup %17341  ;;  %v20576_v36 = vadd.f32 %v20476_v32, %v20436_v46 }
 0xdd9   : > { %v10857_v8 = vadd.f32 %v22044_v25, %v10745_v62  ;;  %v10750_v0 = vadd.f32 %v16219_v56, %v10434_v30  ;;  %v11408_v48 = vmul.f32 %v20033_v35, %v10859_v9  ;;  %v11421_v40 = vsel %vm2321_vm2, %v11405_v15, 0.0  ;;  %v20564_v1 = vpop.eup %17343  ;;  %v22046_v15 = vld [vmem:[#allocation40_spill] sm:$0xff] }
 0xdda   : > { %v10697_v47 = vpop.f32.mrf.mxu0  ;;  %v20570_v30 = vadd.f32 %v20472_v31, %v20434_v21  ;;  %v20572_v62 = vpop.eup %17345  ;;  %v12145_v25 = vld [vmem:[%s21813_s23 + $0x100] sm:$0xff] }
 0xddb   : > { %v10862_v39 = vadd.f32 %v22045_v22, %v10750_v0  ;;  %v10748_v12 = vadd.f32 %v10697_v47, %v10432_v41  ;;  %v11282_v42 = vpop.xlane.xlu1 %11281  ;;  %v11279_v57 = vpop.xlane.xlu0 %11278  ;;  %v11430_v38 = vsel %vm2321_vm2, %v11408_v48, 0.0  ;;  %v11406_v55 = vmul.f32 %v20033_v35, %v10857_v8  ;;  %v22047_v8 = vld [vmem:[#allocation121_spill] sm:$0xff] }
 0xddc   : > { %v11374_v61 = vmul.f32 0.0625, %v11282_v42  ;;  %v11373_v52 = vmul.f32 0.0625, %v11279_v57  ;;  %11422 = vadd.xlane.f32.xlu0 %v11421_v40  ;;  %11431 = vadd.xlane.f32.xlu1 %v11430_v38  ;;  %v16220_v9 = vpop.f32.mrf.mxu0  ;;  %v20580_v21 = vpop.eup %17347  ;;  %v12330_v57 = vld [vmem:[%s21814_s28 + $0x108] sm:$0xff]  ;;  %v12329_v38 = vld [vmem:[%s21814_s28 + $0x100] sm:$0xff] }
 0xddd   : > { %v10860_v37 = vadd.f32 %v22046_v15, %v10748_v12  ;;  %v10751_v34 = vadd.f32 %v16220_v9, %v10435_v28  ;;  %v11411_v31 = vmul.f32 %v20033_v35, %v10862_v39  ;;  %v11424_v46 = vsel %vm2321_vm2, %v11406_v55, 0.0  ;;  %v20592_v41 = vpop.eup %17349  ;;  %v11871_v28 = vld [vmem:[%s17669_s4 + $0x110] sm:$0xff] }
 0xdde   : > { %v11962_v60 = vsub.f32 %v11374_v61, %v11870_v3  ;;  %13183 = vst.msk [vmem:[%s18318_s26 + $0x108] sm:$0xff] %vm13149_vm3, %v11374_v61  ;;  %v11961_v56 = vsub.f32 %v11373_v52, %v11869_v24  ;;  %13182 = vst.msk [vmem:[%s18318_s26 + $0x100] sm:$0xff] %vm13149_vm3, %v11373_v52  ;;  %v10700_v32 = vpop.f32.mrf.mxu0  ;;  %v20602_v24 = vpop.eup %17351  ;;  %v22048_v55 = vld [vmem:[#allocation119_spill] sm:$0xff] }
 0xddf   : > { %v10863_v0 = vadd.f32 %v22047_v8, %v10751_v34  ;;  %v10749_v48 = vadd.f32 %v10700_v32, %v10433_v10  ;;  %v11288_v19 = vpop.xlane.xlu1 %11287  ;;  %v11285_v47 = vpop.xlane.xlu0 %11284  ;;  %v11439_v40 = vsel %vm2321_vm2, %v11411_v31, 0.0  ;;  %v11409_v22 = vmul.f32 %v20033_v35, %v10860_v37  ;;  %v12147_v32 = vld [vmem:[%s21813_s23 + $0x110] sm:$0xff] }
 0xde0   : > { %v12054_v39 = vmul.f32 %v20500_v5, %v11962_v60  ;;  %v12053_v12 = vmul.f32 %v20502_v33, %v11961_v56  ;;  %v11376_v3 = vmul.f32 0.0625, %v11288_v19  ;;  %v11375_v42 = vmul.f32 0.0625, %v11285_v47  ;;  %11425 = vadd.xlane.f32.xlu1 %v11424_v46  ;;  %11440 = vadd.xlane.f32.xlu0 %v11439_v40  ;;  %v16223_v10 = vpop.f32.mrf.mxu0  ;;  %v20613_v60 = vpop.eup %17353  ;;  %v12148_v56 = vld [vmem:[%s21813_s23 + $0x118] sm:$0xff]  ;;  %v11874_v40 = vld [vmem:[%s17669_s4 + $0x128] sm:$0xff] }
 0xde1   : > { %v10861_v61 = vadd.f32 %v22048_v55, %v10749_v48  ;;  %v10754_v52 = vadd.f32 %v16223_v10, %v10438_v45  ;;  %v11433_v5 = vsel %vm2321_vm2, %v11409_v22, 0.0  ;;  %v11412_v33 = vmul.f32 %v20033_v35, %v10863_v0  ;;  %v22049_v45 = vld [vmem:[#allocation116_spill] sm:$0xff] }
 0xde2   : > { %v12238_v9 = vmul.f32 %v12146_v44, %v12054_v39  ;;  %v12237_v15 = vmul.f32 %v12145_v25, %v12053_v12  ;;  %v11964_v37 = vsub.f32 %v11376_v3, %v11872_v23  ;;  %13185 = vst.msk [vmem:[%s18318_s26 + $0x118] sm:$0xff] %vm13149_vm3, %v11376_v3  ;;  %v11963_v34 = vsub.f32 %v11375_v42, %v11871_v28  ;;  %v10713_v31 = vpop.f32.mrf.mxu0  ;;  %v11873_v22 = vld [vmem:[%s17669_s4 + $0x120] sm:$0xff]  ;;  %v20628_v39 = vpop.eup %17355  ;;  %v12332_v12 = vld [vmem:[%s21814_s28 + $0x118] sm:$0xff]  ;;  %v12331_v3 = vld [vmem:[%s21814_s28 + $0x110] sm:$0xff] }
 0xde3   : > { %13184 = vst.msk [vmem:[%s18318_s26 + $0x110] sm:$0xff] %vm13149_vm3, %v11375_v42  ;;  %v10866_v46 = vadd.f32 %v22049_v45, %v10754_v52  ;;  %v10752_v8 = vadd.f32 %v10713_v31, %v10436_v7  ;;  %v11294_v44 = vpop.xlane.xlu1 %11293  ;;  %v11291_v25 = vpop.xlane.xlu0 %11290  ;;  %v11442_v0 = vsel %vm2321_vm2, %v11412_v33, 0.0  ;;  %v11410_v48 = vmul.f32 %v20033_v35, %v10861_v61  ;;  %v22052_v42 = vld [vmem:[#allocation114_spill] sm:$0xff] }
 0xde4   : > { %v20620_v23 = vadd.f32 %v12330_v57, %v12238_v9  ;;  %v20622_v19 = vadd.f32 %v12329_v38, %v12237_v15  ;;  %v12056_v28 = vmul.f32 %v20508_v58, %v11964_v37  ;;  %v12055_v47 = vmul.f32 %v20510_v18, %v11963_v34  ;;  %11434 = vadd.xlane.f32.xlu0 %v11433_v5  ;;  %v16224_v7 = vpop.f32.mrf.mxu0  ;;  %v22053_v9 = vld [vmem:[#allocation124_spill] sm:$0xff] }
 0xde5   : > { %v10864_v10 = vadd.f32 %v22052_v42, %v10752_v8  ;;  %v11378_v57 = vmul.f32 0.0625, %v11294_v44  ;;  %v11377_v38 = vmul.f32 0.0625, %v11291_v25  ;;  %11443 = vadd.xlane.f32.xlu1 %v11442_v0  ;;  %v10755_v58 = vadd.f32 %v16224_v7, %v20570_v30  ;;  %v11876_v34 = vld [vmem:[%s17669_s4 + $0x138] sm:$0xff]  ;;  %v12150_v8 = vld [vmem:[%s21813_s23 + $0x128] sm:$0xff]  ;;  %v12149_v44 = vld [vmem:[%s21813_s23 + $0x120] sm:$0xff] }
 0xde6   : > { %22050 = vst [vmem:[#allocation97_spill] sm:$0xff] %v20620_v23  ;;  %22051 = vst [vmem:[#allocation37_spill] sm:$0xff] %v20622_v19  ;;  %v12240_v18 = vmul.f32 %v12148_v56, %v12056_v28  ;;  %v12239_v55 = vmul.f32 %v12147_v32, %v12055_v47  ;;  %v10716_v61 = vpop.f32.mrf.mxu0  ;;  %v11436_v52 = vsel %vm2321_vm2, %v11410_v48, 0.0  ;;  %v11415_v5 = vmul.f32 %v20033_v35, %v10866_v46  ;;  %v11875_v56 = vld [vmem:[%s17669_s4 + $0x130] sm:$0xff]  ;;  %v12333_v7 = vld [vmem:[%s21814_s28 + $0x120] sm:$0xff] }
 0xde7   : > { %13275 = vst.msk [vmem:[%s18353_s2 + $0x108] sm:$0xff] %vm13149_vm3, %v20620_v23  ;;  %13274 = vst.msk [vmem:[%s18353_s2 + $0x100] sm:$0xff] %vm13149_vm3, %v20622_v19  ;;  %v11966_v33 = vsub.f32 %v11378_v57, %v11874_v40  ;;  %v11965_v30 = vsub.f32 %v11377_v38, %v11873_v22  ;;  %v10867_v15 = vadd.f32 %v22053_v9, %v10755_v58  ;;  %v11300_v31 = vpop.xlane.xlu1 %11299  ;;  %v11297_v32 = vpop.xlane.xlu0 %11296  ;;  %v12334_v22 = vld [vmem:[%s21814_s28 + $0x128] sm:$0xff]  ;;  %v11877_v9 = vld [vmem:[%s17669_s4 + $0x140] sm:$0xff] }
 0xde8   : > { %13187 = vst.msk [vmem:[%s18318_s26 + $0x128] sm:$0xff] %vm13149_vm3, %v11378_v57  ;;  %13186 = vst.msk [vmem:[%s18318_s26 + $0x120] sm:$0xff] %vm13149_vm3, %v11377_v38  ;;  %v10753_v37 = vadd.f32 %v10716_v61, %v20576_v36  ;;  %v20650_v45 = vadd.f32 %v12332_v12, %v12240_v18  ;;  %v20652_v46 = vadd.f32 %v12331_v3, %v12239_v55  ;;  %v11380_v25 = vmul.f32 0.0625, %v11300_v31  ;;  %v16227_v48 = vpop.f32.mrf.mxu0  ;;  %v12152_v57 = vld [vmem:[%s21813_s23 + $0x138] sm:$0xff]  ;;  %v12151_v38 = vld [vmem:[%s21813_s23 + $0x130] sm:$0xff] }
 0xde9   : > { %v11379_v0 = vmul.f32 0.0625, %v11297_v32  ;;  %v10440_v36 = vadd.f32 %v20484_v2, %v20440_v20  ;;  %v12058_v28 = vmul.f32 %v20517_v63, %v11966_v33  ;;  %v12057_v47 = vmul.f32 %v20521_v51, %v11965_v30  ;;  %11437 = vadd.xlane.f32.xlu1 %v11436_v52  ;;  %v11878_v18 = vld [vmem:[%s17669_s4 + $0x148] sm:$0xff]  ;;  %v12335_v32 = vld [vmem:[%s21814_s28 + $0x130] sm:$0xff] }
 0xdea   : > { %22054 = vst [vmem:[#allocation44_spill] sm:$0xff] %v20650_v45  ;;  %22055 = vst [vmem:[#allocation96_spill] sm:$0xff] %v20652_v46  ;;  %v11451_v40 = vsel %vm2321_vm2, %v11415_v5, 0.0  ;;  %v11968_v12 = vsub.f32 %v11380_v25, %v11876_v34  ;;  %v10758_v20 = vadd.f32 %v16227_v48, %v20584_v11  ;;  %v10729_v63 = vpop.f32.mrf.mxu0  ;;  %v11413_v51 = vmul.f32 %v20033_v35, %v10864_v10  ;;  %v22056_v5 = vld [vmem:[#allocation123_spill] sm:$0xff]  ;;  %v11614_v34 = vld [vmem:[%s17674_s12 + $0x1a8] sm:$0xff] }
 0xdeb   : > { %13277 = vst.msk [vmem:[%s18353_s2 + $0x118] sm:$0xff] %vm13149_vm3, %v20650_v45  ;;  %13276 = vst.msk [vmem:[%s18353_s2 + $0x110] sm:$0xff] %vm13149_vm3, %v20652_v46  ;;  %v11967_v2 = vsub.f32 %v11379_v0, %v11875_v56  ;;  %11452 = vadd.xlane.f32.xlu0 %v11451_v40  ;;  %v12242_v3 = vmul.f32 %v12150_v8, %v12058_v28  ;;  %v12241_v42 = vmul.f32 %v12149_v44, %v12057_v47  ;;  %v11306_v55 = vpop.xlane.xlu1 %11305  ;;  %v11303_v61 = vpop.xlane.xlu0 %11302  ;;  %v22057_v8 = vld [vmem:[#allocation120_spill] sm:$0xff]  ;;  %v12154_v47 = vld [vmem:[%s21813_s23 + $0x148] sm:$0xff] }
 0xdec   : > { %13189 = vst.msk [vmem:[%s18318_s26 + $0x138] sm:$0xff] %vm13149_vm3, %v11380_v25  ;;  %13188 = vst.msk [vmem:[%s18318_s26 + $0x130] sm:$0xff] %vm13149_vm3, %v11379_v0  ;;  %v10756_v58 = vadd.f32 %v10729_v63, %v10440_v36  ;;  %v11416_v52 = vmul.f32 %v20033_v35, %v10867_v15  ;;  %v10865_v11 = vadd.f32 %v22056_v5, %v10753_v37  ;;  %v11382_v30 = vmul.f32 0.0625, %v11306_v55  ;;  %v12336_v15 = vld [vmem:[%s21814_s28 + $0x138] sm:$0xff]  ;;  %v11613_v48 = vld [vmem:[%s17674_s12 + $0x1a0] sm:$0xff] }
 0xded   : > { %v12060_v33 = vmul.f32 %v20526_v13, %v11968_v12  ;;  %v12059_v10 = vmul.f32 %v20533_v6, %v11967_v2  ;;  %v20684_v31 = vadd.f32 %v12334_v22, %v12242_v3  ;;  %v20686_v56 = vadd.f32 %v12333_v7, %v12241_v42  ;;  %v22058_v36 = vld [vmem:[#allocation118_spill] sm:$0xff]  ;;  %v11880_v7 = vld [vmem:[%s17669_s4 + $0x158] sm:$0xff]  ;;  %v12153_v42 = vld [vmem:[%s21813_s23 + $0x140] sm:$0xff] }
 0xdee   : > { %v10870_v37 = vadd.f32 %v22057_v8, %v10758_v20  ;;  %v11381_v13 = vmul.f32 0.0625, %v11303_v61  ;;  %v11970_v6 = vsub.f32 %v11382_v30, %v11878_v18  ;;  %13191 = vst.msk [vmem:[%s18318_s26 + $0x148] sm:$0xff] %vm13149_vm3, %v11382_v30  ;;  %v11445_v0 = vsel %vm2321_vm2, %v11413_v51, 0.0  ;;  %v12155_v30 = vld [vmem:[%s21813_s23 + $0x150] sm:$0xff]  ;;  %v11616_v8 = vld [vmem:[%s17674_s12 + $0x1b8] sm:$0xff] }
 0xdef   : > { %v12244_v44 = vmul.f32 %v12152_v57, %v12060_v33  ;;  %v12243_v25 = vmul.f32 %v12151_v38, %v12059_v10  ;;  %13279 = vst.msk [vmem:[%s18353_s2 + $0x128] sm:$0xff] %vm13149_vm3, %v20684_v31  ;;  %13278 = vst.msk [vmem:[%s18353_s2 + $0x120] sm:$0xff] %vm13149_vm3, %v20686_v56  ;;  %v10868_v28 = vadd.f32 %v22058_v36, %v10756_v58  ;;  %11446 = vadd.xlane.f32.xlu0 %v11445_v0  ;;  %v11312_v12 = vpop.xlane.xlu1 %11311  ;;  %v11309_v2 = vpop.xlane.xlu0 %11308  ;;  %v11879_v38 = vld [vmem:[%s17669_s4 + $0x150] sm:$0xff]  ;;  %v12338_v58 = vld [vmem:[%s21814_s28 + $0x148] sm:$0xff] }
 0xdf0   : > { %v11969_v40 = vsub.f32 %v11381_v13, %v11877_v9  ;;  %13190 = vst.msk [vmem:[%s18318_s26 + $0x140] sm:$0xff] %vm13149_vm3, %v11381_v13  ;;  %v11454_v22 = vsel %vm2321_vm2, %v11416_v52, 0.0  ;;  %v11706_v20 = vadd.f32 1e-05, %v11614_v34  ;;  %v12062_v3 = vmul.f32 %v20538_v27, %v11970_v6  ;;  %v12337_v52 = vld [vmem:[%s21814_s28 + $0x140] sm:$0xff]  ;;  %v12156_v10 = vld [vmem:[%s21813_s23 + $0x158] sm:$0xff] }
 0xdf1   : > { %v20707_v63 = vadd.f32 %v12336_v15, %v12244_v44  ;;  %v20709_v51 = vadd.f32 %v12335_v32, %v12243_v25  ;;  %11455 = vadd.xlane.f32.xlu1 %v11454_v22  ;;  %v11384_v57 = vmul.f32 0.0625, %v11312_v12  ;;  %v11383_v55 = vmul.f32 0.0625, %v11309_v2  ;;  %v11882_v25 = vld [vmem:[%s17669_s4 + $0x168] sm:$0xff]  ;;  %v11881_v6 = vld [vmem:[%s17669_s4 + $0x160] sm:$0xff]  ;;  %v11615_v0 = vld [vmem:[%s17674_s12 + $0x1b0] sm:$0xff] }
 0xdf2   : > { %v12061_v18 = vmul.f32 %v20546_v59, %v11969_v40  ;;  %v11705_v61 = vadd.f32 1e-05, %v11613_v48  ;;  %v12246_v27 = vmul.f32 %v12154_v47, %v12062_v3  ;;  %v11414_v33 = vmul.f32 %v20033_v35, %v10865_v11  ;;  %v12340_v36 = vld [vmem:[%s21814_s28 + $0x158] sm:$0xff]  ;;  %v12339_v22 = vld [vmem:[%s21814_s28 + $0x150] sm:$0xff] }
 0xdf3   : > { %22059 = vst [vmem:[#allocation99_spill] sm:$0xff] %v20707_v63  ;;  %22060 = vst [vmem:[#allocation98_spill] sm:$0xff] %v20709_v51  ;;  %v11972_v5 = vsub.f32 %v11384_v57, %v11880_v7  ;;  %v11419_v59 = vmul.f32 %v20033_v35, %v10870_v37  ;;  %v11971_v9 = vsub.f32 %v11383_v55, %v11879_v38  ;;  %v11318_v34 = vpop.xlane.xlu1 %11317  ;;  %v11315_v15 = vpop.xlane.xlu0 %11314  ;;  %17359 = vrsqrt.f32 %v11706_v20  ;;  %v11884_v20 = vld [vmem:[%s17669_s4 + $0x178] sm:$0xff]  ;;  %v11919_v19 = vld [vmem:[%s17669_s4 + $0x290] sm:$0xff] }
 0xdf4   : > { %13281 = vst.msk [vmem:[%s18353_s2 + $0x138] sm:$0xff] %vm13149_vm3, %v20707_v63  ;;  %13280 = vst.msk [vmem:[%s18353_s2 + $0x130] sm:$0xff] %vm13149_vm3, %v20709_v51  ;;  %v12245_v53 = vmul.f32 %v12153_v42, %v12061_v18  ;;  %v11417_v32 = vmul.f32 %v20033_v35, %v10868_v28  ;;  %v20734_v11 = vadd.f32 %v12338_v58, %v12246_v27  ;;  %v11448_v13 = vsel %vm2321_vm2, %v11414_v33, 0.0  ;;  %v11883_v42 = vld [vmem:[%s17669_s4 + $0x170] sm:$0xff]  ;;  %v12158_v18 = vld [vmem:[%s21813_s23 + $0x168] sm:$0xff] }
 0xdf5   : > { %13193 = vst.msk [vmem:[%s18318_s26 + $0x158] sm:$0xff] %vm13149_vm3, %v11384_v57  ;;  %13192 = vst.msk [vmem:[%s18318_s26 + $0x150] sm:$0xff] %vm13149_vm3, %v11383_v55  ;;  %v12064_v37 = vmul.f32 %v20551_v54, %v11972_v5  ;;  %v11463_v44 = vsel %vm2321_vm2, %v11419_v59, 0.0  ;;  %v12063_v28 = vmul.f32 %v20557_v17, %v11971_v9  ;;  %11449 = vadd.xlane.f32.xlu1 %v11448_v13  ;;  %v11386_v54 = vmul.f32 0.0625, %v11318_v34  ;;  %v12157_v55 = vld [vmem:[%s21813_s23 + $0x160] sm:$0xff]  ;;  %v11618_v5 = vld [vmem:[%s17674_s12 + $0x1c8] sm:$0xff] }
 0xdf6   : > { %v20742_v48 = vadd.f32 %v12337_v52, %v12245_v53  ;;  %11464 = vadd.xlane.f32.xlu0 %v11463_v44  ;;  %v11385_v47 = vmul.f32 0.0625, %v11315_v15  ;;  %13283 = vst.msk [vmem:[%s18353_s2 + $0x148] sm:$0xff] %vm13149_vm3, %v20734_v11  ;;  %17361 = vrsqrt.f32 %v11705_v61  ;;  %v11708_v7 = vadd.f32 1e-05, %v11616_v8  ;;  %v12342_v59 = vld [vmem:[%s21814_s28 + $0x168] sm:$0xff]  ;;  %v12160_v9 = vld [vmem:[%s21813_s23 + $0x178] sm:$0xff] }
 0xdf7   : > { %v12248_v40 = vmul.f32 %v12156_v10, %v12064_v37  ;;  %v12247_v12 = vmul.f32 %v12155_v30, %v12063_v28  ;;  %v11974_v17 = vsub.f32 %v11386_v54, %v11882_v25  ;;  %13195 = vst.msk [vmem:[%s18318_s26 + $0x168] sm:$0xff] %vm13149_vm3, %v11386_v54  ;;  %v11324_v3 = vpop.xlane.xlu1 %11323  ;;  %v11321_v57 = vpop.xlane.xlu0 %11320  ;;  %v11707_v38 = vadd.f32 1e-05, %v11615_v0  ;;  %v12341_v10 = vld [vmem:[%s21814_s28 + $0x160] sm:$0xff]  ;;  %v12159_v37 = vld [vmem:[%s21813_s23 + $0x170] sm:$0xff]  ;;  %v11886_v13 = vld [vmem:[%s17669_s4 + $0x188] sm:$0xff] }
 0xdf8   : > { %13282 = vst.msk [vmem:[%s18353_s2 + $0x140] sm:$0xff] %vm13149_vm3, %v20742_v48  ;;  %v11973_v2 = vsub.f32 %v11385_v47, %v11881_v6  ;;  %13194 = vst.msk [vmem:[%s18318_s26 + $0x160] sm:$0xff] %vm13149_vm3, %v11385_v47  ;;  %v11457_v61 = vsel %vm2321_vm2, %v11417_v32, 0.0  ;;  %v11388_v27 = vmul.f32 0.0625, %v11324_v3  ;;  %v11387_v52 = vmul.f32 0.0625, %v11321_v57  ;;  %v11617_v32 = vld [vmem:[%s17674_s12 + $0x1c0] sm:$0xff] }
 0xdf9   : > { %v20759_v58 = vadd.f32 %v12340_v36, %v12248_v40  ;;  %v20765_v33 = vadd.f32 %v12339_v22, %v12247_v12  ;;  %v12066_v53 = vmul.f32 %v20564_v1, %v11974_v17  ;;  %17363 = vrsqrt.f32 %v11708_v7  ;;  %v11620_v1 = vld [vmem:[%s17674_s12 + $0x1d8] sm:$0xff]  ;;  %v11885_v25 = vld [vmem:[%s17669_s4 + $0x180] sm:$0xff]  ;;  %v11619_v40 = vld [vmem:[%s17674_s12 + $0x1d0] sm:$0xff] }
 0xdfa   : > { %v12065_v30 = vmul.f32 %v20572_v62, %v11973_v2  ;;  %11458 = vadd.xlane.f32.xlu0 %v11457_v61  ;;  %v11976_v34 = vsub.f32 %v11388_v27, %v11884_v20  ;;  %13197 = vst.msk [vmem:[%s18318_s26 + $0x178] sm:$0xff] %vm13149_vm3, %v11388_v27  ;;  %v11975_v15 = vsub.f32 %v11387_v52, %v11883_v42  ;;  %13196 = vst.msk [vmem:[%s18318_s26 + $0x170] sm:$0xff] %vm13149_vm3, %v11387_v52  ;;  %v12344_v12 = vld [vmem:[%s21814_s28 + $0x178] sm:$0xff]  ;;  %v12343_v17 = vld [vmem:[%s21814_s28 + $0x170] sm:$0xff] }
 0xdfb   : > { %13285 = vst.msk [vmem:[%s18353_s2 + $0x158] sm:$0xff] %vm13149_vm3, %v20759_v58  ;;  %13284 = vst.msk [vmem:[%s18353_s2 + $0x150] sm:$0xff] %vm13149_vm3, %v20765_v33  ;;  %v12250_v62 = vmul.f32 %v12158_v18, %v12066_v53  ;;  %v11330_v44 = vpop.xlane.xlu1 %11329  ;;  %v11327_v6 = vpop.xlane.xlu0 %11326  ;;  %17365 = vrsqrt.f32 %v11707_v38  ;;  %v11710_v0 = vadd.f32 1e-05, %v11618_v5  ;;  %v11709_v2 = vadd.f32 1e-05, %v11617_v32 }
 0xdfc   : > { %v12249_v8 = vmul.f32 %v12157_v55, %v12065_v30  ;;  %v12068_v36 = vmul.f32 %v20580_v21, %v11976_v34  ;;  %v12067_v28 = vmul.f32 %v20592_v41, %v11975_v15  ;;  %v11390_v54 = vmul.f32 0.0625, %v11330_v44  ;;  %v17358_v21 = vpop.eup %17357  ;;  %v11622_v38 = vld [vmem:[%s17674_s12 + $0x1e8] sm:$0xff]  ;;  %v12161_v55 = vld [vmem:[%s21813_s23 + $0x180] sm:$0xff]  ;;  %v11887_v34 = vld [vmem:[%s17669_s4 + $0x190] sm:$0xff] }
 0xdfd   : > { %v11389_v47 = vmul.f32 0.0625, %v11327_v6  ;;  %v20790_v22 = vadd.f32 %v12342_v59, %v12250_v62  ;;  %v11712_v20 = vadd.f32 1e-05, %v11620_v1  ;;  %v12162_v18 = vld [vmem:[%s21813_s23 + $0x188] sm:$0xff]  ;;  %17367 = vrsqrt.f32 %v11710_v0  ;;  %v11621_v15 = vld [vmem:[%s17674_s12 + $0x1e0] sm:$0xff]  ;;  %v12196_v51 = vld [vmem:[%s21813_s23 + $0x298] sm:$0xff] }
 0xdfe   : > { %v20792_v7 = vadd.f32 %v12341_v10, %v12249_v8  ;;  %v12252_v3 = vmul.f32 %v12160_v9, %v12068_v36  ;;  %v12251_v41 = vmul.f32 %v12159_v37, %v12067_v28  ;;  %v11978_v42 = vsub.f32 %v11390_v54, %v11886_v13  ;;  %13199 = vst.msk [vmem:[%s18318_s26 + $0x188] sm:$0xff] %vm13149_vm3, %v11390_v54  ;;  %v11888_v9 = vld [vmem:[%s17669_s4 + $0x198] sm:$0xff]  ;;  %v12346_v32 = vld [vmem:[%s21814_s28 + $0x188] sm:$0xff]  ;;  %v12345_v1 = vld [vmem:[%s21814_s28 + $0x180] sm:$0xff] }
 0xdff   : > { %v11977_v57 = vsub.f32 %v11389_v47, %v11885_v25  ;;  %13198 = vst.msk [vmem:[%s18318_s26 + $0x180] sm:$0xff] %vm13149_vm3, %v11389_v47  ;;  %13287 = vst.msk [vmem:[%s18353_s2 + $0x168] sm:$0xff] %vm13149_vm3, %v20790_v22  ;;  %v11336_v61 = vpop.xlane.xlu1 %11335  ;;  %v11333_v27 = vpop.xlane.xlu0 %11332  ;;  %v11711_v52 = vadd.f32 1e-05, %v11619_v40  ;;  %17369 = vrsqrt.f32 %v11709_v2  ;;  %v11714_v37 = vadd.f32 1e-05, %v11622_v38 }
 0xe00   : > { %13286 = vst.msk [vmem:[%s18353_s2 + $0x160] sm:$0xff] %vm13149_vm3, %v20792_v7  ;;  %v20809_v5 = vpop.eup %17359  ;;  %v20811_v59 = vadd.f32 %v12344_v12, %v12252_v3  ;;  %v20813_v53 = vadd.f32 %v12343_v17, %v12251_v41  ;;  %v12070_v10 = vmul.f32 %v20602_v24, %v11978_v42  ;;  %v11392_v62 = vmul.f32 0.0625, %v11336_v61  ;;  %v11890_v6 = vld [vmem:[%s17669_s4 + $0x1a8] sm:$0xff]  ;;  %v11889_v36 = vld [vmem:[%s17669_s4 + $0x1a0] sm:$0xff]  ;;  %v11624_v47 = vld [vmem:[%s17674_s12 + $0x1f8] sm:$0xff] }
 0xe01   : > { %v12069_v30 = vmul.f32 %v20613_v60, %v11977_v57  ;;  %v11391_v8 = vmul.f32 0.0625, %v11333_v27  ;;  %17371 = vrsqrt.f32 %v11712_v20  ;;  %v11713_v54 = vadd.f32 1e-05, %v11621_v15  ;;  %v12164_v17 = vld [vmem:[%s21813_s23 + $0x198] sm:$0xff]  ;;  %v12163_v2 = vld [vmem:[%s21813_s23 + $0x190] sm:$0xff]  ;;  %v12381_v63 = vld [vmem:[%s21814_s28 + $0x2a0] sm:$0xff] }
 0xe02   : > { %13289 = vst.msk [vmem:[%s18353_s2 + $0x178] sm:$0xff] %vm13149_vm3, %v20811_v59  ;;  %13288 = vst.msk [vmem:[%s18353_s2 + $0x170] sm:$0xff] %vm13149_vm3, %v20813_v53  ;;  %v12254_v24 = vmul.f32 %v12162_v18, %v12070_v10  ;;  %v11980_v44 = vsub.f32 %v11392_v62, %v11888_v9  ;;  %17373 = vrsqrt.f32 %v11711_v52  ;;  %v12348_v41 = vld [vmem:[%s21814_s28 + $0x198] sm:$0xff]  ;;  %v12347_v38 = vld [vmem:[%s21814_s28 + $0x190] sm:$0xff]  ;;  %v22063_v18 = vpack.i.bf16 %v20389_v14, %v20387_v29 }
 0xe03   : > { %v12253_v60 = vmul.f32 %v12161_v55, %v12069_v30  ;;  %v17362_v13 = vpop.eup %17361  ;;  %13201 = vst.msk [vmem:[%s18318_s26 + $0x198] sm:$0xff] %vm13149_vm3, %v11392_v62  ;;  %v11979_v25 = vsub.f32 %v11391_v8, %v11887_v34  ;;  %13200 = vst.msk [vmem:[%s18318_s26 + $0x190] sm:$0xff] %vm13149_vm3, %v11391_v8  ;;  %v11342_v0 = vpop.xlane.xlu1 %11341  ;;  %17375 = vrsqrt.f32 %v11714_v37  ;;  %v12166_v55 = vld [vmem:[%s21813_s23 + $0x1a8] sm:$0xff]  ;;  %v11623_v27 = vld [vmem:[%s17674_s12 + $0x1f0] sm:$0xff] }
 0xe04   : > { %v11339_v28 = vpop.xlane.xlu0 %11338  ;;  %v20835_v40 = vadd.f32 %v12346_v32, %v12254_v24  ;;  %v11394_v20 = vmul.f32 0.0625, %v11342_v0  ;;  %v12072_v42 = vmul.f32 %v20628_v39, %v11980_v44  ;;  %v12165_v29 = vld [vmem:[%s21813_s23 + $0x1a0] sm:$0xff]  ;;  %v11892_v14 = vld [vmem:[%s17669_s4 + $0x1b8] sm:$0xff]  ;;  %v11891_v15 = vld [vmem:[%s17669_s4 + $0x1b0] sm:$0xff]  ;;  %17377 = vrsqrt.f32 %v11713_v54 }
 0xe05   : > { %v20837_v12 = vadd.f32 %v12345_v1, %v12253_v60  ;;  %v11393_v3 = vmul.f32 0.0625, %v11339_v28  ;;  %v12071_v57 = vmul.f32 %v17358_v21, %v11979_v25  ;;  %v11716_v21 = vadd.f32 1e-05, %v11624_v47  ;;  %v12349_v0 = vld [vmem:[%s21814_s28 + $0x1a0] sm:$0xff]  ;;  %v22080_v28 = vld [vmem:[#allocation55_spill] sm:$0xff] }
 0xe06   : > { %22061 = vst [vmem:[#allocation45_spill] sm:$0xff] %v20835_v40  ;;  %13291 = vst.msk [vmem:[%s18353_s2 + $0x188] sm:$0xff] %vm13149_vm3, %v20835_v40  ;;  %16338 = vperm.xlu1 %16286, %v22063_v18   ;;  %v11982_v61 = vsub.f32 %v11394_v20, %v11890_v6  ;;  %v17364_v10 = vpop.eup %17363  ;;  %v12256_v30 = vmul.f32 %v12164_v17, %v12072_v42  ;;  %v12350_v6 = vld [vmem:[%s21814_s28 + $0x1a8] sm:$0xff]  ;;  %v12168_v17 = vld [vmem:[%s21813_s23 + $0x1b8] sm:$0xff] }
 0xe07   : > { %22062 = vst [vmem:[#allocation46_spill] sm:$0xff] %v20837_v12  ;;  %13290 = vst.msk [vmem:[%s18353_s2 + $0x180] sm:$0xff] %vm13149_vm3, %v20837_v12  ;;  %v11981_v39 = vsub.f32 %v11393_v3, %v11889_v36  ;;  %v12255_v9 = vmul.f32 %v12163_v2, %v12071_v57  ;;  %v11348_v34 = vpop.xlane.xlu1 %11347  ;;  %v11715_v36 = vadd.f32 1e-05, %v11623_v27  ;;  %v12167_v2 = vld [vmem:[%s21813_s23 + $0x1b0] sm:$0xff]  ;;  %17379 = vrsqrt.f32 %v11716_v21  ;;  %v11894_v27 = vld [vmem:[%s17669_s4 + $0x1c8] sm:$0xff] }
 0xe08   : > { %13203 = vst.msk [vmem:[%s18318_s26 + $0x1a8] sm:$0xff] %vm13149_vm3, %v11394_v20  ;;  %13202 = vst.msk [vmem:[%s18318_s26 + $0x1a0] sm:$0xff] %vm13149_vm3, %v11393_v3  ;;  %v11345_v32 = vpop.xlane.xlu0 %11344  ;;  %v17366_v62 = vpop.eup %17365  ;;  %v12074_v8 = vmul.f32 %v20809_v5, %v11982_v61  ;;  %v11396_v24 = vmul.f32 0.0625, %v11348_v34  ;;  %v20867_v44 = vadd.f32 %v12348_v41, %v12256_v30  ;;  %v11893_v21 = vld [vmem:[%s17669_s4 + $0x1c0] sm:$0xff]  ;;  %v12352_v30 = vld [vmem:[%s21814_s28 + $0x1b8] sm:$0xff] }
 0xe09   : > { %v12073_v37 = vmul.f32 %v17362_v13, %v11981_v39  ;;  %v11395_v60 = vmul.f32 0.0625, %v11345_v32  ;;  %v20869_v25 = vadd.f32 %v12347_v38, %v12255_v9  ;;  %v12351_v9 = vld [vmem:[%s21814_s28 + $0x1b0] sm:$0xff]  ;;  %17381 = vrsqrt.f32 %v11715_v36  ;;  %v16228_v41 = vpop.f32.mrf.mxu0  ;;  %v12376_v40 = vld [vmem:[%s21814_s28 + $0x278] sm:$0xff] }
 0xe0a   : > { %22064 = vst [vmem:[#allocation78_spill] sm:$0xff] %v20867_v44  ;;  %v12258_v54 = vmul.f32 %v12166_v55, %v12074_v8  ;;  %v11984_v5 = vsub.f32 %v11396_v24, %v11892_v14  ;;  %13205 = vst.msk [vmem:[%s18318_s26 + $0x1b8] sm:$0xff] %vm13149_vm3, %v11396_v24  ;;  %v17368_v38 = vpop.eup %17367  ;;  %v11895_v36 = vld [vmem:[%s17669_s4 + $0x1d0] sm:$0xff] }
 0xe0b   : > { %22065 = vst [vmem:[#allocation100_spill] sm:$0xff] %v20869_v25  ;;  %v12257_v47 = vmul.f32 %v12165_v29, %v12073_v37  ;;  %v11983_v13 = vsub.f32 %v11395_v60, %v11891_v15  ;;  %13204 = vst.msk [vmem:[%s18318_s26 + $0x1b0] sm:$0xff] %vm13149_vm3, %v11395_v60  ;;  %v11354_v20 = vpop.xlane.xlu1 %11353  ;;  %v22068_v37 = vpack.i.bf16 %v20216_v26, %v20214_v43 }
 0xe0c   : > { %13293 = vst.msk [vmem:[%s18353_s2 + $0x198] sm:$0xff] %vm13149_vm3, %v20867_v44  ;;  %13292 = vst.msk [vmem:[%s18353_s2 + $0x190] sm:$0xff] %vm13149_vm3, %v20869_v25  ;;  %v11351_v3 = vpop.xlane.xlu0 %11350  ;;  %v20893_v18 = vadd.f32 %v12350_v6, %v12258_v54  ;;  %v12076_v61 = vmul.f32 %v17364_v10, %v11984_v5  ;;  %v11398_v29 = vmul.f32 0.0625, %v11354_v20  ;;  %v17370_v15 = vpop.eup %17369  ;;  %v11896_v6 = vld [vmem:[%s17669_s4 + $0x1d8] sm:$0xff] }
 0xe0d   : > { %v20895_v55 = vadd.f32 %v12349_v0, %v12257_v47  ;;  %v12075_v39 = vmul.f32 %v17366_v62, %v11983_v13  ;;  %v11397_v14 = vmul.f32 0.0625, %v11351_v3 }
 0xe0e   : > { %22066 = vst [vmem:[#allocation72_spill] sm:$0xff] %v20893_v18  ;;  %13295 = vst.msk [vmem:[%s18353_s2 + $0x1a8] sm:$0xff] %vm13149_vm3, %v20893_v18  ;;  %v12260_v10 = vmul.f32 %v12168_v17, %v12076_v61  ;;  %v17372_v8 = vpop.eup %17371  ;;  %v11986_v24 = vsub.f32 %v11398_v29, %v11894_v27  ;;  %v12170_v17 = vld [vmem:[%s21813_s23 + $0x1c8] sm:$0xff] }
 0xe0f   : > { %22067 = vst [vmem:[#allocation79_spill] sm:$0xff] %v20895_v55  ;;  %13294 = vst.msk [vmem:[%s18353_s2 + $0x1a0] sm:$0xff] %vm13149_vm3, %v20895_v55  ;;  %v12259_v32 = vmul.f32 %v12167_v2, %v12075_v39  ;;  %v11985_v60 = vsub.f32 %v11397_v14, %v11893_v21  ;;  %v11360_v0 = vpop.xlane.xlu1 %11359  ;;  %v17374_v26 = vpop.eup %17373  ;;  %v12169_v2 = vld [vmem:[%s21813_s23 + $0x1c0] sm:$0xff]  ;;  %v11922_v18 = vld [vmem:[%s17669_s4 + $0x2a8] sm:$0xff] }
 0xe10   : > { %16333 = vperm.xlu0 %16285, %v22068_v37   ;;  %13207 = vst.msk [vmem:[%s18318_s26 + $0x1c8] sm:$0xff] %vm13149_vm3, %v11398_v29  ;;  %13206 = vst.msk [vmem:[%s18318_s26 + $0x1c0] sm:$0xff] %vm13149_vm3, %v11397_v14  ;;  %v11357_v54 = vpop.xlane.xlu0 %11356  ;;  %v20924_v5 = vadd.f32 %v12352_v30, %v12260_v10  ;;  %v11400_v20 = vmul.f32 0.0625, %v11360_v0  ;;  %v20930_v61 = vpop.f32.mrf.mxu1  ;;  %v12078_v39 = vmul.f32 %v17368_v38, %v11986_v24  ;;  %v12354_v30 = vld [vmem:[%s21814_s28 + $0x1c8] sm:$0xff]  ;;  %v12172_v14 = vld [vmem:[%s21813_s23 + $0x1d8] sm:$0xff] }
 0xe11   : > { %v20926_v13 = vadd.f32 %v12351_v9, %v12259_v32  ;;  %v11399_v3 = vmul.f32 0.0625, %v11357_v54  ;;  %v12077_v27 = vmul.f32 %v17370_v15, %v11985_v60  ;;  %v10996_v21 = vpack.c.bf16 %v20930_v61, %v20930_v61  ;;  %v17376_v29 = vpop.eup %17375  ;;  %v12353_v9 = vld [vmem:[%s21814_s28 + $0x1c0] sm:$0xff]  ;;  %v12171_v60 = vld [vmem:[%s21813_s23 + $0x1d0] sm:$0xff]  ;;  %v11898_v0 = vld [vmem:[%s17669_s4 + $0x1e8] sm:$0xff] }
 0xe12   : > { %13297 = vst.msk [vmem:[%s18353_s2 + $0x1b8] sm:$0xff] %vm13149_vm3, %v20924_v5  ;;  %v11988_v10 = vsub.f32 %v11400_v20, %v11896_v6  ;;  %13209 = vst.msk [vmem:[%s18318_s26 + $0x1d8] sm:$0xff] %vm13149_vm3, %v11400_v20  ;;  %v16233_v15 = vpop.f32.mrf.mxu1  ;;  %v12262_v37 = vmul.f32 %v12170_v17, %v12078_v39  ;;  %v11897_v6 = vld [vmem:[%s17669_s4 + $0x1e0] sm:$0xff] }
 0xe13   : > { %13296 = vst.msk [vmem:[%s18353_s2 + $0x1b0] sm:$0xff] %vm13149_vm3, %v20926_v13  ;;  %v11987_v38 = vsub.f32 %v11399_v3, %v11895_v36  ;;  %13208 = vst.msk [vmem:[%s18318_s26 + $0x1d0] sm:$0xff] %vm13149_vm3, %v11399_v3  ;;  %v12261_v24 = vmul.f32 %v12169_v2, %v12077_v27  ;;  %14840 = vmatmul.mubr.msk.bf16.vlgmr.msra.gmra.mxu1 %vm1521_vm0, %v10996_v21  ;;  %v11366_v54 = vpop.xlane.xlu1 %11365  ;;  %v17378_v36 = vpop.eup %17377  ;;  %v12356_v27 = vld [vmem:[%s21814_s28 + $0x1d8] sm:$0xff]  ;;  %v12355_v21 = vld [vmem:[%s21814_s28 + $0x1d0] sm:$0xff] }
 0xe14   : > { %v11363_v43 = vpop.xlane.xlu0 %11362  ;;  %v12080_v20 = vmul.f32 %v17372_v8, %v11988_v10  ;;  %v11402_v15 = vmul.f32 0.0625, %v11366_v54  ;;  %v10985_v17 = vpop.f32.mrf.mxu1  ;;  %v20953_v2 = vadd.f32 %v12354_v30, %v12262_v37  ;;  %v22071_v10 = vld [vmem:[#allocation81_spill] sm:$0xff] }
 0xe15   : > { %v12079_v3 = vmul.f32 %v17374_v26, %v11987_v38  ;;  %v11401_v47 = vmul.f32 0.0625, %v11363_v43  ;;  %v20955_v39 = vadd.f32 %v12353_v9, %v12261_v24  ;;  %v22070_v26 = vld [vmem:[#allocation77_spill] sm:$0xff]  ;;  %v17380_v24 = vpop.eup %17379 }
 0xe16   : > { %v12264_v34 = vmul.f32 %v12172_v14, %v12080_v20  ;;  %v11990_v57 = vsub.f32 %v11402_v15, %v11898_v0  ;;  %13211 = vst.msk [vmem:[%s18318_s26 + $0x1e8] sm:$0xff] %vm13149_vm3, %v11402_v15  ;;  %v16234_v43 = vpop.f32.mrf.mxu1  ;;  %v6271_v30 = vadd.f32 %v22071_v10, %v22070_v26  ;;  %13299 = vst.msk [vmem:[%s18353_s2 + $0x1c8] sm:$0xff] %vm13149_vm3, %v20953_v2  ;;  %v12174_v9 = vld [vmem:[%s21813_s23 + $0x1e8] sm:$0xff]  ;;  %v12173_v14 = vld [vmem:[%s21813_s23 + $0x1e0] sm:$0xff]  ;;  %v17382_v26 = vpop.eup %17381 }
 0xe17   : > { %22069 = vst [vmem:[#allocation47_spill] sm:$0xff] %v20955_v39  ;;  %v12263_v62 = vmul.f32 %v12171_v60, %v12079_v3  ;;  %v11989_v8 = vsub.f32 %v11401_v47, %v11897_v6  ;;  %13210 = vst.msk [vmem:[%s18318_s26 + $0x1e0] sm:$0xff] %vm13149_vm3, %v11401_v47  ;;  %v11372_v38 = vpop.xlane.xlu1 %11371  ;;  %v11900_v6 = vld [vmem:[%s17669_s4 + $0x1f8] sm:$0xff]  ;;  %v11899_v20 = vld [vmem:[%s17669_s4 + $0x1f0] sm:$0xff] }
 0xe18   : > { %13298 = vst.msk [vmem:[%s18353_s2 + $0x1c0] sm:$0xff] %vm13149_vm3, %v20955_v39  ;;  %v11369_v37 = vpop.xlane.xlu0 %11368  ;;  %v20973_v47 = vadd.f32 %v12356_v27, %v12264_v34  ;;  %v12082_v0 = vmul.f32 %v17376_v29, %v11990_v57  ;;  %v12358_v3 = vld [vmem:[%s21814_s28 + $0x1e8] sm:$0xff]  ;;  %v12357_v15 = vld [vmem:[%s21814_s28 + $0x1e0] sm:$0xff]  ;;  %v11404_v17 = vmul.f32 0.0625, %v11372_v38  ;;  %v12175_v38 = vld [vmem:[%s21813_s23 + $0x1f0] sm:$0xff] }
 0xe19   : > { %v20975_v60 = vadd.f32 %v12355_v21, %v12263_v62  ;;  %v12081_v54 = vmul.f32 %v17378_v36, %v11989_v8  ;;  %v11403_v43 = vmul.f32 0.0625, %v11369_v37  ;;  %v22072_v10 = vld [vmem:[#allocation58_spill] sm:$0xff] }
 0xe1a   : > { %v6519_v42 = vadd.f32 %v22072_v10, %v6271_v30  ;;  %13301 = vst.msk [vmem:[%s18353_s2 + $0x1d8] sm:$0xff] %vm13149_vm3, %v20973_v47  ;;  %v12266_v57 = vmul.f32 %v12174_v9, %v12082_v0  ;;  %v11992_v62 = vsub.f32 %v11404_v17, %v11900_v6  ;;  %13213 = vst.msk [vmem:[%s18318_s26 + $0x1f8] sm:$0xff] %vm13149_vm3, %v11404_v17  ;;  %v22073_v36 = vld [vmem:[#allocation66_spill] sm:$0xff]  ;;  %v12176_v30 = vld [vmem:[%s21813_s23 + $0x1f8] sm:$0xff] }
 0xe1b   : > { %13300 = vst.msk [vmem:[%s18353_s2 + $0x1d0] sm:$0xff] %vm13149_vm3, %v20975_v60  ;;  %v12265_v34 = vmul.f32 %v12173_v14, %v12081_v54  ;;  %v11991_v29 = vsub.f32 %v11403_v43, %v11899_v20  ;;  %13212 = vst.msk [vmem:[%s18318_s26 + $0x1f0] sm:$0xff] %vm13149_vm3, %v11403_v43  ;;  %v10759_v14 = vadd.f32 %v16228_v41, %v20490_v50  ;;  %v22074_v54 = vld [vmem:[#allocation91_spill] sm:$0xff]  ;;  %v10732_v20 = vpop.f32.mrf.mxu0  ;;  %v22075_v43 = vld [vmem:[#allocation70_spill] sm:$0xff] }
 0xe1c   : > { %v6747_v27 = vadd.f32 %v22073_v36, %v6519_v42  ;;  %v20993_v21 = vadd.f32 %v12358_v3, %v12266_v57  ;;  %v12084_v37 = vmul.f32 %v17380_v24, %v11992_v62  ;;  %v12360_v42 = vld [vmem:[%s21814_s28 + $0x1f8] sm:$0xff]  ;;  %v12359_v3 = vld [vmem:[%s21814_s28 + $0x1f0] sm:$0xff]  ;;  %v10757_v36 = vadd.f32 %v10732_v20, %v20497_v49  ;;  %v22082_v49 = vld [vmem:[#allocation101_spill] sm:$0xff] }
 0xe1d   : > { %v20995_v8 = vadd.f32 %v12357_v15, %v12265_v34  ;;  %v12083_v0 = vmul.f32 %v17382_v26, %v11991_v29  ;;  %v22076_v26 = vld [vmem:[#allocation52_spill] sm:$0xff]  ;;  %v22078_v62 = vld [vmem:[#allocation126_spill] sm:$0xff]  ;;  %v22079_v15 = vld [vmem:[#allocation89_spill] sm:$0xff]  ;;  %v11488_v20 = vrot.slane %v20930_v61, %v20024_v16 }
 0xe1e   : > { %v6975_v6 = vadd.f32 %v22074_v54, %v6747_v27  ;;  %13303 = vst.msk [vmem:[%s18353_s2 + $0x1e8] sm:$0xff] %vm13149_vm3, %v20993_v21  ;;  %v12268_v24 = vmul.f32 %v12176_v30, %v12084_v37  ;;  %v6287_v10 = vadd.f32 %v22076_v26, %v22075_v43  ;;  %v22077_v57 = vld [vmem:[#allocation80_spill] sm:$0xff]  ;;  %v10871_v29 = vadd.f32 %v22078_v62, %v10759_v14  ;;  %v22087_v43 = vld [vmem:[#allocation106_spill] sm:$0xff]  ;;  %v22090_v61 = vld [vmem:[#allocation103_spill] sm:$0xff] }
 0xe1f   : > { %13302 = vst.msk [vmem:[%s18353_s2 + $0x1e0] sm:$0xff] %vm13149_vm3, %v20995_v8  ;;  %v12267_v17 = vmul.f32 %v12175_v38, %v12083_v0  ;;  %v22081_v38 = vld [vmem:[#allocation74_spill] sm:$0xff]  ;;  %v22083_v0 = vld [vmem:[#allocation125_spill] sm:$0xff] }
 0xe20   : > { %v7203_v34 = vadd.f32 %v22077_v57, %v6975_v6  ;;  %v21022_v27 = vadd.f32 %v12360_v42, %v12268_v24  ;;  %v6523_v50 = vadd.f32 %v22079_v15, %v6287_v10  ;;  %v10869_v6 = vadd.f32 %v22083_v0, %v10757_v36  ;;  %v22084_v42 = vld [vmem:[#allocation71_spill] sm:$0xff]  ;;  %v22085_v15 = vld [vmem:[#allocation104_spill] sm:$0xff]  ;;  %v22089_v62 = vld [vmem:[#allocation90_spill] sm:$0xff] }
 0xe21   : > { %v21024_v54 = vadd.f32 %v12359_v3, %v12267_v17  ;;  %v22086_v24 = vld [vmem:[#allocation27_spill] sm:$0xff]  ;;  %v22088_v10 = vld [vmem:[#allocation60_spill] sm:$0xff]  ;;  %v22093_v0 = vld [vmem:[#allocation102_spill] sm:$0xff] }
 0xe22   : > { %v7431_v32 = vadd.f32 %v22080_v28, %v7203_v34  ;;  %13305 = vst.msk [vmem:[%s18353_s2 + $0x1f8] sm:$0xff] %vm13149_vm3, %v21022_v27  ;;  %v6751_v14 = vadd.f32 %v22081_v38, %v6523_v50  ;;  %v11420_v28 = vmul.f32 %v20033_v35, %v10871_v29  ;;  %v7942_v17 = vadd.f32 %v22086_v24, %v22085_v15  ;;  %v22091_v38 = vld [vmem:[#allocation28_spill] sm:$0xff] }
 0xe23   : > { %13304 = vst.msk [vmem:[%s18353_s2 + $0x1f0] sm:$0xff] %vm13149_vm3, %v21024_v54  ;;  %v7944_v29 = vadd.f32 %v22091_v38, %v22090_v61  ;;  %v22100_v61 = vld [vmem:[#allocation31_spill] sm:$0xff] }
 0xe24   : > { %v7659_v37 = vadd.f32 %v22082_v49, %v7431_v32  ;;  %v6979_v3 = vadd.f32 %v22084_v42, %v6751_v14  ;;  %v11466_v50 = vsel %vm2321_vm2, %v11420_v28, 0.0  ;;  %v11489_v34 = vmul.f32 %v11488_v20, %v7942_v17  ;;  %v22092_v49 = vld [vmem:[#allocation35_spill] sm:$0xff]  ;;  %v22094_v28 = vld [vmem:[#allocation105_spill] sm:$0xff]  ;;  %v22096_v17 = vld [vmem:[#allocation108_spill] sm:$0xff] }
 0xe25   : > { %v11418_v32 = vmul.f32 %v20033_v35, %v10869_v6  ;;  %v22095_v35 = vld [vmem:[#allocation38_spill] sm:$0xff] }
 0xe26   : > { %v7887_v26 = vadd.f32 %v22087_v43, %v7659_v37  ;;  %v7207_v57 = vadd.f32 %v22088_v10, %v6979_v3  ;;  %v11497_v15 = vsel %vm1521_vm0, %v11489_v34, 0.0  ;;  %v11491_v3 = vmul.f32 %v11488_v20, %v7944_v29  ;;  %v22097_v43 = vld [vmem:[#allocation29_spill] sm:$0xff]  ;;  %v22101_v29 = vld [vmem:[#allocation111_spill] sm:$0xff] }
 0xe27   : > { %v11460_v37 = vsel %vm2321_vm2, %v11418_v32, 0.0  ;;  %v7945_v6 = vadd.f32 %v22095_v35, %v22094_v28  ;;  %v7946_v10 = vadd.f32 %v22097_v43, %v22096_v17  ;;  %v22099_v32 = vld [vmem:[#allocation107_spill] sm:$0xff] }
 0xe28   : > { %v7435_v36 = vadd.f32 %v22089_v62, %v7207_v57  ;;  %v7943_v14 = vadd.f32 %v22092_v49, %v7887_v26  ;;  %v22098_v57 = vld [vmem:[#allocation110_spill] sm:$0xff]  ;;  %v11503_v26 = vsel %vm1521_vm0, %v11491_v3, 0.0  ;;  %v7948_v38 = vadd.f32 %v22100_v61, %v22099_v32  ;;  %v22103_v3 = vld [vmem:[#allocation113_spill] sm:$0xff] }
 0xe29   : > { %v11492_v34 = vmul.f32 %v11488_v20, %v7945_v6  ;;  %v11627_v43 = vld [vmem:[%s17674_s12 + $0x210] sm:$0xff]  ;;  %v11629_v61 = vld [vmem:[%s17674_s12 + $0x220] sm:$0xff] }
 0xe2a   : > { %11467 = vadd.xlane.f32.xlu1 %v11466_v50  ;;  %v7663_v42 = vadd.f32 %v22093_v0, %v7435_v36  ;;  %v11490_v24 = vmul.f32 %v11488_v20, %v7943_v14  ;;  %v11493_v36 = vmul.f32 %v11488_v20, %v7946_v10  ;;  %v11719_v10 = vadd.f32 1e-05, %v11627_v43  ;;  %v11901_v43 = vld [vmem:[%s17669_s4 + $0x200] sm:$0xff] }
 0xe2b   : > { %v11506_v0 = vsel %vm1521_vm0, %v11492_v34, 0.0  ;;  %v11631_v34 = vld [vmem:[%s17674_s12 + $0x230] sm:$0xff] }
 0xe2c   : > { %v7891_v50 = vadd.f32 %v22098_v57, %v7663_v42  ;;  %v11500_v62 = vsel %vm1521_vm0, %v11490_v24, 0.0  ;;  %v11509_v14 = vsel %vm1521_vm0, %v11493_v36, 0.0  ;;  %v11495_v42 = vmul.f32 %v11488_v20, %v7948_v38  ;;  %v11625_v57 = vld [vmem:[%s17674_s12 + $0x200] sm:$0xff]  ;;  %v11626_v36 = vld [vmem:[%s17674_s12 + $0x208] sm:$0xff]  ;;  %v11632_v38 = vld [vmem:[%s17674_s12 + $0x238] sm:$0xff] }
 0xe2d   : > { %17383 = vrsqrt.f32 %v11719_v10  ;;  %v11723_v32 = vadd.f32 1e-05, %v11631_v34 }
 0xe2e   : > { %11461 = vadd.xlane.f32.xlu1 %v11460_v37  ;;  %v7947_v49 = vadd.f32 %v22101_v29, %v7891_v50  ;;  %v22102_v37 = vld [vmem:[#allocation109_spill] sm:$0xff]  ;;  %v11515_v28 = vsel %vm1521_vm0, %v11495_v42, 0.0  ;;  %v11628_v50 = vld [vmem:[%s17674_s12 + $0x218] sm:$0xff]  ;;  %v11721_v29 = vadd.f32 1e-05, %v11629_v61  ;;  %v12363_v61 = vld [vmem:[%s21814_s28 + $0x210] sm:$0xff] }
 0xe2f   : > { %11498 = vadd.xlane.f32.xlu0 %v11497_v15  ;;  %v7949_v24 = vadd.f32 %v22103_v3, %v22102_v37 }
 0xe30   : > { %v11494_v15 = vmul.f32 %v11488_v20, %v7947_v49  ;;  %v11724_v49 = vadd.f32 1e-05, %v11632_v38 }
 0xe31   : > { %v11496_v6 = vmul.f32 %v11488_v20, %v7949_v24  ;;  %v11718_v20 = vadd.f32 1e-05, %v11626_v36 }
 0xe32   : > { %11501 = vadd.xlane.f32.xlu1 %v11500_v62  ;;  %v11512_v35 = vsel %vm1521_vm0, %v11494_v15, 0.0  ;;  %v11720_v62 = vadd.f32 1e-05, %v11628_v50  ;;  %v11635_v15 = vld [vmem:[%s17674_s12 + $0x250] sm:$0xff] }
 0xe33   : > { %11504 = vadd.xlane.f32.xlu0 %v11503_v26  ;;  %v11518_v17 = vsel %vm1521_vm0, %v11496_v6, 0.0  ;;  %v11717_v26 = vadd.f32 1e-05, %v11625_v57  ;;  %v11633_v6 = vld [vmem:[%s17674_s12 + $0x240] sm:$0xff]  ;;  %v11904_v57 = vld [vmem:[%s17669_s4 + $0x218] sm:$0xff] }
 0xe34   : > { %v11725_v38 = vadd.f32 1e-05, %v11633_v6 }
 0xe35   : > { %17385 = vrsqrt.f32 %v11717_v26 }
 0xe36   : > { %11507 = vadd.xlane.f32.xlu1 %v11506_v0  ;;  %17387 = vrsqrt.f32 %v11720_v62  ;;  %v11903_v0 = vld [vmem:[%s17669_s4 + $0x210] sm:$0xff] }
 0xe37   : > { %11510 = vadd.xlane.f32.xlu0 %v11509_v14  ;;  %17389 = vrsqrt.f32 %v11718_v20  ;;  %v11630_v14 = vld [vmem:[%s17674_s12 + $0x228] sm:$0xff]  ;;  %v11636_v20 = vld [vmem:[%s17674_s12 + $0x258] sm:$0xff] }
 0xe38   : > { %17391 = vrsqrt.f32 %v11723_v32  ;;  %v11722_v24 = vadd.f32 1e-05, %v11630_v14 }
 0xe39   : > { %17393 = vrsqrt.f32 %v11721_v29 }
 0xe3a   : > { %11513 = vadd.xlane.f32.xlu1 %v11512_v35  ;;  %v17384_v3 = vpop.eup %17383  ;;  %17395 = vrsqrt.f32 %v11724_v49  ;;  %v11727_v35 = vadd.f32 1e-05, %v11635_v15  ;;  %v11902_v15 = vld [vmem:[%s17669_s4 + $0x208] sm:$0xff] }
 0xe3b   : > { %11516 = vadd.xlane.f32.xlu0 %v11515_v28  ;;  %17397 = vrsqrt.f32 %v11722_v24  ;;  %v11728_v24 = vadd.f32 1e-05, %v11636_v20 }
 0xe3c   : > { %17399 = vrsqrt.f32 %v11727_v35 }
 0xe3d   : > { %17401 = vrsqrt.f32 %v11725_v38  ;;  %v12183_v38 = vld [vmem:[%s21813_s23 + $0x230] sm:$0xff] }
 0xe3e   : > { %11519 = vadd.xlane.f32.xlu1 %v11518_v17  ;;  %v12179_v17 = vld [vmem:[%s21813_s23 + $0x210] sm:$0xff]  ;;  %17403 = vrsqrt.f32 %v11728_v24 }
 0xe42   : > { %v17386_v26 = vpop.eup %17385 }
 0xe43   : > { %v17388_v32 = vpop.eup %17387 }
 0xe44   : > { %v17390_v35 = vpop.eup %17389 }
 0xe61   : > { %v11429_v42 = vpop.xlane.xlu0 %11428 }
 0xe62   : > { %v11471_v37 = vmul.f32 0.0625, %v11429_v42  ;;  %v12180_v42 = vld [vmem:[%s21813_s23 + $0x218] sm:$0xff] }
 0xe64   : > { %v11995_v28 = vsub.f32 %v11471_v37, %v11903_v0  ;;  %13216 = vst.msk [vmem:[%s18318_s26 + $0x210] sm:$0xff] %vm13149_vm3, %v11471_v37  ;;  %v12177_v0 = vld [vmem:[%s21813_s23 + $0x200] sm:$0xff] }
 0xe65   : > { %v11423_v10 = vpop.xlane.xlu0 %11422  ;;  %v11432_v50 = vpop.xlane.xlu1 %11431 }
 0xe66   : > { %v12087_v62 = vmul.f32 %v17384_v3, %v11995_v28  ;;  %v11469_v36 = vmul.f32 0.0625, %v11423_v10  ;;  %v11472_v34 = vmul.f32 0.0625, %v11432_v50  ;;  %v11907_v10 = vld [vmem:[%s17669_s4 + $0x230] sm:$0xff]  ;;  %v12361_v50 = vld [vmem:[%s21814_s28 + $0x200] sm:$0xff] }
 0xe68   : > { %v12271_v29 = vmul.f32 %v12179_v17, %v12087_v62  ;;  %v11993_v49 = vsub.f32 %v11469_v36, %v11901_v43  ;;  %13214 = vst.msk [vmem:[%s18318_s26 + $0x200] sm:$0xff] %vm13149_vm3, %v11469_v36  ;;  %v11996_v14 = vsub.f32 %v11472_v34, %v11904_v57  ;;  %13217 = vst.msk [vmem:[%s18318_s26 + $0x218] sm:$0xff] %vm13149_vm3, %v11472_v34  ;;  %v11634_v57 = vld [vmem:[%s17674_s12 + $0x248] sm:$0xff]  ;;  %v12364_v62 = vld [vmem:[%s21814_s28 + $0x218] sm:$0xff]  ;;  %v17392_v34 = vpop.eup %17391 }
 0xe69   : > { %v11426_v37 = vpop.xlane.xlu1 %11425  ;;  %v11441_v3 = vpop.xlane.xlu0 %11440 }
 0xe6a   : > { %v21098_v28 = vadd.f32 %v12363_v61, %v12271_v29  ;;  %v12085_v6 = vmul.f32 %v17386_v26, %v11993_v49  ;;  %v12088_v17 = vmul.f32 %v17388_v32, %v11996_v14  ;;  %v11470_v43 = vmul.f32 0.0625, %v11426_v37  ;;  %v11639_v32 = vld [vmem:[%s17674_s12 + $0x270] sm:$0xff]  ;;  %v12178_v29 = vld [vmem:[%s21813_s23 + $0x208] sm:$0xff]  ;;  %v11905_v14 = vld [vmem:[%s17669_s4 + $0x220] sm:$0xff] }
 0xe6b   : > { %v11475_v36 = vmul.f32 0.0625, %v11441_v3  ;;  %v11726_v3 = vadd.f32 1e-05, %v11634_v57  ;;  %v11731_v1 = vadd.f32 1e-05, %v11639_v32  ;;  %v11637_v32 = vld [vmem:[%s17674_s12 + $0x260] sm:$0xff] }
 0xe6c   : > { %13308 = vst.msk [vmem:[%s18353_s2 + $0x210] sm:$0xff] %vm13149_vm3, %v21098_v28  ;;  %v12269_v20 = vmul.f32 %v12177_v0, %v12085_v6  ;;  %v12272_v61 = vmul.f32 %v12180_v42, %v12088_v17  ;;  %v11994_v26 = vsub.f32 %v11470_v43, %v11902_v15  ;;  %13215 = vst.msk [vmem:[%s18318_s26 + $0x208] sm:$0xff] %vm13149_vm3, %v11470_v43  ;;  %v11908_v17 = vld [vmem:[%s17669_s4 + $0x238] sm:$0xff] }
 0xe6d   : > { %v11999_v49 = vsub.f32 %v11475_v36, %v11907_v10  ;;  %13220 = vst.msk [vmem:[%s18318_s26 + $0x230] sm:$0xff] %vm13149_vm3, %v11475_v36  ;;  %v11435_v37 = vpop.xlane.xlu0 %11434  ;;  %v17394_v10 = vpop.eup %17393  ;;  %v12362_v36 = vld [vmem:[%s21814_s28 + $0x208] sm:$0xff]  ;;  %17405 = vrsqrt.f32 %v11726_v3 }
 0xe6e   : > { %v21114_v0 = vadd.f32 %v12361_v50, %v12269_v20  ;;  %v21116_v42 = vadd.f32 %v12364_v62, %v12272_v61  ;;  %v12086_v15 = vmul.f32 %v17390_v35, %v11994_v26  ;;  %v11473_v6 = vmul.f32 0.0625, %v11435_v37  ;;  %v11444_v43 = vpop.xlane.xlu1 %11443  ;;  %v17396_v57 = vpop.eup %17395  ;;  %v12367_v50 = vld [vmem:[%s21814_s28 + $0x230] sm:$0xff]  ;;  %v12181_v61 = vld [vmem:[%s21813_s23 + $0x220] sm:$0xff]  ;;  %v12184_v37 = vld [vmem:[%s21813_s23 + $0x238] sm:$0xff] }
 0xe6f   : > { %v12091_v41 = vmul.f32 %v17392_v34, %v11999_v49  ;;  %v11476_v24 = vmul.f32 0.0625, %v11444_v43  ;;  %v12365_v43 = vld [vmem:[%s21814_s28 + $0x220] sm:$0xff]  ;;  %17407 = vrsqrt.f32 %v11731_v1 }
 0xe70   : > { %13306 = vst.msk [vmem:[%s18353_s2 + $0x200] sm:$0xff] %vm13149_vm3, %v21114_v0  ;;  %13309 = vst.msk [vmem:[%s18353_s2 + $0x218] sm:$0xff] %vm13149_vm3, %v21116_v42  ;;  %v12270_v35 = vmul.f32 %v12178_v29, %v12086_v15  ;;  %v11997_v62 = vsub.f32 %v11473_v6, %v11905_v14  ;;  %v11906_v15 = vld [vmem:[%s17669_s4 + $0x228] sm:$0xff] }
 0xe71   : > { %13218 = vst.msk [vmem:[%s18318_s26 + $0x220] sm:$0xff] %vm13149_vm3, %v11473_v6  ;;  %v12275_v20 = vmul.f32 %v12183_v38, %v12091_v41  ;;  %v12000_v26 = vsub.f32 %v11476_v24, %v11908_v17  ;;  %13221 = vst.msk [vmem:[%s18318_s26 + $0x238] sm:$0xff] %vm13149_vm3, %v11476_v24  ;;  %v11911_v38 = vld [vmem:[%s17669_s4 + $0x250] sm:$0xff]  ;;  %v12368_v24 = vld [vmem:[%s21814_s28 + $0x238] sm:$0xff] }
 0xe72   : > { %v21136_v49 = vadd.f32 %v12362_v36, %v12270_v35  ;;  %v12089_v29 = vmul.f32 %v17394_v10, %v11997_v62  ;;  %v11438_v14 = vpop.xlane.xlu1 %11437  ;;  %v17398_v36 = vpop.eup %17397  ;;  %v11729_v35 = vadd.f32 1e-05, %v11637_v32 }
 0xe73   : > { %v21140_v6 = vadd.f32 %v12367_v50, %v12275_v20  ;;  %v12092_v34 = vmul.f32 %v17396_v57, %v12000_v26  ;;  %v11474_v41 = vmul.f32 0.0625, %v11438_v14  ;;  %v17400_v50 = vpop.eup %17399  ;;  %v12187_v14 = vld [vmem:[%s21813_s23 + $0x250] sm:$0xff] }
 0xe74   : > { %v11453_v17 = vpop.xlane.xlu0 %11452  ;;  %13307 = vst.msk [vmem:[%s18353_s2 + $0x208] sm:$0xff] %vm13149_vm3, %v21136_v49  ;;  %v12273_v10 = vmul.f32 %v12181_v61, %v12089_v29  ;;  %v12182_v61 = vld [vmem:[%s21813_s23 + $0x228] sm:$0xff]  ;;  %17409 = vrsqrt.f32 %v11729_v35 }
 0xe75   : > { %v11479_v3 = vmul.f32 0.0625, %v11453_v17  ;;  %13312 = vst.msk [vmem:[%s18353_s2 + $0x230] sm:$0xff] %vm13149_vm3, %v21140_v6  ;;  %v12276_v1 = vmul.f32 %v12184_v37, %v12092_v34  ;;  %v11998_v62 = vsub.f32 %v11474_v41, %v11906_v15  ;;  %13219 = vst.msk [vmem:[%s18318_s26 + $0x228] sm:$0xff] %vm13149_vm3, %v11474_v41  ;;  %v12366_v34 = vld [vmem:[%s21814_s28 + $0x228] sm:$0xff]  ;;  %v11909_v15 = vld [vmem:[%s17669_s4 + $0x240] sm:$0xff] }
 0xe76   : > { %v21155_v20 = vadd.f32 %v12365_v43, %v12273_v10  ;;  %v17402_v43 = vpop.eup %17401  ;;  %v12371_v17 = vld [vmem:[%s21814_s28 + $0x250] sm:$0xff]  ;;  %v11912_v10 = vld [vmem:[%s17669_s4 + $0x258] sm:$0xff] }
 0xe77   : > { %v12003_v26 = vsub.f32 %v11479_v3, %v11911_v38  ;;  %13224 = vst.msk [vmem:[%s18318_s26 + $0x250] sm:$0xff] %vm13149_vm3, %v11479_v3  ;;  %v21160_v32 = vadd.f32 %v12368_v24, %v12276_v1  ;;  %v12090_v29 = vmul.f32 %v17398_v36, %v11998_v62 }
 0xe78   : > { %13310 = vst.msk [vmem:[%s18353_s2 + $0x220] sm:$0xff] %vm13149_vm3, %v21155_v20  ;;  %v11447_v41 = vpop.xlane.xlu0 %11446 }
 0xe79   : > { %v12095_v37 = vmul.f32 %v17400_v50, %v12003_v26  ;;  %13313 = vst.msk [vmem:[%s18353_s2 + $0x238] sm:$0xff] %vm13149_vm3, %v21160_v32  ;;  %v12274_v38 = vmul.f32 %v12182_v61, %v12090_v29  ;;  %v11477_v36 = vmul.f32 0.0625, %v11447_v41  ;;  %v17404_v50 = vpop.eup %17403  ;;  %v12185_v29 = vld [vmem:[%s21813_s23 + $0x240] sm:$0xff] }
 0xe7a   : > { %v11456_v24 = vpop.xlane.xlu1 %11455 }
 0xe7b   : > { %v12279_v35 = vmul.f32 %v12187_v14, %v12095_v37  ;;  %v11480_v1 = vmul.f32 0.0625, %v11456_v24  ;;  %v21175_v62 = vadd.f32 %v12366_v34, %v12274_v38  ;;  %v12001_v26 = vsub.f32 %v11477_v36, %v11909_v15  ;;  %13222 = vst.msk [vmem:[%s18318_s26 + $0x240] sm:$0xff] %vm13149_vm3, %v11477_v36  ;;  %v12188_v14 = vld [vmem:[%s21813_s23 + $0x258] sm:$0xff]  ;;  %v12369_v37 = vld [vmem:[%s21814_s28 + $0x240] sm:$0xff]  ;;  %v11910_v38 = vld [vmem:[%s17669_s4 + $0x248] sm:$0xff]  ;;  %v17406_v24 = vpop.eup %17405 }
 0xe7c   : > { %v11915_v36 = vld [vmem:[%s17669_s4 + $0x270] sm:$0xff]  ;;  %v17408_v57 = vpop.eup %17407 }
 0xe7d   : > { %v21179_v61 = vadd.f32 %v12371_v17, %v12279_v35  ;;  %v12004_v41 = vsub.f32 %v11480_v1, %v11912_v10  ;;  %13225 = vst.msk [vmem:[%s18318_s26 + $0x258] sm:$0xff] %vm13149_vm3, %v11480_v1  ;;  %13311 = vst.msk [vmem:[%s18353_s2 + $0x228] sm:$0xff] %vm13149_vm3, %v21175_v62  ;;  %v12093_v3 = vmul.f32 %v17402_v43, %v12001_v26  ;;  %v12372_v35 = vld [vmem:[%s21814_s28 + $0x258] sm:$0xff] }
 0xe7e   : > { %v11450_v17 = vpop.xlane.xlu1 %11449 }
 0xe7f   : > { %13316 = vst.msk [vmem:[%s18353_s2 + $0x250] sm:$0xff] %vm13149_vm3, %v21179_v61  ;;  %v12096_v15 = vmul.f32 %v17404_v50, %v12004_v41  ;;  %v11465_v10 = vpop.xlane.xlu0 %11464  ;;  %v12277_v43 = vmul.f32 %v12185_v29, %v12093_v3  ;;  %v11478_v1 = vmul.f32 0.0625, %v11450_v17  ;;  %v12186_v3 = vld [vmem:[%s21813_s23 + $0x248] sm:$0xff]  ;;  %v12191_v29 = vld [vmem:[%s21813_s23 + $0x270] sm:$0xff] }
 0xe80   : > { %v11483_v26 = vmul.f32 0.0625, %v11465_v10 }
 0xe81   : > { %v12280_v9 = vmul.f32 %v12188_v14, %v12096_v15  ;;  %v21197_v50 = vadd.f32 %v12369_v37, %v12277_v43  ;;  %v12002_v41 = vsub.f32 %v11478_v1, %v11910_v38  ;;  %13223 = vst.msk [vmem:[%s18318_s26 + $0x248] sm:$0xff] %vm13149_vm3, %v11478_v1  ;;  %v11913_v37 = vld [vmem:[%s17669_s4 + $0x260] sm:$0xff]  ;;  %v12370_v15 = vld [vmem:[%s21814_s28 + $0x248] sm:$0xff]  ;;  %v17410_v43 = vpop.eup %17409 }
 0xe82   : > { %v12007_v52 = vsub.f32 %v11483_v26, %v11915_v36  ;;  %13228 = vst.msk [vmem:[%s18318_s26 + $0x270] sm:$0xff] %vm13149_vm3, %v11483_v26 }
 0xe83   : > { %v21203_v34 = vadd.f32 %v12372_v35, %v12280_v9  ;;  %v11459_v17 = vpop.xlane.xlu0 %11458  ;;  %13314 = vst.msk [vmem:[%s18353_s2 + $0x240] sm:$0xff] %vm13149_vm3, %v21197_v50  ;;  %v12094_v10 = vmul.f32 %v17406_v24, %v12002_v41  ;;  %v12375_v9 = vld [vmem:[%s21814_s28 + $0x270] sm:$0xff]  ;;  %v16339_v24 = vpop.permute.xlu1 %16338  ;;  %v12189_v41 = vld [vmem:[%s21813_s23 + $0x260] sm:$0xff] }
 0xe84   : > { %v12099_v14 = vmul.f32 %v17408_v57, %v12007_v52  ;;  %v11481_v38 = vmul.f32 0.0625, %v11459_v17  ;;  %v16341_v17 = vunpack.i.h.bf16 %v16339_v24 }
 0xe85   : > { %13317 = vst.msk [vmem:[%s18353_s2 + $0x258] sm:$0xff] %vm13149_vm3, %v21203_v34  ;;  %v12278_v35 = vmul.f32 %v12186_v3, %v12094_v10  ;;  %v12373_v3 = vld [vmem:[%s21814_s28 + $0x260] sm:$0xff]  ;;  %v16340_v10 = vunpack.i.l.bf16 %v16339_v24  ;;  %v11638_v24 = vld [vmem:[%s17674_s12 + $0x268] sm:$0xff] }
 0xe86   : > { %v12283_v1 = vmul.f32 %v12191_v29, %v12099_v14  ;;  %v12005_v26 = vsub.f32 %v11481_v38, %v11913_v37  ;;  %13226 = vst.msk [vmem:[%s18318_s26 + $0x260] sm:$0xff] %vm13149_vm3, %v11481_v38  ;;  %v11917_v29 = vld [vmem:[%s17669_s4 + $0x280] sm:$0xff] }
 0xe87   : > { %v21220_v52 = vadd.f32 %v12370_v15, %v12278_v35  ;;  %v12958_v35 = vpack.c.bf16 %v16341_v17, %v16340_v10 }
 0xe88   : > { %v21222_v57 = vadd.f32 %v12375_v9, %v12283_v1  ;;  %v12097_v30 = vmul.f32 %v17410_v43, %v12005_v26  ;;  %v11640_v1 = vld [vmem:[%s17674_s12 + $0x278] sm:$0xff] }
 0xe89   : > { %13315 = vst.msk [vmem:[%s18353_s2 + $0x248] sm:$0xff] %vm13149_vm3, %v21220_v52  ;;  %v11732_v26 = vadd.f32 1e-05, %v11640_v1 }
 0xe8a   : > { %13320 = vst.msk [vmem:[%s18353_s2 + $0x270] sm:$0xff] %vm13149_vm3, %v21222_v57  ;;  %v12281_v14 = vmul.f32 %v12189_v41, %v12097_v30  ;;  %v11641_v30 = vld [vmem:[%s17674_s12 + $0x280] sm:$0xff] }
 0xe8b   : > { %v16334_v37 = vpop.permute.xlu0 %16333  ;;  %v11733_v41 = vadd.f32 1e-05, %v11641_v30  ;;  %17411 = vrsqrt.f32 %v11732_v26  ;;  %v11646_v26 = vld [vmem:[%s17674_s12 + $0x2a8] sm:$0xff]  ;;  %v11916_v30 = vld [vmem:[%s17669_s4 + $0x278] sm:$0xff] }
 0xe8c   : > { %v16336_v15 = vunpack.i.h.bf16 %v16334_v37  ;;  %v16335_v9 = vunpack.i.l.bf16 %v16334_v37  ;;  %v21234_v38 = vadd.f32 %v12373_v3, %v12281_v14  ;;  %v11730_v3 = vadd.f32 1e-05, %v11638_v24  ;;  %v11643_v14 = vld [vmem:[%s17674_s12 + $0x290] sm:$0xff]  ;;  %v11642_v37 = vld [vmem:[%s17674_s12 + $0x288] sm:$0xff] }
 0xe8d   : > { %17413 = vrsqrt.f32 %v11733_v41  ;;  %v11735_v17 = vadd.f32 1e-05, %v11643_v14  ;;  %v11734_v10 = vadd.f32 1e-05, %v11642_v37  ;;  %v11648_v14 = vld [vmem:[%s17674_s12 + $0x2b8] sm:$0xff] }
 0xe8e   : > { %v12951_v43 = vpack.c.bf16 %v16336_v15, %v16335_v9  ;;  %13318 = vst.msk [vmem:[%s18353_s2 + $0x260] sm:$0xff] %vm13149_vm3, %v21234_v38  ;;  %17415 = vrsqrt.f32 %v11730_v3  ;;  %v11645_v15 = vld [vmem:[%s17674_s12 + $0x2a0] sm:$0xff]  ;;  %v11644_v9 = vld [vmem:[%s17674_s12 + $0x298] sm:$0xff]  ;;  %v11738_v3 = vadd.f32 1e-05, %v11646_v26 }
 0xe8f   : > { %17417 = vrsqrt.f32 %v11735_v17  ;;  %v11736_v1 = vadd.f32 1e-05, %v11644_v9  ;;  %v11914_v9 = vld [vmem:[%s17669_s4 + $0x268] sm:$0xff] }
 0xe90   : > { %15364 = vmatpush3.bf16.msra.mxu0 %v12951_v43  ;;  %v11737_v43 = vadd.f32 1e-05, %v11645_v15  ;;  %17419 = vrsqrt.f32 %v11734_v10  ;;  %v12192_v15 = vld [vmem:[%s21813_s23 + $0x278] sm:$0xff] }
 0xe91   : > { %15365 = vmatprep.subr.bf16.mxu0 %v12958_v35  ;;  %v11647_v35 = vld [vmem:[%s17674_s12 + $0x2b0] sm:$0xff] }
 0xe92   : > { %v11739_v36 = vadd.f32 1e-05, %v11647_v35  ;;  %17421 = vrsqrt.f32 %v11737_v43  ;;  %v11740_v43 = vadd.f32 1e-05, %v11648_v14  ;;  %v12190_v14 = vld [vmem:[%s21813_s23 + $0x268] sm:$0xff] }
 0xe93   : > { %17423 = vrsqrt.f32 %v11736_v1 }
 0xe94   : > { %17425 = vrsqrt.f32 %v11739_v36  ;;  %v12193_v36 = vld [vmem:[%s21813_s23 + $0x280] sm:$0xff] }
 0xe95   : > { %17427 = vrsqrt.f32 %v11738_v3 }
 0xe96   : > { %17429 = vrsqrt.f32 %v11740_v43 }
 0xe98   : > { %v17412_v37 = vpop.eup %17411 }
 0xe9a   : > { %v17414_v35 = vpop.eup %17413 }
 0xeb3   : > { %v11468_v24 = vpop.xlane.xlu1 %11467 }
 0xeb4   : > { %v11484_v41 = vmul.f32 0.0625, %v11468_v24 }
 0xeb6   : > { %v12008_v17 = vsub.f32 %v11484_v41, %v11916_v30  ;;  %13229 = vst.msk [vmem:[%s18318_s26 + $0x278] sm:$0xff] %vm13149_vm3, %v11484_v41  ;;  %v17416_v30 = vpop.eup %17415 }
 0xeb7   : > { %v11462_v12 = vpop.xlane.xlu1 %11461 }
 0xeb8   : > { %v11499_v10 = vpop.xlane.xlu0 %11498  ;;  %v12100_v26 = vmul.f32 %v17412_v37, %v12008_v17  ;;  %v11482_v1 = vmul.f32 0.0625, %v11462_v12 }
 0xeb9   : > { %v11521_v24 = vmul.f32 0.015625, %v11499_v10  ;;  %v11918_v10 = vld [vmem:[%s17669_s4 + $0x288] sm:$0xff] }
 0xeba   : > { %v12284_v41 = vmul.f32 %v12192_v15, %v12100_v26  ;;  %v12006_v45 = vsub.f32 %v11482_v1, %v11914_v9  ;;  %13227 = vst.msk [vmem:[%s18318_s26 + $0x268] sm:$0xff] %vm13149_vm3, %v11482_v1  ;;  %v17418_v9 = vpop.eup %17417  ;;  %v12377_v26 = vld [vmem:[%s21814_s28 + $0x280] sm:$0xff] }
 0xebb   : > { %v12009_v46 = vsub.f32 %v11521_v24, %v11917_v29  ;;  %13230 = vst.msk [vmem:[%s18318_s26 + $0x280] sm:$0xff] %vm13149_vm3, %v11521_v24  ;;  %v11502_v17 = vpop.xlane.xlu1 %11501  ;;  %v12374_v24 = vld [vmem:[%s21814_s28 + $0x268] sm:$0xff]  ;;  %v17420_v23 = vpop.eup %17419 }
 0xebc   : > { %v11505_v37 = vpop.xlane.xlu0 %11504  ;;  %v21263_v12 = vadd.f32 %v12376_v40, %v12284_v41  ;;  %v12098_v29 = vmul.f32 %v17416_v30, %v12006_v45  ;;  %v11522_v1 = vmul.f32 0.015625, %v11502_v17  ;;  %v11921_v30 = vld [vmem:[%s17669_s4 + $0x2a0] sm:$0xff]  ;;  %v12194_v17 = vld [vmem:[%s21813_s23 + $0x288] sm:$0xff] }
 0xebd   : > { %v12101_v3 = vmul.f32 %v17414_v35, %v12009_v46  ;;  %v11523_v15 = vmul.f32 0.015625, %v11505_v37  ;;  %v12195_v46 = vld [vmem:[%s21813_s23 + $0x290] sm:$0xff] }
 0xebe   : > { %13321 = vst.msk [vmem:[%s18353_s2 + $0x278] sm:$0xff] %vm13149_vm3, %v21263_v12  ;;  %v12282_v40 = vmul.f32 %v12190_v14, %v12098_v29  ;;  %v12010_v35 = vsub.f32 %v11522_v1, %v11918_v10  ;;  %13231 = vst.msk [vmem:[%s18318_s26 + $0x288] sm:$0xff] %vm13149_vm3, %v11522_v1  ;;  %v11920_v29 = vld [vmem:[%s17669_s4 + $0x298] sm:$0xff]  ;;  %v12379_v10 = vld [vmem:[%s21814_s28 + $0x290] sm:$0xff] }
 0xebf   : > { %v12285_v25 = vmul.f32 %v12193_v36, %v12101_v3  ;;  %v12011_v43 = vsub.f32 %v11523_v15, %v11919_v19  ;;  %13232 = vst.msk [vmem:[%s18318_s26 + $0x290] sm:$0xff] %vm13149_vm3, %v11523_v15  ;;  %v11508_v37 = vpop.xlane.xlu1 %11507  ;;  %v17422_v15 = vpop.eup %17421 }
 0xec0   : > { %v11511_v41 = vpop.xlane.xlu0 %11510  ;;  %v21281_v19 = vadd.f32 %v12374_v24, %v12282_v40  ;;  %v12102_v1 = vmul.f32 %v17420_v23, %v12010_v35  ;;  %v11524_v45 = vmul.f32 0.015625, %v11508_v37  ;;  %v17424_v44 = vpop.eup %17423  ;;  %v22105_v24 = vld [vmem:[#allocation67_spill] sm:$0xff]  ;;  %v22106_v40 = vld [vmem:[#allocation65_spill] sm:$0xff] }
 0xec1   : > { %v21279_v36 = vadd.f32 %v12377_v26, %v12285_v25  ;;  %v12103_v14 = vmul.f32 %v17418_v9, %v12011_v43  ;;  %v11525_v3 = vmul.f32 0.015625, %v11511_v41  ;;  %v12378_v9 = vld [vmem:[%s21814_s28 + $0x288] sm:$0xff]  ;;  %v3492_v43 = vadd.f32 %v22106_v40, %v22105_v24  ;;  %v12197_v23 = vld [vmem:[%s21813_s23 + $0x2a0] sm:$0xff]  ;;  %v11923_v37 = vld [vmem:[%s17669_s4 + $0x2b0] sm:$0xff] }
 0xec2   : > { %13319 = vst.msk [vmem:[%s18353_s2 + $0x268] sm:$0xff] %vm13149_vm3, %v21281_v19  ;;  %v12286_v41 = vmul.f32 %v12194_v17, %v12102_v1  ;;  %v12012_v35 = vsub.f32 %v11524_v45, %v11920_v29  ;;  %13233 = vst.msk [vmem:[%s18318_s26 + $0x298] sm:$0xff] %vm13149_vm3, %v11524_v45  ;;  %v22108_v24 = vld [vmem:[#allocation57_spill] sm:$0xff] }
 0xec3   : > { %22104 = vst [vmem:[#allocation48_spill] sm:$0xff] %v21279_v36  ;;  %13322 = vst.msk [vmem:[%s18353_s2 + $0x280] sm:$0xff] %vm13149_vm3, %v21279_v36  ;;  %v12287_v25 = vmul.f32 %v12195_v46, %v12103_v14  ;;  %v12013_v26 = vsub.f32 %v11525_v3, %v11921_v30  ;;  %v11514_v46 = vpop.xlane.xlu1 %11513  ;;  %v17426_v14 = vpop.eup %17425  ;;  %v3831_v45 = vadd.f32 %v22108_v24, %v3492_v43 }
 0xec4   : > { %13234 = vst.msk [vmem:[%s18318_s26 + $0x2a0] sm:$0xff] %vm13149_vm3, %v11525_v3  ;;  %v11517_v55 = vpop.xlane.xlu0 %11516  ;;  %v11526_v1 = vmul.f32 0.015625, %v11514_v46  ;;  %v17428_v29 = vpop.eup %17427  ;;  %v21306_v40 = vadd.f32 %v12378_v9, %v12286_v41  ;;  %v12104_v39 = vmul.f32 %v17424_v44, %v12012_v35  ;;  %v12199_v9 = vld [vmem:[%s21813_s23 + $0x2b0] sm:$0xff]  ;;  %v12198_v41 = vld [vmem:[%s21813_s23 + $0x2a8] sm:$0xff]  ;;  %v11924_v35 = vld [vmem:[%s17669_s4 + $0x2b8] sm:$0xff] }
 0xec5   : > { %v21302_v30 = vadd.f32 %v12379_v10, %v12287_v25  ;;  %v12105_v3 = vmul.f32 %v17422_v15, %v12013_v26  ;;  %v11527_v17 = vmul.f32 0.015625, %v11517_v55  ;;  %v12380_v25 = vld [vmem:[%s21814_s28 + $0x298] sm:$0xff]  ;;  %v22110_v26 = vld [vmem:[#allocation61_spill] sm:$0xff] }
 0xec6   : > { %22109 = vst [vmem:[#allocation50_spill] sm:$0xff] %v21306_v40  ;;  %v12014_v55 = vsub.f32 %v11526_v1, %v11922_v18  ;;  %13235 = vst.msk [vmem:[%s18318_s26 + $0x2a8] sm:$0xff] %vm13149_vm3, %v11526_v1  ;;  %v4163_v43 = vadd.f32 %v22110_v26, %v3831_v45  ;;  %v12288_v44 = vmul.f32 %v12196_v51, %v12104_v39  ;;  %v12383_v51 = vld [vmem:[%s21814_s28 + $0x2b0] sm:$0xff]  ;;  %v12382_v39 = vld [vmem:[%s21814_s28 + $0x2a8] sm:$0xff] }
 0xec7   : > { %22107 = vst [vmem:[#allocation49_spill] sm:$0xff] %v21302_v30  ;;  %13324 = vst.msk [vmem:[%s18353_s2 + $0x290] sm:$0xff] %vm13149_vm3, %v21302_v30  ;;  %v12289_v10 = vmul.f32 %v12197_v23, %v12105_v3  ;;  %v12015_v15 = vsub.f32 %v11527_v17, %v11923_v37  ;;  %v11520_v23 = vpop.xlane.xlu1 %11519  ;;  %v17430_v37 = vpop.eup %17429  ;;  %v22112_v45 = vld [vmem:[#allocation54_spill] sm:$0xff] }
 0xec8   : > { %13236 = vst.msk [vmem:[%s18318_s26 + $0x2b0] sm:$0xff] %vm13149_vm3, %v11527_v17  ;;  %13323 = vst.msk [vmem:[%s18353_s2 + $0x288] sm:$0xff] %vm13149_vm3, %v21306_v40  ;;  %v12106_v17 = vmul.f32 %v17428_v29, %v12014_v55  ;;  %v11528_v1 = vmul.f32 0.015625, %v11520_v23  ;;  %v21328_v24 = vadd.f32 %v12380_v25, %v12288_v44  ;;  %v4495_v26 = vadd.f32 %v22112_v45, %v4163_v43  ;;  %v22113_v29 = vld [vmem:[#allocation51_spill] sm:$0xff]  ;;  %v22115_v44 = vld [vmem:[#allocation53_spill] sm:$0xff] }
 0xec9   : > { %v21326_v46 = vadd.f32 %v12381_v63, %v12289_v10  ;;  %v12107_v3 = vmul.f32 %v17426_v14, %v12015_v15  ;;  %v12200_v63 = vld [vmem:[%s21813_s23 + $0x2b8] sm:$0xff] }
 0xeca   : > { %22111 = vst [vmem:[#allocation36_spill] sm:$0xff] %v21328_v24  ;;  %v12290_v36 = vmul.f32 %v12198_v41, %v12106_v17  ;;  %v12016_v40 = vsub.f32 %v11528_v1, %v11924_v35  ;;  %13237 = vst.msk [vmem:[%s18318_s26 + $0x2b8] sm:$0xff] %vm13149_vm3, %v11528_v1  ;;  %v4827_v10 = vadd.f32 %v22113_v29, %v4495_v26  ;;  %v12384_v43 = vld [vmem:[%s21814_s28 + $0x2b8] sm:$0xff]  ;;  %v22122_v29 = vld [vmem:[#allocation85_spill] sm:$0xff] }
 0xecb   : > { %13326 = vst.msk [vmem:[%s18353_s2 + $0x2a0] sm:$0xff] %vm13149_vm3, %v21326_v46  ;;  %v12291_v18 = vmul.f32 %v12199_v9, %v12107_v3  ;;  %13325 = vst.msk [vmem:[%s18353_s2 + $0x298] sm:$0xff] %vm13149_vm3, %v21328_v24  ;;  %v22116_v23 = vld [vmem:[#allocation56_spill] sm:$0xff] }
 0xecc   : > { %v21347_v15 = vadd.f32 %v12382_v39, %v12290_v36  ;;  %v12108_v55 = vmul.f32 %v17430_v37, %v12016_v40  ;;  %v5159_v9 = vadd.f32 %v22115_v44, %v4827_v10  ;;  %v22118_v36 = vld [vmem:[#allocation84_spill] sm:$0xff]  ;;  %v22120_v39 = vld [vmem:[#allocation25_spill] sm:$0xff]  ;;  %v22123_v10 = vld [vmem:[#allocation30_spill] sm:$0xff] }
 0xecd   : > { %v21345_v25 = vadd.f32 %v12383_v51, %v12291_v18  ;;  %v22119_v51 = vld [vmem:[#allocation83_spill] sm:$0xff]  ;;  %v22121_v26 = vld [vmem:[#allocation76_spill] sm:$0xff] }
 0xece   : > { %13327 = vst.msk [vmem:[%s18353_s2 + $0x2a8] sm:$0xff] %vm13149_vm3, %v21347_v15  ;;  %v12292_v41 = vmul.f32 %v12200_v63, %v12108_v55  ;;  %v5491_v3 = vadd.f32 %v22116_v23, %v5159_v9  ;;  %v5852_v45 = vadd.f32 %v22120_v39, %v22119_v51  ;;  %v5853_v63 = vadd.f32 %v22120_v39, %v22121_v26  ;;  %v22124_v9 = vld [vmem:[#allocation88_spill] sm:$0xff] }
 0xecf   : > { %22114 = vst [vmem:[#allocation34_spill] sm:$0xff] %v21345_v25  ;;  %13328 = vst.msk [vmem:[%s18353_s2 + $0x2b0] sm:$0xff] %vm13149_vm3, %v21345_v25  ;;  %v5854_v55 = vadd.f32 %v22123_v10, %v22122_v29 }
 0xed0   : > { %v21360_v18 = vadd.f32 %v12384_v43, %v12292_v41  ;;  %v5823_v17 = vadd.f32 %v22118_v36, %v5491_v3  ;;  %v22125_v41 = vld [vmem:[#allocation26_spill] sm:$0xff] }
 0xed1   : > { %v5856_v23 = vadd.f32 %v22125_v41, %v22124_v9  ;;  %v22126_v3 = vld [vmem:[#allocation82_spill] sm:$0xff]  ;;  %v22129_v9 = vld [vmem:[#allocation95_spill] sm:$0xff] }
 0xed2   : > { %22117 = vst [vmem:[#allocation117_spill] sm:$0xff] %v21360_v18  ;;  %13329 = vst.msk [vmem:[%s18353_s2 + $0x2b8] sm:$0xff] %vm13149_vm3, %v21360_v18  ;;  %v5855_v44 = vadd.f32 %v22123_v10, %v5823_v17  ;;  %v5857_v36 = vadd.f32 %v22125_v41, %v22126_v3  ;;  %v22127_v17 = vld [vmem:[#allocation39_spill] sm:$0xff] }
 0xed3   : > { %v11074_v37 = vpop.f32.mrf.mxu1  ;;  %v22128_v10 = vpack.i.bf16 %v20365_v4, %v22127_v17  ;;  %v22141_v4 = vld [vmem:[#allocation41_spill] sm:$0xff]  ;;  %v22145_v17 = vld [vmem:[#allocation87_spill] sm:$0xff] }
 0xed4   : > { %v11532_v1 = vrot.slane %v11074_v37, %v20024_v16 }
 0xed5   : > { %v11076_v43 = vpop.f32.mrf.mxu1 }
 0xed6   : > { %v11536_v37 = vrot.slane %v11076_v43, %v20024_v16  ;;  %v11537_v40 = vmul.f32 %v11532_v1, %v5852_v45  ;;  %v11539_v51 = vmul.f32 %v11532_v1, %v5854_v55  ;;  %v11541_v39 = vmul.f32 %v11532_v1, %v5856_v23  ;;  %v22130_v16 = vld [vmem:[#allocation92_spill] sm:$0xff]  ;;  %v22132_v45 = vld [vmem:[#allocation63_spill] sm:$0xff]  ;;  %v22140_v23 = vld [vmem:[#allocation94_spill] sm:$0xff] }
 0xed7   : > { %v11078_v14 = vpop.f32.mrf.mxu1  ;;  %v22134_v43 = vld [vmem:[#allocation59_spill] sm:$0xff]  ;;  %v22142_v3 = vpack.i.bf16 %v22140_v23, %v22141_v4  ;;  %v12201_v4 = vld [vmem:[%s21813_s23 + $0x2c0] sm:$0xff] }
 0xed8   : > { %v11538_v35 = vmul.f32 %v11536_v37, %v5853_v63  ;;  %v11540_v30 = vmul.f32 %v11536_v37, %v5855_v44  ;;  %v11542_v26 = vmul.f32 %v11536_v37, %v5857_v36  ;;  %v22131_v14 = vpack.i.bf16 %v22129_v9, %v22130_v16  ;;  %v22133_v63 = vld [vmem:[#allocation62_spill] sm:$0xff]  ;;  %v22143_v36 = vld [vmem:[#allocation64_spill] sm:$0xff] }
 0xed9   : > { %v11079_v24 = vpop.f32.mrf.mxu1  ;;  %v3502_v55 = vadd.f32 %v22133_v63, %v22132_v45  ;;  %v22146_v9 = vld [vmem:[#allocation86_spill] sm:$0xff]  ;;  %v22148_v45 = vld [vmem:[#allocation33_spill] sm:$0xff] }
 0xeda   : > { %v11545_v29 = vadd.f32 %v11538_v35, %v11537_v40  ;;  %v11548_v25 = vadd.f32 %v11540_v30, %v11539_v51  ;;  %v11551_v18 = vadd.f32 %v11542_v26, %v11541_v39  ;;  %v22135_v24 = vld [vmem:[#allocation32_spill] sm:$0xff]  ;;  %v22136_v35 = vld [vmem:[#allocation93_spill] sm:$0xff]  ;;  %v16372_v39 = vpack.i.bf16 %v21281_v19, %v21234_v38 }
 0xedb   : > { %v3835_v44 = vadd.f32 %v22134_v43, %v3502_v55  ;;  %v22137_v30 = vpack.i.bf16 %v22135_v24, %v22136_v35  ;;  %v22138_v40 = vld [vmem:[#allocation69_spill] sm:$0xff]  ;;  %v22149_v55 = vpack.i.bf16 %v21022_v27, %v21024_v54  ;;  %v22150_v43 = vld [vmem:[#allocation75_spill] sm:$0xff]  ;;  %v22151_v24 = vpack.i.bf16 %v21175_v62, %v21155_v20  ;;  %v22157_v62 = vld [vmem:[#allocation42_spill] sm:$0xff] }
 0xedc   : > { %11546 = vadd.xlane.f32.xlu0 %v11545_v29  ;;  %11549 = vadd.xlane.f32.xlu1 %v11548_v25  ;;  %v22144_v26 = vld [vmem:[#allocation73_spill] sm:$0xff]  ;;  %v5858_v38 = vadd.f32 %v22148_v45, %v22150_v43  ;;  %v22153_v27 = vpack.i.bf16 %v20973_v47, %v20975_v60  ;;  %v22154_v54 = vpack.i.bf16 %v21136_v49, %v21114_v0  ;;  %v22156_v20 = vld [vmem:[#allocation43_spill] sm:$0xff] }
 0xedd   : > { %v4167_v25 = vadd.f32 %v22138_v40, %v3835_v44  ;;  %v22161_v47 = vpack.i.bf16 %v20684_v31, %v20686_v56  ;;  %v22163_v60 = vpack.i.bf16 %v21160_v32, %v21140_v6  ;;  %v22166_v31 = vpack.i.bf16 %v21116_v42, %v21098_v28  ;;  %v22168_v0 = vld [vmem:[#allocation47_spill] sm:$0xff]  ;;  %v11650_v28 = vld [vmem:[%s17674_s12 + $0x2c8] sm:$0xff] }
 0xede   : > { %v11543_v44 = vmul.f32 %v11532_v1, %v5858_v38  ;;  %v22158_v1 = vpack.i.bf16 %v22156_v20, %v22157_v62  ;;  %v22167_v56 = vpack.i.bf16 %v20759_v58, %v20765_v33  ;;  %v22169_v49 = vpack.i.bf16 %v20953_v2, %v22168_v0  ;;  %v11651_v58 = vld [vmem:[%s17674_s12 + $0x2d0] sm:$0xff]  ;;  %v11925_v2 = vld [vmem:[%s17669_s4 + $0x2c0] sm:$0xff] }
 0xedf   : > { %v11743_v33 = vadd.f32 1e-05, %v11651_v58  ;;  %v12203_v38 = vld [vmem:[%s21813_s23 + $0x2d0] sm:$0xff]  ;;  %v11928_v58 = vld [vmem:[%s17669_s4 + $0x2d8] sm:$0xff] }
 0xee0   : > { %11552 = vadd.xlane.f32.xlu0 %v11551_v18  ;;  %v22139_v18 = vld [vmem:[#allocation68_spill] sm:$0xff] }
 0xee1   : > { %v4499_v41 = vadd.f32 %v22139_v18, %v4167_v25 }
 0xee3   : > { %v4831_v51 = vadd.f32 %v22143_v36, %v4499_v41 }
 0xee5   : > { %v5163_v29 = vadd.f32 %v22144_v26, %v4831_v51  ;;  %v11927_v26 = vld [vmem:[%s17669_s4 + $0x2d0] sm:$0xff] }
 0xeed   : > { %16348 = vperm.xlu1 %16286, %v22128_v10   ;;  %v5495_v10 = vadd.f32 %v22145_v17, %v5163_v29  ;;  %v12385_v29 = vld [vmem:[%s21814_s28 + $0x2c0] sm:$0xff]  ;;  %v12386_v17 = vld [vmem:[%s21814_s28 + $0x2c8] sm:$0xff] }
 0xeef   : > { %v5827_v16 = vadd.f32 %v22146_v9, %v5495_v10 }
 0xef1   : > { %v5859_v63 = vadd.f32 %v22148_v45, %v5827_v16 }
 0xef3   : > { %v11544_v19 = vmul.f32 %v11536_v37, %v5859_v63 }
 0xef5   : > { %v11554_v35 = vadd.f32 %v11544_v19, %v11543_v44  ;;  %v12387_v44 = vld [vmem:[%s21814_s28 + $0x2d0] sm:$0xff] }
 0xef6   : > { %16343 = vperm.xlu0 %16285, %v22131_v14   ;;  %v22147_v14 = vpack.i.bf16 %v21220_v52, %v21197_v50  ;;  %v22152_v50 = vpack.i.bf16 %v20790_v22, %v20792_v7  ;;  %v22155_v52 = vpack.i.bf16 %v20734_v11, %v20742_v48  ;;  %v22159_v22 = vpack.i.bf16 %v20924_v5, %v20926_v13  ;;  %v17228_v48 = vld [vmem:[%s17679_s22 + $0x4] ss:$24 sps:$4 sm:$0xff]  }
 0xef7   : > { %v22160_v7 = vpack.i.bf16 %v21263_v12, %v21222_v57  ;;  %v22162_v11 = vpack.i.bf16 %v21203_v34, %v21179_v61  ;;  %13058 = vmatprep.mubr.bf16.mxu0 %v17228_v48  ;;  %v22164_v5 = vpack.i.bf16 %v20811_v59, %v20813_v53  ;;  %v22165_v13 = vpack.i.bf16 %v20993_v21, %v20995_v8  ;;  %v22170_v59 = vld [vmem:[#allocation99_spill] sm:$0xff]  ;;  %v22171_v53 = vld [vmem:[#allocation98_spill] sm:$0xff]  ;;  %v22173_v21 = vld [vmem:[#allocation72_spill] sm:$0xff] }
 0xef8   : > { %v22172_v6 = vpack.i.bf16 %v22170_v59, %v22171_v53  ;;  %v22174_v8 = vld [vmem:[#allocation79_spill] sm:$0xff]  ;;  %v11649_v61 = vld [vmem:[%s17674_s12 + $0x2c0] sm:$0xff]  ;;  %v11742_v34 = vadd.f32 1e-05, %v11650_v28  ;;  %v11926_v12 = vld [vmem:[%s17669_s4 + $0x2c8] sm:$0xff] }
 0xef9   : > { %v22175_v32 = vpack.i.bf16 %v22173_v21, %v22174_v8  ;;  %v11741_v42 = vadd.f32 1e-05, %v11649_v61  ;;  %v22176_v48 = vld [vmem:[#allocation78_spill] sm:$0xff]  ;;  %v22181_v59 = vld [vmem:[#allocation37_spill] sm:$0xff]  ;;  %v22184_v8 = vld [vmem:[#allocation48_spill] sm:$0xff] }
 0xefa   : > { %16353 = vperm.xlu0 %16285, %v22137_v30   ;;  %v22183_v21 = vld [vmem:[#allocation50_spill] sm:$0xff] }
 0xefb   : > { %17431 = vrsqrt.f32 %v11741_v42 }
 0xefc   : > { %17433 = vrsqrt.f32 %v11742_v34 }
 0xefd   : > { %17435 = vrsqrt.f32 %v11743_v33 }
 0xefe   : > { %16363 = vperm.xlu0 %16285, %v22142_v3   ;;  %v12202_v3 = vld [vmem:[%s21813_s23 + $0x2c8] sm:$0xff] }
 0xf02   : > { %16373 = vperm.xlu0 %16285, %v16372_v39  }
 0xf06   : > { %16383 = vperm.xlu0 %16285, %v22147_v14  }
 0xf08   : > { %v17432_v30 = vpop.eup %17431 }
 0xf09   : > { %v17434_v18 = vpop.eup %17433 }
 0xf0a   : > { %16393 = vperm.xlu0 %16285, %v22149_v55   ;;  %v17436_v9 = vpop.eup %17435 }
 0xf0e   : > { %16403 = vperm.xlu0 %16285, %v22151_v24  }
 0xf11   : > { %11555 = vadd.xlane.f32.xlu1 %v11554_v35 }
 0xf12   : > { %16413 = vperm.xlu0 %16285, %v22152_v50  }
 0xf16   : > { %16423 = vperm.xlu0 %16285, %v22153_v27  }
 0xf1a   : > { %16433 = vperm.xlu0 %16285, %v22154_v54  }
 0xf1e   : > { %16443 = vperm.xlu0 %16285, %v22155_v52  }
 0xf22   : > { %16358 = vperm.xlu1 %16286, %v22158_v1   ;;  %16448 = vperm.xlu0 %16285, %v22159_v22  }
 0xf26   : > { %16368 = vperm.xlu1 %16286, %v22160_v7   ;;  %16463 = vperm.xlu0 %16285, %v22161_v47  }
 0xf2a   : > { %16378 = vperm.xlu1 %16286, %v22162_v11  }
 0xf2e   : > { %16388 = vperm.xlu1 %16286, %v22163_v60   ;;  %v22177_v60 = vld [vmem:[#allocation100_spill] sm:$0xff] }
 0xf32   : > { %16398 = vperm.xlu1 %16286, %v22164_v5   ;;  %v22178_v5 = vpack.i.bf16 %v22176_v48, %v22177_v60 }
 0xf36   : > { %16408 = vperm.xlu1 %16286, %v22165_v13  }
 0xf3a   : > { %16418 = vperm.xlu1 %16286, %v22166_v31  }
 0xf3e   : > { %16428 = vperm.xlu1 %16286, %v22167_v56   ;;  %v22179_v56 = vpack.i.bf16 %v21347_v15, %v21326_v46  ;;  %v11652_v46 = vld [vmem:[%s17674_s12 + $0x2d8] sm:$0xff] }
 0xf3f   : > { %v11744_v15 = vadd.f32 1e-05, %v11652_v46 }
 0xf41   : > { %17437 = vrsqrt.f32 %v11744_v15 }
 0xf42   : > { %16438 = vperm.xlu1 %16286, %v22169_v49   ;;  %v22180_v49 = vld [vmem:[#allocation97_spill] sm:$0xff] }
 0xf43   : > { %v22182_v53 = vpack.i.bf16 %v22180_v49, %v22181_v59 }
 0xf46   : > { %16453 = vperm.xlu1 %16286, %v22172_v6  }
 0xf4a   : > { %16458 = vperm.xlu1 %16286, %v22175_v32   ;;  %v22185_v32 = vpack.i.bf16 %v22183_v21, %v22184_v8 }
 0xf65   : > { %v11547_v57 = vpop.xlane.xlu0 %11546  ;;  %v11550_v37 = vpop.xlane.xlu1 %11549 }
 0xf66   : > { %v11557_v40 = vmul.f32 0.00390625, %v11547_v57  ;;  %v11558_v25 = vmul.f32 0.00390625, %v11550_v37  ;;  %v17438_v57 = vpop.eup %17437  ;;  %v22186_v37 = vld [vmem:[#allocation122_spill] sm:$0xff] }
 0xf68   : > { %v12017_v41 = vsub.f32 %v11557_v40, %v11925_v2  ;;  %13238 = vst.msk [vmem:[%s18318_s26 + $0x2c0] sm:$0xff] %vm13149_vm3, %v11557_v40  ;;  %v12018_v23 = vsub.f32 %v11558_v25, %v11926_v12  ;;  %13239 = vst.msk [vmem:[%s18318_s26 + $0x2c8] sm:$0xff] %vm13149_vm3, %v11558_v25  ;;  %v16295_v40 = vunpack.i.l.bf16 %v22186_v37 }
 0xf69   : > { %v11553_v36 = vpop.xlane.xlu0 %11552  ;;  %v16349_v43 = vpop.permute.xlu1 %16348 }
 0xf6a   : > { %v12109_v51 = vmul.f32 %v17432_v30, %v12017_v41  ;;  %v12110_v39 = vmul.f32 %v17434_v18, %v12018_v23  ;;  %v11559_v10 = vmul.f32 0.00390625, %v11553_v36  ;;  %v16351_v35 = vunpack.i.h.bf16 %v16349_v43  ;;  %v12204_v41 = vld [vmem:[%s21813_s23 + $0x2d8] sm:$0xff] }
 0xf6b   : > { %v16350_v50 = vunpack.i.l.bf16 %v16349_v43  ;;  %v16296_v30 = vunpack.i.h.bf16 %v22186_v37 }
 0xf6c   : > { %v12293_v16 = vmul.f32 %v12201_v4, %v12109_v51  ;;  %v12294_v14 = vmul.f32 %v12202_v3, %v12110_v39  ;;  %v12019_v45 = vsub.f32 %v11559_v10, %v11927_v26  ;;  %13240 = vst.msk [vmem:[%s18318_s26 + $0x2d0] sm:$0xff] %vm13149_vm3, %v11559_v10  ;;  %v12388_v39 = vld [vmem:[%s21814_s28 + $0x2d8] sm:$0xff] }
 0xf6d   : > { %v12957_v22 = vpack.c.bf16 %v16351_v35, %v16350_v50  ;;  %v17226_v35 = vld [vmem:[%s17679_s22] ss:$24 sps:$4 sm:$0xff]   ;;  %v22188_v50 = vmov 0  }
 0xf6e   : > { %v12477_v63 = vadd.f32 %v12385_v29, %v12293_v16  ;;  %v12478_v55 = vadd.f32 %v12386_v17, %v12294_v14  ;;  %v12111_v19 = vmul.f32 %v17436_v9, %v12019_v45  ;;  %v22187_v17 = vld [vmem:[#allocation127_spill] sm:$0xff]  ;;  %v12948_v16 = vpack.c.bf16 %v16296_v30, %v16295_v40 }
 0xf6f   : > { %v16291_v10 = vunpack.i.h.bf16 %v22187_v17  ;;  %v16290_v9 = vunpack.i.l.bf16 %v22187_v17 }
 0xf70   : > { %13330 = vst.msk [vmem:[%s18353_s2 + $0x2c0] sm:$0xff] %vm13149_vm3, %v12477_v63  ;;  %13331 = vst.msk [vmem:[%s18353_s2 + $0x2c8] sm:$0xff] %vm13149_vm3, %v12478_v55  ;;  %v16477_v24 = vpack.i.bf16 %v12478_v55, %v12477_v63  ;;  %v12295_v27 = vmul.f32 %v12203_v38, %v12111_v19 }
 0xf71   : > { %v16344_v54 = vpop.permute.xlu0 %16343  ;;  %v12947_v38 = vpack.c.bf16 %v16291_v10, %v16290_v9  ;;  %v17234_v9 = vld [vmem:[%s17679_s22 + $0x14] ss:$24 sps:$4 sm:$0xff]  }
 0xf72   : > { %v16346_v52 = vunpack.i.h.bf16 %v16344_v54  ;;  %v16345_v20 = vunpack.i.l.bf16 %v16344_v54  ;;  %16478 = vperm.xlu0 %16285, %v16477_v24   ;;  %v12479_v62 = vadd.f32 %v12387_v44, %v12295_v27 }
 0xf74   : > { %v12950_v1 = vpack.c.bf16 %v16346_v52, %v16345_v20  ;;  %13332 = vst.msk [vmem:[%s18353_s2 + $0x2d0] sm:$0xff] %vm13149_vm3, %v12479_v62 }
 0xf75   : > { %v16354_v7 = vpop.permute.xlu0 %16353 }
 0xf76   : > { %v16356_v47 = vunpack.i.h.bf16 %v16354_v7  ;;  %v16355_v11 = vunpack.i.l.bf16 %v16354_v7  ;;  %16483 = vperm.xlu0 %16285, %v22178_v5   ;;  %15366 = vmatpush3.bf16.msra.mxu0 %v12950_v1  ;;  %v22190_v7 = vld [vmem:[#allocation34_spill] sm:$0xff] }
 0xf77   : > { %15367 = vmatprep.subr.bf16.mxu0 %v12957_v22  ;;  %v22189_v22 = vld [vmem:[#allocation117_spill] sm:$0xff] }
 0xf78   : > { %v12949_v13 = vpack.c.bf16 %v16356_v47, %v16355_v11  ;;  %v22191_v47 = vpack.i.bf16 %v22189_v22, %v22190_v7 }
 0xf79   : > { %v16364_v31 = vpop.permute.xlu0 %16363 }
 0xf7a   : > { %16493 = vperm.xlu0 %16285, %v22179_v56   ;;  %15368 = vmatpush3.bf16.msra.mxu0 %v12949_v13  ;;  %v16366_v25 = vunpack.i.h.bf16 %v16364_v31  ;;  %v16365_v4 = vunpack.i.l.bf16 %v16364_v31  ;;  %v22192_v31 = vld [vmem:[#allocation44_spill] sm:$0xff] }
 0xf7b   : > { %v22193_v56 = vld [vmem:[#allocation96_spill] sm:$0xff] }
 0xf7c   : > { %v12955_v45 = vpack.c.bf16 %v16366_v25, %v16365_v4  ;;  %v22198_v4 = vld [vmem:[#allocation36_spill] sm:$0xff] }
 0xf7d   : > { %v16374_v0 = vpop.permute.xlu0 %16373 }
 0xf7e   : > { %16503 = vperm.xlu0 %16285, %v22182_v53   ;;  %v16376_v27 = vunpack.i.h.bf16 %v16374_v0  ;;  %v16375_v54 = vunpack.i.l.bf16 %v16374_v0  ;;  %v22194_v0 = vpack.i.bf16 %v22192_v31, %v22193_v56 }
 0xf81   : > { %v21501_v6 = vpop.permute.xlu0 %16383 }
 0xf82   : > { %16513 = vperm.xlu0 %16285, %v22185_v32   ;;  %v16386_v59 = vunpack.i.h.bf16 %v21501_v6  ;;  %v16385_v21 = vunpack.i.l.bf16 %v21501_v6 }
 0xf85   : > { %v16394_v61 = vpop.permute.xlu0 %16393 }
 0xf86   : > { %v16396_v28 = vunpack.i.h.bf16 %v16394_v61  ;;  %v16395_v42 = vunpack.i.l.bf16 %v16394_v61 }
 0xf88   : > { %v12978_v34 = vpack.c.bf16 %v16396_v28, %v16395_v42 }
 0xf89   : > { %v21512_v18 = vpop.permute.xlu0 %16403 }
 0xf8a   : > { %15379 = vmatprep.subr.bf16.mxu1 %v12978_v34 }
 0xf8d   : > { %v16414_v55 = vpop.permute.xlu0 %16413 }
 0xf8e   : > { %v16416_v8 = vunpack.i.h.bf16 %v16414_v55  ;;  %v16415_v32 = vunpack.i.l.bf16 %v16414_v55 }
 0xf90   : > { %v12969_v6 = vpack.c.bf16 %v16416_v8, %v16415_v32 }
 0xf91   : > { %v16424_v52 = vpop.permute.xlu0 %16423 }
 0xf92   : > { %v16426_v42 = vunpack.i.h.bf16 %v16424_v52  ;;  %v16425_v34 = vunpack.i.l.bf16 %v16424_v52 }
 0xf95   : > { %v21529_v49 = vpop.permute.xlu0 %16433 }
 0xf96   : > { %v16435_v52 = vunpack.i.l.bf16 %v21529_v49 }
 0xf99   : > { %v16444_v37 = vpop.permute.xlu0 %16443 }
 0xf9a   : > { %v11556_v33 = vpop.xlane.xlu1 %11555  ;;  %v16445_v55 = vunpack.i.l.bf16 %v16444_v37 }
 0xf9b   : > { %v11560_v2 = vmul.f32 0.00390625, %v11556_v33  ;;  %v22196_v33 = vld [vmem:[#allocation46_spill] sm:$0xff] }
 0xf9d   : > { %v12020_v12 = vsub.f32 %v11560_v2, %v11928_v58  ;;  %13241 = vst.msk [vmem:[%s18318_s26 + $0x2d8] sm:$0xff] %vm13149_vm3, %v11560_v2  ;;  %v22195_v58 = vld [vmem:[#allocation45_spill] sm:$0xff]  ;;  %s14854_s26 = sshll.u32 %s22202_s20, 4 }
 0xf9e   : > { %v16359_v23 = vpop.permute.xlu1 %16358  ;;  %v22197_v2 = vpack.i.bf16 %v22195_v58, %v22196_v33 }
 0xf9f   : > { %v12112_v3 = vmul.f32 %v17438_v57, %v12020_v12  ;;  %v16361_v36 = vunpack.i.h.bf16 %v16359_v23  ;;  %v16360_v51 = vunpack.i.l.bf16 %v16359_v23  ;;  %v12983_v12 = vpack.c.bf16 %v16386_v59, %v16385_v21 }
 0xfa0   : > { %v12976_v23 = vpack.c.bf16 %v16426_v42, %v16425_v34 }
 0xfa1   : > { %v12296_v26 = vmul.f32 %v12204_v41, %v12112_v3  ;;  %v12956_v29 = vpack.c.bf16 %v16361_v36, %v16360_v51  ;;  %v17231_v41 = vld [vmem:[%s17679_s22 + $0xc] ss:$24 sps:$4 sm:$0xff]   ;;  %v16406_v51 = vunpack.i.h.bf16 %v21512_v18 }
 0xfa2   : > { %v16369_v14 = vpop.permute.xlu1 %16368  ;;  %v22199_v3 = vld [vmem:[#allocation49_spill] sm:$0xff]  ;;  %13099 = vmatprep.mubr.bf16.mxu1 %v17231_v41 }
 0xfa3   : > { %v12480_v63 = vadd.f32 %v12388_v39, %v12296_v26  ;;  %15369 = vmatprep.subr.bf16.mxu0 %v12956_v29  ;;  %v16371_v19 = vunpack.i.h.bf16 %v16369_v14  ;;  %v16370_v44 = vunpack.i.l.bf16 %v16369_v14  ;;  %v22200_v36 = vpack.i.bf16 %v22198_v4, %v22199_v3 }
 0xfa4   : > { %15370 = vmatpush3.bf16.msra.mxu0 %v12948_v16  ;;  %v16405_v39 = vunpack.i.l.bf16 %v21512_v18  ;;  %v16449_v16 = vpop.permute.xlu0 %16448 }
 0xfa5   : > { %13333 = vst.msk [vmem:[%s18353_s2 + $0x2d8] sm:$0xff] %vm13149_vm3, %v12480_v63  ;;  %15371 = vmatprep.subr.bf16.mxu0 %v12955_v45  ;;  %v16467_v43 = vpack.i.bf16 %v12480_v63, %v12479_v62  ;;  %v12986_v20 = vpack.c.bf16 %v16371_v19, %v16370_v44  ;;  %v12985_v62 = vpack.c.bf16 %v16376_v27, %v16375_v54  ;;  %v16446_v63 = vunpack.i.h.bf16 %v16444_v37  ;;  %s1241_s2 = scalar_lea.vmem %s17694_s15, %s14854_s26 }
 0xfa6   : > { %v16379_v24 = vpop.permute.xlu1 %16378  ;;  %v12981_v14 = vpack.c.bf16 %v16406_v51, %v16405_v39  ;;  %v16451_v19 = vunpack.i.h.bf16 %v16449_v16  ;;  %v16450_v44 = vunpack.i.l.bf16 %v16449_v16  ;;  %v16436_v54 = vunpack.i.h.bf16 %v21529_v49 }
 0xfa7   : > { %16468 = vperm.xlu1 %16286, %v16467_v43   ;;  %v16381_v11 = vunpack.i.h.bf16 %v16379_v24  ;;  %v16380_v48 = vunpack.i.l.bf16 %v16379_v24 }
 0xfa8   : > { %15372 = vmatpush3.bf16.msra.mxu0 %v12947_v38  ;;  %v12974_v7 = vpack.c.bf16 %v16451_v19, %v16450_v44  ;;  %v17232_v44 = vld [vmem:[%s17679_s22 + $0x10] ss:$24 sps:$4 sm:$0xff]  }
 0xfa9   : > { %13108 = vmatprep.subr.bf16.mxu0 %v22188_v50  ;;  %v12984_v61 = vpack.c.bf16 %v16381_v11, %v16380_v48 }
 0xfaa   : > { %v16389_v1 = vpop.permute.xlu1 %16388 }
 0xfab   : > { %16473 = vperm.xlu1 %16286, %v22191_v47   ;;  %13059 = vmatmul.mubr.bf16.vlgmr.msra.gmra.mxu0 %v17226_v35  ;;  %v16391_v30 = vunpack.i.h.bf16 %v16389_v1  ;;  %v16390_v40 = vunpack.i.l.bf16 %v16389_v1  ;;  %v16464_v47 = vpop.permute.xlu0 %16463 }
 0xfac   : > { %13109 = vmatpush1.bf16.msra.mxu0 %v12986_v20  ;;  %14847 = vmatprep.mubr.msk.bf16.mxu0 %vm13022_vm5, %v17234_v9  ;;  %v12967_v20 = vpack.c.bf16 %v16446_v63, %v16445_v55  ;;  %v17229_v55 = vld [vmem:[%s17679_s22 + $0x8] ss:$24 sps:$4 sm:$0xff]  }
 0xfad   : > { %13110 = vmatprep.subr.bf16.mxu0 %v22188_v50  ;;  %v12982_v26 = vpack.c.bf16 %v16391_v30, %v16390_v40 }
 0xfae   : > { %v16399_v60 = vpop.permute.xlu1 %16398 }
 0xfaf   : > { %v16401_v5 = vunpack.i.h.bf16 %v16399_v60  ;;  %v16400_v13 = vunpack.i.l.bf16 %v16399_v60  ;;  %16488 = vperm.xlu1 %16286, %v22194_v0   ;;  %v12979_v60 = vpack.c.bf16 %v16436_v54, %v16435_v52 }
 0xfb0   : > { %13111 = vmatpush1.bf16.msra.mxu0 %v12985_v62 }
 0xfb1   : > { %v12970_v53 = vpack.c.bf16 %v16401_v5, %v16400_v13  ;;  %13112 = vmatprep.subr.bf16.mxu0 %v22188_v50  ;;  %v16466_v5 = vunpack.i.h.bf16 %v16464_v47  ;;  %v16465_v13 = vunpack.i.l.bf16 %v16464_v47 }
 0xfb2   : > { %v16409_v28 = vpop.permute.xlu1 %16408 }
 0xfb3   : > { %v16411_v46 = vunpack.i.h.bf16 %v16409_v28  ;;  %v16410_v15 = vunpack.i.l.bf16 %v16409_v28  ;;  %16498 = vperm.xlu1 %16286, %v22197_v2   ;;  %15380 = vmatpush3.bf16.msra.mxu1 %v12970_v53  ;;  %v12965_v59 = vpack.c.bf16 %v16466_v5, %v16465_v13 }
 0xfb4   : > { %13113 = vmatpush1.bf16.msra.mxu0 %v12984_v61 }
 0xfb5   : > { %v12977_v57 = vpack.c.bf16 %v16411_v46, %v16410_v15  ;;  %13114 = vmatprep.subr.bf16.mxu0 %v22188_v50 }
 0xfb6   : > { %v16419_v25 = vpop.permute.xlu1 %16418 }
 0xfb7   : > { %16508 = vperm.xlu1 %16286, %v22200_v36   ;;  %15381 = vmatprep.subr.bf16.mxu1 %v12977_v57  ;;  %v16421_v18 = vunpack.i.h.bf16 %v16419_v25  ;;  %v16420_v43 = vunpack.i.l.bf16 %v16419_v25 }
 0xfb8   : > { %15382 = vmatpush3.bf16.msra.mxu1 %v12969_v6  ;;  %13115 = vmatpush1.bf16.msra.mxu0 %v12983_v12 }
 0xfb9   : > { %15383 = vmatprep.subr.bf16.mxu1 %v12976_v23  ;;  %13116 = vmatprep.subr.bf16.mxu0 %v22188_v50  ;;  %v12980_v1 = vpack.c.bf16 %v16421_v18, %v16420_v43 }
 0xfba   : > { %v16429_v29 = vpop.permute.xlu1 %16428 }
 0xfbb   : > { %v16431_v17 = vunpack.i.h.bf16 %v16429_v29  ;;  %v16430_v10 = vunpack.i.l.bf16 %v16429_v29 }
 0xfbc   : > { %13117 = vmatpush1.bf16.msra.mxu0 %v12982_v26 }
 0xfbd   : > { %v12968_v45 = vpack.c.bf16 %v16431_v17, %v16430_v10  ;;  %13118 = vmatprep.subr.bf16.mxu0 %v22188_v50 }
 0xfbe   : > { %v16439_v38 = vpop.permute.xlu1 %16438 }
 0xfbf   : > { %v16441_v24 = vunpack.i.h.bf16 %v16439_v38  ;;  %v16440_v35 = vunpack.i.l.bf16 %v16439_v38  ;;  %15384 = vmatpush3.bf16.msra.mxu1 %v12968_v45 }
 0xfc0   : > { %13119 = vmatpush1.bf16.msra.mxu0 %v12981_v14 }
 0xfc1   : > { %v12975_v27 = vpack.c.bf16 %v16441_v24, %v16440_v35  ;;  %13120 = vmatprep.subr.bf16.mxu0 %v22188_v50 }
 0xfc2   : > { %v16454_v22 = vpop.permute.xlu1 %16453 }
 0xfc3   : > { %v16456_v62 = vunpack.i.h.bf16 %v16454_v22  ;;  %v16455_v11 = vunpack.i.l.bf16 %v16454_v22  ;;  %15385 = vmatprep.subr.bf16.mxu1 %v12975_v27 }
 0xfc4   : > { %15386 = vmatpush3.bf16.msra.mxu1 %v12967_v20  ;;  %13121 = vmatpush1.bf16.msra.mxu0 %v12980_v1 }
 0xfc5   : > { %v12966_v48 = vpack.c.bf16 %v16456_v62, %v16455_v11  ;;  %15387 = vmatprep.subr.bf16.mxu1 %v12974_v7  ;;  %13122 = vmatprep.subr.bf16.mxu0 %v22188_v50 }
 0xfc6   : > { %v16459_v31 = vpop.permute.xlu1 %16458 }
 0xfc7   : > { %v16461_v56 = vunpack.i.h.bf16 %v16459_v31  ;;  %v16460_v0 = vunpack.i.l.bf16 %v16459_v31 }
 0xfc8   : > { %15388 = vmatpush3.bf16.msra.mxu1 %v12966_v48  ;;  %13123 = vmatpush1.bf16.msra.mxu0 %v12979_v60 }
 0xfc9   : > { %v12973_v49 = vpack.c.bf16 %v16461_v56, %v16460_v0  ;;  %13128 = vmatprep.subr.bf16.mxu0 %v22188_v50 }
 0xfcb   : > { %15389 = vmatprep.subr.bf16.mxu1 %v12973_v49 }
 0xfcc   : > { %15390 = vmatpush3.bf16.msra.mxu1 %v12965_v59 }
 0xfed   : > { %v16479_v53 = vpop.permute.xlu0 %16478 }
 0xfee   : > { %v16481_v46 = vunpack.i.h.bf16 %v16479_v53  ;;  %v16480_v15 = vunpack.i.l.bf16 %v16479_v53 }
 0xff0   : > { %v12991_v57 = vpack.c.bf16 %v16481_v46, %v16480_v15 }
 0xff1   : > { %v16484_v21 = vpop.permute.xlu0 %16483 }
 0xff2   : > { %v16486_v8 = vunpack.i.h.bf16 %v16484_v21  ;;  %v16485_v32 = vunpack.i.l.bf16 %v16484_v21 }
 0xff4   : > { %v12972_v61 = vpack.c.bf16 %v16486_v8, %v16485_v32 }
 0xff5   : > { %v16494_v58 = vpop.permute.xlu0 %16493 }
 0xff6   : > { %15391 = vmatprep.subr.bf16.mxu1 %v12972_v61  ;;  %v16496_v41 = vunpack.i.h.bf16 %v16494_v58  ;;  %v16495_v23 = vunpack.i.l.bf16 %v16494_v58 }
 0xff8   : > { %v12989_v17 = vpack.c.bf16 %v16496_v41, %v16495_v23 }
 0xff9   : > { %v16504_v30 = vpop.permute.xlu0 %16503 }
 0xffa   : > { %v16506_v36 = vunpack.i.h.bf16 %v16504_v30  ;;  %v16505_v51 = vunpack.i.l.bf16 %v16504_v30 }
 0xffc   : > { %v12963_v9 = vpack.c.bf16 %v16506_v36, %v16505_v51 }
 0xffd   : > { %v16514_v16 = vpop.permute.xlu0 %16513 }
 0xffe   : > { %v16516_v18 = vunpack.i.h.bf16 %v16514_v16  ;;  %v16515_v43 = vunpack.i.l.bf16 %v16514_v16 }
0x1000   : > { %v12987_v19 = vpack.c.bf16 %v16516_v18, %v16515_v43 }
0x1022   : > { %v16469_v28 = vpop.permute.xlu1 %16468 }
0x1023   : > { %v16471_v42 = vunpack.i.h.bf16 %v16469_v28  ;;  %v16470_v34 = vunpack.i.l.bf16 %v16469_v28 }
0x1025   : > { %v12992_v33 = vpack.c.bf16 %v16471_v42, %v16470_v34 }
0x1026   : > { %v16474_v2 = vpop.permute.xlu1 %16473 }
0x1027   : > { %13129 = vmatpush2.bf16.msra.mxu0 %v12992_v33  ;;  %v16476_v12 = vunpack.i.h.bf16 %v16474_v2  ;;  %v16475_v6 = vunpack.i.l.bf16 %v16474_v2 }
0x1028   : > { %13130 = vmatprep.subr.bf16.mxu0 %v22188_v50 }
0x1029   : > { %v12990_v4 = vpack.c.bf16 %v16476_v12, %v16475_v6 }
0x102a   : > { %v16489_v37 = vpop.permute.xlu1 %16488 }
0x102b   : > { %v16491_v40 = vunpack.i.h.bf16 %v16489_v37  ;;  %v16490_v25 = vunpack.i.l.bf16 %v16489_v37  ;;  %13131 = vmatpush2.bf16.msra.mxu0 %v12991_v57 }
0x102c   : > { %13132 = vmatprep.subr.bf16.mxu0 %v22188_v50 }
0x102d   : > { %v12964_v3 = vpack.c.bf16 %v16491_v40, %v16490_v25 }
0x102e   : > { %v16499_v39 = vpop.permute.xlu1 %16498 }
0x102f   : > { %v16501_v26 = vunpack.i.h.bf16 %v16499_v39  ;;  %v16500_v29 = vunpack.i.l.bf16 %v16499_v39  ;;  %15392 = vmatpush3.bf16.msra.mxu1 %v12964_v3  ;;  %13133 = vmatpush2.bf16.msra.mxu0 %v12990_v4 }
0x1030   : > { %13134 = vmatprep.subr.bf16.mxu0 %v22188_v50 }
0x1031   : > { %v12971_v10 = vpack.c.bf16 %v16501_v26, %v16500_v29 }
0x1032   : > { %v16509_v14 = vpop.permute.xlu1 %16508 }
0x1033   : > { %v16511_v45 = vunpack.i.h.bf16 %v16509_v14  ;;  %v16510_v63 = vunpack.i.l.bf16 %v16509_v14  ;;  %15393 = vmatprep.subr.bf16.mxu1 %v12971_v10  ;;  %13135 = vmatpush2.bf16.msra.mxu0 %v12989_v17 }
0x1034   : > { %15394 = vmatpush3.bf16.msra.mxu1 %v12963_v9  ;;  %13136 = vmatprep.subr.bf16.mxu0 %v22188_v50 }
0x1035   : > { %v12988_v38 = vpack.c.bf16 %v16511_v45, %v16510_v63 }
0x1037   : > { %13100 = vmatmul.mubr.bf16.vlgmr.msra.gmra.mxu1 %v17229_v55  ;;  %13137 = vmatpush2.bf16.msra.mxu0 %v12988_v38 }
0x1038   : > { %13138 = vmatprep.subr.bf16.mxu0 %v22188_v50 }
0x103b   : > { %13139 = vmatpush2.bf16.msra.mxu0 %v12987_v19 }
0x103e   : > { %13141 = vmatmul.mubr.bf16.vlgmr.msra.gmra.mxu0 %v17232_v44 }
0x106b   : > { %v15373_v24 = vpop.f32.mrf.mxu0 }
0x106d   : > { %v15374_v35 = vpop.f32.mrf.mxu0 }
0x106e   : > { %v15375_v20 = vadd.f32 %v15374_v35, %v15373_v24 }
0x106f   : > { %v15376_v27 = vpop.f32.mrf.mxu0 }
0x1071   : > { %v15377_v22 = vpop.f32.mrf.mxu0 }
0x1072   : > { %v15378_v11 = vadd.f32 %v15377_v22, %v15376_v27 }
0x10f7   : > { %v15395_v54 = vpop.f32.mrf.mxu1 }
0x10f9   : > { %v15396_v52 = vpop.f32.mrf.mxu1 }
0x10fa   : > { %v15397_v1 = vadd.f32 %v15396_v52, %v15395_v54 }
0x10fb   : > { %v15398_v7 = vpop.f32.mrf.mxu1 }
0x10fc   : > { %v13102_v47 = vadd.f32 %v15397_v1, %v15375_v20 }
0x10fd   : > { %v15399_v62 = vpop.f32.mrf.mxu1 }
0x10fe   : > { %v15400_v48 = vadd.f32 %v15399_v62, %v15398_v7  ;;  %v13142_v50 = vpop.f32.mrf.mxu0 }
0x10ff   : > { %v13143_v60 = vadd.f32 %v13142_v50, %v13102_v47 }
0x1100   : > { %v13144_v5 = vpop.f32.mrf.mxu0  ;;  %v13105_v13 = vadd.f32 %v15400_v48, %v15378_v11 }
0x1101   : > { %13334 = vst.msk [vmem:[%s1241_s2] sm:$0xff] %vm13149_vm3, %v13143_v60 }
0x1102   : > { %v13145_v31 = vpop.f32.mrf.mxu0 }
0x1103   : > { %v13146_v56 = vadd.f32 %v13145_v31, %v13105_v13 }
0x1104   : > { %v13147_v0 = vpop.f32.mrf.mxu0 }
0x1105   : > { %13335 = vst.msk [vmem:[%s1241_s2 + $0x8] sm:$0xff] %vm13149_vm3, %v13146_v56 }
0x1106 PF: > { %s90_s16 = sadd.s32 1, %s17455_s16  }
0x1107   : > { %p87_p4 = scmp.ge.s32.totalorder %s90_s16, 4  }
0x1109   :  { %89 = sbr.rel (!%p87_p4) target bundleno = 67 (0x43), region = 313 }

</bundles_post_ra>
